<compile_context>
chip_gen: v6e
topology: v6e:2x2x1
jax: 0.10.0
libtpu: 0.0.40
codegen_flags: <defaults>
</compile_context>

<pallas_src>
import jax
import jax.numpy as jnp
from jax.experimental import pallas as pl
from jax.experimental.pallas import tpu as pltpu


def _gated_attn_kernel(x_ref, wab_ref, bab_ref, wct_ref, bc_ref, at_ref):
    """One tile of instances.

    x_ref   : [tile_n, L]
    wab_ref : [L, 2D]      (Wa | Wb fused)
    bab_ref : [1, 2D]      (ba | bb fused)
    wct_ref : [T, D]       (Wc transposed)
    bc_ref  : [T, 1]
    at_ref  : [T, tile_n]  (A transposed -> lane-dense stores)
    """
    d = wct_ref.shape[1]
    x = x_ref[...]
    # One MXU pass over x computes both gate pre-activations; f32 accumulate.
    h = (jnp.dot(x, wab_ref[...], preferred_element_type=jnp.float32)
         + bab_ref[...])                                         # [tile_n, 2D]
    # D is a lane-tile multiple in the default config (D=256), so these
    # column slices are free relayouts.
    a = jnp.tanh(h[:, :d])                                       # [tile_n, D]
    # sigmoid via exp + approximate reciprocal (stays on the EUP slot).
    b = pl.reciprocal(1.0 + jnp.exp(-h[:, d:]), approx=True)     # [tile_n, D]
    ab = a * b
    # A^T = Wc^T @ (a*b)^T : contract over D (rhs-transposed matmul form).
    at = jax.lax.dot_general(
        wct_ref[...], ab,
        dimension_numbers=(((1,), (1,)), ((), ())),
        preferred_element_type=jnp.float32)                      # [T, tile_n]
    at_ref[...] = (at + bc_ref[...]).astype(at_ref.dtype)


def _round_up(x, m):
    return ((x + m - 1) // m) * m


def _vmem_need(tile_n, L, D, T, x_itemsize):
    """Rough per-call VMEM requirement (bytes)."""
    x_buf = 2 * tile_n * L * x_itemsize              # x tile, double-buffered
    w_buf = (L * 2 * D + 2 * D + T * D + T) * 4      # weights/bias, single buf
    o_buf = 2 * T * tile_n * 4                       # output, double-buffered
    tmp = 4 * tile_n * 2 * D * 4                     # h / a / b / ab live vals
    return x_buf + w_buf + o_buf + tmp


def _pick_tile_n(N, L, D, T, itemsize, budget=20 << 20):
    """Largest 128-multiple tile that fits a conservative VMEM budget
    (conservative enough for v7x's 64 MiB physical / 32 MiB scoped VMEM)."""
    tile_n = 128
    for cand in (2048, 1024, 512, 256, 128):
        if _vmem_need(cand, L, D, T, itemsize) <= budget:
            tile_n = cand
            break
    # Don't tile past the problem, and prefer >=2 grid steps so the v7x
    # megacore ("parallel" axis) actually uses both TensorCores.
    unit = 128 if N >= 256 else 8
    cap = max(unit, _round_up((N + 1) // 2, unit))
    return min(tile_n, cap)


def attn_net_gated_forward(x, wa, ba, wb, bb, wc, bc, *,
                           tile_n=None, compute_dtype=None):
    """Pallas forward of Attn_Net_Gated. Returns (A, x) like the nn.Module.

    compute_dtype: optionally jnp.bfloat16 to halve HBM traffic of x / Wab
    on v6e/v7x (accumulation stays f32).
    """
    N, L = x.shape
    D = wa.shape[1]
    T = wc.shape[1]

    # Fuse Wa|Wb so both gate projections share one MXU pass over x.
    wab = jnp.concatenate([wa, wb], axis=1)                              # [L, 2D]
    bab = jnp.concatenate([ba.reshape(1, D), bb.reshape(1, D)], axis=1)  # [1, 2D]
    wc_t = jnp.transpose(wc)                                             # [T, D]
    bc_col = bc.reshape(T, 1)                                            # [T, 1]

    x_in = x if compute_dtype is None else x.astype(compute_dtype)
    wab = wab if compute_dtype is None else wab.astype(compute_dtype)

    itemsize = jnp.dtype(x_in.dtype).itemsize
    if tile_n is None:
        tile_n = _pick_tile_n(N, L, D, T, itemsize)
    assert tile_n % 8 == 0, "tile_n must be a multiple of the f32 sublane (8)"

    # Ragged bag sizes: pad the instance axis up to a whole number of tiles.
    n_pad = _round_up(N, tile_n)
    if n_pad != N:
        x_in = jnp.pad(x_in, ((0, n_pad - N), (0, 0)))
    grid = (n_pad // tile_n,)

    vmem_limit = int(min(48 << 20,
                         _vmem_need(tile_n, L, D, T, itemsize) + (16 << 20)))

    def _run(buffered_weights):
        # Constant operands (index_map always (0, 0)) don't need double
        # buffering; single-buffering them frees VMEM for a larger x tile.
        const_kw = ({"pipeline_mode": pl.Buffered(1)}
                    if buffered_weights else {})
        in_specs = [
            pl.BlockSpec((tile_n, L), lambda i: (i, 0)),            # x tile
            pl.BlockSpec((L, 2 * D), lambda i: (0, 0), **const_kw),  # Wa|Wb
            pl.BlockSpec((1, 2 * D), lambda i: (0, 0), **const_kw),  # ba|bb
            pl.BlockSpec((T, D), lambda i: (0, 0), **const_kw),      # Wc^T
            pl.BlockSpec((T, 1), lambda i: (0, 0), **const_kw),      # bc
        ]
        return pl.pallas_call(
            _gated_attn_kernel,
            out_shape=jax.ShapeDtypeStruct((T, n_pad), jnp.float32),
            grid_spec=pltpu.PrefetchScalarGridSpec(
                num_scalar_prefetch=0,
                grid=grid,
                in_specs=in_specs,
                # Transposed output: tile_n (128-multiple) on the lane axis.
                out_specs=pl.BlockSpec((T, tile_n), lambda i: (0, i)),
            ),
            compiler_params=pltpu.CompilerParams(
                dimension_semantics=("parallel",),
                vmem_limit_bytes=vmem_limit,
            ),
        )(x_in, wab, bab, wc_t, bc_col)

    try:
        a_t = _run(buffered_weights=True)
    except Exception:
        # Fallback for jax versions that reject single-buffer pipeline_mode.
        a_t = _run(buffered_weights=False)

    A = jnp.transpose(a_t[:, :N])    # [N, T]
    return A, x


def _init_params(key, L, D, T):
    """Deterministic synthetic parameters (shapes match the nn.Linear layers)."""
    ks = jax.random.split(key, 6)
    scale_a = 1.0 / jnp.sqrt(L)
    scale_c = 1.0 / jnp.sqrt(D)
    wa = jax.random.uniform(ks[0], (L, D), jnp.float32, -scale_a, scale_a)
    ba = jax.random.uniform(ks[1], (1, D), jnp.float32, -scale_a, scale_a)
    wb = jax.random.uniform(ks[2], (L, D), jnp.float32, -scale_a, scale_a)
    bb = jax.random.uniform(ks[3], (1, D), jnp.float32, -scale_a, scale_a)
    wc = jax.random.uniform(ks[4], (D, T), jnp.float32, -scale_c, scale_c)
    bc = jax.random.uniform(ks[5], (1, T), jnp.float32, -scale_c, scale_c)
    return wa, ba, wb, bb, wc, bc


def _reference(x, wa, ba, wb, bb, wc, bc):
    a = jnp.tanh(x @ wa + ba)
    b = jax.nn.sigmoid(x @ wb + bb)
    A = (a * b) @ wc + bc
    return A, x


if __name__ == "__main__":
    # Module default dims (L=1024, D=256, n_tasks=1) with a small bag of
    # N=256 instances -> tile_n=128, grid of 2 (exercises multi-tile path).
    N, L, D, T = 256, 1024, 256, 1

    key = jax.random.PRNGKey(0)
    kx, kp = jax.random.split(key)
    x = jax.random.normal(kx, (N, L), jnp.float32)
    params = _init_params(kp, L, D, T)

    A, x_out = attn_net_gated_forward(x, *params)
    A = jax.block_until_ready(A)
    x_out = jax.block_until_ready(x_out)

    A_ref, x_ref_out = _reference(x, *params)
    assert A.shape == (N, T)
    assert x_out.shape == (N, L)
    # Tolerance loosened vs. exact f32 because sigmoid uses the EUP
    # approximate reciprocal (pl.reciprocal(..., approx=True)).
    assert jnp.allclose(A, A_ref, atol=3e-2, rtol=3e-2), \
        float(jnp.max(jnp.abs(A - A_ref)))
    assert jnp.allclose(x_out, x_ref_out)

    print("KERNEL_OK")
</pallas_src>

<mosaic_0001>
module attributes {stable_mosaic.version = 11 : i64} {
  func.func @_gated_attn_kernel(%arg0: i32, %arg1: memref<128x1024xf32, #tpu.memory_space<vmem>>, %arg2: memref<1024x512xf32, #tpu.memory_space<vmem>>, %arg3: memref<1x512xf32, #tpu.memory_space<vmem>>, %arg4: memref<1x256xf32, #tpu.memory_space<vmem>>, %arg5: memref<1x1xf32, #tpu.memory_space<vmem>>, %arg6: memref<1x128xf32, #tpu.memory_space<vmem>>) attributes {dimension_semantics = [#tpu.dimension_semantics<parallel>], iteration_bounds = array<i64: 2>, scalar_prefetch = 0 : i64, scratch_operands = 0 : i64, tpu.core_type = #tpu.core_type<tc>, window_params = [{transform_indices = @transform_0, window_bounds = array<i64: 128, 1024>}, {pipeline_mode = #tpu.pipeline_mode<synchronous>, transform_indices = @transform_1, window_bounds = array<i64: 1024, 512>}, {pipeline_mode = #tpu.pipeline_mode<synchronous>, transform_indices = @transform_2, window_bounds = array<i64: 1, 512>}, {pipeline_mode = #tpu.pipeline_mode<synchronous>, transform_indices = @transform_3, window_bounds = array<i64: 1, 256>}, {pipeline_mode = #tpu.pipeline_mode<synchronous>, transform_indices = @transform_4, window_bounds = array<i64: 1, 1>}, {transform_indices = @transform_5, window_bounds = array<i64: 1, 128>}]} {
    %c0 = arith.constant 0 : index
    %c0_0 = arith.constant 0 : index
    %0 = vector.load %arg1[%c0, %c0_0] : memref<128x1024xf32, #tpu.memory_space<vmem>>, vector<128x1024xf32>
    %c0_1 = arith.constant 0 : index
    %c0_2 = arith.constant 0 : index
    %1 = vector.load %arg2[%c0_1, %c0_2] : memref<1024x512xf32, #tpu.memory_space<vmem>>, vector<1024x512xf32>
    %cst = arith.constant dense<0.000000e+00> : vector<128x512xf32>
    %2 = tpu.matmul %0, %1, %cst {dimension_numbers = #tpu.dot_dimension_numbers<[1], [0], [0], [1], [0, 0, 1, 1], [], []>} : vector<128x1024xf32>, vector<1024x512xf32>, vector<128x512xf32> -> vector<128x512xf32>
    %c0_3 = arith.constant 0 : index
    %c0_4 = arith.constant 0 : index
    %3 = vector.load %arg3[%c0_3, %c0_4] : memref<1x512xf32, #tpu.memory_space<vmem>>, vector<1x512xf32>
    %4 = vector.broadcast %3 : vector<1x512xf32> to vector<128x512xf32>
    %5 = arith.addf %2, %4 : vector<128x512xf32>
    %6 = vector.extract_strided_slice %5 {offsets = [0, 0], sizes = [128, 256], strides = [1, 1]} : vector<128x512xf32> to vector<128x256xf32>
    %7 = math.tanh %6 : vector<128x256xf32>
    %8 = vector.extract_strided_slice %5 {offsets = [0, 256], sizes = [128, 256], strides = [1, 1]} : vector<128x512xf32> to vector<128x256xf32>
    %cst_5 = arith.constant 0.000000e+00 : f32
    %9 = vector.broadcast %cst_5 : f32 to vector<128x256xf32>
    %10 = arith.subf %9, %8 : vector<128x256xf32>
    %11 = math.exp %10 : vector<128x256xf32>
    %cst_6 = arith.constant 1.000000e+00 : f32
    %12 = vector.broadcast %cst_6 : f32 to vector<128x256xf32>
    %13 = arith.addf %12, %11 : vector<128x256xf32>
    %14 = tpu.reciprocal %13 {approx = true} : vector<128x256xf32> -> vector<128x256xf32>
    %15 = arith.mulf %7, %14 : vector<128x256xf32>
    %c0_7 = arith.constant 0 : index
    %c0_8 = arith.constant 0 : index
    %16 = vector.load %arg4[%c0_7, %c0_8] : memref<1x256xf32, #tpu.memory_space<vmem>>, vector<1x256xf32>
    %cst_9 = arith.constant dense<0.000000e+00> : vector<1x128xf32>
    %17 = tpu.matmul %16, %15, %cst_9 {dimension_numbers = #tpu.dot_dimension_numbers<[1], [1], [0], [0], [0, 0, 1, 0], [], []>} : vector<1x256xf32>, vector<128x256xf32>, vector<1x128xf32> -> vector<1x128xf32>
    %c0_10 = arith.constant 0 : index
    %c0_11 = arith.constant 0 : index
    %18 = vector.load %arg5[%c0_10, %c0_11] : memref<1x1xf32, #tpu.memory_space<vmem>>, vector<1x1xf32>
    %19 = vector.broadcast %18 : vector<1x1xf32> to vector<1x128xf32>
    %20 = arith.addf %17, %19 : vector<1x128xf32>
    %c0_12 = arith.constant 0 : index
    %c0_13 = arith.constant 0 : index
    %21 = vector.load %arg6[%c0_12, %c0_13] : memref<1x128xf32, #tpu.memory_space<vmem>>, vector<1x128xf32>
    tpu.vector_store %arg6[%c0_12, %c0_13], %20 {strides = array<i32>} : memref<1x128xf32, #tpu.memory_space<vmem>>, vector<1x128xf32>,
    return
  }
  func.func @transform_0(%arg0: i32) -> (i32, i32) {
    %c0_i32 = arith.constant 0 : i32
    %c0_i32_0 = arith.constant 0 : i32
    return %arg0, %c0_i32 : i32, i32
  }
  func.func @transform_1(%arg0: i32) -> (i32, i32) {
    %c0_i32 = arith.constant 0 : i32
    %c0_i32_0 = arith.constant 0 : i32
    %c0_i32_1 = arith.constant 0 : i32
    return %c0_i32, %c0_i32_0 : i32, i32
  }
  func.func @transform_2(%arg0: i32) -> (i32, i32) {
    %c0_i32 = arith.constant 0 : i32
    %c0_i32_0 = arith.constant 0 : i32
    %c0_i32_1 = arith.constant 0 : i32
    return %c0_i32, %c0_i32_0 : i32, i32
  }
  func.func @transform_3(%arg0: i32) -> (i32, i32) {
    %c0_i32 = arith.constant 0 : i32
    %c0_i32_0 = arith.constant 0 : i32
    %c0_i32_1 = arith.constant 0 : i32
    return %c0_i32, %c0_i32_0 : i32, i32
  }
  func.func @transform_4(%arg0: i32) -> (i32, i32) {
    %c0_i32 = arith.constant 0 : i32
    %c0_i32_0 = arith.constant 0 : i32
    %c0_i32_1 = arith.constant 0 : i32
    return %c0_i32, %c0_i32_0 : i32, i32
  }
  func.func @transform_5(%arg0: i32) -> (i32, i32) {
    %c0_i32 = arith.constant 0 : i32
    %c0_i32_0 = arith.constant 0 : i32
    return %c0_i32, %arg0 : i32, i32
  }
}

module attributes {stable_mosaic.version = 11 : i64} {
  func.func @_gated_attn_kernel(%arg0: i32, %arg1: memref<128x1024xf32, #tpu.memory_space<vmem>>, %arg2: memref<1024x512xf32, #tpu.memory_space<vmem>>, %arg3: memref<1x512xf32, #tpu.memory_space<vmem>>, %arg4: memref<1x256xf32, #tpu.memory_space<vmem>>, %arg5: memref<1x1xf32, #tpu.memory_space<vmem>>, %arg6: memref<1x128xf32, #tpu.memory_space<vmem>>) attributes {dimension_semantics = [#tpu.dimension_semantics<parallel>], iteration_bounds = array<i64: 2>, scalar_prefetch = 0 : i64, scratch_operands = 0 : i64, tpu.core_type = #tpu.core_type<tc>, window_params = [{transform_indices = @transform_0, window_bounds = array<i64: 128, 1024>}, {pipeline_mode = #tpu.pipeline_mode<synchronous>, transform_indices = @transform_1, window_bounds = array<i64: 1024, 512>}, {pipeline_mode = #tpu.pipeline_mode<synchronous>, transform_indices = @transform_2, window_bounds = array<i64: 1, 512>}, {pipeline_mode = #tpu.pipeline_mode<synchronous>, transform_indices = @transform_3, window_bounds = array<i64: 1, 256>}, {pipeline_mode = #tpu.pipeline_mode<synchronous>, transform_indices = @transform_4, window_bounds = array<i64: 1, 1>}, {transform_indices = @transform_5, window_bounds = array<i64: 1, 128>}]} {
    %c0 = arith.constant 0 : index
    %c0_0 = arith.constant 0 : index
    %0 = vector.load %arg1[%c0, %c0_0] : memref<128x1024xf32, #tpu.memory_space<vmem>>, vector<128x1024xf32>
    %c0_1 = arith.constant 0 : index
    %c0_2 = arith.constant 0 : index
    %1 = vector.load %arg2[%c0_1, %c0_2] : memref<1024x512xf32, #tpu.memory_space<vmem>>, vector<1024x512xf32>
    %cst = arith.constant dense<0.000000e+00> : vector<128x512xf32>
    %2 = tpu.matmul %0, %1, %cst {dimension_numbers = #tpu.dot_dimension_numbers<[1], [0], [0], [1], [0, 0, 1, 1], [], []>} : vector<128x1024xf32>, vector<1024x512xf32>, vector<128x512xf32> -> vector<128x512xf32>
    %c0_3 = arith.constant 0 : index
    %c0_4 = arith.constant 0 : index
    %3 = vector.load %arg3[%c0_3, %c0_4] : memref<1x512xf32, #tpu.memory_space<vmem>>, vector<1x512xf32>
    %4 = vector.broadcast %3 : vector<1x512xf32> to vector<128x512xf32>
    %5 = arith.addf %2, %4 : vector<128x512xf32>
    %6 = vector.extract_strided_slice %5 {offsets = [0, 0], sizes = [128, 256], strides = [1, 1]} : vector<128x512xf32> to vector<128x256xf32>
    %7 = math.tanh %6 : vector<128x256xf32>
    %8 = vector.extract_strided_slice %5 {offsets = [0, 256], sizes = [128, 256], strides = [1, 1]} : vector<128x512xf32> to vector<128x256xf32>
    %cst_5 = arith.constant 0.000000e+00 : f32
    %9 = vector.broadcast %cst_5 : f32 to vector<128x256xf32>
    %10 = arith.subf %9, %8 : vector<128x256xf32>
    %11 = math.exp %10 : vector<128x256xf32>
    %cst_6 = arith.constant 1.000000e+00 : f32
    %12 = vector.broadcast %cst_6 : f32 to vector<128x256xf32>
    %13 = arith.addf %12, %11 : vector<128x256xf32>
    %14 = tpu.reciprocal %13 {approx = true} : vector<128x256xf32> -> vector<128x256xf32>
    %15 = arith.mulf %7, %14 : vector<128x256xf32>
    %c0_7 = arith.constant 0 : index
    %c0_8 = arith.constant 0 : index
    %16 = vector.load %arg4[%c0_7, %c0_8] : memref<1x256xf32, #tpu.memory_space<vmem>>, vector<1x256xf32>
    %cst_9 = arith.constant dense<0.000000e+00> : vector<1x128xf32>
    %17 = tpu.matmul %16, %15, %cst_9 {dimension_numbers = #tpu.dot_dimension_numbers<[1], [1], [0], [0], [0, 0, 1, 0], [], []>} : vector<1x256xf32>, vector<128x256xf32>, vector<1x128xf32> -> vector<1x128xf32>
    %c0_10 = arith.constant 0 : index
    %c0_11 = arith.constant 0 : index
    %18 = vector.load %arg5[%c0_10, %c0_11] : memref<1x1xf32, #tpu.memory_space<vmem>>, vector<1x1xf32>
    %19 = vector.broadcast %18 : vector<1x1xf32> to vector<1x128xf32>
    %20 = arith.addf %17, %19 : vector<1x128xf32>
    %c0_12 = arith.constant 0 : index
    %c0_13 = arith.constant 0 : index
    %21 = vector.load %arg6[%c0_12, %c0_13] : memref<1x128xf32, #tpu.memory_space<vmem>>, vector<1x128xf32>
    tpu.vector_store %arg6[%c0_12, %c0_13], %20 {strides = array<i32>} : memref<1x128xf32, #tpu.memory_space<vmem>>, vector<1x128xf32>,
    return
  }
  func.func @transform_0(%arg0: i32) -> (i32, i32) {
    %c0_i32 = arith.constant 0 : i32
    %c0_i32_0 = arith.constant 0 : i32
    return %arg0, %c0_i32 : i32, i32
  }
  func.func @transform_1(%arg0: i32) -> (i32, i32) {
    %c0_i32 = arith.constant 0 : i32
    %c0_i32_0 = arith.constant 0 : i32
    %c0_i32_1 = arith.constant 0 : i32
    return %c0_i32, %c0_i32_0 : i32, i32
  }
  func.func @transform_2(%arg0: i32) -> (i32, i32) {
    %c0_i32 = arith.constant 0 : i32
    %c0_i32_0 = arith.constant 0 : i32
    %c0_i32_1 = arith.constant 0 : i32
    return %c0_i32, %c0_i32_0 : i32, i32
  }
  func.func @transform_3(%arg0: i32) -> (i32, i32) {
    %c0_i32 = arith.constant 0 : i32
    %c0_i32_0 = arith.constant 0 : i32
    %c0_i32_1 = arith.constant 0 : i32
    return %c0_i32, %c0_i32_0 : i32, i32
  }
  func.func @transform_4(%arg0: i32) -> (i32, i32) {
    %c0_i32 = arith.constant 0 : i32
    %c0_i32_0 = arith.constant 0 : i32
    %c0_i32_1 = arith.constant 0 : i32
    return %c0_i32, %c0_i32_0 : i32, i32
  }
  func.func @transform_5(%arg0: i32) -> (i32, i32) {
    %c0_i32 = arith.constant 0 : i32
    %c0_i32_0 = arith.constant 0 : i32
    return %c0_i32, %arg0 : i32, i32
  }
}

</mosaic_0001>

<bundles_post_ra>
// kernel: tpu_custom_call.1
= control target key start
LH: loop header
LB: loop body
LE: loop exit
PB: predicated region body
PF: predicated region fallthrough
CT: control target
= control target key end

     0   :  { %s4313_s0 = inlined_call_operand.hbm [shape: f32[256,1024], index: 0, kind: input, shape index: {}]   ;;  %s4314_s1 = inlined_call_operand.hbm [shape: f32[1024,512], index: 1, kind: input, shape index: {}]   ;;  %s4315_s2 = inlined_call_operand.hbm [shape: f32[1,512], index: 2, kind: input, shape index: {}]   ;;  %s4316_s3 = inlined_call_operand.hbm [shape: f32[1,256], index: 3, kind: input, shape index: {}]   ;;  %s4317_s4 = inlined_call_operand.<no memory space> [shape: f32[1,1], index: 4, kind: input, shape index: {}]   ;;  %s4318_s5 = inlined_call_operand.hbm [shape: f32[1,256], index: 5, kind: output, shape index: {}]  }
   0x1   :  { %v10_v0 = vstv %s4317_s4 }
   0x2   :  { %11 = vst [vmem:[#allocation2] sm:$0x1] %v10_v0 }
   0x3   :  { %12 = vsyncpa [#allocation4], 0 }
   0x4   :  { %14 = vsyncpa [#allocation4 + $0x1], 0 }
   0x5   :  { %15 = vsyncpa [#allocation7], 0 }
   0x6   :  { %16 = vsyncpa [#allocation10], 0 }
   0x7   :  { %17 = vsyncpa [#allocation5], 0 }
   0x8   :  { %19 = vsyncpa [#allocation5 + $0x1], 0  ;;  %s3308_s20 = smov 0   ;;  %s3310_s21 = smov 0  }
   0x9   :  { %s3312_s22 = smov 0   ;;  %s3314_s23 = smov 0  }
   0xa LB: > { %s3329_s4 = sadd.s32 4294967295, %s3263_s23   ;;  %s2661_s24 = sadd.s32 4294967294, %s3263_s23   ;;  %s3263_s23 = sphi %s3314_s23, %s4373_s23   ;;  %s3259_s22 = sphi %s3312_s22, %s4372_s22   ;;  %s3255_s21 = sphi %s3310_s21, %s4371_s21   ;;  %s3251_s20 = sphi %s3308_s20, %s4370_s20  }
   0xb   : > { %p45_p0 = scmp.ne.s32.totalorder %s3255_s21, %s3251_s20  ;;  %p4319_p1 = scmp.eq.s32.totalorder %s3329_s4, 0 }
   0xc   : > { %p159_p3 = scmp.eq.s32.totalorder %s2661_s24, 1  ;;  %p2662_p5 = scmp.ge.s32.totalorder %s3263_s23, 1 }
   0xd   : > { %p3338_p4 = por %p4319_p1, %p45_p0  ;;  %p166_p7 = scmp.lt.s32.totalorder %s3263_s23, 3 }
   0xe   : > { %p3343_p6 = por %p159_p3, %p45_p0  ;;  %s3265_s28 = smov [#allocation6]  }
   0xf   : > { %s4327_s25 = scalar_select %p3338_p4, 1, 0 }
  0x10   : > { %s4328_s26 = scalar_select %p3343_p6, 1, 0 }
  0x11   : > { %p3348_p8 = pnand %p2662_p5, %p166_p7  ;;  %s178_s29 = sshll.u32 %s3265_s28, 4  ;;  %s179_s29 = int_to_ptr.vmem [resolvable:$true] %s178_s29 }
  0x12   : > { %s3266_s6 = smov [#allocation8]   ;;  %s3267_s8 = smov [#allocation9]  }
  0x13   : > { %s4329_s27 = scalar_select %p3348_p8, 1, 0 }
  0x14   : > { %p2697_p9 = pneg %p3348_p8  ;;  %s192_s7 = sshll.u32 %s3266_s6, 4  ;;  %s193_s7 = int_to_ptr.vmem [resolvable:$true] %s192_s7 }
  0x15   : > { %s203_s9 = sshll.u32 %s3267_s8, 4  ;;  %s3096_s10 = scalar_lea.vmem %s179_s29, 65536  ;;  %s204_s9 = int_to_ptr.vmem [resolvable:$true] %s203_s9 }
  0x16   : > { %p3357_p11 = pnand %p2697_p9, %p4319_p1  ;;  %p3097_p13 = scmp.ne.s32.totalorder %s179_s29, %s3096_s10 }
  0x17   : > { %p3104_p5 = scmp.lt.s32.totalorder %s179_s29, %s179_s29  ;;  %p3105_p7 = scmp.lt.s32.totalorder %s3096_s10, %s3096_s10 }
  0x18   : > { %p3087_p12 = pneg %p3357_p11 }
  0x19   : > { %p3106_p9 = por %p3105_p7, %p3104_p5 }
  0x1a   : > { %p3099_p0 = pnand %p3097_p13, %p3087_p12 }
  0x1c   : > { %p3100_p3 = pneg %p3099_p0 }
  0x1e   : > { %p3107_p10 = pnand %p3106_p9, %p3100_p3 }
  0x20   : > { %3110 = shalt.err (!%p3107_p10)
}
  0x21   : > { %s3268_s11 = smov 512   ;;  %s3269_s12 = smov 32  }
  0x22   : > { %2700 = dma.hbm_to_vmem [thread:$0]  (!%p3357_p11), %s4314_s1, 65536, %s179_s29, [#allocation7], %s3268_s11, %s3268_s11, %s3269_s12  }
  0x23   : > { %s3122_s15 = scalar_lea.vmem %s193_s7, 64  ;;  %p3130_p2 = scmp.lt.s32.totalorder %s193_s7, %s193_s7 }
  0x24   : > { %p3123_p1 = scmp.ne.s32.totalorder %s193_s7, %s3122_s15  ;;  %p3131_p6 = scmp.lt.s32.totalorder %s3122_s15, %s3122_s15 }
  0x26   : > { %p3125_p13 = pnand %p3123_p1, %p3087_p12  ;;  %p3132_p5 = por %p3131_p6, %p3130_p2 }
  0x28   : > { %p3126_p0 = pneg %p3125_p13 }
  0x2a   : > { %p3133_p3 = pnand %p3132_p5, %p3126_p0 }
  0x2c   : > { %3136 = shalt.err (!%p3133_p3)
}
  0x2d   : > { %2703 = dma.hbm_to_vmem [thread:$0]  (!%p3357_p11), %s4315_s2, 64, %s193_s7, [#allocation7]  }
  0x2e   : > { %s3148_s18 = scalar_lea.vmem %s204_s9, 32  ;;  %p3156_p9 = scmp.lt.s32.totalorder %s204_s9, %s204_s9 }
  0x2f   : > { %p3149_p10 = scmp.ne.s32.totalorder %s204_s9, %s3148_s18  ;;  %p3157_p13 = scmp.lt.s32.totalorder %s3148_s18, %s3148_s18 }
  0x31   : > { %p3151_p7 = pnand %p3149_p10, %p3087_p12  ;;  %p3158_p4 = por %p3157_p13, %p3156_p9 }
  0x33   : > { %p3152_p1 = pneg %p3151_p7 }
  0x35   : > { %p3159_p2 = pnand %p3158_p4, %p3152_p1 }
  0x37   : > { %3162 = shalt.err (!%p3159_p2)
}
  0x38   : > { %2706 = dma.hbm_to_vmem [thread:$0]  (!%p3357_p11), %s4316_s3, 32, %s204_s9, [#allocation10]  }
  0x39   : > { %s3388_s28 = sadd.s32 1, %s3263_s23   ;;  %s32_s30 = sadd.s32 1, %s3259_s22 }
  0x3a   : > { %s29_s29 = ssub.s32 %s3263_s23, %s3388_s28  ;;  %p39_p6 = scmp.ne.s32.totalorder %s3259_s22, %s3255_s21 }
  0x3b   : > { %p30_p4 = scmp.eq.s32.totalorder %s29_s29, 0  ;;  %p40_p12 = scmp.eq.s32.totalorder %s3263_s23, 0 }
  0x3c   : > { %p2718_p0 = scmp.lt.s32.totalorder %s3263_s23, 2  ;;  %p4331_p3 = scmp.eq.s32.totalorder %s3329_s4, 1 }
  0x3d   : > { %s3398_s6 = scalar_select %p30_p4, %s3259_s22, %s32_s30  }
  0x3e   : > { %p41_p5 = por %p40_p12, %p39_p6  ;;  %p3402_p10 = por %p4331_p3, %p39_p6 }
  0x3f   : > { %s217_s8 = sand.u32 1, %s3259_s22   ;;  %s2680_s10 = sshll.u32 %s3263_s23, 14 }
  0x40   : > { %s4332_s7 = scalar_select %p3402_p10, 1, 0 }
  0x41   : > { %s2667_s9 = sshll.u32 %s217_s8, 10  ;;  %s3411_s13 = scalar_lea.hbm %s4313_s0, %s2680_s10 }
  0x42   : > { %s221_s14 = scalar_lea.vmem [#allocation3], %s2667_s9  ;;  %p3413_p11 = pnand %p2718_p0, %p41_p5 }
  0x43   : > { %s229_s15 = sshll.u32 %s221_s14, 4  ;;  %s3419_s17 = scalar_lea.sflag [#allocation4], %s217_s8  ;;  %s3417_s15 = int_to_ptr.vmem [resolvable:$true] %s229_s15 }
  0x44   : > { %s3163_s18 = scalar_lea.hbm %s3411_s13, 16384  ;;  %p3165_p1 = pneg %p3413_p11 }
  0x45   : > { %p3164_p7 = scmp.ne.s32.totalorder %s3411_s13, %s3163_s18  ;;  %s3168_s29 = scalar_lea.hbm %s4313_s0, 32768 }
  0x46   : > { %p3169_p2 = scmp.lt.s32.totalorder %s3411_s13, %s4313_s0  ;;  %p3170_p4 = scmp.lt.s32.totalorder %s3168_s29, %s3163_s18 }
  0x47   : > { %p3166_p9 = pnand %p3165_p1, %p3164_p7 }
  0x48   : > { %p3171_p6 = por %p3170_p4, %p3169_p2 }
  0x49   : > { %p3167_p13 = pneg %p3166_p9 }
  0x4b   : > { %p3172_p12 = pnand %p3171_p6, %p3167_p13 }
  0x4d   : > { %3175 = shalt.err (!%p3172_p12)
}
  0x4e   : > { %s3176_s8 = scalar_lea.vmem %s3417_s15, 16384  ;;  %s3270_s9 = smov [#allocation3]  }
  0x4f   : > { %p3177_p0 = scmp.ne.s32.totalorder %s3417_s15, %s3176_s8  ;;  %s3181_s11 = sshll.u32 %s3270_s9, 4  ;;  %s3182_s11 = int_to_ptr.vmem [resolvable:$false] %s3181_s11 }
  0x50   : > { %s3183_s12 = scalar_lea.vmem %s3182_s11, 32768  ;;  %p3184_p7 = scmp.lt.s32.totalorder %s3417_s15, %s3182_s11 }
  0x51   : > { %p3179_p5 = pnand %p3177_p0, %p3165_p1  ;;  %p3185_p9 = scmp.lt.s32.totalorder %s3183_s12, %s3176_s8 }
  0x53   : > { %p3180_p3 = pneg %p3179_p5  ;;  %p3186_p10 = por %p3185_p9, %p3184_p7 }
  0x55   : > { %p3187_p8 = pnand %p3186_p10, %p3180_p3 }
  0x57   : > { %3190 = shalt.err (!%p3187_p8)
}
  0x58   : > { %s3271_s14 = smov 1024   ;;  %s3272_s18 = smov 64  }
  0x59   : > { %2710 = dma.hbm_to_vmem [thread:$0]  (!%p3413_p11), %s3411_s13, 16384, %s3417_s15, %s3419_s17, %s3271_s14, %s3271_s14, %s3272_s18  }
  0x5a   : > { %p4334_p1 = scmp.ne.s32.totalorder %s4329_s27, 0 }
  0x5c   : > { %241 = sbr.rel (%p4334_p1) target bundleno = 1032 (0x408), region = 40 }
  0x61   : > { %s3443_s19 = sand.u32 1, %s3255_s21   ;;  %p4335_p8 = scmp.ne.s32.totalorder %s4327_s25, 0 }
  0x62   : > { %s2672_s24 = sshll.u32 %s3443_s19, 10  ;;  %s244_s29 = scalar_lea.sflag [#allocation4], %s3443_s19 }
  0x63   : > { %s3447_s30 = scalar_lea.vmem [#allocation3], %s2672_s24 }
  0x64   : > { %3234 = dma.done.wait (%p4335_p8), %s244_s29, 16384  }
  0x65   : > { %3236 = vsyncadd (%p4335_p8), %s244_s29, 4294950912  ;;  %p4336_p10 = scmp.eq.s32.totalorder %s3329_s4, 0 }
  0x67   : > { %3238 = dma.done.wait (%p4336_p10), [#allocation7], 65600   ;;  %p4337_p11 = pmov %p4336_p10 }
  0x68   : > { %p4338_p13 = pmov %p4336_p10 }
  0x69   : > { %3240 = vsyncadd (%p4337_p11), [#allocation7], 4294901696 }
  0x6a   : > { %3242 = dma.done.wait (%p4338_p13), [#allocation10], 32   ;;  %p4339_p2 = pmov %p4336_p10 }
  0x6b   : > { %v475_v1 = vld [vmem:[#allocation6 + $0x1e8] sm:$0xff]  ;;  %v474_v3 = vld [vmem:[#allocation6 + $0x1e0] sm:$0xff]  ;;  %s2676_s25 = sshll.u32 %s3329_s4, 4  ;;  %s284_s27 = scalar_lea.vmem [#allocation11], %s3443_s19 }
  0x6c   : > { %3244 = vsyncadd (%p4339_p2), [#allocation10], 4294967264  ;;  %v603_v2 = vld [vmem:[#allocation6 + $0x5e8] sm:$0xff]  ;;  %948 = vmatprep.subr.mxu0 %v475_v1  ;;  %v602_v4 = vld [vmem:[#allocation6 + $0x5e0] sm:$0xff]  ;;  %s2566_s13 = sshll.u32 %s284_s27, 4  ;;  %s4276_s17 = scalar_lea.hbm %s4318_s5, %s2676_s25  ;;  %s2567_s13 = int_to_ptr.vmem [resolvable:$true] %s2566_s13 }
  0x6d   : > { %1109 = vmatprep.subr.mxu1 %v603_v2  ;;  %v471_v5 = vld [vmem:[#allocation6 + $0x1c8] sm:$0xff]  ;;  %949 = vmatpush1.msra.mxu0 %v474_v3  ;;  %v470_v7 = vld [vmem:[#allocation6 + $0x1c0] sm:$0xff]  ;;  %s2554_s10 = scalar_lea.sflag [#allocation5], %s3443_s19  ;;  %s3191_s8 = scalar_lea.vmem %s2567_s13, 16 }
  0x6e   : > { %v599_v6 = vld [vmem:[#allocation6 + $0x5c8] sm:$0xff]  ;;  %1110 = vmatpush1.msra.mxu1 %v602_v4  ;;  %v598_v8 = vld [vmem:[#allocation6 + $0x5c0] sm:$0xff]  ;;  %950 = vmatprep.subr.mxu0 %v471_v5  ;;  %p3192_p4 = scmp.ne.s32.totalorder %s2567_s13, %s3191_s8  ;;  %p4367_p6 = scmp.ne.s32.totalorder %s4332_s7, 0 }
  0x6f   : > { %v467_v9 = vld [vmem:[#allocation6 + $0x1a8] sm:$0xff]  ;;  %1111 = vmatprep.subr.mxu1 %v599_v6  ;;  %v466_v11 = vld [vmem:[#allocation6 + $0x1a0] sm:$0xff]  ;;  %951 = vmatpush1.msra.mxu0 %v470_v7  ;;  %s3274_s9 = smov [#allocation11]  }
  0x70   : > { %v595_v10 = vld [vmem:[#allocation6 + $0x5a8] sm:$0xff]  ;;  %v594_v12 = vld [vmem:[#allocation6 + $0x5a0] sm:$0xff]  ;;  %1112 = vmatpush1.msra.mxu1 %v598_v8  ;;  %952 = vmatprep.subr.mxu0 %v467_v9  ;;  %p3193_p12 = pnand %p3192_p4, %p4367_p6  ;;  %s3195_s4 = sshll.u32 %s3274_s9, 4  ;;  %s3196_s4 = int_to_ptr.vmem [resolvable:$false] %s3195_s4 }
  0x71   : > { %v463_v13 = vld [vmem:[#allocation6 + $0x188] sm:$0xff]  ;;  %1113 = vmatprep.subr.mxu1 %v595_v10  ;;  %v462_v15 = vld [vmem:[#allocation6 + $0x180] sm:$0xff]  ;;  %953 = vmatpush1.msra.mxu0 %v466_v11  ;;  %s3197_s11 = scalar_lea.vmem %s3196_s4, 32  ;;  %p3198_p5 = scmp.lt.s32.totalorder %s2567_s13, %s3196_s4 }
  0x72   : > { %v591_v14 = vld [vmem:[#allocation6 + $0x588] sm:$0xff]  ;;  %v590_v16 = vld [vmem:[#allocation6 + $0x580] sm:$0xff]  ;;  %1114 = vmatpush1.msra.mxu1 %v594_v12  ;;  %954 = vmatprep.subr.mxu0 %v463_v13  ;;  %p3194_p0 = pneg %p3193_p12  ;;  %p3199_p3 = scmp.lt.s32.totalorder %s3197_s11, %s3191_s8 }
  0x73   : > { %v459_v17 = vld [vmem:[#allocation6 + $0x168] sm:$0xff]  ;;  %1115 = vmatprep.subr.mxu1 %v591_v14  ;;  %v458_v19 = vld [vmem:[#allocation6 + $0x160] sm:$0xff]  ;;  %955 = vmatpush1.msra.mxu0 %v462_v15 }
  0x74   : > { %v587_v18 = vld [vmem:[#allocation6 + $0x568] sm:$0xff]  ;;  %v586_v20 = vld [vmem:[#allocation6 + $0x560] sm:$0xff]  ;;  %1116 = vmatpush1.msra.mxu1 %v590_v16  ;;  %956 = vmatprep.subr.mxu0 %v459_v17  ;;  %p3200_p7 = por %p3199_p3, %p3198_p5 }
  0x75   : > { %v455_v21 = vld [vmem:[#allocation6 + $0x148] sm:$0xff]  ;;  %1117 = vmatprep.subr.mxu1 %v587_v18  ;;  %v454_v23 = vld [vmem:[#allocation6 + $0x140] sm:$0xff]  ;;  %957 = vmatpush1.msra.mxu0 %v458_v19 }
  0x76   : > { %v583_v22 = vld [vmem:[#allocation6 + $0x548] sm:$0xff]  ;;  %v582_v24 = vld [vmem:[#allocation6 + $0x540] sm:$0xff]  ;;  %1118 = vmatpush1.msra.mxu1 %v586_v20  ;;  %958 = vmatprep.subr.mxu0 %v455_v21  ;;  %p3201_p9 = pnand %p3200_p7, %p3194_p0 }
  0x77   : > { %v451_v25 = vld [vmem:[#allocation6 + $0x128] sm:$0xff]  ;;  %1119 = vmatprep.subr.mxu1 %v583_v22  ;;  %v450_v27 = vld [vmem:[#allocation6 + $0x120] sm:$0xff]  ;;  %959 = vmatpush1.msra.mxu0 %v454_v23 }
  0x78   : > { %v579_v26 = vld [vmem:[#allocation6 + $0x528] sm:$0xff]  ;;  %v578_v28 = vld [vmem:[#allocation6 + $0x520] sm:$0xff]  ;;  %1120 = vmatpush1.msra.mxu1 %v582_v24  ;;  %960 = vmatprep.subr.mxu0 %v451_v25 }
  0x79   : > { %v447_v29 = vld [vmem:[#allocation6 + $0x108] sm:$0xff]  ;;  %1121 = vmatprep.subr.mxu1 %v579_v26  ;;  %v446_v31 = vld [vmem:[#allocation6 + $0x100] sm:$0xff]  ;;  %961 = vmatpush1.msra.mxu0 %v450_v27 }
  0x7a   : > { %v575_v30 = vld [vmem:[#allocation6 + $0x508] sm:$0xff]  ;;  %v574_v32 = vld [vmem:[#allocation6 + $0x500] sm:$0xff]  ;;  %1122 = vmatpush1.msra.mxu1 %v578_v28  ;;  %962 = vmatprep.subr.mxu0 %v447_v29 }
  0x7b   : > { %v443_v33 = vld [vmem:[#allocation6 + $0xe8] sm:$0xff]  ;;  %1123 = vmatprep.subr.mxu1 %v575_v30  ;;  %v442_v35 = vld [vmem:[#allocation6 + $0xe0] sm:$0xff]  ;;  %963 = vmatpush1.msra.mxu0 %v446_v31 }
  0x7c   : > { %v571_v34 = vld [vmem:[#allocation6 + $0x4e8] sm:$0xff]  ;;  %v570_v36 = vld [vmem:[#allocation6 + $0x4e0] sm:$0xff]  ;;  %1124 = vmatpush1.msra.mxu1 %v574_v32  ;;  %964 = vmatprep.subr.mxu0 %v443_v33 }
  0x7d   : > { %v439_v37 = vld [vmem:[#allocation6 + $0xc8] sm:$0xff]  ;;  %1125 = vmatprep.subr.mxu1 %v571_v34  ;;  %v438_v39 = vld [vmem:[#allocation6 + $0xc0] sm:$0xff]  ;;  %965 = vmatpush1.msra.mxu0 %v442_v35 }
  0x7e   : > { %v567_v38 = vld [vmem:[#allocation6 + $0x4c8] sm:$0xff]  ;;  %v566_v40 = vld [vmem:[#allocation6 + $0x4c0] sm:$0xff]  ;;  %1126 = vmatpush1.msra.mxu1 %v570_v36  ;;  %966 = vmatprep.subr.mxu0 %v439_v37 }
  0x7f   : > { %v435_v41 = vld [vmem:[#allocation6 + $0xa8] sm:$0xff]  ;;  %1127 = vmatprep.subr.mxu1 %v567_v38  ;;  %v434_v43 = vld [vmem:[#allocation6 + $0xa0] sm:$0xff]  ;;  %967 = vmatpush1.msra.mxu0 %v438_v39 }
  0x80   : > { %v563_v42 = vld [vmem:[#allocation6 + $0x4a8] sm:$0xff]  ;;  %v562_v44 = vld [vmem:[#allocation6 + $0x4a0] sm:$0xff]  ;;  %1128 = vmatpush1.msra.mxu1 %v566_v40  ;;  %968 = vmatprep.subr.mxu0 %v435_v41 }
  0x81   : > { %v431_v45 = vld [vmem:[#allocation6 + $0x88] sm:$0xff]  ;;  %1129 = vmatprep.subr.mxu1 %v563_v42  ;;  %v430_v47 = vld [vmem:[#allocation6 + $0x80] sm:$0xff]  ;;  %969 = vmatpush1.msra.mxu0 %v434_v43 }
  0x82   : > { %v559_v46 = vld [vmem:[#allocation6 + $0x488] sm:$0xff]  ;;  %v558_v48 = vld [vmem:[#allocation6 + $0x480] sm:$0xff]  ;;  %1130 = vmatpush1.msra.mxu1 %v562_v44  ;;  %970 = vmatprep.subr.mxu0 %v431_v45 }
  0x83   : > { %v427_v49 = vld [vmem:[#allocation6 + $0x68] sm:$0xff]  ;;  %1131 = vmatprep.subr.mxu1 %v559_v46  ;;  %v426_v51 = vld [vmem:[#allocation6 + $0x60] sm:$0xff]  ;;  %971 = vmatpush1.msra.mxu0 %v430_v47 }
  0x84   : > { %v555_v50 = vld [vmem:[#allocation6 + $0x468] sm:$0xff]  ;;  %v554_v52 = vld [vmem:[#allocation6 + $0x460] sm:$0xff]  ;;  %1132 = vmatpush1.msra.mxu1 %v558_v48  ;;  %972 = vmatprep.subr.mxu0 %v427_v49 }
  0x85   : > { %v423_v53 = vld [vmem:[#allocation6 + $0x48] sm:$0xff]  ;;  %1133 = vmatprep.subr.mxu1 %v555_v50  ;;  %v422_v55 = vld [vmem:[#allocation6 + $0x40] sm:$0xff]  ;;  %973 = vmatpush1.msra.mxu0 %v426_v51 }
  0x86   : > { %v551_v54 = vld [vmem:[#allocation6 + $0x448] sm:$0xff]  ;;  %v550_v56 = vld [vmem:[#allocation6 + $0x440] sm:$0xff]  ;;  %1134 = vmatpush1.msra.mxu1 %v554_v52  ;;  %974 = vmatprep.subr.mxu0 %v423_v53 }
  0x87   : > { %v419_v57 = vld [vmem:[#allocation6 + $0x28] sm:$0xff]  ;;  %1135 = vmatprep.subr.mxu1 %v551_v54  ;;  %v418_v59 = vld [vmem:[#allocation6 + $0x20] sm:$0xff]  ;;  %975 = vmatpush1.msra.mxu0 %v422_v55 }
  0x88   : > { %v547_v58 = vld [vmem:[#allocation6 + $0x428] sm:$0xff]  ;;  %v546_v60 = vld [vmem:[#allocation6 + $0x420] sm:$0xff]  ;;  %1136 = vmatpush1.msra.mxu1 %v550_v56  ;;  %976 = vmatprep.subr.mxu0 %v419_v57 }
  0x89   : > { %v415_v61 = vld [vmem:[#allocation6 + $0x8] sm:$0xff]  ;;  %1137 = vmatprep.subr.mxu1 %v547_v58  ;;  %v414_v63 = vld [vmem:[#allocation6] sm:$0xff]  ;;  %977 = vmatpush1.msra.mxu0 %v418_v59 }
  0x8a   : > { %v543_v62 = vld [vmem:[#allocation6 + $0x408] sm:$0xff]  ;;  %v542_v0 = vld [vmem:[#allocation6 + $0x400] sm:$0xff]  ;;  %1138 = vmatpush1.msra.mxu1 %v546_v60  ;;  %978 = vmatprep.subr.mxu0 %v415_v61 }
  0x8b   : > { %v539_v1 = vld [vmem:[#allocation6 + $0x3e8] sm:$0xff]  ;;  %1139 = vmatprep.subr.mxu1 %v543_v62  ;;  %v538_v3 = vld [vmem:[#allocation6 + $0x3e0] sm:$0xff]  ;;  %979 = vmatpush1.msra.mxu0 %v414_v63 }
  0x8c   : > { %v667_v2 = vld [vmem:[#allocation6 + $0x7e8] sm:$0xff]  ;;  %v666_v4 = vld [vmem:[#allocation6 + $0x7e0] sm:$0xff]  ;;  %1140 = vmatpush1.msra.mxu1 %v542_v0  ;;  %980 = vmatprep.subr.mxu0 %v539_v1 }
  0x8d   : > { %v535_v5 = vld [vmem:[#allocation6 + $0x3c8] sm:$0xff]  ;;  %1141 = vmatprep.subr.mxu1 %v667_v2  ;;  %v534_v7 = vld [vmem:[#allocation6 + $0x3c0] sm:$0xff]  ;;  %981 = vmatpush2.msra.mxu0 %v538_v3  ;;  %v289_v2 = vld [vmem:[%s3447_s30 + $0x18] sm:$0xff] }
  0x8e   : > { %v663_v6 = vld [vmem:[#allocation6 + $0x7c8] sm:$0xff]  ;;  %v662_v8 = vld [vmem:[#allocation6 + $0x7c0] sm:$0xff]  ;;  %1142 = vmatpush2.msra.mxu1 %v666_v4  ;;  %982 = vmatprep.subr.mxu0 %v535_v5  ;;  %v288_v4 = vld [vmem:[%s3447_s30 + $0x10] sm:$0xff] }
  0x8f   : > { %v531_v9 = vld [vmem:[#allocation6 + $0x3a8] sm:$0xff]  ;;  %1143 = vmatprep.subr.mxu1 %v663_v6  ;;  %v530_v11 = vld [vmem:[#allocation6 + $0x3a0] sm:$0xff]  ;;  %983 = vmatpush2.msra.mxu0 %v534_v7 }
  0x90   : > { %v659_v10 = vld [vmem:[#allocation6 + $0x7a8] sm:$0xff]  ;;  %v658_v12 = vld [vmem:[#allocation6 + $0x7a0] sm:$0xff]  ;;  %1144 = vmatpush2.msra.mxu1 %v662_v8  ;;  %984 = vmatprep.subr.mxu0 %v531_v9 }
  0x91   : > { %v527_v13 = vld [vmem:[#allocation6 + $0x388] sm:$0xff]  ;;  %1145 = vmatprep.subr.mxu1 %v659_v10  ;;  %v526_v15 = vld [vmem:[#allocation6 + $0x380] sm:$0xff]  ;;  %985 = vmatpush2.msra.mxu0 %v530_v11 }
  0x92   : > { %v655_v14 = vld [vmem:[#allocation6 + $0x788] sm:$0xff]  ;;  %v654_v16 = vld [vmem:[#allocation6 + $0x780] sm:$0xff]  ;;  %1146 = vmatpush2.msra.mxu1 %v658_v12  ;;  %986 = vmatprep.subr.mxu0 %v527_v13  ;;  %v297_v12 = vld [vmem:[%s3447_s30 + $0x58] sm:$0xff] }
  0x93   : > { %v523_v17 = vld [vmem:[#allocation6 + $0x368] sm:$0xff]  ;;  %1147 = vmatprep.subr.mxu1 %v655_v14  ;;  %v522_v19 = vld [vmem:[#allocation6 + $0x360] sm:$0xff]  ;;  %987 = vmatpush2.msra.mxu0 %v526_v15 }
  0x94   : > { %v651_v18 = vld [vmem:[#allocation6 + $0x768] sm:$0xff]  ;;  %v650_v20 = vld [vmem:[#allocation6 + $0x760] sm:$0xff]  ;;  %1148 = vmatpush2.msra.mxu1 %v654_v16  ;;  %988 = vmatprep.subr.mxu0 %v523_v17  ;;  %v296_v16 = vld [vmem:[%s3447_s30 + $0x50] sm:$0xff] }
  0x95   : > { %v519_v21 = vld [vmem:[#allocation6 + $0x348] sm:$0xff]  ;;  %1149 = vmatprep.subr.mxu1 %v651_v18  ;;  %v518_v23 = vld [vmem:[#allocation6 + $0x340] sm:$0xff]  ;;  %989 = vmatpush2.msra.mxu0 %v522_v19 }
  0x96   : > { %v647_v22 = vld [vmem:[#allocation6 + $0x748] sm:$0xff]  ;;  %v646_v24 = vld [vmem:[#allocation6 + $0x740] sm:$0xff]  ;;  %1150 = vmatpush2.msra.mxu1 %v650_v20  ;;  %990 = vmatprep.subr.mxu0 %v519_v21 }
  0x97   : > { %v515_v25 = vld [vmem:[#allocation6 + $0x328] sm:$0xff]  ;;  %1151 = vmatprep.subr.mxu1 %v647_v22  ;;  %v514_v27 = vld [vmem:[#allocation6 + $0x320] sm:$0xff]  ;;  %991 = vmatpush2.msra.mxu0 %v518_v23 }
  0x98   : > { %v643_v26 = vld [vmem:[#allocation6 + $0x728] sm:$0xff]  ;;  %v642_v28 = vld [vmem:[#allocation6 + $0x720] sm:$0xff]  ;;  %1152 = vmatpush2.msra.mxu1 %v646_v24  ;;  %992 = vmatprep.subr.mxu0 %v515_v25  ;;  %v305_v24 = vld [vmem:[%s3447_s30 + $0x98] sm:$0xff] }
  0x99   : > { %v511_v29 = vld [vmem:[#allocation6 + $0x308] sm:$0xff]  ;;  %1153 = vmatprep.subr.mxu1 %v643_v26  ;;  %v510_v31 = vld [vmem:[#allocation6 + $0x300] sm:$0xff]  ;;  %993 = vmatpush2.msra.mxu0 %v514_v27 }
  0x9a   : > { %v639_v30 = vld [vmem:[#allocation6 + $0x708] sm:$0xff]  ;;  %v638_v32 = vld [vmem:[#allocation6 + $0x700] sm:$0xff]  ;;  %1154 = vmatpush2.msra.mxu1 %v642_v28  ;;  %994 = vmatprep.subr.mxu0 %v511_v29  ;;  %v304_v28 = vld [vmem:[%s3447_s30 + $0x90] sm:$0xff] }
  0x9b   : > { %v507_v33 = vld [vmem:[#allocation6 + $0x2e8] sm:$0xff]  ;;  %1155 = vmatprep.subr.mxu1 %v639_v30  ;;  %v506_v35 = vld [vmem:[#allocation6 + $0x2e0] sm:$0xff]  ;;  %995 = vmatpush2.msra.mxu0 %v510_v31 }
  0x9c   : > { %v635_v34 = vld [vmem:[#allocation6 + $0x6e8] sm:$0xff]  ;;  %v634_v36 = vld [vmem:[#allocation6 + $0x6e0] sm:$0xff]  ;;  %1156 = vmatpush2.msra.mxu1 %v638_v32  ;;  %996 = vmatprep.subr.mxu0 %v507_v33 }
  0x9d   : > { %v503_v37 = vld [vmem:[#allocation6 + $0x2c8] sm:$0xff]  ;;  %1157 = vmatprep.subr.mxu1 %v635_v34  ;;  %v502_v39 = vld [vmem:[#allocation6 + $0x2c0] sm:$0xff]  ;;  %997 = vmatpush2.msra.mxu0 %v506_v35 }
  0x9e   : > { %v631_v38 = vld [vmem:[#allocation6 + $0x6c8] sm:$0xff]  ;;  %v630_v40 = vld [vmem:[#allocation6 + $0x6c0] sm:$0xff]  ;;  %1158 = vmatpush2.msra.mxu1 %v634_v36  ;;  %998 = vmatprep.subr.mxu0 %v503_v37  ;;  %v313_v36 = vld [vmem:[%s3447_s30 + $0xd8] sm:$0xff] }
  0x9f   : > { %v499_v41 = vld [vmem:[#allocation6 + $0x2a8] sm:$0xff]  ;;  %1159 = vmatprep.subr.mxu1 %v631_v38  ;;  %v498_v43 = vld [vmem:[#allocation6 + $0x2a0] sm:$0xff]  ;;  %999 = vmatpush2.msra.mxu0 %v502_v39 }
  0xa0   : > { %v627_v42 = vld [vmem:[#allocation6 + $0x6a8] sm:$0xff]  ;;  %v626_v44 = vld [vmem:[#allocation6 + $0x6a0] sm:$0xff]  ;;  %1160 = vmatpush2.msra.mxu1 %v630_v40  ;;  %1000 = vmatprep.subr.mxu0 %v499_v41  ;;  %v312_v40 = vld [vmem:[%s3447_s30 + $0xd0] sm:$0xff] }
  0xa1   : > { %v495_v45 = vld [vmem:[#allocation6 + $0x288] sm:$0xff]  ;;  %1161 = vmatprep.subr.mxu1 %v627_v42  ;;  %v494_v47 = vld [vmem:[#allocation6 + $0x280] sm:$0xff]  ;;  %1001 = vmatpush2.msra.mxu0 %v498_v43 }
  0xa2   : > { %v623_v46 = vld [vmem:[#allocation6 + $0x688] sm:$0xff]  ;;  %v622_v48 = vld [vmem:[#allocation6 + $0x680] sm:$0xff]  ;;  %1162 = vmatpush2.msra.mxu1 %v626_v44  ;;  %1002 = vmatprep.subr.mxu0 %v495_v45 }
  0xa3   : > { %v491_v49 = vld [vmem:[#allocation6 + $0x268] sm:$0xff]  ;;  %1163 = vmatprep.subr.mxu1 %v623_v46  ;;  %v490_v51 = vld [vmem:[#allocation6 + $0x260] sm:$0xff]  ;;  %1003 = vmatpush2.msra.mxu0 %v494_v47 }
  0xa4   : > { %v619_v50 = vld [vmem:[#allocation6 + $0x668] sm:$0xff]  ;;  %v618_v52 = vld [vmem:[#allocation6 + $0x660] sm:$0xff]  ;;  %1164 = vmatpush2.msra.mxu1 %v622_v48  ;;  %1004 = vmatprep.subr.mxu0 %v491_v49  ;;  %v321_v48 = vld [vmem:[%s3447_s30 + $0x118] sm:$0xff] }
  0xa5   : > { %v487_v53 = vld [vmem:[#allocation6 + $0x248] sm:$0xff]  ;;  %1165 = vmatprep.subr.mxu1 %v619_v50  ;;  %v486_v55 = vld [vmem:[#allocation6 + $0x240] sm:$0xff]  ;;  %1005 = vmatpush2.msra.mxu0 %v490_v51 }
  0xa6   : > { %v615_v54 = vld [vmem:[#allocation6 + $0x648] sm:$0xff]  ;;  %v614_v56 = vld [vmem:[#allocation6 + $0x640] sm:$0xff]  ;;  %1166 = vmatpush2.msra.mxu1 %v618_v52  ;;  %1006 = vmatprep.subr.mxu0 %v487_v53  ;;  %v320_v52 = vld [vmem:[%s3447_s30 + $0x110] sm:$0xff] }
  0xa7   : > { %v483_v57 = vld [vmem:[#allocation6 + $0x228] sm:$0xff]  ;;  %1167 = vmatprep.subr.mxu1 %v615_v54  ;;  %v482_v59 = vld [vmem:[#allocation6 + $0x220] sm:$0xff]  ;;  %1007 = vmatpush2.msra.mxu0 %v486_v55 }
  0xa8   : > { %v611_v58 = vld [vmem:[#allocation6 + $0x628] sm:$0xff]  ;;  %v610_v60 = vld [vmem:[#allocation6 + $0x620] sm:$0xff]  ;;  %1168 = vmatpush2.msra.mxu1 %v614_v56  ;;  %1008 = vmatprep.subr.mxu0 %v483_v57 }
  0xa9   : > { %v479_v61 = vld [vmem:[#allocation6 + $0x208] sm:$0xff]  ;;  %1169 = vmatprep.subr.mxu1 %v611_v58  ;;  %v478_v63 = vld [vmem:[#allocation6 + $0x200] sm:$0xff]  ;;  %1009 = vmatpush2.msra.mxu0 %v482_v59 }
  0xaa   : > { %v607_v62 = vld [vmem:[#allocation6 + $0x608] sm:$0xff]  ;;  %1170 = vmatpush2.msra.mxu1 %v610_v60  ;;  %v606_v1 = vld [vmem:[#allocation6 + $0x600] sm:$0xff]  ;;  %1010 = vmatprep.subr.mxu0 %v479_v61  ;;  %v329_v60 = vld [vmem:[%s3447_s30 + $0x158] sm:$0xff] }
  0xab   : > { %v287_v0 = vld [vmem:[%s3447_s30 + $0x8] sm:$0xff]  ;;  %1171 = vmatprep.subr.mxu1 %v607_v62  ;;  %v286_v3 = vld [vmem:[%s3447_s30] sm:$0xff]  ;;  %1011 = vmatpush2.msra.mxu0 %v478_v63 }
  0xac   : > { %1012 = vmatprep.mubr.f32.mxu0 %v287_v0  ;;  %v731_v5 = vld [vmem:[#allocation6 + $0x9e8] sm:$0xff]  ;;  %1172 = vmatpush2.msra.mxu1 %v606_v1  ;;  %v730_v7 = vld [vmem:[#allocation6 + $0x9e0] sm:$0xff]  ;;  %v328_v0 = vld [vmem:[%s3447_s30 + $0x150] sm:$0xff] }
  0xad   : > { %v859_v6 = vld [vmem:[#allocation6 + $0xde8] sm:$0xff]  ;;  %1173 = vmatprep.mubr.f32.mxu1 %v289_v2  ;;  %v858_v8 = vld [vmem:[#allocation6 + $0xde0] sm:$0xff]  ;;  %1013 = vmatmul.mubr.f32.vlgmr.msra.gmra.mxu0 %v286_v3 }
  0xae   : > { %1174 = vmatmul.mubr.f32.vlgmr.msra.gmra.mxu1 %v288_v4  ;;  %v727_v9 = vld [vmem:[#allocation6 + $0x9c8] sm:$0xff]  ;;  %1270 = vmatprep.subr.mxu0 %v731_v5  ;;  %v726_v13 = vld [vmem:[#allocation6 + $0x9c0] sm:$0xff] }
  0xaf   : > { %v855_v10 = vld [vmem:[#allocation6 + $0xdc8] sm:$0xff]  ;;  %1431 = vmatprep.subr.mxu1 %v859_v6  ;;  %1271 = vmatpush1.msra.mxu0 %v730_v7  ;;  %v854_v14 = vld [vmem:[#allocation6 + $0xdc0] sm:$0xff] }
  0xb0   : > { %v295_v11 = vld [vmem:[%s3447_s30 + $0x48] sm:$0xff]  ;;  %1432 = vmatpush1.msra.mxu1 %v858_v8  ;;  %1272 = vmatprep.subr.mxu0 %v727_v9  ;;  %v294_v15 = vld [vmem:[%s3447_s30 + $0x40] sm:$0xff]  ;;  %v337_v8 = vld [vmem:[%s3447_s30 + $0x198] sm:$0xff] }
  0xb1   : > { %1433 = vmatprep.subr.mxu1 %v855_v10  ;;  %1018 = vmatprep.mubr.f32.mxu0 %v295_v11  ;;  %v723_v17 = vld [vmem:[#allocation6 + $0x9a8] sm:$0xff]  ;;  %v722_v19 = vld [vmem:[#allocation6 + $0x9a0] sm:$0xff] }
  0xb2   : > { %1179 = vmatprep.mubr.f32.mxu1 %v297_v12  ;;  %v851_v18 = vld [vmem:[#allocation6 + $0xda8] sm:$0xff]  ;;  %1273 = vmatpush1.msra.mxu0 %v726_v13  ;;  %v850_v20 = vld [vmem:[#allocation6 + $0xda0] sm:$0xff]  ;;  %v336_v12 = vld [vmem:[%s3447_s30 + $0x190] sm:$0xff] }
  0xb3   : > { %1434 = vmatpush1.msra.mxu1 %v854_v14  ;;  %1019 = vmatmul.mubr.f32.gmra.mxu0 %v294_v15  ;;  %v719_v21 = vld [vmem:[#allocation6 + $0x988] sm:$0xff]  ;;  %v718_v25 = vld [vmem:[#allocation6 + $0x980] sm:$0xff] }
  0xb4   : > { %1180 = vmatmul.mubr.f32.gmra.mxu1 %v296_v16  ;;  %v847_v22 = vld [vmem:[#allocation6 + $0xd88] sm:$0xff]  ;;  %1274 = vmatprep.subr.mxu0 %v723_v17  ;;  %v846_v26 = vld [vmem:[#allocation6 + $0xd80] sm:$0xff] }
  0xb5   : > { %1435 = vmatprep.subr.mxu1 %v851_v18  ;;  %v303_v23 = vld [vmem:[%s3447_s30 + $0x88] sm:$0xff]  ;;  %1275 = vmatpush1.msra.mxu0 %v722_v19  ;;  %v302_v27 = vld [vmem:[%s3447_s30 + $0x80] sm:$0xff] }
  0xb6   : > { %1436 = vmatpush1.msra.mxu1 %v850_v20  ;;  %1276 = vmatprep.subr.mxu0 %v719_v21  ;;  %v715_v29 = vld [vmem:[#allocation6 + $0x968] sm:$0xff]  ;;  %v714_v31 = vld [vmem:[#allocation6 + $0x960] sm:$0xff]  ;;  %v345_v20 = vld [vmem:[%s3447_s30 + $0x1d8] sm:$0xff] }
  0xb7   : > { %1437 = vmatprep.subr.mxu1 %v847_v22  ;;  %1024 = vmatprep.mubr.f32.mxu0 %v303_v23  ;;  %v843_v30 = vld [vmem:[#allocation6 + $0xd68] sm:$0xff]  ;;  %v842_v32 = vld [vmem:[#allocation6 + $0xd60] sm:$0xff] }
  0xb8   : > { %1185 = vmatprep.mubr.f32.mxu1 %v305_v24  ;;  %1277 = vmatpush1.msra.mxu0 %v718_v25  ;;  %v711_v33 = vld [vmem:[#allocation6 + $0x948] sm:$0xff]  ;;  %v710_v37 = vld [vmem:[#allocation6 + $0x940] sm:$0xff]  ;;  %v344_v24 = vld [vmem:[%s3447_s30 + $0x1d0] sm:$0xff] }
  0xb9   : > { %1438 = vmatpush1.msra.mxu1 %v846_v26  ;;  %1025 = vmatmul.mubr.f32.gmra.mxu0 %v302_v27  ;;  %v839_v34 = vld [vmem:[#allocation6 + $0xd48] sm:$0xff]  ;;  %v838_v38 = vld [vmem:[#allocation6 + $0xd40] sm:$0xff] }
  0xba   : > { %1186 = vmatmul.mubr.f32.gmra.mxu1 %v304_v28  ;;  %1278 = vmatprep.subr.mxu0 %v715_v29  ;;  %v311_v35 = vld [vmem:[%s3447_s30 + $0xc8] sm:$0xff]  ;;  %v310_v39 = vld [vmem:[%s3447_s30 + $0xc0] sm:$0xff] }
  0xbb   : > { %1439 = vmatprep.subr.mxu1 %v843_v30  ;;  %1279 = vmatpush1.msra.mxu0 %v714_v31  ;;  %v707_v41 = vld [vmem:[#allocation6 + $0x928] sm:$0xff]  ;;  %v706_v43 = vld [vmem:[#allocation6 + $0x920] sm:$0xff] }
  0xbc   : > { %1440 = vmatpush1.msra.mxu1 %v842_v32  ;;  %1280 = vmatprep.subr.mxu0 %v711_v33  ;;  %v835_v42 = vld [vmem:[#allocation6 + $0xd28] sm:$0xff]  ;;  %v834_v44 = vld [vmem:[#allocation6 + $0xd20] sm:$0xff]  ;;  %v353_v32 = vld [vmem:[%s3447_s30 + $0x218] sm:$0xff] }
  0xbd   : > { %1441 = vmatprep.subr.mxu1 %v839_v34  ;;  %1030 = vmatprep.mubr.f32.mxu0 %v311_v35  ;;  %v703_v45 = vld [vmem:[#allocation6 + $0x908] sm:$0xff]  ;;  %v702_v49 = vld [vmem:[#allocation6 + $0x900] sm:$0xff] }
  0xbe   : > { %1191 = vmatprep.mubr.f32.mxu1 %v313_v36  ;;  %1281 = vmatpush1.msra.mxu0 %v710_v37  ;;  %v831_v46 = vld [vmem:[#allocation6 + $0xd08] sm:$0xff]  ;;  %v830_v50 = vld [vmem:[#allocation6 + $0xd00] sm:$0xff]  ;;  %v352_v36 = vld [vmem:[%s3447_s30 + $0x210] sm:$0xff] }
  0xbf   : > { %1442 = vmatpush1.msra.mxu1 %v838_v38  ;;  %1031 = vmatmul.mubr.f32.gmra.mxu0 %v310_v39  ;;  %v319_v47 = vld [vmem:[%s3447_s30 + $0x108] sm:$0xff]  ;;  %v318_v51 = vld [vmem:[%s3447_s30 + $0x100] sm:$0xff] }
  0xc0   : > { %1192 = vmatmul.mubr.f32.gmra.mxu1 %v312_v40  ;;  %1282 = vmatprep.subr.mxu0 %v707_v41  ;;  %v699_v53 = vld [vmem:[#allocation6 + $0x8e8] sm:$0xff]  ;;  %v698_v55 = vld [vmem:[#allocation6 + $0x8e0] sm:$0xff] }
  0xc1   : > { %1443 = vmatprep.subr.mxu1 %v835_v42  ;;  %1283 = vmatpush1.msra.mxu0 %v706_v43  ;;  %v827_v54 = vld [vmem:[#allocation6 + $0xce8] sm:$0xff]  ;;  %v826_v56 = vld [vmem:[#allocation6 + $0xce0] sm:$0xff] }
  0xc2   : > { %1444 = vmatpush1.msra.mxu1 %v834_v44  ;;  %1284 = vmatprep.subr.mxu0 %v703_v45  ;;  %v695_v57 = vld [vmem:[#allocation6 + $0x8c8] sm:$0xff]  ;;  %v694_v61 = vld [vmem:[#allocation6 + $0x8c0] sm:$0xff]  ;;  %v361_v44 = vld [vmem:[%s3447_s30 + $0x258] sm:$0xff] }
  0xc3   : > { %1445 = vmatprep.subr.mxu1 %v831_v46  ;;  %1036 = vmatprep.mubr.f32.mxu0 %v319_v47  ;;  %v823_v58 = vld [vmem:[#allocation6 + $0xcc8] sm:$0xff]  ;;  %v822_v62 = vld [vmem:[#allocation6 + $0xcc0] sm:$0xff] }
  0xc4   : > { %1197 = vmatprep.mubr.f32.mxu1 %v321_v48  ;;  %1285 = vmatpush1.msra.mxu0 %v702_v49  ;;  %v327_v59 = vld [vmem:[%s3447_s30 + $0x148] sm:$0xff]  ;;  %v326_v63 = vld [vmem:[%s3447_s30 + $0x140] sm:$0xff]  ;;  %v360_v48 = vld [vmem:[%s3447_s30 + $0x250] sm:$0xff] }
  0xc5   : > { %1446 = vmatpush1.msra.mxu1 %v830_v50  ;;  %1037 = vmatmul.mubr.f32.gmra.mxu0 %v318_v51  ;;  %v691_v1 = vld [vmem:[#allocation6 + $0x8a8] sm:$0xff]  ;;  %v690_v3 = vld [vmem:[#allocation6 + $0x8a0] sm:$0xff] }
  0xc6   : > { %1198 = vmatmul.mubr.f32.gmra.mxu1 %v320_v52  ;;  %1286 = vmatprep.subr.mxu0 %v699_v53  ;;  %v819_v2 = vld [vmem:[#allocation6 + $0xca8] sm:$0xff]  ;;  %v818_v4 = vld [vmem:[#allocation6 + $0xca0] sm:$0xff] }
  0xc7   : > { %1447 = vmatprep.subr.mxu1 %v827_v54  ;;  %1287 = vmatpush1.msra.mxu0 %v698_v55  ;;  %v687_v5 = vld [vmem:[#allocation6 + $0x888] sm:$0xff]  ;;  %v686_v9 = vld [vmem:[#allocation6 + $0x880] sm:$0xff] }
  0xc8   : > { %1448 = vmatpush1.msra.mxu1 %v826_v56  ;;  %1288 = vmatprep.subr.mxu0 %v695_v57  ;;  %v815_v6 = vld [vmem:[#allocation6 + $0xc88] sm:$0xff]  ;;  %v814_v10 = vld [vmem:[#allocation6 + $0xc80] sm:$0xff]  ;;  %v369_v56 = vld [vmem:[%s3447_s30 + $0x298] sm:$0xff] }
  0xc9   : > { %1449 = vmatprep.subr.mxu1 %v823_v58  ;;  %1042 = vmatprep.mubr.f32.mxu0 %v327_v59  ;;  %v335_v7 = vld [vmem:[%s3447_s30 + $0x188] sm:$0xff]  ;;  %v334_v11 = vld [vmem:[%s3447_s30 + $0x180] sm:$0xff] }
  0xca   : > { %1203 = vmatprep.mubr.f32.mxu1 %v329_v60  ;;  %1289 = vmatpush1.msra.mxu0 %v694_v61  ;;  %v683_v13 = vld [vmem:[#allocation6 + $0x868] sm:$0xff]  ;;  %v682_v15 = vld [vmem:[#allocation6 + $0x860] sm:$0xff]  ;;  %v368_v60 = vld [vmem:[%s3447_s30 + $0x290] sm:$0xff] }
  0xcb   : > { %1450 = vmatpush1.msra.mxu1 %v822_v62  ;;  %1043 = vmatmul.mubr.f32.gmra.mxu0 %v326_v63  ;;  %v811_v14 = vld [vmem:[#allocation6 + $0xc68] sm:$0xff]  ;;  %v810_v16 = vld [vmem:[#allocation6 + $0xc60] sm:$0xff] }
  0xcc   : > { %1204 = vmatmul.mubr.f32.gmra.mxu1 %v328_v0  ;;  %1290 = vmatprep.subr.mxu0 %v691_v1  ;;  %v679_v17 = vld [vmem:[#allocation6 + $0x848] sm:$0xff]  ;;  %v678_v21 = vld [vmem:[#allocation6 + $0x840] sm:$0xff] }
  0xcd   : > { %1451 = vmatprep.subr.mxu1 %v819_v2  ;;  %1291 = vmatpush1.msra.mxu0 %v690_v3  ;;  %v807_v18 = vld [vmem:[#allocation6 + $0xc48] sm:$0xff]  ;;  %v806_v22 = vld [vmem:[#allocation6 + $0xc40] sm:$0xff] }
  0xce   : > { %1452 = vmatpush1.msra.mxu1 %v818_v4  ;;  %1292 = vmatprep.subr.mxu0 %v687_v5  ;;  %v343_v19 = vld [vmem:[%s3447_s30 + $0x1c8] sm:$0xff]  ;;  %v342_v23 = vld [vmem:[%s3447_s30 + $0x1c0] sm:$0xff]  ;;  %v377_v4 = vld [vmem:[%s3447_s30 + $0x2d8] sm:$0xff] }
  0xcf   : > { %1453 = vmatprep.subr.mxu1 %v815_v6  ;;  %1048 = vmatprep.mubr.f32.mxu0 %v335_v7  ;;  %v675_v25 = vld [vmem:[#allocation6 + $0x828] sm:$0xff]  ;;  %v674_v27 = vld [vmem:[#allocation6 + $0x820] sm:$0xff] }
  0xd0   : > { %1209 = vmatprep.mubr.f32.mxu1 %v337_v8  ;;  %1293 = vmatpush1.msra.mxu0 %v686_v9  ;;  %v803_v26 = vld [vmem:[#allocation6 + $0xc28] sm:$0xff]  ;;  %v802_v28 = vld [vmem:[#allocation6 + $0xc20] sm:$0xff]  ;;  %v376_v8 = vld [vmem:[%s3447_s30 + $0x2d0] sm:$0xff] }
  0xd1   : > { %1454 = vmatpush1.msra.mxu1 %v814_v10  ;;  %1049 = vmatmul.mubr.f32.gmra.mxu0 %v334_v11  ;;  %v671_v29 = vld [vmem:[#allocation6 + $0x808] sm:$0xff]  ;;  %v670_v33 = vld [vmem:[#allocation6 + $0x800] sm:$0xff] }
  0xd2   : > { %1210 = vmatmul.mubr.f32.gmra.mxu1 %v336_v12  ;;  %1294 = vmatprep.subr.mxu0 %v683_v13  ;;  %v799_v30 = vld [vmem:[#allocation6 + $0xc08] sm:$0xff]  ;;  %v798_v34 = vld [vmem:[#allocation6 + $0xc00] sm:$0xff] }
  0xd3   : > { %1455 = vmatprep.subr.mxu1 %v811_v14  ;;  %1295 = vmatpush1.msra.mxu0 %v682_v15  ;;  %v351_v31 = vld [vmem:[%s3447_s30 + $0x208] sm:$0xff]  ;;  %v350_v35 = vld [vmem:[%s3447_s30 + $0x200] sm:$0xff] }
  0xd4   : > { %1456 = vmatpush1.msra.mxu1 %v810_v16  ;;  %1296 = vmatprep.subr.mxu0 %v679_v17  ;;  %v795_v37 = vld [vmem:[#allocation6 + $0xbe8] sm:$0xff]  ;;  %v794_v39 = vld [vmem:[#allocation6 + $0xbe0] sm:$0xff]  ;;  %v385_v16 = vld [vmem:[%s3447_s30 + $0x318] sm:$0xff] }
  0xd5   : > { %1457 = vmatprep.subr.mxu1 %v807_v18  ;;  %1054 = vmatprep.mubr.f32.mxu0 %v343_v19  ;;  %v923_v38 = vld [vmem:[#allocation6 + $0xfe8] sm:$0xff]  ;;  %v922_v40 = vld [vmem:[#allocation6 + $0xfe0] sm:$0xff] }
  0xd6   : > { %1215 = vmatprep.mubr.f32.mxu1 %v345_v20  ;;  %1297 = vmatpush1.msra.mxu0 %v678_v21  ;;  %v791_v41 = vld [vmem:[#allocation6 + $0xbc8] sm:$0xff]  ;;  %v790_v45 = vld [vmem:[#allocation6 + $0xbc0] sm:$0xff]  ;;  %v384_v20 = vld [vmem:[%s3447_s30 + $0x310] sm:$0xff] }
  0xd7   : > { %1458 = vmatpush1.msra.mxu1 %v806_v22  ;;  %1055 = vmatmul.mubr.f32.gmra.mxu0 %v342_v23  ;;  %v919_v42 = vld [vmem:[#allocation6 + $0xfc8] sm:$0xff]  ;;  %v918_v46 = vld [vmem:[#allocation6 + $0xfc0] sm:$0xff] }
  0xd8   : > { %1216 = vmatmul.mubr.f32.gmra.mxu1 %v344_v24  ;;  %1298 = vmatprep.subr.mxu0 %v675_v25  ;;  %v359_v43 = vld [vmem:[%s3447_s30 + $0x248] sm:$0xff]  ;;  %v358_v47 = vld [vmem:[%s3447_s30 + $0x240] sm:$0xff] }
  0xd9   : > { %1459 = vmatprep.subr.mxu1 %v803_v26  ;;  %1299 = vmatpush1.msra.mxu0 %v674_v27  ;;  %v787_v49 = vld [vmem:[#allocation6 + $0xba8] sm:$0xff]  ;;  %v786_v51 = vld [vmem:[#allocation6 + $0xba0] sm:$0xff] }
  0xda   : > { %1460 = vmatpush1.msra.mxu1 %v802_v28  ;;  %1300 = vmatprep.subr.mxu0 %v671_v29  ;;  %v915_v50 = vld [vmem:[#allocation6 + $0xfa8] sm:$0xff]  ;;  %v914_v52 = vld [vmem:[#allocation6 + $0xfa0] sm:$0xff]  ;;  %v393_v28 = vld [vmem:[%s3447_s30 + $0x358] sm:$0xff] }
  0xdb   : > { %1461 = vmatprep.subr.mxu1 %v799_v30  ;;  %1060 = vmatprep.mubr.f32.mxu0 %v351_v31  ;;  %v783_v53 = vld [vmem:[#allocation6 + $0xb88] sm:$0xff]  ;;  %v782_v57 = vld [vmem:[#allocation6 + $0xb80] sm:$0xff] }
  0xdc   : > { %1221 = vmatprep.mubr.f32.mxu1 %v353_v32  ;;  %1301 = vmatpush1.msra.mxu0 %v670_v33  ;;  %v911_v54 = vld [vmem:[#allocation6 + $0xf88] sm:$0xff]  ;;  %v910_v58 = vld [vmem:[#allocation6 + $0xf80] sm:$0xff]  ;;  %v392_v32 = vld [vmem:[%s3447_s30 + $0x350] sm:$0xff] }
  0xdd   : > { %1462 = vmatpush1.msra.mxu1 %v798_v34  ;;  %1061 = vmatmul.mubr.f32.gmra.mxu0 %v350_v35  ;;  %v367_v55 = vld [vmem:[%s3447_s30 + $0x288] sm:$0xff]  ;;  %v366_v59 = vld [vmem:[%s3447_s30 + $0x280] sm:$0xff] }
  0xde   : > { %1222 = vmatmul.mubr.f32.gmra.mxu1 %v352_v36  ;;  %1302 = vmatprep.subr.mxu0 %v795_v37  ;;  %v779_v61 = vld [vmem:[#allocation6 + $0xb68] sm:$0xff]  ;;  %v778_v63 = vld [vmem:[#allocation6 + $0xb60] sm:$0xff] }
  0xdf   : > { %1463 = vmatprep.subr.mxu1 %v923_v38  ;;  %1303 = vmatpush2.msra.mxu0 %v794_v39  ;;  %v907_v62 = vld [vmem:[#allocation6 + $0xf68] sm:$0xff]  ;;  %v906_v0 = vld [vmem:[#allocation6 + $0xf60] sm:$0xff] }
  0xe0   : > { %1464 = vmatpush2.msra.mxu1 %v922_v40  ;;  %1304 = vmatprep.subr.mxu0 %v791_v41  ;;  %v775_v1 = vld [vmem:[#allocation6 + $0xb48] sm:$0xff]  ;;  %v774_v5 = vld [vmem:[#allocation6 + $0xb40] sm:$0xff]  ;;  %v401_v40 = vld [vmem:[%s3447_s30 + $0x398] sm:$0xff] }
  0xe1   : > { %1465 = vmatprep.subr.mxu1 %v919_v42  ;;  %1066 = vmatprep.mubr.f32.mxu0 %v359_v43  ;;  %v903_v2 = vld [vmem:[#allocation6 + $0xf48] sm:$0xff]  ;;  %v902_v6 = vld [vmem:[#allocation6 + $0xf40] sm:$0xff] }
  0xe2   : > { %1227 = vmatprep.mubr.f32.mxu1 %v361_v44  ;;  %1305 = vmatpush2.msra.mxu0 %v790_v45  ;;  %v375_v3 = vld [vmem:[%s3447_s30 + $0x2c8] sm:$0xff]  ;;  %v374_v7 = vld [vmem:[%s3447_s30 + $0x2c0] sm:$0xff]  ;;  %v400_v44 = vld [vmem:[%s3447_s30 + $0x390] sm:$0xff] }
  0xe3   : > { %1466 = vmatpush2.msra.mxu1 %v918_v46  ;;  %1067 = vmatmul.mubr.f32.gmra.mxu0 %v358_v47  ;;  %v771_v9 = vld [vmem:[#allocation6 + $0xb28] sm:$0xff]  ;;  %v770_v11 = vld [vmem:[#allocation6 + $0xb20] sm:$0xff] }
  0xe4   : > { %1228 = vmatmul.mubr.f32.gmra.mxu1 %v360_v48  ;;  %1306 = vmatprep.subr.mxu0 %v787_v49  ;;  %v899_v10 = vld [vmem:[#allocation6 + $0xf28] sm:$0xff]  ;;  %v898_v12 = vld [vmem:[#allocation6 + $0xf20] sm:$0xff] }
  0xe5   : > { %1467 = vmatprep.subr.mxu1 %v915_v50  ;;  %1307 = vmatpush2.msra.mxu0 %v786_v51  ;;  %v767_v13 = vld [vmem:[#allocation6 + $0xb08] sm:$0xff]  ;;  %v766_v17 = vld [vmem:[#allocation6 + $0xb00] sm:$0xff] }
  0xe6   : > { %1468 = vmatpush2.msra.mxu1 %v914_v52  ;;  %1308 = vmatprep.subr.mxu0 %v783_v53  ;;  %v895_v14 = vld [vmem:[#allocation6 + $0xf08] sm:$0xff]  ;;  %v894_v18 = vld [vmem:[#allocation6 + $0xf00] sm:$0xff]  ;;  %v409_v52 = vld [vmem:[%s3447_s30 + $0x3d8] sm:$0xff] }
  0xe7   : > { %1469 = vmatprep.subr.mxu1 %v911_v54  ;;  %1072 = vmatprep.mubr.f32.mxu0 %v367_v55  ;;  %v383_v15 = vld [vmem:[%s3447_s30 + $0x308] sm:$0xff]  ;;  %v382_v19 = vld [vmem:[%s3447_s30 + $0x300] sm:$0xff] }
  0xe8   : > { %1233 = vmatprep.mubr.f32.mxu1 %v369_v56  ;;  %1309 = vmatpush2.msra.mxu0 %v782_v57  ;;  %v763_v21 = vld [vmem:[#allocation6 + $0xae8] sm:$0xff]  ;;  %v762_v23 = vld [vmem:[#allocation6 + $0xae0] sm:$0xff]  ;;  %v408_v56 = vld [vmem:[%s3447_s30 + $0x3d0] sm:$0xff] }
  0xe9   : > { %1470 = vmatpush2.msra.mxu1 %v910_v58  ;;  %1073 = vmatmul.mubr.f32.gmra.mxu0 %v366_v59  ;;  %v891_v22 = vld [vmem:[#allocation6 + $0xee8] sm:$0xff]  ;;  %v890_v24 = vld [vmem:[#allocation6 + $0xee0] sm:$0xff] }
  0xea   : > { %1234 = vmatmul.mubr.f32.gmra.mxu1 %v368_v60  ;;  %1310 = vmatprep.subr.mxu0 %v779_v61  ;;  %v759_v25 = vld [vmem:[#allocation6 + $0xac8] sm:$0xff]  ;;  %v758_v29 = vld [vmem:[#allocation6 + $0xac0] sm:$0xff] }
  0xeb   : > { %1471 = vmatprep.subr.mxu1 %v907_v62  ;;  %1311 = vmatpush2.msra.mxu0 %v778_v63  ;;  %v887_v26 = vld [vmem:[#allocation6 + $0xec8] sm:$0xff]  ;;  %v886_v30 = vld [vmem:[#allocation6 + $0xec0] sm:$0xff] }
  0xec   : > { %1472 = vmatpush2.msra.mxu1 %v906_v0  ;;  %1312 = vmatprep.subr.mxu0 %v775_v1  ;;  %v391_v27 = vld [vmem:[%s3447_s30 + $0x348] sm:$0xff]  ;;  %v390_v31 = vld [vmem:[%s3447_s30 + $0x340] sm:$0xff] }
  0xed   : > { %1473 = vmatprep.subr.mxu1 %v903_v2  ;;  %1078 = vmatprep.mubr.f32.mxu0 %v375_v3  ;;  %v755_v33 = vld [vmem:[#allocation6 + $0xaa8] sm:$0xff]  ;;  %v754_v35 = vld [vmem:[#allocation6 + $0xaa0] sm:$0xff]  ;;  %v293_v2 = vld [vmem:[%s3447_s30 + $0x38] sm:$0xff] }
  0xee   : > { %1239 = vmatprep.mubr.f32.mxu1 %v377_v4  ;;  %1313 = vmatpush2.msra.mxu0 %v774_v5  ;;  %v883_v34 = vld [vmem:[#allocation6 + $0xea8] sm:$0xff]  ;;  %v882_v36 = vld [vmem:[#allocation6 + $0xea0] sm:$0xff]  ;;  %v292_v4 = vld [vmem:[%s3447_s30 + $0x30] sm:$0xff] }
  0xef   : > { %1474 = vmatpush2.msra.mxu1 %v902_v6  ;;  %1079 = vmatmul.mubr.f32.gmra.mxu0 %v374_v7  ;;  %v751_v37 = vld [vmem:[#allocation6 + $0xa88] sm:$0xff]  ;;  %v750_v41 = vld [vmem:[#allocation6 + $0xa80] sm:$0xff]  ;;  %v477_v5 = vld [vmem:[#allocation6 + $0x1f8] sm:$0xff] }
  0xf0   : > { %1240 = vmatmul.mubr.f32.gmra.mxu1 %v376_v8  ;;  %1314 = vmatprep.subr.mxu0 %v771_v9  ;;  %v879_v38 = vld [vmem:[#allocation6 + $0xe88] sm:$0xff]  ;;  %v878_v42 = vld [vmem:[#allocation6 + $0xe80] sm:$0xff]  ;;  %v605_v6 = vld [vmem:[#allocation6 + $0x5f8] sm:$0xff] }
  0xf1   : > { %1475 = vmatprep.subr.mxu1 %v899_v10  ;;  %1315 = vmatpush2.msra.mxu0 %v770_v11  ;;  %v399_v39 = vld [vmem:[%s3447_s30 + $0x388] sm:$0xff]  ;;  %v398_v43 = vld [vmem:[%s3447_s30 + $0x380] sm:$0xff]  ;;  %v476_v7 = vld [vmem:[#allocation6 + $0x1f0] sm:$0xff] }
  0xf2   : > { %1476 = vmatpush2.msra.mxu1 %v898_v12  ;;  %1316 = vmatprep.subr.mxu0 %v767_v13  ;;  %v747_v45 = vld [vmem:[#allocation6 + $0xa68] sm:$0xff]  ;;  %v746_v47 = vld [vmem:[#allocation6 + $0xa60] sm:$0xff]  ;;  %v604_v8 = vld [vmem:[#allocation6 + $0x5f0] sm:$0xff] }
  0xf3   : > { %1477 = vmatprep.subr.mxu1 %v895_v14  ;;  %1084 = vmatprep.mubr.f32.mxu0 %v383_v15  ;;  %v875_v46 = vld [vmem:[#allocation6 + $0xe68] sm:$0xff]  ;;  %v874_v48 = vld [vmem:[#allocation6 + $0xe60] sm:$0xff]  ;;  %v473_v9 = vld [vmem:[#allocation6 + $0x1d8] sm:$0xff] }
  0xf4   : > { %1245 = vmatprep.mubr.f32.mxu1 %v385_v16  ;;  %1317 = vmatpush2.msra.mxu0 %v766_v17  ;;  %v743_v49 = vld [vmem:[#allocation6 + $0xa48] sm:$0xff]  ;;  %v742_v53 = vld [vmem:[#allocation6 + $0xa40] sm:$0xff]  ;;  %v601_v10 = vld [vmem:[#allocation6 + $0x5d8] sm:$0xff] }
  0xf5   : > { %1478 = vmatpush2.msra.mxu1 %v894_v18  ;;  %1085 = vmatmul.mubr.f32.gmra.mxu0 %v382_v19  ;;  %v871_v50 = vld [vmem:[#allocation6 + $0xe48] sm:$0xff]  ;;  %v870_v54 = vld [vmem:[#allocation6 + $0xe40] sm:$0xff]  ;;  %v301_v12 = vld [vmem:[%s3447_s30 + $0x78] sm:$0xff] }
  0xf6   : > { %1246 = vmatmul.mubr.f32.gmra.mxu1 %v384_v20  ;;  %1318 = vmatprep.subr.mxu0 %v763_v21  ;;  %v407_v51 = vld [vmem:[%s3447_s30 + $0x3c8] sm:$0xff]  ;;  %v406_v55 = vld [vmem:[%s3447_s30 + $0x3c0] sm:$0xff]  ;;  %v472_v13 = vld [vmem:[#allocation6 + $0x1d0] sm:$0xff] }
  0xf7   : > { %1479 = vmatprep.subr.mxu1 %v891_v22  ;;  %1319 = vmatpush2.msra.mxu0 %v762_v23  ;;  %v739_v57 = vld [vmem:[#allocation6 + $0xa28] sm:$0xff]  ;;  %v738_v59 = vld [vmem:[#allocation6 + $0xa20] sm:$0xff]  ;;  %v600_v14 = vld [vmem:[#allocation6 + $0x5d0] sm:$0xff] }
  0xf8   : > { %1480 = vmatpush2.msra.mxu1 %v890_v24  ;;  %1320 = vmatprep.subr.mxu0 %v759_v25  ;;  %v867_v58 = vld [vmem:[#allocation6 + $0xe28] sm:$0xff]  ;;  %v866_v60 = vld [vmem:[#allocation6 + $0xe20] sm:$0xff]  ;;  %v300_v16 = vld [vmem:[%s3447_s30 + $0x70] sm:$0xff] }
  0xf9   : > { %1481 = vmatprep.subr.mxu1 %v887_v26  ;;  %1090 = vmatprep.mubr.f32.mxu0 %v391_v27  ;;  %v735_v61 = vld [vmem:[#allocation6 + $0xa08] sm:$0xff]  ;;  %v734_v63 = vld [vmem:[#allocation6 + $0xa00] sm:$0xff]  ;;  %v469_v17 = vld [vmem:[#allocation6 + $0x1b8] sm:$0xff] }
  0xfa   : > { %1251 = vmatprep.mubr.f32.mxu1 %v393_v28  ;;  %1321 = vmatpush2.msra.mxu0 %v758_v29  ;;  %v863_v62 = vld [vmem:[#allocation6 + $0xe08] sm:$0xff]  ;;  %v862_v1 = vld [vmem:[#allocation6 + $0xe00] sm:$0xff]  ;;  %v597_v18 = vld [vmem:[#allocation6 + $0x5b8] sm:$0xff] }
  0xfb   : > { %1482 = vmatpush2.msra.mxu1 %v886_v30  ;;  %1091 = vmatmul.mubr.f32.gmra.mxu0 %v390_v31  ;;  %v291_v0 = vld [vmem:[%s3447_s30 + $0x28] sm:$0xff]  ;;  %v290_v3 = vld [vmem:[%s3447_s30 + $0x20] sm:$0xff]  ;;  %v468_v19 = vld [vmem:[#allocation6 + $0x1b0] sm:$0xff] }
  0xfc   : > { %1252 = vmatmul.mubr.f32.gmra.mxu1 %v392_v32  ;;  %1322 = vmatprep.subr.mxu0 %v755_v33  ;;  %v299_v11 = vld [vmem:[%s3447_s30 + $0x68] sm:$0xff]  ;;  %v298_v15 = vld [vmem:[%s3447_s30 + $0x60] sm:$0xff]  ;;  %v596_v20 = vld [vmem:[#allocation6 + $0x5b0] sm:$0xff] }
  0xfd   : > { %1483 = vmatprep.subr.mxu1 %v883_v34  ;;  %1323 = vmatpush2.msra.mxu0 %v754_v35  ;;  %v465_v21 = vld [vmem:[#allocation6 + $0x198] sm:$0xff]  ;;  %v307_v23 = vld [vmem:[%s3447_s30 + $0xa8] sm:$0xff]  ;;  %v464_v25 = vld [vmem:[#allocation6 + $0x190] sm:$0xff] }
  0xfe   : > { %1484 = vmatpush2.msra.mxu1 %v882_v36  ;;  %1324 = vmatprep.subr.mxu0 %v751_v37  ;;  %v593_v22 = vld [vmem:[#allocation6 + $0x598] sm:$0xff]  ;;  %v592_v26 = vld [vmem:[#allocation6 + $0x590] sm:$0xff]  ;;  %v306_v27 = vld [vmem:[%s3447_s30 + $0xa0] sm:$0xff] }
  0xff   : > { %1485 = vmatprep.subr.mxu1 %v879_v38  ;;  %1096 = vmatprep.mubr.f32.mxu0 %v399_v39  ;;  %v309_v24 = vld [vmem:[%s3447_s30 + $0xb8] sm:$0xff]  ;;  %v308_v28 = vld [vmem:[%s3447_s30 + $0xb0] sm:$0xff]  ;;  %v315_v35 = vld [vmem:[%s3447_s30 + $0xe8] sm:$0xff] }
 0x100   : > { %1257 = vmatprep.mubr.f32.mxu1 %v401_v40  ;;  %1325 = vmatpush2.msra.mxu0 %v750_v41  ;;  %v461_v29 = vld [vmem:[#allocation6 + $0x178] sm:$0xff]  ;;  %v460_v31 = vld [vmem:[#allocation6 + $0x170] sm:$0xff]  ;;  %v314_v39 = vld [vmem:[%s3447_s30 + $0xe0] sm:$0xff] }
 0x101   : > { %1486 = vmatpush2.msra.mxu1 %v878_v42  ;;  %1097 = vmatmul.mubr.f32.gmra.mxu0 %v398_v43  ;;  %v589_v30 = vld [vmem:[#allocation6 + $0x578] sm:$0xff]  ;;  %v588_v32 = vld [vmem:[#allocation6 + $0x570] sm:$0xff] }
 0x102   : > { %1258 = vmatmul.mubr.f32.gmra.mxu1 %v400_v44  ;;  %1326 = vmatprep.subr.mxu0 %v747_v45  ;;  %v457_v33 = vld [vmem:[#allocation6 + $0x158] sm:$0xff]  ;;  %v456_v37 = vld [vmem:[#allocation6 + $0x150] sm:$0xff] }
 0x103   : > { %1487 = vmatprep.subr.mxu1 %v875_v46  ;;  %1327 = vmatpush2.msra.mxu0 %v746_v47  ;;  %v585_v34 = vld [vmem:[#allocation6 + $0x558] sm:$0xff]  ;;  %v584_v38 = vld [vmem:[#allocation6 + $0x550] sm:$0xff]  ;;  %v323_v47 = vld [vmem:[%s3447_s30 + $0x128] sm:$0xff] }
 0x104   : > { %1488 = vmatpush2.msra.mxu1 %v874_v48  ;;  %1328 = vmatprep.subr.mxu0 %v743_v49  ;;  %v317_v36 = vld [vmem:[%s3447_s30 + $0xf8] sm:$0xff]  ;;  %v316_v40 = vld [vmem:[%s3447_s30 + $0xf0] sm:$0xff] }
 0x105   : > { %1489 = vmatprep.subr.mxu1 %v871_v50  ;;  %1102 = vmatprep.mubr.f32.mxu0 %v407_v51  ;;  %v453_v41 = vld [vmem:[#allocation6 + $0x138] sm:$0xff]  ;;  %v452_v43 = vld [vmem:[#allocation6 + $0x130] sm:$0xff]  ;;  %v322_v51 = vld [vmem:[%s3447_s30 + $0x120] sm:$0xff] }
 0x106   : > { %1263 = vmatprep.mubr.f32.mxu1 %v409_v52  ;;  %1329 = vmatpush2.msra.mxu0 %v742_v53  ;;  %v581_v42 = vld [vmem:[#allocation6 + $0x538] sm:$0xff]  ;;  %v580_v44 = vld [vmem:[#allocation6 + $0x530] sm:$0xff] }
 0x107   : > { %1490 = vmatpush2.msra.mxu1 %v870_v54  ;;  %1103 = vmatmul.mubr.f32.gmra.mxu0 %v406_v55  ;;  %v449_v45 = vld [vmem:[#allocation6 + $0x118] sm:$0xff]  ;;  %v448_v49 = vld [vmem:[#allocation6 + $0x110] sm:$0xff] }
 0x108   : > { %1264 = vmatmul.mubr.f32.gmra.mxu1 %v408_v56  ;;  %1330 = vmatprep.subr.mxu0 %v739_v57  ;;  %v577_v46 = vld [vmem:[#allocation6 + $0x518] sm:$0xff]  ;;  %v576_v50 = vld [vmem:[#allocation6 + $0x510] sm:$0xff] }
 0x109   : > { %1491 = vmatprep.subr.mxu1 %v867_v58  ;;  %1331 = vmatpush2.msra.mxu0 %v738_v59  ;;  %v325_v48 = vld [vmem:[%s3447_s30 + $0x138] sm:$0xff]  ;;  %v324_v52 = vld [vmem:[%s3447_s30 + $0x130] sm:$0xff]  ;;  %v331_v59 = vld [vmem:[%s3447_s30 + $0x168] sm:$0xff] }
 0x10a   : > { %1492 = vmatpush2.msra.mxu1 %v866_v60  ;;  %1332 = vmatprep.subr.mxu0 %v735_v61  ;;  %v445_v53 = vld [vmem:[#allocation6 + $0xf8] sm:$0xff]  ;;  %v444_v55 = vld [vmem:[#allocation6 + $0xf0] sm:$0xff] }
 0x10b   : > { %1493 = vmatprep.subr.mxu1 %v863_v62  ;;  %1333 = vmatpush2.msra.mxu0 %v734_v63  ;;  %v573_v54 = vld [vmem:[#allocation6 + $0x4f8] sm:$0xff]  ;;  %v572_v56 = vld [vmem:[#allocation6 + $0x4f0] sm:$0xff]  ;;  %v330_v63 = vld [vmem:[%s3447_s30 + $0x160] sm:$0xff] }
 0x10c   : > { %1334 = vmatprep.mubr.f32.mxu0 %v291_v0  ;;  %1494 = vmatpush2.msra.mxu1 %v862_v1  ;;  %v441_v57 = vld [vmem:[#allocation6 + $0xd8] sm:$0xff]  ;;  %v440_v61 = vld [vmem:[#allocation6 + $0xd0] sm:$0xff] }
 0x10d   : > { %1495 = vmatprep.mubr.f32.mxu1 %v293_v2  ;;  %1335 = vmatmul.mubr.f32.vlgmr.msra.gmra.mxu0 %v290_v3  ;;  %v569_v58 = vld [vmem:[#allocation6 + $0x4d8] sm:$0xff]  ;;  %v568_v62 = vld [vmem:[#allocation6 + $0x4d0] sm:$0xff] }
 0x10e   : > { %1496 = vmatmul.mubr.f32.vlgmr.msra.gmra.mxu1 %v292_v4  ;;  %1592 = vmatprep.subr.mxu0 %v477_v5  ;;  %v333_v60 = vld [vmem:[%s3447_s30 + $0x178] sm:$0xff]  ;;  %v332_v0 = vld [vmem:[%s3447_s30 + $0x170] sm:$0xff] }
 0x10f   : > { %1753 = vmatprep.subr.mxu1 %v605_v6  ;;  %1593 = vmatpush1.msra.mxu0 %v476_v7  ;;  %v437_v1 = vld [vmem:[#allocation6 + $0xb8] sm:$0xff]  ;;  %v436_v3 = vld [vmem:[#allocation6 + $0xb0] sm:$0xff]  ;;  %v339_v7 = vld [vmem:[%s3447_s30 + $0x1a8] sm:$0xff] }
 0x110   : > { %1754 = vmatpush1.msra.mxu1 %v604_v8  ;;  %1594 = vmatprep.subr.mxu0 %v473_v9  ;;  %v565_v2 = vld [vmem:[#allocation6 + $0x4b8] sm:$0xff]  ;;  %v564_v4 = vld [vmem:[#allocation6 + $0x4b0] sm:$0xff] }
 0x111   : > { %1755 = vmatprep.subr.mxu1 %v601_v10  ;;  %1340 = vmatprep.mubr.f32.mxu0 %v299_v11  ;;  %v433_v5 = vld [vmem:[#allocation6 + $0x98] sm:$0xff]  ;;  %v432_v9 = vld [vmem:[#allocation6 + $0x90] sm:$0xff]  ;;  %v338_v11 = vld [vmem:[%s3447_s30 + $0x1a0] sm:$0xff] }
 0x112   : > { %1501 = vmatprep.mubr.f32.mxu1 %v301_v12  ;;  %1595 = vmatpush1.msra.mxu0 %v472_v13  ;;  %v561_v6 = vld [vmem:[#allocation6 + $0x498] sm:$0xff]  ;;  %v560_v10 = vld [vmem:[#allocation6 + $0x490] sm:$0xff] }
 0x113   : > { %1756 = vmatpush1.msra.mxu1 %v600_v14  ;;  %1341 = vmatmul.mubr.f32.gmra.mxu0 %v298_v15  ;;  %v341_v8 = vld [vmem:[%s3447_s30 + $0x1b8] sm:$0xff]  ;;  %v340_v12 = vld [vmem:[%s3447_s30 + $0x1b0] sm:$0xff] }
 0x114   : > { %1502 = vmatmul.mubr.f32.gmra.mxu1 %v300_v16  ;;  %1596 = vmatprep.subr.mxu0 %v469_v17  ;;  %v429_v13 = vld [vmem:[#allocation6 + $0x78] sm:$0xff]  ;;  %v428_v15 = vld [vmem:[#allocation6 + $0x70] sm:$0xff] }
 0x115   : > { %1757 = vmatprep.subr.mxu1 %v597_v18  ;;  %1597 = vmatpush1.msra.mxu0 %v468_v19  ;;  %v557_v14 = vld [vmem:[#allocation6 + $0x478] sm:$0xff]  ;;  %v556_v16 = vld [vmem:[#allocation6 + $0x470] sm:$0xff]  ;;  %v347_v19 = vld [vmem:[%s3447_s30 + $0x1e8] sm:$0xff] }
 0x116   : > { %1758 = vmatpush1.msra.mxu1 %v596_v20  ;;  %1598 = vmatprep.subr.mxu0 %v465_v21  ;;  %v425_v17 = vld [vmem:[#allocation6 + $0x58] sm:$0xff]  ;;  %v424_v21 = vld [vmem:[#allocation6 + $0x50] sm:$0xff] }
 0x117   : > { %1759 = vmatprep.subr.mxu1 %v593_v22  ;;  %1346 = vmatprep.mubr.f32.mxu0 %v307_v23  ;;  %v553_v18 = vld [vmem:[#allocation6 + $0x458] sm:$0xff]  ;;  %v552_v22 = vld [vmem:[#allocation6 + $0x450] sm:$0xff]  ;;  %v346_v23 = vld [vmem:[%s3447_s30 + $0x1e0] sm:$0xff] }
 0x118   : > { %1507 = vmatprep.mubr.f32.mxu1 %v309_v24  ;;  %1599 = vmatpush1.msra.mxu0 %v464_v25  ;;  %v349_v20 = vld [vmem:[%s3447_s30 + $0x1f8] sm:$0xff]  ;;  %v348_v24 = vld [vmem:[%s3447_s30 + $0x1f0] sm:$0xff] }
 0x119   : > { %1760 = vmatpush1.msra.mxu1 %v592_v26  ;;  %1347 = vmatmul.mubr.f32.gmra.mxu0 %v306_v27  ;;  %v421_v25 = vld [vmem:[#allocation6 + $0x38] sm:$0xff]  ;;  %v420_v27 = vld [vmem:[#allocation6 + $0x30] sm:$0xff] }
 0x11a   : > { %1508 = vmatmul.mubr.f32.gmra.mxu1 %v308_v28  ;;  %1600 = vmatprep.subr.mxu0 %v461_v29  ;;  %v549_v26 = vld [vmem:[#allocation6 + $0x438] sm:$0xff]  ;;  %v548_v28 = vld [vmem:[#allocation6 + $0x430] sm:$0xff] }
 0x11b   : > { %1761 = vmatprep.subr.mxu1 %v589_v30  ;;  %1601 = vmatpush1.msra.mxu0 %v460_v31  ;;  %v417_v29 = vld [vmem:[#allocation6 + $0x18] sm:$0xff]  ;;  %v355_v31 = vld [vmem:[%s3447_s30 + $0x228] sm:$0xff] }
 0x11c   : > { %1762 = vmatpush1.msra.mxu1 %v588_v32  ;;  %1602 = vmatprep.subr.mxu0 %v457_v33  ;;  %v545_v30 = vld [vmem:[#allocation6 + $0x418] sm:$0xff]  ;;  %v416_v33 = vld [vmem:[#allocation6 + $0x10] sm:$0xff] }
 0x11d   : > { %1763 = vmatprep.subr.mxu1 %v585_v34  ;;  %1352 = vmatprep.mubr.f32.mxu0 %v315_v35  ;;  %v357_v32 = vld [vmem:[%s3447_s30 + $0x238] sm:$0xff]  ;;  %v544_v34 = vld [vmem:[#allocation6 + $0x410] sm:$0xff]  ;;  %v354_v35 = vld [vmem:[%s3447_s30 + $0x220] sm:$0xff] }
 0x11e   : > { %1513 = vmatprep.mubr.f32.mxu1 %v317_v36  ;;  %1603 = vmatpush1.msra.mxu0 %v456_v37  ;;  %v356_v36 = vld [vmem:[%s3447_s30 + $0x230] sm:$0xff]  ;;  %v541_v37 = vld [vmem:[#allocation6 + $0x3f8] sm:$0xff] }
 0x11f   : > { %1764 = vmatpush1.msra.mxu1 %v584_v38  ;;  %1353 = vmatmul.mubr.f32.gmra.mxu0 %v314_v39  ;;  %v669_v38 = vld [vmem:[#allocation6 + $0x7f8] sm:$0xff]  ;;  %v540_v39 = vld [vmem:[#allocation6 + $0x3f0] sm:$0xff] }
 0x120   : > { %1514 = vmatmul.mubr.f32.gmra.mxu1 %v316_v40  ;;  %1604 = vmatprep.subr.mxu0 %v453_v41  ;;  %v668_v40 = vld [vmem:[#allocation6 + $0x7f0] sm:$0xff]  ;;  %v537_v41 = vld [vmem:[#allocation6 + $0x3d8] sm:$0xff] }
 0x121   : > { %1765 = vmatprep.subr.mxu1 %v581_v42  ;;  %1605 = vmatpush1.msra.mxu0 %v452_v43  ;;  %v665_v42 = vld [vmem:[#allocation6 + $0x7d8] sm:$0xff]  ;;  %v363_v43 = vld [vmem:[%s3447_s30 + $0x268] sm:$0xff] }
 0x122   : > { %1766 = vmatpush1.msra.mxu1 %v580_v44  ;;  %1606 = vmatprep.subr.mxu0 %v449_v45  ;;  %v365_v44 = vld [vmem:[%s3447_s30 + $0x278] sm:$0xff]  ;;  %v536_v45 = vld [vmem:[#allocation6 + $0x3d0] sm:$0xff] }
 0x123   : > { %1767 = vmatprep.subr.mxu1 %v577_v46  ;;  %1358 = vmatprep.mubr.f32.mxu0 %v323_v47  ;;  %v664_v46 = vld [vmem:[#allocation6 + $0x7d0] sm:$0xff]  ;;  %v362_v47 = vld [vmem:[%s3447_s30 + $0x260] sm:$0xff] }
 0x124   : > { %1519 = vmatprep.mubr.f32.mxu1 %v325_v48  ;;  %1607 = vmatpush1.msra.mxu0 %v448_v49  ;;  %v364_v48 = vld [vmem:[%s3447_s30 + $0x270] sm:$0xff]  ;;  %v533_v49 = vld [vmem:[#allocation6 + $0x3b8] sm:$0xff] }
 0x125   : > { %1768 = vmatpush1.msra.mxu1 %v576_v50  ;;  %1359 = vmatmul.mubr.f32.gmra.mxu0 %v322_v51  ;;  %v661_v50 = vld [vmem:[#allocation6 + $0x7b8] sm:$0xff]  ;;  %v532_v51 = vld [vmem:[#allocation6 + $0x3b0] sm:$0xff] }
 0x126   : > { %1520 = vmatmul.mubr.f32.gmra.mxu1 %v324_v52  ;;  %1608 = vmatprep.subr.mxu0 %v445_v53  ;;  %v660_v52 = vld [vmem:[#allocation6 + $0x7b0] sm:$0xff]  ;;  %v529_v53 = vld [vmem:[#allocation6 + $0x398] sm:$0xff] }
 0x127   : > { %1769 = vmatprep.subr.mxu1 %v573_v54  ;;  %1609 = vmatpush1.msra.mxu0 %v444_v55  ;;  %v657_v54 = vld [vmem:[#allocation6 + $0x798] sm:$0xff]  ;;  %v371_v55 = vld [vmem:[%s3447_s30 + $0x2a8] sm:$0xff] }
 0x128   : > { %1770 = vmatpush1.msra.mxu1 %v572_v56  ;;  %1610 = vmatprep.subr.mxu0 %v441_v57  ;;  %v373_v56 = vld [vmem:[%s3447_s30 + $0x2b8] sm:$0xff]  ;;  %v528_v57 = vld [vmem:[#allocation6 + $0x390] sm:$0xff] }
 0x129   : > { %1771 = vmatprep.subr.mxu1 %v569_v58  ;;  %1364 = vmatprep.mubr.f32.mxu0 %v331_v59  ;;  %v656_v58 = vld [vmem:[#allocation6 + $0x790] sm:$0xff]  ;;  %v370_v59 = vld [vmem:[%s3447_s30 + $0x2a0] sm:$0xff] }
 0x12a   : > { %1525 = vmatprep.mubr.f32.mxu1 %v333_v60  ;;  %1611 = vmatpush1.msra.mxu0 %v440_v61  ;;  %v372_v60 = vld [vmem:[%s3447_s30 + $0x2b0] sm:$0xff]  ;;  %v525_v61 = vld [vmem:[#allocation6 + $0x378] sm:$0xff] }
 0x12b   : > { %1772 = vmatpush1.msra.mxu1 %v568_v62  ;;  %1365 = vmatmul.mubr.f32.gmra.mxu0 %v330_v63  ;;  %v653_v62 = vld [vmem:[#allocation6 + $0x778] sm:$0xff]  ;;  %v524_v63 = vld [vmem:[#allocation6 + $0x370] sm:$0xff] }
 0x12c   : > { %1526 = vmatmul.mubr.f32.gmra.mxu1 %v332_v0  ;;  %1612 = vmatprep.subr.mxu0 %v437_v1  ;;  %v652_v0 = vld [vmem:[#allocation6 + $0x770] sm:$0xff]  ;;  %v521_v1 = vld [vmem:[#allocation6 + $0x358] sm:$0xff] }
 0x12d   : > { %1773 = vmatprep.subr.mxu1 %v565_v2  ;;  %1613 = vmatpush1.msra.mxu0 %v436_v3  ;;  %v649_v2 = vld [vmem:[#allocation6 + $0x758] sm:$0xff]  ;;  %v379_v3 = vld [vmem:[%s3447_s30 + $0x2e8] sm:$0xff] }
 0x12e   : > { %1774 = vmatpush1.msra.mxu1 %v564_v4  ;;  %1614 = vmatprep.subr.mxu0 %v433_v5  ;;  %v381_v4 = vld [vmem:[%s3447_s30 + $0x2f8] sm:$0xff]  ;;  %v520_v5 = vld [vmem:[#allocation6 + $0x350] sm:$0xff] }
 0x12f   : > { %1775 = vmatprep.subr.mxu1 %v561_v6  ;;  %1370 = vmatprep.mubr.f32.mxu0 %v339_v7  ;;  %v648_v6 = vld [vmem:[#allocation6 + $0x750] sm:$0xff]  ;;  %v378_v7 = vld [vmem:[%s3447_s30 + $0x2e0] sm:$0xff] }
 0x130   : > { %1531 = vmatprep.mubr.f32.mxu1 %v341_v8  ;;  %1615 = vmatpush1.msra.mxu0 %v432_v9  ;;  %v380_v8 = vld [vmem:[%s3447_s30 + $0x2f0] sm:$0xff]  ;;  %v517_v9 = vld [vmem:[#allocation6 + $0x338] sm:$0xff] }
 0x131   : > { %1776 = vmatpush1.msra.mxu1 %v560_v10  ;;  %1371 = vmatmul.mubr.f32.gmra.mxu0 %v338_v11  ;;  %v645_v10 = vld [vmem:[#allocation6 + $0x738] sm:$0xff]  ;;  %v516_v11 = vld [vmem:[#allocation6 + $0x330] sm:$0xff] }
 0x132   : > { %1532 = vmatmul.mubr.f32.gmra.mxu1 %v340_v12  ;;  %1616 = vmatprep.subr.mxu0 %v429_v13  ;;  %v644_v12 = vld [vmem:[#allocation6 + $0x730] sm:$0xff]  ;;  %v513_v13 = vld [vmem:[#allocation6 + $0x318] sm:$0xff] }
 0x133   : > { %1777 = vmatprep.subr.mxu1 %v557_v14  ;;  %1617 = vmatpush1.msra.mxu0 %v428_v15  ;;  %v641_v14 = vld [vmem:[#allocation6 + $0x718] sm:$0xff]  ;;  %v387_v15 = vld [vmem:[%s3447_s30 + $0x328] sm:$0xff] }
 0x134   : > { %1778 = vmatpush1.msra.mxu1 %v556_v16  ;;  %1618 = vmatprep.subr.mxu0 %v425_v17  ;;  %v389_v16 = vld [vmem:[%s3447_s30 + $0x338] sm:$0xff]  ;;  %v512_v17 = vld [vmem:[#allocation6 + $0x310] sm:$0xff] }
 0x135   : > { %1779 = vmatprep.subr.mxu1 %v553_v18  ;;  %1376 = vmatprep.mubr.f32.mxu0 %v347_v19  ;;  %v640_v18 = vld [vmem:[#allocation6 + $0x710] sm:$0xff]  ;;  %v386_v19 = vld [vmem:[%s3447_s30 + $0x320] sm:$0xff] }
 0x136   : > { %1537 = vmatprep.mubr.f32.mxu1 %v349_v20  ;;  %1619 = vmatpush1.msra.mxu0 %v424_v21  ;;  %v388_v20 = vld [vmem:[%s3447_s30 + $0x330] sm:$0xff]  ;;  %v509_v21 = vld [vmem:[#allocation6 + $0x2f8] sm:$0xff] }
 0x137   : > { %1780 = vmatpush1.msra.mxu1 %v552_v22  ;;  %1377 = vmatmul.mubr.f32.gmra.mxu0 %v346_v23  ;;  %v637_v22 = vld [vmem:[#allocation6 + $0x6f8] sm:$0xff]  ;;  %v508_v23 = vld [vmem:[#allocation6 + $0x2f0] sm:$0xff] }
 0x138   : > { %1538 = vmatmul.mubr.f32.gmra.mxu1 %v348_v24  ;;  %1620 = vmatprep.subr.mxu0 %v421_v25  ;;  %v636_v24 = vld [vmem:[#allocation6 + $0x6f0] sm:$0xff]  ;;  %v505_v25 = vld [vmem:[#allocation6 + $0x2d8] sm:$0xff] }
 0x139   : > { %1781 = vmatprep.subr.mxu1 %v549_v26  ;;  %1621 = vmatpush1.msra.mxu0 %v420_v27  ;;  %v633_v26 = vld [vmem:[#allocation6 + $0x6d8] sm:$0xff]  ;;  %v395_v27 = vld [vmem:[%s3447_s30 + $0x368] sm:$0xff] }
 0x13a   : > { %1782 = vmatpush1.msra.mxu1 %v548_v28  ;;  %1622 = vmatprep.subr.mxu0 %v417_v29  ;;  %v397_v28 = vld [vmem:[%s3447_s30 + $0x378] sm:$0xff]  ;;  %v504_v29 = vld [vmem:[#allocation6 + $0x2d0] sm:$0xff] }
 0x13b   : > { %1783 = vmatprep.subr.mxu1 %v545_v30  ;;  %1382 = vmatprep.mubr.f32.mxu0 %v355_v31  ;;  %v632_v30 = vld [vmem:[#allocation6 + $0x6d0] sm:$0xff]  ;;  %v394_v31 = vld [vmem:[%s3447_s30 + $0x360] sm:$0xff] }
 0x13c   : > { %1543 = vmatprep.mubr.f32.mxu1 %v357_v32  ;;  %1623 = vmatpush1.msra.mxu0 %v416_v33  ;;  %v396_v32 = vld [vmem:[%s3447_s30 + $0x370] sm:$0xff]  ;;  %v501_v33 = vld [vmem:[#allocation6 + $0x2b8] sm:$0xff] }
 0x13d   : > { %1784 = vmatpush1.msra.mxu1 %v544_v34  ;;  %1383 = vmatmul.mubr.f32.gmra.mxu0 %v354_v35  ;;  %v629_v34 = vld [vmem:[#allocation6 + $0x6b8] sm:$0xff]  ;;  %v500_v35 = vld [vmem:[#allocation6 + $0x2b0] sm:$0xff] }
 0x13e   : > { %1544 = vmatmul.mubr.f32.gmra.mxu1 %v356_v36  ;;  %1624 = vmatprep.subr.mxu0 %v541_v37  ;;  %v628_v36 = vld [vmem:[#allocation6 + $0x6b0] sm:$0xff]  ;;  %v497_v37 = vld [vmem:[#allocation6 + $0x298] sm:$0xff] }
 0x13f   : > { %1785 = vmatprep.subr.mxu1 %v669_v38  ;;  %1625 = vmatpush2.msra.mxu0 %v540_v39  ;;  %v625_v38 = vld [vmem:[#allocation6 + $0x698] sm:$0xff]  ;;  %v403_v39 = vld [vmem:[%s3447_s30 + $0x3a8] sm:$0xff] }
 0x140   : > { %1786 = vmatpush2.msra.mxu1 %v668_v40  ;;  %1626 = vmatprep.subr.mxu0 %v537_v41  ;;  %v405_v40 = vld [vmem:[%s3447_s30 + $0x3b8] sm:$0xff]  ;;  %v496_v41 = vld [vmem:[#allocation6 + $0x290] sm:$0xff] }
 0x141   : > { %1787 = vmatprep.subr.mxu1 %v665_v42  ;;  %1388 = vmatprep.mubr.f32.mxu0 %v363_v43  ;;  %v624_v42 = vld [vmem:[#allocation6 + $0x690] sm:$0xff]  ;;  %v402_v43 = vld [vmem:[%s3447_s30 + $0x3a0] sm:$0xff] }
 0x142   : > { %1549 = vmatprep.mubr.f32.mxu1 %v365_v44  ;;  %1627 = vmatpush2.msra.mxu0 %v536_v45  ;;  %v404_v44 = vld [vmem:[%s3447_s30 + $0x3b0] sm:$0xff]  ;;  %v928_v45 = vlaneseq }
 0x143   : > { %1788 = vmatpush2.msra.mxu1 %v664_v46  ;;  %1389 = vmatmul.mubr.f32.gmra.mxu0 %v362_v47  ;;  %v493_v46 = vld [vmem:[#allocation6 + $0x278] sm:$0xff] }
 0x144   : > { %1550 = vmatmul.mubr.f32.gmra.mxu1 %v364_v48  ;;  %1628 = vmatprep.subr.mxu0 %v533_v49  ;;  %v621_v47 = vld [vmem:[#allocation6 + $0x678] sm:$0xff]  ;;  %v492_v48 = vld [vmem:[#allocation6 + $0x270] sm:$0xff] }
 0x145   : > { %1789 = vmatprep.subr.mxu1 %v661_v50  ;;  %1629 = vmatpush2.msra.mxu0 %v532_v51  ;;  %v620_v49 = vld [vmem:[#allocation6 + $0x670] sm:$0xff]  ;;  %v489_v50 = vld [vmem:[#allocation6 + $0x258] sm:$0xff] }
 0x146   : > { %1790 = vmatpush2.msra.mxu1 %v660_v52  ;;  %1630 = vmatprep.subr.mxu0 %v529_v53  ;;  %v617_v51 = vld [vmem:[#allocation6 + $0x658] sm:$0xff]  ;;  %v411_v52 = vld [vmem:[%s3447_s30 + $0x3e8] sm:$0xff] }
 0x147   : > { %1791 = vmatprep.subr.mxu1 %v657_v54  ;;  %1394 = vmatprep.mubr.f32.mxu0 %v371_v55  ;;  %v413_v53 = vld [vmem:[%s3447_s30 + $0x3f8] sm:$0xff]  ;;  %v3587_v54 = vshrl.u32 %v928_v45, 7  ;;  %v488_v55 = vld [vmem:[#allocation6 + $0x250] sm:$0xff] }
 0x148   : > { %1555 = vmatprep.mubr.f32.mxu1 %v373_v56  ;;  %1631 = vmatpush2.msra.mxu0 %v528_v57  ;;  %v616_v56 = vld [vmem:[#allocation6 + $0x650] sm:$0xff]  ;;  %v410_v57 = vld [vmem:[%s3447_s30 + $0x3e0] sm:$0xff]  ;;  %v845_v45 = vld [vmem:[#allocation6 + $0xd78] sm:$0xff] }
 0x149   : > { %1792 = vmatpush2.msra.mxu1 %v656_v58  ;;  %1395 = vmatmul.mubr.f32.gmra.mxu0 %v370_v59  ;;  %4340 = vst [vmem:[#allocation16_spill] sm:$0xff] %v3587_v54  ;;  %v412_v58 = vld [vmem:[%s3447_s30 + $0x3f0] sm:$0xff]  ;;  %v485_v59 = vld [vmem:[#allocation6 + $0x238] sm:$0xff] }
 0x14a   : > { %1556 = vmatmul.mubr.f32.gmra.mxu1 %v372_v60  ;;  %1632 = vmatprep.subr.mxu0 %v525_v61  ;;  %v613_v60 = vld [vmem:[#allocation6 + $0x638] sm:$0xff]  ;;  %v484_v61 = vld [vmem:[#allocation6 + $0x230] sm:$0xff] }
 0x14b   : > { %1793 = vmatprep.subr.mxu1 %v653_v62  ;;  %1633 = vmatpush2.msra.mxu0 %v524_v63  ;;  %v612_v62 = vld [vmem:[#allocation6 + $0x630] sm:$0xff]  ;;  %v3592_v63 = vsub.s32 0, %v3587_v54 }
 0x14c   : > { %1794 = vmatpush2.msra.mxu1 %v652_v0  ;;  %1634 = vmatprep.subr.mxu0 %v521_v1  ;;  %v481_v0 = vld [vmem:[#allocation6 + $0x218] sm:$0xff] }
 0x14d   : > { %1795 = vmatprep.subr.mxu1 %v649_v2  ;;  %1400 = vmatprep.mubr.f32.mxu0 %v379_v3  ;;  %4341 = vst [vmem:[#allocation17_spill] sm:$0xff] %v3592_v63  ;;  %v609_v1 = vld [vmem:[#allocation6 + $0x618] sm:$0xff]  ;;  %v3594_v2 = vld [vmem:[#allocation8] sm:$0xf]  ;;  %v480_v3 = vld [vmem:[#allocation6 + $0x210] sm:$0xff] }
 0x14e   : > { %1561 = vmatprep.mubr.f32.mxu1 %v381_v4  ;;  %1635 = vmatpush2.msra.mxu0 %v520_v5  ;;  %v608_v4 = vld [vmem:[#allocation6 + $0x610] sm:$0xff]  ;;  %v3598_v5 = vrot.slane %v3594_v2, %v3592_v63 }
 0x14f   : > { %1796 = vmatpush2.msra.mxu1 %v648_v6  ;;  %1401 = vmatmul.mubr.f32.gmra.mxu0 %v378_v7  ;;  %v2956_v6 = vld [vmem:[%s3447_s30 + $0x8] sm:$0xff]  ;;  %v733_v7 = vld [vmem:[#allocation6 + $0x9f8] sm:$0xff] }
 0x150   : > { %1562 = vmatmul.mubr.f32.gmra.mxu1 %v380_v8  ;;  %1636 = vmatprep.subr.mxu0 %v517_v9  ;;  %v861_v8 = vld [vmem:[#allocation6 + $0xdf8] sm:$0xff] }
 0x151   : > { %1797 = vmatprep.subr.mxu1 %v645_v10  ;;  %1637 = vmatpush2.msra.mxu0 %v516_v11  ;;  %v2957_v9 = vld [vmem:[%s3447_s30 + $0x18] sm:$0xff]  ;;  %v732_v10 = vld [vmem:[#allocation6 + $0x9f0] sm:$0xff] }
 0x152   : > { %1798 = vmatpush2.msra.mxu1 %v644_v12  ;;  %1638 = vmatprep.subr.mxu0 %v513_v13  ;;  %v860_v11 = vld [vmem:[#allocation6 + $0xdf0] sm:$0xff]  ;;  %v2958_v12 = vld [vmem:[%s3447_s30] sm:$0xff] }
 0x153   : > { %1799 = vmatprep.subr.mxu1 %v641_v14  ;;  %1406 = vmatprep.mubr.f32.mxu0 %v387_v15  ;;  %v2959_v13 = vld [vmem:[%s3447_s30 + $0x10] sm:$0xff]  ;;  %v729_v14 = vld [vmem:[#allocation6 + $0x9d8] sm:$0xff] }
 0x154   : > { %1567 = vmatprep.mubr.f32.mxu1 %v389_v16  ;;  %1639 = vmatpush2.msra.mxu0 %v512_v17  ;;  %v857_v15 = vld [vmem:[#allocation6 + $0xdd8] sm:$0xff] }
 0x155   : > { %1800 = vmatpush2.msra.mxu1 %v640_v18  ;;  %1407 = vmatmul.mubr.f32.gmra.mxu0 %v386_v19  ;;  %v728_v19 = vld [vmem:[#allocation6 + $0x9d0] sm:$0xff] }
 0x156   : > { %1568 = vmatmul.mubr.f32.gmra.mxu1 %v388_v20  ;;  %1640 = vmatprep.subr.mxu0 %v509_v21  ;;  %v856_v20 = vld [vmem:[#allocation6 + $0xdd0] sm:$0xff] }
 0x157   : > { %1801 = vmatprep.subr.mxu1 %v637_v22  ;;  %1641 = vmatpush2.msra.mxu0 %v508_v23 }
 0x158   : > { %1802 = vmatpush2.msra.mxu1 %v636_v24  ;;  %1642 = vmatprep.subr.mxu0 %v505_v25  ;;  %v2960_v24 = vld [vmem:[%s3447_s30 + $0x48] sm:$0xff]  ;;  %v2961_v25 = vld [vmem:[%s3447_s30 + $0x58] sm:$0xff] }
 0x159   : > { %1803 = vmatprep.subr.mxu1 %v633_v26  ;;  %1412 = vmatprep.mubr.f32.mxu0 %v395_v27  ;;  %v725_v26 = vld [vmem:[#allocation6 + $0x9b8] sm:$0xff] }
 0x15a   : > { %1573 = vmatprep.mubr.f32.mxu1 %v397_v28  ;;  %1643 = vmatpush2.msra.mxu0 %v504_v29  ;;  %v853_v27 = vld [vmem:[#allocation6 + $0xdb8] sm:$0xff]  ;;  %v724_v28 = vld [vmem:[#allocation6 + $0x9b0] sm:$0xff] }
 0x15b   : > { %1804 = vmatpush2.msra.mxu1 %v632_v30  ;;  %1413 = vmatmul.mubr.f32.gmra.mxu0 %v394_v31  ;;  %v852_v29 = vld [vmem:[#allocation6 + $0xdb0] sm:$0xff]  ;;  %v2962_v30 = vld [vmem:[%s3447_s30 + $0x40] sm:$0xff] }
 0x15c   : > { %1574 = vmatmul.mubr.f32.gmra.mxu1 %v396_v32  ;;  %1644 = vmatprep.subr.mxu0 %v501_v33  ;;  %v2963_v31 = vld [vmem:[%s3447_s30 + $0x50] sm:$0xff]  ;;  %v721_v32 = vld [vmem:[#allocation6 + $0x998] sm:$0xff] }
 0x15d   : > { %1805 = vmatprep.subr.mxu1 %v629_v34  ;;  %1645 = vmatpush2.msra.mxu0 %v500_v35  ;;  %v849_v33 = vld [vmem:[#allocation6 + $0xd98] sm:$0xff] }
 0x15e   : > { %1806 = vmatpush2.msra.mxu1 %v628_v36  ;;  %1646 = vmatprep.subr.mxu0 %v497_v37  ;;  %v720_v37 = vld [vmem:[#allocation6 + $0x990] sm:$0xff] }
 0x15f   : > { %1807 = vmatprep.subr.mxu1 %v625_v38  ;;  %1418 = vmatprep.mubr.f32.mxu0 %v403_v39  ;;  %v848_v38 = vld [vmem:[#allocation6 + $0xd90] sm:$0xff] }
 0x160   : > { %1579 = vmatprep.mubr.f32.mxu1 %v405_v40  ;;  %1647 = vmatpush2.msra.mxu0 %v496_v41 }
 0x161   : > { %1808 = vmatpush2.msra.mxu1 %v624_v42  ;;  %1419 = vmatmul.mubr.f32.gmra.mxu0 %v402_v43  ;;  %v2964_v42 = vld [vmem:[%s3447_s30 + $0x88] sm:$0xff]  ;;  %v2965_v43 = vld [vmem:[%s3447_s30 + $0x98] sm:$0xff] }
 0x162   : > { %1580 = vmatmul.mubr.f32.gmra.mxu1 %v404_v44  ;;  %1648 = vmatprep.subr.mxu0 %v493_v46  ;;  %v717_v44 = vld [vmem:[#allocation6 + $0x978] sm:$0xff]  ;;  %v716_v46 = vld [vmem:[#allocation6 + $0x970] sm:$0xff] }
 0x163   : > { %1809 = vmatprep.subr.mxu1 %v621_v47  ;;  %1649 = vmatpush2.msra.mxu0 %v492_v48  ;;  %v844_v47 = vld [vmem:[#allocation6 + $0xd70] sm:$0xff]  ;;  %v2966_v48 = vld [vmem:[%s3447_s30 + $0x80] sm:$0xff] }
 0x164   : > { %1810 = vmatpush2.msra.mxu1 %v620_v49  ;;  %1650 = vmatprep.subr.mxu0 %v489_v50  ;;  %v2967_v49 = vld [vmem:[%s3447_s30 + $0x90] sm:$0xff]  ;;  %v713_v50 = vld [vmem:[#allocation6 + $0x958] sm:$0xff] }
 0x165   : > { %1811 = vmatprep.subr.mxu1 %v617_v51  ;;  %1424 = vmatprep.mubr.f32.mxu0 %v411_v52  ;;  %v841_v51 = vld [vmem:[#allocation6 + $0xd58] sm:$0xff] }
 0x166   : > { %1585 = vmatprep.mubr.f32.mxu1 %v413_v53  ;;  %1651 = vmatpush2.msra.mxu0 %v488_v55 }
 0x167   : > { %1812 = vmatpush2.msra.mxu1 %v616_v56  ;;  %1425 = vmatmul.mubr.f32.gmra.mxu0 %v410_v57  ;;  %v712_v56 = vld [vmem:[#allocation6 + $0x950] sm:$0xff] }
 0x168   : > { %1586 = vmatmul.mubr.f32.gmra.mxu1 %v412_v58  ;;  %1652 = vmatprep.subr.mxu0 %v485_v59  ;;  %v840_v57 = vld [vmem:[#allocation6 + $0xd50] sm:$0xff] }
 0x169   : > { %1813 = vmatprep.subr.mxu1 %v613_v60  ;;  %1653 = vmatpush2.msra.mxu0 %v484_v61  ;;  %v2968_v61 = vld [vmem:[%s3447_s30 + $0xc8] sm:$0xff] }
 0x16a   : > { %1814 = vmatpush2.msra.mxu1 %v612_v62  ;;  %1654 = vmatprep.subr.mxu0 %v481_v0  ;;  %v2969_v62 = vld [vmem:[%s3447_s30 + $0xd8] sm:$0xff] }
 0x16b   : > { %1815 = vmatprep.subr.mxu1 %v609_v1  ;;  %1655 = vmatpush2.msra.mxu0 %v480_v3  ;;  %v709_v0 = vld [vmem:[#allocation6 + $0x938] sm:$0xff]  ;;  %v708_v3 = vld [vmem:[#allocation6 + $0x930] sm:$0xff] }
 0x16c   : > { %1656 = vmatprep.mubr.f32.mxu0 %v2956_v6  ;;  %1816 = vmatpush2.msra.mxu1 %v608_v4  ;;  %v837_v1 = vld [vmem:[#allocation6 + $0xd38] sm:$0xff]  ;;  %v836_v4 = vld [vmem:[#allocation6 + $0xd30] sm:$0xff]  ;;  %v2970_v6 = vld [vmem:[%s3447_s30 + $0xc0] sm:$0xff] }
 0x16d   : > { %1817 = vmatprep.mubr.f32.mxu1 %v2957_v9  ;;  %1657 = vmatmul.mubr.f32.vlgmr.msra.gmra.mxu0 %v2958_v12  ;;  %v1014_v16 = vpop.f32.mrf.mxu0  ;;  %v833_v9 = vld [vmem:[#allocation6 + $0xd18] sm:$0xff] }
 0x16e   : > { %1818 = vmatmul.mubr.f32.vlgmr.msra.gmra.mxu1 %v2959_v13  ;;  %v1175_v17 = vpop.f32.mrf.mxu1  ;;  %1914 = vmatprep.subr.mxu0 %v733_v7  ;;  %v1015_v18 = vadd.f32 %v1014_v16, %v3598_v5  ;;  %v2971_v7 = vld [vmem:[%s3447_s30 + $0xd0] sm:$0xff] }
 0x16f   : > { %2075 = vmatprep.subr.mxu1 %v861_v8  ;;  %1915 = vmatpush1.msra.mxu0 %v732_v10  ;;  %v3605_v21 = vpop.f32.mrf.mxu0  ;;  %v705_v8 = vld [vmem:[#allocation6 + $0x918] sm:$0xff]  ;;  %v704_v13 = vld [vmem:[#allocation6 + $0x910] sm:$0xff] }
 0x170   : > { %2076 = vmatpush1.msra.mxu1 %v860_v11  ;;  %v3607_v22 = vpop.f32.mrf.mxu1  ;;  %1916 = vmatprep.subr.mxu0 %v729_v14  ;;  %v3609_v23 = vadd.f32 %v1175_v17, %v1015_v18  ;;  %v832_v14 = vld [vmem:[#allocation6 + $0xd10] sm:$0xff]  ;;  %v2972_v18 = vld [vmem:[%s3447_s30 + $0x108] sm:$0xff] }
 0x171   : > { %2077 = vmatprep.subr.mxu1 %v857_v15  ;;  %1662 = vmatprep.mubr.f32.mxu0 %v2960_v24  ;;  %v829_v24 = vld [vmem:[#allocation6 + $0xcf8] sm:$0xff] }
 0x172   : > { %1823 = vmatprep.mubr.f32.mxu1 %v2961_v25  ;;  %1917 = vmatpush1.msra.mxu0 %v728_v19  ;;  %v2973_v19 = vld [vmem:[%s3447_s30 + $0x118] sm:$0xff]  ;;  %v700_v25 = vld [vmem:[#allocation6 + $0x8f0] sm:$0xff] }
 0x173   : > { %2078 = vmatpush1.msra.mxu1 %v856_v20  ;;  %1663 = vmatmul.mubr.f32.gmra.mxu0 %v2962_v30  ;;  %v1020_v34 = vpop.f32.mrf.mxu0  ;;  %v701_v20 = vld [vmem:[#allocation6 + $0x8f8] sm:$0xff] }
 0x174   : > { %1824 = vmatmul.mubr.f32.gmra.mxu1 %v2963_v31  ;;  %v1181_v35 = vpop.f32.mrf.mxu1  ;;  %1918 = vmatprep.subr.mxu0 %v725_v26  ;;  %v1021_v36 = vadd.f32 %v1020_v34, %v3598_v5  ;;  %v828_v26 = vld [vmem:[#allocation6 + $0xcf0] sm:$0xff]  ;;  %v825_v30 = vld [vmem:[#allocation6 + $0xcd8] sm:$0xff] }
 0x175   : > { %2079 = vmatprep.subr.mxu1 %v853_v27  ;;  %1919 = vmatpush1.msra.mxu0 %v724_v28  ;;  %v3616_v39 = vpop.f32.mrf.mxu0  ;;  %v2974_v27 = vld [vmem:[%s3447_s30 + $0x100] sm:$0xff]  ;;  %v2975_v28 = vld [vmem:[%s3447_s30 + $0x110] sm:$0xff] }
 0x176   : > { %2080 = vmatpush1.msra.mxu1 %v852_v29  ;;  %v3618_v40 = vpop.f32.mrf.mxu1  ;;  %1920 = vmatprep.subr.mxu0 %v721_v32  ;;  %v3620_v41 = vadd.f32 %v1181_v35, %v1021_v36  ;;  %v697_v29 = vld [vmem:[#allocation6 + $0x8d8] sm:$0xff]  ;;  %v696_v34 = vld [vmem:[#allocation6 + $0x8d0] sm:$0xff] }
 0x177   : > { %2081 = vmatprep.subr.mxu1 %v849_v33  ;;  %1668 = vmatprep.mubr.f32.mxu0 %v2964_v42  ;;  %v824_v35 = vld [vmem:[#allocation6 + $0xcd0] sm:$0xff]  ;;  %v2976_v42 = vld [vmem:[%s3447_s30 + $0x148] sm:$0xff] }
 0x178   : > { %1829 = vmatprep.mubr.f32.mxu1 %v2965_v43  ;;  %1921 = vmatpush1.msra.mxu0 %v720_v37  ;;  %v2977_v43 = vld [vmem:[%s3447_s30 + $0x158] sm:$0xff] }
 0x179   : > { %2082 = vmatpush1.msra.mxu1 %v848_v38  ;;  %1669 = vmatmul.mubr.f32.gmra.mxu0 %v2966_v48  ;;  %v1026_v52 = vpop.f32.mrf.mxu0  ;;  %v2978_v48 = vld [vmem:[%s3447_s30 + $0x140] sm:$0xff] }
 0x17a   : > { %1830 = vmatmul.mubr.f32.gmra.mxu1 %v2967_v49  ;;  %v1187_v53 = vpop.f32.mrf.mxu1  ;;  %1922 = vmatprep.subr.mxu0 %v717_v44  ;;  %v1027_v55 = vadd.f32 %v1026_v52, %v3598_v5  ;;  %v693_v44 = vld [vmem:[#allocation6 + $0x8b8] sm:$0xff]  ;;  %v2979_v49 = vld [vmem:[%s3447_s30 + $0x150] sm:$0xff] }
 0x17b   : > { %2083 = vmatprep.subr.mxu1 %v845_v45  ;;  %1923 = vmatpush1.msra.mxu0 %v716_v46  ;;  %v3627_v58 = vpop.f32.mrf.mxu0  ;;  %v821_v45 = vld [vmem:[#allocation6 + $0xcb8] sm:$0xff]  ;;  %v692_v46 = vld [vmem:[#allocation6 + $0x8b0] sm:$0xff] }
 0x17c   : > { %2084 = vmatpush1.msra.mxu1 %v844_v47  ;;  %v3629_v59 = vpop.f32.mrf.mxu1  ;;  %1924 = vmatprep.subr.mxu0 %v713_v50  ;;  %v3631_v60 = vadd.f32 %v1187_v53, %v1027_v55  ;;  %v820_v47 = vld [vmem:[#allocation6 + $0xcb0] sm:$0xff]  ;;  %v689_v50 = vld [vmem:[#allocation6 + $0x898] sm:$0xff] }
 0x17d   : > { %2085 = vmatprep.subr.mxu1 %v841_v51  ;;  %1674 = vmatprep.mubr.f32.mxu0 %v2968_v61  ;;  %v817_v51 = vld [vmem:[#allocation6 + $0xc98] sm:$0xff] }
 0x17e   : > { %1835 = vmatprep.mubr.f32.mxu1 %v2969_v62  ;;  %1925 = vmatpush1.msra.mxu0 %v712_v56  ;;  %v688_v56 = vld [vmem:[#allocation6 + $0x890] sm:$0xff] }
 0x17f   : > { %2086 = vmatpush1.msra.mxu1 %v840_v57  ;;  %1675 = vmatmul.mubr.f32.gmra.mxu0 %v2970_v6  ;;  %v1032_v10 = vpop.f32.mrf.mxu0  ;;  %v816_v57 = vld [vmem:[#allocation6 + $0xc90] sm:$0xff]  ;;  %v813_v6 = vld [vmem:[#allocation6 + $0xc78] sm:$0xff] }
 0x180   : > { %1836 = vmatmul.mubr.f32.gmra.mxu1 %v2971_v7  ;;  %v1193_v11 = vpop.f32.mrf.mxu1  ;;  %1926 = vmatprep.subr.mxu0 %v709_v0  ;;  %v1033_v12 = vadd.f32 %v1032_v10, %v3598_v5  ;;  %v684_v7 = vld [vmem:[#allocation6 + $0x870] sm:$0xff] }
 0x181   : > { %2087 = vmatprep.subr.mxu1 %v837_v1  ;;  %1927 = vmatpush1.msra.mxu0 %v708_v3  ;;  %v3638_v15 = vpop.f32.mrf.mxu0  ;;  %v2980_v1 = vld [vmem:[%s3447_s30 + $0x188] sm:$0xff]  ;;  %v2981_v3 = vld [vmem:[%s3447_s30 + $0x198] sm:$0xff]  ;;  %v2983_v10 = vld [vmem:[%s3447_s30 + $0x190] sm:$0xff] }
 0x182   : > { %2088 = vmatpush1.msra.mxu1 %v836_v4  ;;  %v3640_v16 = vpop.f32.mrf.mxu1  ;;  %1928 = vmatprep.subr.mxu0 %v705_v8  ;;  %v3642_v17 = vadd.f32 %v1193_v11, %v1033_v12  ;;  %v685_v4 = vld [vmem:[#allocation6 + $0x878] sm:$0xff]  ;;  %v812_v8 = vld [vmem:[#allocation6 + $0xc70] sm:$0xff] }
 0x183   : > { %2089 = vmatprep.subr.mxu1 %v833_v9  ;;  %1680 = vmatprep.mubr.f32.mxu0 %v2972_v18  ;;  %v2982_v9 = vld [vmem:[%s3447_s30 + $0x180] sm:$0xff]  ;;  %v681_v11 = vld [vmem:[#allocation6 + $0x858] sm:$0xff] }
 0x184   : > { %1841 = vmatprep.mubr.f32.mxu1 %v2973_v19  ;;  %1929 = vmatpush1.msra.mxu0 %v704_v13  ;;  %v809_v12 = vld [vmem:[#allocation6 + $0xc58] sm:$0xff]  ;;  %v680_v19 = vld [vmem:[#allocation6 + $0x850] sm:$0xff] }
 0x185   : > { %2090 = vmatpush1.msra.mxu1 %v832_v14  ;;  %1681 = vmatmul.mubr.f32.gmra.mxu0 %v2974_v27  ;;  %v1038_v31 = vpop.f32.mrf.mxu0  ;;  %v2984_v27 = vld [vmem:[%s3447_s30 + $0x1c8] sm:$0xff] }
 0x186   : > { %1842 = vmatmul.mubr.f32.gmra.mxu1 %v2975_v28  ;;  %v1199_v32 = vpop.f32.mrf.mxu1  ;;  %1930 = vmatprep.subr.mxu0 %v701_v20  ;;  %v1039_v33 = vadd.f32 %v1038_v31, %v3598_v5  ;;  %v808_v20 = vld [vmem:[#allocation6 + $0xc50] sm:$0xff]  ;;  %v2985_v28 = vld [vmem:[%s3447_s30 + $0x1d8] sm:$0xff] }
 0x187   : > { %2091 = vmatprep.subr.mxu1 %v829_v24  ;;  %1931 = vmatpush1.msra.mxu0 %v700_v25  ;;  %v3649_v36 = vpop.f32.mrf.mxu0  ;;  %v676_v31 = vld [vmem:[#allocation6 + $0x830] sm:$0xff] }
 0x188   : > { %2092 = vmatpush1.msra.mxu1 %v828_v26  ;;  %v3651_v37 = vpop.f32.mrf.mxu1  ;;  %1932 = vmatprep.subr.mxu0 %v697_v29  ;;  %v3653_v38 = vadd.f32 %v1199_v32, %v1039_v33  ;;  %v677_v29 = vld [vmem:[#allocation6 + $0x838] sm:$0xff]  ;;  %v804_v32 = vld [vmem:[#allocation6 + $0xc30] sm:$0xff]  ;;  %v2986_v33 = vld [vmem:[%s3447_s30 + $0x1c0] sm:$0xff] }
 0x189   : > { %2093 = vmatprep.subr.mxu1 %v825_v30  ;;  %1686 = vmatprep.mubr.f32.mxu0 %v2976_v42  ;;  %v805_v30 = vld [vmem:[#allocation6 + $0xc38] sm:$0xff] }
 0x18a   : > { %1847 = vmatprep.mubr.f32.mxu1 %v2977_v43  ;;  %1933 = vmatpush1.msra.mxu0 %v696_v34  ;;  %v2987_v34 = vld [vmem:[%s3447_s30 + $0x1d0] sm:$0xff]  ;;  %v801_v42 = vld [vmem:[#allocation6 + $0xc18] sm:$0xff] }
 0x18b   : > { %2094 = vmatpush1.msra.mxu1 %v824_v35  ;;  %1687 = vmatmul.mubr.f32.gmra.mxu0 %v2978_v48  ;;  %v1044_v52 = vpop.f32.mrf.mxu0  ;;  %v673_v35 = vld [vmem:[#allocation6 + $0x818] sm:$0xff] }
 0x18c   : > { %1848 = vmatmul.mubr.f32.gmra.mxu1 %v2979_v49  ;;  %v1205_v53 = vpop.f32.mrf.mxu1  ;;  %1934 = vmatprep.subr.mxu0 %v693_v44  ;;  %v1045_v55 = vadd.f32 %v1044_v52, %v3598_v5  ;;  %v2989_v52 = vld [vmem:[%s3447_s30 + $0x218] sm:$0xff] }
 0x18d   : > { %2095 = vmatprep.subr.mxu1 %v821_v45  ;;  %1935 = vmatpush1.msra.mxu0 %v692_v46  ;;  %v3660_v61 = vpop.f32.mrf.mxu0  ;;  %v672_v46 = vld [vmem:[#allocation6 + $0x810] sm:$0xff] }
 0x18e   : > { %2096 = vmatpush1.msra.mxu1 %v820_v47  ;;  %v3662_v62 = vpop.f32.mrf.mxu1  ;;  %1936 = vmatprep.subr.mxu0 %v689_v50  ;;  %v3664_v0 = vadd.f32 %v1205_v53, %v1045_v55  ;;  %v800_v47 = vld [vmem:[#allocation6 + $0xc10] sm:$0xff]  ;;  %v797_v53 = vld [vmem:[#allocation6 + $0xbf8] sm:$0xff] }
 0x18f   : > { %2097 = vmatprep.subr.mxu1 %v817_v51  ;;  %1692 = vmatprep.mubr.f32.mxu0 %v2980_v1  ;;  %v2988_v51 = vld [vmem:[%s3447_s30 + $0x208] sm:$0xff]  ;;  %v925_v55 = vld [vmem:[#allocation6 + $0xff8] sm:$0xff]  ;;  %v2990_v1 = vld [vmem:[%s3447_s30 + $0x200] sm:$0xff] }
 0x190   : > { %1853 = vmatprep.mubr.f32.mxu1 %v2981_v3  ;;  %1937 = vmatpush1.msra.mxu0 %v688_v56  ;;  %v796_v56 = vld [vmem:[#allocation6 + $0xbf0] sm:$0xff] }
 0x191   : > { %2098 = vmatpush1.msra.mxu1 %v816_v57  ;;  %1693 = vmatmul.mubr.f32.gmra.mxu0 %v2982_v9  ;;  %v1050_v13 = vpop.f32.mrf.mxu0  ;;  %v924_v57 = vld [vmem:[#allocation6 + $0xff0] sm:$0xff] }
 0x192   : > { %1854 = vmatmul.mubr.f32.gmra.mxu1 %v2983_v10  ;;  %v1211_v14 = vpop.f32.mrf.mxu1  ;;  %1938 = vmatprep.subr.mxu0 %v685_v4  ;;  %v1051_v18 = vadd.f32 %v1050_v13, %v3598_v5  ;;  %v2991_v3 = vld [vmem:[%s3447_s30 + $0x210] sm:$0xff]  ;;  %v793_v4 = vld [vmem:[#allocation6 + $0xbd8] sm:$0xff] }
 0x193   : > { %2099 = vmatprep.subr.mxu1 %v813_v6  ;;  %1939 = vmatpush1.msra.mxu0 %v684_v7  ;;  %v3671_v24 = vpop.f32.mrf.mxu0  ;;  %v921_v6 = vld [vmem:[#allocation6 + $0xfd8] sm:$0xff]  ;;  %v792_v10 = vld [vmem:[#allocation6 + $0xbd0] sm:$0xff] }
 0x194   : > { %2100 = vmatpush1.msra.mxu1 %v812_v8  ;;  %v3673_v25 = vpop.f32.mrf.mxu1  ;;  %1940 = vmatprep.subr.mxu0 %v681_v11  ;;  %v3675_v26 = vadd.f32 %v1211_v14, %v1051_v18  ;;  %v920_v11 = vld [vmem:[#allocation6 + $0xfd0] sm:$0xff]  ;;  %v4323_v14 = vsub.s32 1, %v3587_v54 }
 0x195   : > { %2101 = vmatprep.subr.mxu1 %v809_v12  ;;  %1698 = vmatprep.mubr.f32.mxu0 %v2984_v27  ;;  %v789_v27 = vld [vmem:[#allocation6 + $0xbb8] sm:$0xff] }
 0x196   : > { %1859 = vmatprep.mubr.f32.mxu1 %v2985_v28  ;;  %1941 = vmatpush1.msra.mxu0 %v680_v19  ;;  %v2992_v19 = vld [vmem:[%s3447_s30 + $0x248] sm:$0xff]  ;;  %v917_v28 = vld [vmem:[#allocation6 + $0xfb8] sm:$0xff] }
 0x197   : > { %2102 = vmatpush1.msra.mxu1 %v808_v20  ;;  %1699 = vmatmul.mubr.f32.gmra.mxu0 %v2986_v33  ;;  %v1056_v43 = vpop.f32.mrf.mxu0  ;;  %v2993_v20 = vld [vmem:[%s3447_s30 + $0x258] sm:$0xff] }
 0x198   : > { %1860 = vmatmul.mubr.f32.gmra.mxu1 %v2987_v34  ;;  %v1217_v44 = vpop.f32.mrf.mxu1  ;;  %1942 = vmatprep.subr.mxu0 %v677_v29  ;;  %v1057_v45 = vadd.f32 %v1056_v43, %v3598_v5  ;;  %v788_v29 = vld [vmem:[#allocation6 + $0xbb0] sm:$0xff]  ;;  %v785_v33 = vld [vmem:[#allocation6 + $0xb98] sm:$0xff]  ;;  %v3707_v43 = vrot.slane %v3594_v2, %v4323_v14 }
 0x199   : > { %2103 = vmatprep.subr.mxu1 %v805_v30  ;;  %1943 = vmatpush1.msra.mxu0 %v676_v31  ;;  %v3682_v48 = vpop.f32.mrf.mxu0  ;;  %v916_v30 = vld [vmem:[#allocation6 + $0xfb0] sm:$0xff]  ;;  %v2994_v31 = vld [vmem:[%s3447_s30 + $0x240] sm:$0xff]  ;;  %v913_v34 = vld [vmem:[#allocation6 + $0xf98] sm:$0xff] }
 0x19a   : > { %2104 = vmatpush1.msra.mxu1 %v804_v32  ;;  %v3684_v49 = vpop.f32.mrf.mxu1  ;;  %1944 = vmatprep.subr.mxu0 %v673_v35  ;;  %v3686_v50 = vadd.f32 %v1217_v44, %v1057_v45  ;;  %v2995_v32 = vld [vmem:[%s3447_s30 + $0x250] sm:$0xff]  ;;  %v2997_v2 = vld [vmem:[%s3447_s30 + $0x298] sm:$0xff] }
 0x19b   : > { %2105 = vmatprep.subr.mxu1 %v801_v42  ;;  %1704 = vmatprep.mubr.f32.mxu0 %v2988_v51  ;;  %v784_v45 = vld [vmem:[#allocation6 + $0xb90] sm:$0xff] }
 0x19c   : > { %1865 = vmatprep.mubr.f32.mxu1 %v2989_v52  ;;  %1945 = vmatpush1.msra.mxu0 %v672_v46  ;;  %v912_v46 = vld [vmem:[#allocation6 + $0xf90] sm:$0xff] }
 0x19d   : > { %2106 = vmatpush1.msra.mxu1 %v800_v47  ;;  %1705 = vmatmul.mubr.f32.gmra.mxu0 %v2990_v1  ;;  %v1062_v7 = vpop.f32.mrf.mxu0  ;;  %v780_v1 = vld [vmem:[#allocation6 + $0xb70] sm:$0xff] }
 0x19e   : > { %1866 = vmatmul.mubr.f32.gmra.mxu1 %v2991_v3  ;;  %v1223_v8 = vpop.f32.mrf.mxu1  ;;  %1946 = vmatprep.subr.mxu0 %v797_v53  ;;  %v1063_v9 = vadd.f32 %v1062_v7, %v3598_v5  ;;  %v908_v3 = vld [vmem:[#allocation6 + $0xf70] sm:$0xff] }
 0x19f   : > { %2107 = vmatprep.subr.mxu1 %v925_v55  ;;  %1947 = vmatpush2.msra.mxu0 %v796_v56  ;;  %v3693_v12 = vpop.f32.mrf.mxu0  ;;  %v2996_v55 = vld [vmem:[%s3447_s30 + $0x288] sm:$0xff]  ;;  %v781_v56 = vld [vmem:[#allocation6 + $0xb78] sm:$0xff]  ;;  %v2999_v7 = vld [vmem:[%s3447_s30 + $0x290] sm:$0xff] }
 0x1a0   : > { %2108 = vmatpush2.msra.mxu1 %v924_v57  ;;  %v3695_v13 = vpop.f32.mrf.mxu1  ;;  %1948 = vmatprep.subr.mxu0 %v793_v4  ;;  %v3698_v18 = vadd.f32 %v1223_v8, %v1063_v9  ;;  %v909_v57 = vld [vmem:[#allocation6 + $0xf78] sm:$0xff] }
 0x1a1   : > { %2109 = vmatprep.subr.mxu1 %v921_v6  ;;  %1710 = vmatprep.mubr.f32.mxu0 %v2992_v19  ;;  %v2998_v6 = vld [vmem:[%s3447_s30 + $0x280] sm:$0xff]  ;;  %v777_v8 = vld [vmem:[#allocation6 + $0xb58] sm:$0xff] }
 0x1a2   : > { %1871 = vmatprep.mubr.f32.mxu1 %v2993_v20  ;;  %1949 = vmatpush2.msra.mxu0 %v792_v10  ;;  %v905_v9 = vld [vmem:[#allocation6 + $0xf58] sm:$0xff]  ;;  %v776_v20 = vld [vmem:[#allocation6 + $0xb50] sm:$0xff] }
 0x1a3   : > { %2110 = vmatpush2.msra.mxu1 %v920_v11  ;;  %1711 = vmatmul.mubr.f32.gmra.mxu0 %v2994_v31  ;;  %v1068_v35 = vpop.f32.mrf.mxu0 }
 0x1a4   : > { %1872 = vmatmul.mubr.f32.gmra.mxu1 %v2995_v32  ;;  %v1229_v42 = vpop.f32.mrf.mxu1  ;;  %1950 = vmatprep.subr.mxu0 %v789_v27  ;;  %v1069_v44 = vadd.f32 %v1068_v35, %v3598_v5  ;;  %v904_v27 = vld [vmem:[#allocation6 + $0xf50] sm:$0xff]  ;;  %v3000_v32 = vld [vmem:[%s3447_s30 + $0x2c8] sm:$0xff]  ;;  %v901_v35 = vld [vmem:[#allocation6 + $0xf38] sm:$0xff] }
 0x1a5   : > { %2111 = vmatprep.subr.mxu1 %v917_v28  ;;  %1951 = vmatpush2.msra.mxu0 %v788_v29  ;;  %v1070_v47 = vpop.f32.mrf.mxu0 }
 0x1a6   : > { %2112 = vmatpush2.msra.mxu1 %v916_v30  ;;  %v1231_v51 = vpop.f32.mrf.mxu1  ;;  %1952 = vmatprep.subr.mxu0 %v785_v33  ;;  %v3710_v52 = vadd.f32 %v1229_v42, %v1069_v44  ;;  %v1071_v53 = vadd.f32 %v1070_v47, %v3707_v43  ;;  %v3001_v33 = vld [vmem:[%s3447_s30 + $0x2d8] sm:$0xff]  ;;  %v772_v42 = vld [vmem:[#allocation6 + $0xb30] sm:$0xff] }
 0x1a7   : > { %2113 = vmatprep.subr.mxu1 %v913_v34  ;;  %1716 = vmatprep.mubr.f32.mxu0 %v2996_v55  ;;  %v773_v34 = vld [vmem:[#allocation6 + $0xb38] sm:$0xff]  ;;  %v900_v44 = vld [vmem:[#allocation6 + $0xf30] sm:$0xff] }
 0x1a8   : > { %1877 = vmatprep.mubr.f32.mxu1 %v2997_v2  ;;  %1953 = vmatpush2.msra.mxu0 %v784_v45  ;;  %v3715_v4 = vadd.f32 %v1231_v51, %v1071_v53  ;;  %v3003_v47 = vld [vmem:[%s3447_s30 + $0x2d0] sm:$0xff]  ;;  %v769_v51 = vld [vmem:[#allocation6 + $0xb18] sm:$0xff] }
 0x1a9   : > { %2114 = vmatpush2.msra.mxu1 %v912_v46  ;;  %1717 = vmatmul.mubr.f32.gmra.mxu0 %v2998_v6  ;;  %v1074_v10 = vpop.f32.mrf.mxu0  ;;  %v3002_v46 = vld [vmem:[%s3447_s30 + $0x2c0] sm:$0xff]  ;;  %v897_v53 = vld [vmem:[#allocation6 + $0xf18] sm:$0xff] }
 0x1aa   : > { %1878 = vmatmul.mubr.f32.gmra.mxu1 %v2999_v7  ;;  %v1235_v11 = vpop.f32.mrf.mxu1  ;;  %1954 = vmatprep.subr.mxu0 %v781_v56  ;;  %v1075_v19 = vadd.f32 %v1074_v10, %v3598_v5  ;;  %v3005_v10 = vld [vmem:[%s3447_s30 + $0x318] sm:$0xff] }
 0x1ab   : > { %2115 = vmatprep.subr.mxu1 %v909_v57  ;;  %1955 = vmatpush2.msra.mxu0 %v780_v1  ;;  %v1076_v28 = vpop.f32.mrf.mxu0  ;;  %v768_v57 = vld [vmem:[#allocation6 + $0xb10] sm:$0xff] }
 0x1ac   : > { %2116 = vmatpush2.msra.mxu1 %v908_v3  ;;  %v1237_v29 = vpop.f32.mrf.mxu1  ;;  %1956 = vmatprep.subr.mxu0 %v777_v8  ;;  %v3720_v30 = vadd.f32 %v1235_v11, %v1075_v19  ;;  %v1077_v31 = vadd.f32 %v1076_v28, %v3707_v43  ;;  %v896_v1 = vld [vmem:[#allocation6 + $0xf10] sm:$0xff]  ;;  %v765_v11 = vld [vmem:[#allocation6 + $0xaf8] sm:$0xff] }
 0x1ad   : > { %2117 = vmatprep.subr.mxu1 %v905_v9  ;;  %1722 = vmatprep.mubr.f32.mxu0 %v3000_v32  ;;  %v3004_v9 = vld [vmem:[%s3447_s30 + $0x308] sm:$0xff]  ;;  %v893_v19 = vld [vmem:[#allocation6 + $0xef8] sm:$0xff] }
 0x1ae   : > { %1883 = vmatprep.mubr.f32.mxu1 %v3001_v33  ;;  %1957 = vmatpush2.msra.mxu0 %v776_v20  ;;  %v3725_v45 = vadd.f32 %v1237_v29, %v1077_v31  ;;  %v764_v20 = vld [vmem:[#allocation6 + $0xaf0] sm:$0xff]  ;;  %v3006_v29 = vld [vmem:[%s3447_s30 + $0x300] sm:$0xff]  ;;  %v761_v32 = vld [vmem:[#allocation6 + $0xad8] sm:$0xff] }
 0x1af   : > { %2118 = vmatpush2.msra.mxu1 %v904_v27  ;;  %1723 = vmatmul.mubr.f32.gmra.mxu0 %v3002_v46  ;;  %v1080_v55 = vpop.f32.mrf.mxu0  ;;  %v892_v27 = vld [vmem:[#allocation6 + $0xef0] sm:$0xff]  ;;  %v889_v33 = vld [vmem:[#allocation6 + $0xed8] sm:$0xff] }
 0x1b0   : > { %1884 = vmatmul.mubr.f32.gmra.mxu1 %v3003_v47  ;;  %v1241_v2 = vpop.f32.mrf.mxu1  ;;  %1958 = vmatprep.subr.mxu0 %v773_v34  ;;  %v1081_v56 = vadd.f32 %v1080_v55, %v3598_v5  ;;  %v3007_v31 = vld [vmem:[%s3447_s30 + $0x310] sm:$0xff] }
 0x1b1   : > { %2119 = vmatprep.subr.mxu1 %v901_v35  ;;  %1959 = vmatpush2.msra.mxu0 %v772_v42  ;;  %v1082_v3 = vpop.f32.mrf.mxu0  ;;  %v888_v46 = vld [vmem:[#allocation6 + $0xed0] sm:$0xff] }
 0x1b2   : > { %2120 = vmatpush2.msra.mxu1 %v900_v44  ;;  %v1243_v6 = vpop.f32.mrf.mxu1  ;;  %1960 = vmatprep.subr.mxu0 %v769_v51  ;;  %v3730_v7 = vadd.f32 %v1241_v2, %v1081_v56  ;;  %v1083_v8 = vadd.f32 %v1082_v3, %v3707_v43  ;;  %v760_v44 = vld [vmem:[#allocation6 + $0xad0] sm:$0xff]  ;;  %v3008_v2 = vld [vmem:[%s3447_s30 + $0x348] sm:$0xff]  ;;  %v3009_v56 = vld [vmem:[%s3447_s30 + $0x358] sm:$0xff] }
 0x1b3   : > { %2121 = vmatprep.subr.mxu1 %v897_v53  ;;  %1728 = vmatprep.mubr.f32.mxu0 %v3004_v9  ;;  %v756_v3 = vld [vmem:[#allocation6 + $0xab0] sm:$0xff]  ;;  %v3010_v9 = vld [vmem:[%s3447_s30 + $0x340] sm:$0xff] }
 0x1b4   : > { %1889 = vmatprep.mubr.f32.mxu1 %v3005_v10  ;;  %1961 = vmatpush2.msra.mxu0 %v768_v57  ;;  %v3735_v28 = vadd.f32 %v1243_v6, %v1083_v8  ;;  %v757_v57 = vld [vmem:[#allocation6 + $0xab8] sm:$0xff]  ;;  %v884_v6 = vld [vmem:[#allocation6 + $0xeb0] sm:$0xff] }
 0x1b5   : > { %2122 = vmatpush2.msra.mxu1 %v896_v1  ;;  %1729 = vmatmul.mubr.f32.gmra.mxu0 %v3006_v29  ;;  %v1086_v34 = vpop.f32.mrf.mxu0  ;;  %v885_v1 = vld [vmem:[#allocation6 + $0xeb8] sm:$0xff]  ;;  %v3011_v10 = vld [vmem:[%s3447_s30 + $0x350] sm:$0xff] }
 0x1b6   : > { %1890 = vmatmul.mubr.f32.gmra.mxu1 %v3007_v31  ;;  %v1247_v35 = vpop.f32.mrf.mxu1  ;;  %1962 = vmatprep.subr.mxu0 %v765_v11  ;;  %v1087_v42 = vadd.f32 %v1086_v34, %v3598_v5  ;;  %v753_v11 = vld [vmem:[#allocation6 + $0xa98] sm:$0xff]  ;;  %v752_v31 = vld [vmem:[#allocation6 + $0xa90] sm:$0xff] }
 0x1b7   : > { %2123 = vmatprep.subr.mxu1 %v893_v19  ;;  %1963 = vmatpush2.msra.mxu0 %v764_v20  ;;  %v1088_v47 = vpop.f32.mrf.mxu0  ;;  %v881_v19 = vld [vmem:[#allocation6 + $0xe98] sm:$0xff] }
 0x1b8   : > { %2124 = vmatpush2.msra.mxu1 %v892_v27  ;;  %v1249_v51 = vpop.f32.mrf.mxu1  ;;  %1964 = vmatprep.subr.mxu0 %v761_v32  ;;  %v3740_v53 = vadd.f32 %v1247_v35, %v1087_v42  ;;  %v1089_v55 = vadd.f32 %v1088_v47, %v3707_v43  ;;  %v880_v32 = vld [vmem:[#allocation6 + $0xe90] sm:$0xff]  ;;  %v749_v47 = vld [vmem:[#allocation6 + $0xa78] sm:$0xff] }
 0x1b9   : > { %2125 = vmatprep.subr.mxu1 %v889_v33  ;;  %1734 = vmatprep.mubr.f32.mxu0 %v3008_v2  ;;  %v876_v2 = vld [vmem:[#allocation6 + $0xe70] sm:$0xff] }
 0x1ba   : > { %1895 = vmatprep.mubr.f32.mxu1 %v3009_v56  ;;  %1965 = vmatpush2.msra.mxu0 %v760_v44  ;;  %v3745_v8 = vadd.f32 %v1249_v51, %v1089_v55  ;;  %v3012_v44 = vld [vmem:[%s3447_s30 + $0x388] sm:$0xff]  ;;  %v877_v51 = vld [vmem:[#allocation6 + $0xe78] sm:$0xff]  ;;  %v748_v55 = vld [vmem:[#allocation6 + $0xa70] sm:$0xff] }
 0x1bb   : > { %2126 = vmatpush2.msra.mxu1 %v888_v46  ;;  %1735 = vmatmul.mubr.f32.gmra.mxu0 %v3010_v9  ;;  %v1092_v20 = vpop.f32.mrf.mxu0  ;;  %v3013_v46 = vld [vmem:[%s3447_s30 + $0x398] sm:$0xff] }
 0x1bc   : > { %1896 = vmatmul.mubr.f32.gmra.mxu1 %v3011_v10  ;;  %v1253_v27 = vpop.f32.mrf.mxu1  ;;  %1966 = vmatprep.subr.mxu0 %v757_v57  ;;  %v1093_v29 = vadd.f32 %v1092_v20, %v3598_v5  ;;  %v3014_v57 = vld [vmem:[%s3447_s30 + $0x380] sm:$0xff]  ;;  %v872_v20 = vld [vmem:[#allocation6 + $0xe50] sm:$0xff] }
 0x1bd   : > { %2127 = vmatprep.subr.mxu1 %v885_v1  ;;  %1967 = vmatpush2.msra.mxu0 %v756_v3  ;;  %v1094_v33 = vpop.f32.mrf.mxu0  ;;  %v3015_v1 = vld [vmem:[%s3447_s30 + $0x390] sm:$0xff]  ;;  %v745_v3 = vld [vmem:[#allocation6 + $0xa58] sm:$0xff] }
 0x1be   : > { %2128 = vmatpush2.msra.mxu1 %v884_v6  ;;  %v1255_v34 = vpop.f32.mrf.mxu1  ;;  %1968 = vmatprep.subr.mxu0 %v753_v11  ;;  %v3750_v35 = vadd.f32 %v1253_v27, %v1093_v29  ;;  %v1095_v42 = vadd.f32 %v1094_v33, %v3707_v43  ;;  %v873_v6 = vld [vmem:[#allocation6 + $0xe58] sm:$0xff]  ;;  %v3016_v33 = vld [vmem:[%s3447_s30 + $0x3c8] sm:$0xff] }
 0x1bf   : > { %2129 = vmatprep.subr.mxu1 %v881_v19  ;;  %1740 = vmatprep.mubr.f32.mxu0 %v3012_v44  ;;  %v744_v19 = vld [vmem:[#allocation6 + $0xa50] sm:$0xff]  ;;  %v869_v44 = vld [vmem:[#allocation6 + $0xe38] sm:$0xff] }
 0x1c0   : > { %1901 = vmatprep.mubr.f32.mxu1 %v3013_v46  ;;  %1969 = vmatpush2.msra.mxu0 %v752_v31  ;;  %v3755_v56 = vadd.f32 %v1255_v34, %v1095_v42  ;;  %v3017_v34 = vld [vmem:[%s3447_s30 + $0x3d8] sm:$0xff]  ;;  %v740_v46 = vld [vmem:[#allocation6 + $0xa30] sm:$0xff] }
 0x1c1   : > { %2130 = vmatpush2.msra.mxu1 %v880_v32  ;;  %1741 = vmatmul.mubr.f32.gmra.mxu0 %v3014_v57  ;;  %v1098_v9 = vpop.f32.mrf.mxu0  ;;  %v741_v42 = vld [vmem:[#allocation6 + $0xa38] sm:$0xff] }
 0x1c2   : > { %1902 = vmatmul.mubr.f32.gmra.mxu1 %v3015_v1  ;;  %v1259_v10 = vpop.f32.mrf.mxu1  ;;  %1970 = vmatprep.subr.mxu0 %v749_v47  ;;  %v1099_v11 = vadd.f32 %v1098_v9, %v3598_v5  ;;  %v868_v47 = vld [vmem:[#allocation6 + $0xe30] sm:$0xff]  ;;  %v737_v57 = vld [vmem:[#allocation6 + $0xa18] sm:$0xff] }
 0x1c3   : > { %2131 = vmatprep.subr.mxu1 %v877_v51  ;;  %1971 = vmatpush2.msra.mxu0 %v748_v55  ;;  %v1100_v27 = vpop.f32.mrf.mxu0  ;;  %v3018_v55 = vld [vmem:[%s3447_s30 + $0x3c0] sm:$0xff]  ;;  %v865_v1 = vld [vmem:[#allocation6 + $0xe18] sm:$0xff]  ;;  %v736_v9 = vld [vmem:[#allocation6 + $0xa10] sm:$0xff] }
 0x1c4   : > { %2132 = vmatpush2.msra.mxu1 %v876_v2  ;;  %v1261_v29 = vpop.f32.mrf.mxu1  ;;  %1972 = vmatprep.subr.mxu0 %v745_v3  ;;  %v3760_v31 = vadd.f32 %v1259_v10, %v1099_v11  ;;  %v1101_v32 = vadd.f32 %v1100_v27, %v3707_v43  ;;  %v3019_v2 = vld [vmem:[%s3447_s30 + $0x3d0] sm:$0xff]  ;;  %v1017_v27 = vadd.f32 %v3605_v21, %v3707_v43 }
 0x1c5   : > { %2133 = vmatprep.subr.mxu1 %v873_v6  ;;  %1746 = vmatprep.mubr.f32.mxu0 %v3016_v33  ;;  %v864_v11 = vld [vmem:[#allocation6 + $0xe10] sm:$0xff]  ;;  %v3021_v33 = vld [vmem:[%s3447_s30 + $0x38] sm:$0xff] }
 0x1c6   : > { %1907 = vmatprep.mubr.f32.mxu1 %v3017_v34  ;;  %1973 = vmatpush2.msra.mxu0 %v744_v19  ;;  %v3765_v51 = vadd.f32 %v1261_v29, %v1101_v32 }
 0x1c7   : > { %2134 = vmatpush2.msra.mxu1 %v872_v20  ;;  %1747 = vmatmul.mubr.f32.gmra.mxu0 %v3018_v55  ;;  %v1104_v3 = vpop.f32.mrf.mxu0  ;;  %v3024_v55 = vld [vmem:[%s3447_s30 + $0x68] sm:$0xff] }
 0x1c8   : > { %1908 = vmatmul.mubr.f32.gmra.mxu1 %v3019_v2  ;;  %v1265_v6 = vpop.f32.mrf.mxu1  ;;  %1974 = vmatprep.subr.mxu0 %v741_v42  ;;  %v1105_v10 = vadd.f32 %v1104_v3, %v3598_v5  ;;  %v3020_v5 = vld [vmem:[%s3447_s30 + $0x28] sm:$0xff]  ;;  %v3022_v42 = vld [vmem:[%s3447_s30 + $0x20] sm:$0xff]  ;;  %v3025_v2 = vld [vmem:[%s3447_s30 + $0x78] sm:$0xff] }
 0x1c9   : > { %2135 = vmatprep.subr.mxu1 %v869_v44  ;;  %1975 = vmatpush2.msra.mxu0 %v740_v46  ;;  %v1106_v19 = vpop.f32.mrf.mxu0  ;;  %v3023_v44 = vld [vmem:[%s3447_s30 + $0x30] sm:$0xff] }
 0x1ca   : > { %2136 = vmatpush2.msra.mxu1 %v868_v47  ;;  %v1267_v20 = vpop.f32.mrf.mxu1  ;;  %1976 = vmatprep.subr.mxu0 %v737_v57  ;;  %v3772_v29 = vadd.f32 %v1265_v6, %v1105_v10  ;;  %v1107_v32 = vadd.f32 %v1106_v19, %v3707_v43  ;;  %v1178_v47 = vadd.f32 %v3607_v22, %v1017_v27  ;;  %v3027_v22 = vld [vmem:[%s3447_s30 + $0x70] sm:$0xff]  ;;  %v3028_v19 = vld [vmem:[%s3447_s30 + $0xa8] sm:$0xff] }
 0x1cb   : > { %2137 = vmatprep.subr.mxu1 %v865_v1  ;;  %1977 = vmatpush2.msra.mxu0 %v736_v9  ;;  %v1023_v6 = vadd.f32 %v3616_v39, %v3707_v43 }
 0x1cc   : > { %1978 = vmatprep.mubr.f32.mxu0 %v3020_v5  ;;  %2138 = vmatpush2.msra.mxu1 %v864_v11  ;;  %v3777_v34 = vadd.f32 %v1267_v20, %v1107_v32  ;;  %v3026_v11 = vld [vmem:[%s3447_s30 + $0x60] sm:$0xff]  ;;  %v3029_v20 = vld [vmem:[%s3447_s30 + $0xb8] sm:$0xff] }
 0x1cd   : > { %2139 = vmatprep.mubr.f32.mxu1 %v3021_v33  ;;  %1979 = vmatmul.mubr.f32.vlgmr.msra.gmra.mxu0 %v3022_v42  ;;  %v1336_v21 = vpop.f32.mrf.mxu0  ;;  %v1184_v39 = vadd.f32 %v3618_v40, %v1023_v6  ;;  %v3030_v33 = vld [vmem:[%s3447_s30 + $0xa0] sm:$0xff]  ;;  %v3031_v42 = vld [vmem:[%s3447_s30 + $0xb0] sm:$0xff] }
 0x1ce   : > { %2140 = vmatmul.mubr.f32.vlgmr.msra.gmra.mxu1 %v3023_v44  ;;  %v1497_v46 = vpop.f32.mrf.mxu1  ;;  %1984 = vmatprep.mubr.f32.mxu0 %v3024_v55  ;;  %v1337_v57 = vadd.f32 %v1336_v21, %v3609_v23  ;;  %v3033_v55 = vld [vmem:[%s3447_s30 + $0xf8] sm:$0xff] }
 0x1cf   : > { %2145 = vmatprep.mubr.f32.mxu1 %v3025_v2  ;;  %v1338_v1 = vpop.f32.mrf.mxu0 }
 0x1d0   : > { %v1499_v3 = vpop.f32.mrf.mxu1  ;;  %v3787_v9 = vadd.f32 %v1497_v46, %v1337_v57  ;;  %v1339_v10 = vadd.f32 %v1338_v1, %v1178_v47  ;;  %v1029_v46 = vadd.f32 %v3627_v58, %v3707_v43  ;;  %v3032_v47 = vld [vmem:[%s3447_s30 + $0xe8] sm:$0xff]  ;;  %v3034_v57 = vld [vmem:[%s3447_s30 + $0xe0] sm:$0xff]  ;;  %v3035_v1 = vld [vmem:[%s3447_s30 + $0xf0] sm:$0xff] }
 0x1d1   : > { %1985 = vmatmul.mubr.f32.gmra.mxu0 %v3026_v11  ;;  %v3037_v11 = vld [vmem:[%s3447_s30 + $0x138] sm:$0xff] }
 0x1d2   : > { %2146 = vmatmul.mubr.f32.gmra.mxu1 %v3027_v22  ;;  %1990 = vmatprep.mubr.f32.mxu0 %v3028_v19  ;;  %v3793_v23 = vadd.f32 %v1499_v3, %v1339_v10  ;;  %v1190_v58 = vadd.f32 %v3629_v59, %v1029_v46  ;;  %v3036_v10 = vld [vmem:[%s3447_s30 + $0x128] sm:$0xff]  ;;  %v3039_v59 = vld [vmem:[%s3447_s30 + $0x130] sm:$0xff]  ;;  %2764 = vtanh.f32 %v3787_v9 }
 0x1d3   : > { %2151 = vmatprep.mubr.f32.mxu1 %v3029_v20  ;;  %v1342_v27 = vpop.f32.mrf.mxu0 }
 0x1d4   : > { %v1503_v32 = vpop.f32.mrf.mxu1  ;;  %v1343_v5 = vadd.f32 %v1342_v27, %v3620_v41  ;;  %v1035_v27 = vadd.f32 %v3638_v15, %v3707_v43  ;;  %2766 = vtanh.f32 %v3793_v23 }
 0x1d5   : > { %1991 = vmatmul.mubr.f32.gmra.mxu0 %v3030_v33  ;;  %v1344_v44 = vpop.f32.mrf.mxu0  ;;  %v3040_v33 = vld [vmem:[%s3447_s30 + $0x168] sm:$0xff] }
 0x1d6   : > { %2152 = vmatmul.mubr.f32.gmra.mxu1 %v3031_v42  ;;  %v1505_v21 = vpop.f32.mrf.mxu1  ;;  %1996 = vmatprep.mubr.f32.mxu0 %v3032_v47  ;;  %v3803_v40 = vadd.f32 %v1503_v32, %v1343_v5  ;;  %v1345_v2 = vadd.f32 %v1344_v44, %v1184_v39  ;;  %v3038_v5 = vld [vmem:[%s3447_s30 + $0x120] sm:$0xff]  ;;  %v3041_v42 = vld [vmem:[%s3447_s30 + $0x178] sm:$0xff]  ;;  %v1196_v15 = vadd.f32 %v3640_v16, %v1035_v27 }
 0x1d7   : > { %2157 = vmatprep.mubr.f32.mxu1 %v3033_v55  ;;  %v3042_v47 = vld [vmem:[%s3447_s30 + $0x160] sm:$0xff]  ;;  %v3043_v55 = vld [vmem:[%s3447_s30 + $0x170] sm:$0xff]  ;;  %v3049_v27 = vld [vmem:[%s3447_s30 + $0x1f8] sm:$0xff] }
 0x1d8   : > { %v3805_v41 = vadd.f32 %v1505_v21, %v1345_v2  ;;  %2768 = vtanh.f32 %v3803_v40 }
 0x1d9   : > { %1997 = vmatmul.mubr.f32.gmra.mxu0 %v3034_v57  ;;  %v1348_v3 = vpop.f32.mrf.mxu0 }
 0x1da   : > { %2158 = vmatmul.mubr.f32.gmra.mxu1 %v3035_v1  ;;  %v1509_v6 = vpop.f32.mrf.mxu1  ;;  %2002 = vmatprep.mubr.f32.mxu0 %v3036_v10  ;;  %v1349_v22 = vadd.f32 %v1348_v3, %v3631_v60  ;;  %v1041_v1 = vadd.f32 %v3649_v36, %v3707_v43  ;;  %v3044_v3 = vld [vmem:[%s3447_s30 + $0x1a8] sm:$0xff]  ;;  %v3046_v10 = vld [vmem:[%s3447_s30 + $0x1a0] sm:$0xff]  ;;  %2770 = vtanh.f32 %v3805_v41 }
 0x1db   : > { %2163 = vmatprep.mubr.f32.mxu1 %v3037_v11  ;;  %v1350_v19 = vpop.f32.mrf.mxu0  ;;  %v3047_v11 = vld [vmem:[%s3447_s30 + $0x1b0] sm:$0xff] }
 0x1dc   : > { %v1511_v20 = vpop.f32.mrf.mxu1  ;;  %v3815_v32 = vadd.f32 %v1509_v6, %v1349_v22  ;;  %v1351_v39 = vadd.f32 %v1350_v19, %v1190_v58  ;;  %v3045_v6 = vld [vmem:[%s3447_s30 + $0x1b8] sm:$0xff]  ;;  %v1202_v36 = vadd.f32 %v3651_v37, %v1041_v1  ;;  %v3051_v37 = vld [vmem:[%s3447_s30 + $0x1f0] sm:$0xff] }
 0x1dd   : > { %2003 = vmatmul.mubr.f32.gmra.mxu0 %v3038_v5  ;;  %v3055_v1 = vld [vmem:[%s3447_s30 + $0x230] sm:$0xff] }
 0x1de   : > { %2164 = vmatmul.mubr.f32.gmra.mxu1 %v3039_v59  ;;  %2008 = vmatprep.mubr.f32.mxu0 %v3040_v33  ;;  %v3821_v60 = vadd.f32 %v1511_v20, %v1351_v39  ;;  %v3048_v20 = vld [vmem:[%s3447_s30 + $0x1e8] sm:$0xff]  ;;  %v1047_v33 = vadd.f32 %v3660_v61, %v3707_v43  ;;  %2772 = vtanh.f32 %v3815_v32 }
 0x1df   : > { %2169 = vmatprep.mubr.f32.mxu1 %v3041_v42  ;;  %v1354_v44 = vpop.f32.mrf.mxu0 }
 0x1e0   : > { %v1515_v21 = vpop.f32.mrf.mxu1  ;;  %v1355_v46 = vadd.f32 %v1354_v44, %v3642_v17  ;;  %v1208_v61 = vadd.f32 %v3662_v62, %v1047_v33  ;;  %2774 = vtanh.f32 %v3821_v60 }
 0x1e1   : > { %2009 = vmatmul.mubr.f32.gmra.mxu0 %v3042_v47  ;;  %v1356_v2 = vpop.f32.mrf.mxu0 }
 0x1e2   : > { %2170 = vmatmul.mubr.f32.gmra.mxu1 %v3043_v55  ;;  %v1517_v57 = vpop.f32.mrf.mxu1  ;;  %2014 = vmatprep.mubr.f32.mxu0 %v3044_v3  ;;  %v3831_v16 = vadd.f32 %v1515_v21, %v1355_v46  ;;  %v1357_v58 = vadd.f32 %v1356_v2, %v1196_v15  ;;  %v3050_v21 = vld [vmem:[%s3447_s30 + $0x1e0] sm:$0xff]  ;;  %v3052_v15 = vld [vmem:[%s3447_s30 + $0x228] sm:$0xff]  ;;  %v3053_v46 = vld [vmem:[%s3447_s30 + $0x238] sm:$0xff] }
 0x1e3   : > { %2175 = vmatprep.mubr.f32.mxu1 %v3045_v6 }
 0x1e4   : > { %v3833_v17 = vadd.f32 %v1517_v57, %v1357_v58  ;;  %v3054_v57 = vld [vmem:[%s3447_s30 + $0x220] sm:$0xff]  ;;  %v1053_v58 = vadd.f32 %v3671_v24, %v3707_v43  ;;  %2776 = vtanh.f32 %v3831_v16 }
 0x1e5   : > { %2015 = vmatmul.mubr.f32.gmra.mxu0 %v3046_v10  ;;  %v1360_v22 = vpop.f32.mrf.mxu0  ;;  %v3056_v10 = vld [vmem:[%s3447_s30 + $0x268] sm:$0xff] }
 0x1e6   : > { %2176 = vmatmul.mubr.f32.gmra.mxu1 %v3047_v11  ;;  %v1521_v19 = vpop.f32.mrf.mxu1  ;;  %2020 = vmatprep.mubr.f32.mxu0 %v3048_v20  ;;  %v1361_v39 = vadd.f32 %v1360_v22, %v3653_v38  ;;  %v3057_v11 = vld [vmem:[%s3447_s30 + $0x278] sm:$0xff]  ;;  %v1214_v24 = vadd.f32 %v3673_v25, %v1053_v58  ;;  %v3063_v25 = vld [vmem:[%s3447_s30 + $0x2b0] sm:$0xff]  ;;  %2778 = vtanh.f32 %v3833_v17 }
 0x1e7   : > { %2181 = vmatprep.mubr.f32.mxu1 %v3049_v27  ;;  %v1362_v5 = vpop.f32.mrf.mxu0 }
 0x1e8   : > { %v1523_v59 = vpop.f32.mrf.mxu1  ;;  %v3843_v42 = vadd.f32 %v1521_v19, %v1361_v39  ;;  %v1363_v44 = vadd.f32 %v1362_v5, %v1202_v36  ;;  %v3058_v19 = vld [vmem:[%s3447_s30 + $0x260] sm:$0xff]  ;;  %v3059_v36 = vld [vmem:[%s3447_s30 + $0x270] sm:$0xff]  ;;  %v3060_v39 = vld [vmem:[%s3447_s30 + $0x2a8] sm:$0xff] }
 0x1e9   : > { %2021 = vmatmul.mubr.f32.gmra.mxu0 %v3050_v21  ;;  %v3061_v5 = vld [vmem:[%s3447_s30 + $0x2b8] sm:$0xff]  ;;  %v1059_v21 = vadd.f32 %v3682_v48, %v3707_v43 }
 0x1ea   : > { %2182 = vmatmul.mubr.f32.gmra.mxu1 %v3051_v37  ;;  %2026 = vmatprep.mubr.f32.mxu0 %v3052_v15  ;;  %v3849_v38 = vadd.f32 %v1523_v59, %v1363_v44  ;;  %2780 = vtanh.f32 %v3843_v42 }
 0x1eb   : > { %2187 = vmatprep.mubr.f32.mxu1 %v3053_v46  ;;  %v1366_v47 = vpop.f32.mrf.mxu0  ;;  %v3062_v46 = vld [vmem:[%s3447_s30 + $0x2a0] sm:$0xff]  ;;  %v1220_v48 = vadd.f32 %v3684_v49, %v1059_v21 }
 0x1ec   : > { %v1527_v55 = vpop.f32.mrf.mxu1  ;;  %v1367_v2 = vadd.f32 %v1366_v47, %v3664_v0  ;;  %v3064_v47 = vld [vmem:[%s3447_s30 + $0x2e8] sm:$0xff]  ;;  %2782 = vtanh.f32 %v3849_v38 }
 0x1ed   : > { %2027 = vmatmul.mubr.f32.gmra.mxu0 %v3054_v57  ;;  %v1368_v3 = vpop.f32.mrf.mxu0 }
 0x1ee   : > { %2188 = vmatmul.mubr.f32.gmra.mxu1 %v3055_v1  ;;  %v1529_v6 = vpop.f32.mrf.mxu1  ;;  %2032 = vmatprep.mubr.f32.mxu0 %v3056_v10  ;;  %v3859_v62 = vadd.f32 %v1527_v55, %v1367_v2  ;;  %v1369_v22 = vadd.f32 %v1368_v3, %v1208_v61  ;;  %v3065_v55 = vld [vmem:[%s3447_s30 + $0x2f8] sm:$0xff]  ;;  %v3066_v1 = vld [vmem:[%s3447_s30 + $0x2e0] sm:$0xff]  ;;  %v3067_v3 = vld [vmem:[%s3447_s30 + $0x2f0] sm:$0xff]  ;;  %v1065_v10 = vadd.f32 %v3693_v12, %v3707_v43 }
 0x1ef   : > { %2193 = vmatprep.mubr.f32.mxu1 %v3057_v11  ;;  %v3068_v11 = vld [vmem:[%s3447_s30 + $0x328] sm:$0xff] }
 0x1f0   : > { %v3861_v0 = vadd.f32 %v1529_v6, %v1369_v22  ;;  %v3069_v22 = vld [vmem:[%s3447_s30 + $0x338] sm:$0xff]  ;;  %v1226_v12 = vadd.f32 %v3695_v13, %v1065_v10  ;;  %v3072_v43 = vld [vmem:[%s3447_s30 + $0x368] sm:$0xff]  ;;  %2784 = vtanh.f32 %v3859_v62 }
 0x1f1   : > { %2033 = vmatmul.mubr.f32.gmra.mxu0 %v3058_v19  ;;  %v1372_v20 = vpop.f32.mrf.mxu0  ;;  %v3076_v13 = vld [vmem:[%s3447_s30 + $0x3a8] sm:$0xff] }
 0x1f2   : > { %2194 = vmatmul.mubr.f32.gmra.mxu1 %v3059_v36  ;;  %v1533_v27 = vpop.f32.mrf.mxu1  ;;  %2038 = vmatprep.mubr.f32.mxu0 %v3060_v39  ;;  %v1373_v59 = vadd.f32 %v1372_v20, %v3675_v26  ;;  %v3070_v36 = vld [vmem:[%s3447_s30 + $0x320] sm:$0xff]  ;;  %v3071_v20 = vld [vmem:[%s3447_s30 + $0x330] sm:$0xff]  ;;  %v3073_v39 = vld [vmem:[%s3447_s30 + $0x378] sm:$0xff]  ;;  %2786 = vtanh.f32 %v3861_v0 }
 0x1f3   : > { %2199 = vmatprep.mubr.f32.mxu1 %v3061_v5  ;;  %v1374_v33 = vpop.f32.mrf.mxu0 }
 0x1f4   : > { %v1535_v44 = vpop.f32.mrf.mxu1  ;;  %v3871_v37 = vadd.f32 %v1533_v27, %v1373_v59  ;;  %v1375_v15 = vadd.f32 %v1374_v33, %v1214_v24 }
 0x1f5   : > { %2039 = vmatmul.mubr.f32.gmra.mxu0 %v3062_v46  ;;  %v3075_v46 = vld [vmem:[%s3447_s30 + $0x370] sm:$0xff] }
 0x1f6   : > { %2200 = vmatmul.mubr.f32.gmra.mxu1 %v3063_v25  ;;  %2044 = vmatprep.mubr.f32.mxu0 %v3064_v47  ;;  %v3877_v26 = vadd.f32 %v1535_v44, %v1375_v15  ;;  %v3074_v15 = vld [vmem:[%s3447_s30 + $0x360] sm:$0xff]  ;;  %v3077_v25 = vld [vmem:[%s3447_s30 + $0x3b8] sm:$0xff]  ;;  %2788 = vtanh.f32 %v3871_v37 }
 0x1f7   : > { %2205 = vmatprep.mubr.f32.mxu1 %v3065_v55  ;;  %v1378_v61 = vpop.f32.mrf.mxu0 }
 0x1f8   : > { %v1539_v2 = vpop.f32.mrf.mxu1  ;;  %v1379_v57 = vadd.f32 %v1378_v61, %v3686_v50  ;;  %2790 = vtanh.f32 %v3877_v26 }
 0x1f9   : > { %2045 = vmatmul.mubr.f32.gmra.mxu0 %v3066_v1  ;;  %v1380_v6 = vpop.f32.mrf.mxu0 }
 0x1fa   : > { %2206 = vmatmul.mubr.f32.gmra.mxu1 %v3067_v3  ;;  %v1541_v58 = vpop.f32.mrf.mxu1  ;;  %2050 = vmatprep.mubr.f32.mxu0 %v3068_v11  ;;  %v3887_v49 = vadd.f32 %v1539_v2, %v1379_v57  ;;  %v1381_v19 = vadd.f32 %v1380_v6, %v1220_v48  ;;  %v3078_v2 = vld [vmem:[%s3447_s30 + $0x3a0] sm:$0xff]  ;;  %v3079_v48 = vld [vmem:[%s3447_s30 + $0x3b0] sm:$0xff]  ;;  %v3080_v3 = vld [vmem:[%s3447_s30 + $0x3e8] sm:$0xff] }
 0x1fb   : > { %2211 = vmatprep.mubr.f32.mxu1 %v3069_v22  ;;  %v3081_v6 = vld [vmem:[%s3447_s30 + $0x3f8] sm:$0xff]  ;;  %v3082_v22 = vld [vmem:[%s3447_s30 + $0x3e0] sm:$0xff] }
 0x1fc   : > { %v3889_v50 = vadd.f32 %v1541_v58, %v1381_v19  ;;  %2792 = vtanh.f32 %v3887_v49 }
 0x1fd   : > { %2051 = vmatmul.mubr.f32.gmra.mxu0 %v3070_v36  ;;  %v1384_v27 = vpop.f32.mrf.mxu0 }
 0x1fe   : > { %2212 = vmatmul.mubr.f32.gmra.mxu1 %v3071_v20  ;;  %v1545_v24 = vpop.f32.mrf.mxu1  ;;  %2056 = vmatprep.mubr.f32.mxu0 %v3072_v43  ;;  %v1385_v5 = vadd.f32 %v1384_v27, %v3698_v18  ;;  %2794 = vtanh.f32 %v3889_v50 }
 0x1ff   : > { %2217 = vmatprep.mubr.f32.mxu1 %v3073_v39  ;;  %v1386_v59 = vpop.f32.mrf.mxu0 }
 0x200   : > { %v1547_v33 = vpop.f32.mrf.mxu1  ;;  %v3897_v44 = vadd.f32 %v1545_v24, %v1385_v5  ;;  %v1387_v21 = vadd.f32 %v1386_v59, %v1226_v12 }
 0x201   : > { %2057 = vmatmul.mubr.f32.gmra.mxu0 %v3074_v15 }
 0x202   : > { %2218 = vmatmul.mubr.f32.gmra.mxu1 %v3075_v46  ;;  %2062 = vmatprep.mubr.f32.mxu0 %v3076_v13  ;;  %v3903_v47 = vadd.f32 %v1547_v33, %v1387_v21 }
 0x203   : > { %2223 = vmatprep.mubr.f32.mxu1 %v3077_v25  ;;  %v1390_v18 = vpop.f32.mrf.mxu0 }
 0x204   : > { %v1551_v55 = vpop.f32.mrf.mxu1  ;;  %v1391_v61 = vadd.f32 %v1390_v18, %v3710_v52  ;;  %v3083_v52 = vld [vmem:[%s3447_s30 + $0x3f0] sm:$0xff] }
 0x205   : > { %2063 = vmatmul.mubr.f32.gmra.mxu0 %v3078_v2  ;;  %v1392_v57 = vpop.f32.mrf.mxu0 }
 0x206   : > { %2224 = vmatmul.mubr.f32.gmra.mxu1 %v3079_v48  ;;  %v1553_v1 = vpop.f32.mrf.mxu1  ;;  %2068 = vmatprep.mubr.f32.mxu0 %v3080_v3  ;;  %v3910_v58 = vadd.f32 %v1551_v55, %v1391_v61  ;;  %v1393_v10 = vadd.f32 %v1392_v57, %v3715_v4 }
 0x207   : > { %2229 = vmatprep.mubr.f32.mxu1 %v3081_v6 }
 0x208   : > { %v3913_v11 = vadd.f32 %v1553_v1, %v1393_v10 }
 0x209   : > { %2069 = vmatmul.mubr.f32.gmra.mxu0 %v3082_v22  ;;  %v1396_v19 = vpop.f32.mrf.mxu0 }
 0x20a   : > { %2230 = vmatmul.mubr.f32.gmra.mxu1 %v3083_v52  ;;  %v1557_v36 = vpop.f32.mrf.mxu1  ;;  %v1397_v20 = vadd.f32 %v1396_v19, %v3720_v30 }
 0x20b   : > { %v1398_v27 = vpop.f32.mrf.mxu0 }
 0x20c   : > { %v1559_v24 = vpop.f32.mrf.mxu1  ;;  %v3918_v12 = vadd.f32 %v1557_v36, %v1397_v20  ;;  %v1399_v43 = vadd.f32 %v1398_v27, %v3725_v45 }
 0x20e   : > { %v3921_v39 = vadd.f32 %v1559_v24, %v1399_v43 }
 0x20f   : > { %v1402_v5 = vpop.f32.mrf.mxu0 }
 0x210   : > { %v1563_v4 = vpop.f32.mrf.mxu1  ;;  %v1403_v59 = vadd.f32 %v1402_v5, %v3730_v7 }
 0x211   : > { %v1404_v33 = vpop.f32.mrf.mxu0 }
 0x212   : > { %v1565_v21 = vpop.f32.mrf.mxu1  ;;  %v3924_v15 = vadd.f32 %v1563_v4, %v1403_v59  ;;  %v1405_v46 = vadd.f32 %v1404_v33, %v3735_v28  ;;  %v942_v4 = vsub.s32 3, %v3587_v54 }
 0x214   : > { %v3927_v13 = vadd.f32 %v1565_v21, %v1405_v46  ;;  %v3084_v46 = vld [vmem:[#allocation8] sm:$0xf] }
 0x215   : > { %v1408_v30 = vpop.f32.mrf.mxu0 }
 0x216   : > { %v1569_v25 = vpop.f32.mrf.mxu1  ;;  %v1409_v18 = vadd.f32 %v1408_v30, %v3740_v53 }
 0x217   : > { %v1410_v55 = vpop.f32.mrf.mxu0 }
 0x218   : > { %v1571_v45 = vpop.f32.mrf.mxu1  ;;  %v3930_v61 = vadd.f32 %v1569_v25, %v1409_v18  ;;  %v1411_v2 = vadd.f32 %v1410_v55, %v3745_v8  ;;  %v3957_v25 = vrot.slane %v3084_v46, %v942_v4 }
 0x21a   : > { %v3933_v48 = vadd.f32 %v1571_v45, %v1411_v2 }
 0x21b   : > { %v1414_v7 = vpop.f32.mrf.mxu0 }
 0x21c   : > { %4342 = vst [vmem:[#allocation18_spill] sm:$0xff] %v3933_v48  ;;  %v1575_v57 = vpop.f32.mrf.mxu1  ;;  %v1415_v1 = vadd.f32 %v1414_v7, %v3750_v35  ;;  %v938_v35 = vsub.s32 2, %v3587_v54 }
 0x21d   : > { %v1416_v3 = vpop.f32.mrf.mxu0 }
 0x21e   : > { %v1577_v28 = vpop.f32.mrf.mxu1  ;;  %v3936_v6 = vadd.f32 %v1575_v57, %v1415_v1  ;;  %v1417_v10 = vadd.f32 %v1416_v3, %v3755_v56  ;;  %v3953_v30 = vrot.slane %v3084_v46, %v938_v35 }
 0x220   : > { %4343 = vst [vmem:[#allocation19_spill] sm:$0xff] %v3936_v6  ;;  %v3939_v22 = vadd.f32 %v1577_v28, %v1417_v10 }
 0x221   : > { %v1420_v53 = vpop.f32.mrf.mxu0 }
 0x222   : > { %4344 = vst [vmem:[#allocation20_spill] sm:$0xff] %v3939_v22  ;;  %v1581_v52 = vpop.f32.mrf.mxu1  ;;  %v1421_v19 = vadd.f32 %v1420_v53, %v3760_v31 }
 0x223   : > { %v1422_v36 = vpop.f32.mrf.mxu0 }
 0x224   : > { %v1583_v8 = vpop.f32.mrf.mxu1  ;;  %v3942_v20 = vadd.f32 %v1581_v52, %v1421_v19  ;;  %v1423_v27 = vadd.f32 %v1422_v36, %v3765_v51 }
 0x226   : > { %4345 = vst [vmem:[#allocation21_spill] sm:$0xff] %v3942_v20  ;;  %v3945_v24 = vadd.f32 %v1583_v8, %v1423_v27 }
 0x227   : > { %v1426_v43 = vpop.f32.mrf.mxu0 }
 0x228   : > { %4346 = vst [vmem:[#allocation22_spill] sm:$0xff] %v3945_v24  ;;  %v1587_v5 = vpop.f32.mrf.mxu1  ;;  %v1427_v56 = vadd.f32 %v1426_v43, %v3772_v29 }
 0x229   : > { %v1428_v59 = vpop.f32.mrf.mxu0 }
 0x22a   : > { %v1589_v33 = vpop.f32.mrf.mxu1  ;;  %v3950_v21 = vadd.f32 %v1587_v5, %v1427_v56  ;;  %v1429_v31 = vadd.f32 %v1428_v59, %v3777_v34 }
 0x22c   : > { %4347 = vst [vmem:[#allocation23_spill] sm:$0xff] %v3950_v21  ;;  %v3955_v51 = vadd.f32 %v1589_v33, %v1429_v31 }
 0x22d   : > { %v1658_v18 = vpop.f32.mrf.mxu0 }
 0x22e   : > { %4348 = vst [vmem:[#allocation24_spill] sm:$0xff] %v3955_v51  ;;  %v1819_v55 = vpop.f32.mrf.mxu1  ;;  %v1659_v45 = vadd.f32 %v1658_v18, %v3953_v30 }
 0x22f   : > { %v1660_v29 = vpop.f32.mrf.mxu0 }
 0x230   : > { %v1821_v2 = vpop.f32.mrf.mxu1  ;;  %v3960_v7 = vadd.f32 %v1819_v55, %v1659_v45  ;;  %v1661_v57 = vadd.f32 %v1660_v29, %v3957_v25 }
 0x232   : > { %v3963_v1 = vadd.f32 %v1821_v2, %v1661_v57 }
 0x233   : > { %v1664_v34 = vpop.f32.mrf.mxu0 }
 0x234   : > { %v1825_v3 = vpop.f32.mrf.mxu1  ;;  %v1665_v28 = vadd.f32 %v1664_v34, %v3953_v30 }
 0x235   : > { %v1666_v10 = vpop.f32.mrf.mxu0 }
 0x236   : > { %v1827_v53 = vpop.f32.mrf.mxu1  ;;  %v3966_v52 = vadd.f32 %v1825_v3, %v1665_v28  ;;  %v1667_v19 = vadd.f32 %v1666_v10, %v3957_v25 }
 0x238   : > { %v3969_v36 = vadd.f32 %v1827_v53, %v1667_v19 }
 0x239   : > { %v1670_v8 = vpop.f32.mrf.mxu0 }
 0x23a   : > { %v1831_v27 = vpop.f32.mrf.mxu1  ;;  %v1671_v35 = vadd.f32 %v1670_v8, %v3953_v30 }
 0x23b   : > { %v1672_v43 = vpop.f32.mrf.mxu0 }
 0x23c   : > { %v1833_v5 = vpop.f32.mrf.mxu1  ;;  %v3972_v56 = vadd.f32 %v1831_v27, %v1671_v35  ;;  %v1673_v4 = vadd.f32 %v1672_v43, %v3957_v25 }
 0x23e   : > { %v3975_v59 = vadd.f32 %v1833_v5, %v1673_v4 }
 0x23f   : > { %v1676_v33 = vpop.f32.mrf.mxu0 }
 0x240   : > { %v1837_v31 = vpop.f32.mrf.mxu1  ;;  %v1677_v46 = vadd.f32 %v1676_v33, %v3953_v30 }
 0x241   : > { %v1678_v18 = vpop.f32.mrf.mxu0 }
 0x242   : > { %v1839_v55 = vpop.f32.mrf.mxu1  ;;  %v3978_v45 = vadd.f32 %v1837_v31, %v1677_v46  ;;  %v1679_v29 = vadd.f32 %v1678_v18, %v3957_v25 }
 0x244   : > { %v3981_v2 = vadd.f32 %v1839_v55, %v1679_v29 }
 0x245   : > { %v1682_v57 = vpop.f32.mrf.mxu0 }
 0x246   : > { %v1843_v34 = vpop.f32.mrf.mxu1  ;;  %v1683_v3 = vadd.f32 %v1682_v57, %v3953_v30 }
 0x247   : > { %v1684_v28 = vpop.f32.mrf.mxu0 }
 0x248   : > { %v1845_v10 = vpop.f32.mrf.mxu1  ;;  %v3984_v53 = vadd.f32 %v1843_v34, %v1683_v3  ;;  %v1685_v19 = vadd.f32 %v1684_v28, %v3957_v25 }
 0x24a   : > { %v3987_v8 = vadd.f32 %v1845_v10, %v1685_v19 }
 0x24b   : > { %v1688_v27 = vpop.f32.mrf.mxu0 }
 0x24c   : > { %v1849_v35 = vpop.f32.mrf.mxu1  ;;  %v1689_v43 = vadd.f32 %v1688_v27, %v3953_v30 }
 0x24d   : > { %v1690_v5 = vpop.f32.mrf.mxu0 }
 0x24e   : > { %v1851_v4 = vpop.f32.mrf.mxu1  ;;  %v3990_v33 = vadd.f32 %v1849_v35, %v1689_v43  ;;  %v1691_v31 = vadd.f32 %v1690_v5, %v3957_v25 }
 0x250   : > { %v3993_v46 = vadd.f32 %v1851_v4, %v1691_v31 }
 0x251   : > { %v1694_v18 = vpop.f32.mrf.mxu0 }
 0x252   : > { %v1855_v55 = vpop.f32.mrf.mxu1  ;;  %v1695_v29 = vadd.f32 %v1694_v18, %v3953_v30 }
 0x253   : > { %v1696_v57 = vpop.f32.mrf.mxu0 }
 0x254   : > { %v1857_v34 = vpop.f32.mrf.mxu1  ;;  %v3996_v3 = vadd.f32 %v1855_v55, %v1695_v29  ;;  %v1697_v28 = vadd.f32 %v1696_v57, %v3957_v25 }
 0x256   : > { %v3999_v10 = vadd.f32 %v1857_v34, %v1697_v28 }
 0x257   : > { %v1700_v19 = vpop.f32.mrf.mxu0 }
 0x258   : > { %v1861_v27 = vpop.f32.mrf.mxu1  ;;  %v1701_v35 = vadd.f32 %v1700_v19, %v3953_v30 }
 0x259   : > { %v1702_v43 = vpop.f32.mrf.mxu0 }
 0x25a   : > { %v1863_v5 = vpop.f32.mrf.mxu1  ;;  %v4002_v4 = vadd.f32 %v1861_v27, %v1701_v35  ;;  %v1703_v31 = vadd.f32 %v1702_v43, %v3957_v25 }
 0x25c   : > { %v4005_v14 = vadd.f32 %v1863_v5, %v1703_v31 }
 0x25d   : > { %v1706_v18 = vpop.f32.mrf.mxu0 }
 0x25e   : > { %v1867_v63 = vpop.f32.mrf.mxu1  ;;  %v1707_v55 = vadd.f32 %v1706_v18, %v3953_v30 }
 0x25f   : > { %v1708_v29 = vpop.f32.mrf.mxu0 }
 0x260   : > { %v1869_v57 = vpop.f32.mrf.mxu1  ;;  %v4008_v34 = vadd.f32 %v1867_v63, %v1707_v55  ;;  %v1709_v28 = vadd.f32 %v1708_v29, %v3957_v25 }
 0x262   : > { %v4011_v21 = vadd.f32 %v1869_v57, %v1709_v28 }
 0x263   : > { %v1712_v19 = vpop.f32.mrf.mxu0 }
 0x264   : > { %v1873_v51 = vpop.f32.mrf.mxu1  ;;  %v1713_v27 = vadd.f32 %v1712_v19, %v3953_v30 }
 0x265   : > { %v1714_v35 = vpop.f32.mrf.mxu0 }
 0x266   : > { %v1875_v43 = vpop.f32.mrf.mxu1  ;;  %v4014_v5 = vadd.f32 %v1873_v51, %v1713_v27  ;;  %v1715_v31 = vadd.f32 %v1714_v35, %v3957_v25 }
 0x268   : > { %v4017_v24 = vadd.f32 %v1875_v43, %v1715_v31 }
 0x269   : > { %v1718_v18 = vpop.f32.mrf.mxu0 }
 0x26a   : > { %v1879_v20 = vpop.f32.mrf.mxu1  ;;  %v1719_v63 = vadd.f32 %v1718_v18, %v3953_v30 }
 0x26b   : > { %v1720_v55 = vpop.f32.mrf.mxu0 }
 0x26c   : > { %v1881_v29 = vpop.f32.mrf.mxu1  ;;  %v4020_v57 = vadd.f32 %v1879_v20, %v1719_v63  ;;  %v1721_v28 = vadd.f32 %v1720_v55, %v3957_v25 }
 0x26e   : > { %4349 = vst [vmem:[#allocation25_spill] sm:$0xff] %v4020_v57  ;;  %v4023_v22 = vadd.f32 %v1881_v29, %v1721_v28 }
 0x26f   : > { %v1724_v19 = vpop.f32.mrf.mxu0 }
 0x270   : > { %4350 = vst [vmem:[#allocation26_spill] sm:$0xff] %v4023_v22  ;;  %v1885_v6 = vpop.f32.mrf.mxu1  ;;  %v1725_v51 = vadd.f32 %v1724_v19, %v3953_v30 }
 0x271   : > { %v1726_v27 = vpop.f32.mrf.mxu0 }
 0x272   : > { %v1887_v35 = vpop.f32.mrf.mxu1  ;;  %v4026_v43 = vadd.f32 %v1885_v6, %v1725_v51  ;;  %v1727_v31 = vadd.f32 %v1726_v27, %v3957_v25 }
 0x274   : > { %4351 = vst [vmem:[#allocation27_spill] sm:$0xff] %v4026_v43  ;;  %v4029_v48 = vadd.f32 %v1887_v35, %v1727_v31 }
 0x275   : > { %v1730_v18 = vpop.f32.mrf.mxu0 }
 0x276   : > { %4352 = vst [vmem:[#allocation28_spill] sm:$0xff] %v4029_v48  ;;  %v1891_v54 = vpop.f32.mrf.mxu1  ;;  %v1731_v20 = vadd.f32 %v1730_v18, %v3953_v30 }
 0x277   : > { %v1732_v63 = vpop.f32.mrf.mxu0 }
 0x278   : > { %v1893_v55 = vpop.f32.mrf.mxu1  ;;  %v4032_v29 = vadd.f32 %v1891_v54, %v1731_v20  ;;  %v1733_v28 = vadd.f32 %v1732_v63, %v3957_v25 }
 0x27a   : > { %v4035_v22 = vadd.f32 %v1893_v55, %v1733_v28 }
 0x27b   : > { %v1736_v19 = vpop.f32.mrf.mxu0 }
 0x27c   : > { %v1897_v57 = vpop.f32.mrf.mxu1  ;;  %v1737_v6 = vadd.f32 %v1736_v19, %v3953_v30 }
 0x27d   : > { %v1738_v51 = vpop.f32.mrf.mxu0 }
 0x27e   : > { %v1899_v27 = vpop.f32.mrf.mxu1  ;;  %v4038_v35 = vadd.f32 %v1897_v57, %v1737_v6  ;;  %v1739_v31 = vadd.f32 %v1738_v51, %v3957_v25 }
 0x280   : > { %v4041_v48 = vadd.f32 %v1899_v27, %v1739_v31 }
 0x281   : > { %v1742_v18 = vpop.f32.mrf.mxu0 }
 0x282   : > { %v1903_v43 = vpop.f32.mrf.mxu1  ;;  %v1743_v54 = vadd.f32 %v1742_v18, %v3953_v30 }
 0x283   : > { %v1744_v20 = vpop.f32.mrf.mxu0 }
 0x284   : > { %v1905_v63 = vpop.f32.mrf.mxu1  ;;  %v4046_v55 = vadd.f32 %v1903_v43, %v1743_v54  ;;  %v1745_v28 = vadd.f32 %v1744_v20, %v3957_v25  ;;  %v4071_v43 = vpop.eup %2764  ;;  %2796 = vtanh.f32 %v3897_v44 }
 0x285   : > { %v4075_v38 = vpop.eup %2766  ;;  %2798 = vtanh.f32 %v3903_v47 }
 0x286   : > { %v4051_v57 = vadd.f32 %v1905_v63, %v1745_v28  ;;  %v4078_v0 = vpop.eup %2768 }
 0x287   : > { %v4054_v19 = vpop.f32.mrf.mxu0  ;;  %v4082_v31 = vpop.eup %2770 }
 0x288   : > { %v4056_v6 = vpop.f32.mrf.mxu1  ;;  %v4085_v18 = vpop.eup %2772 }
 0x289   : > { %v4060_v9 = vpop.f32.mrf.mxu0  ;;  %v4088_v28 = vpop.eup %2774 }
 0x28a   : > { %v4062_v23 = vpop.f32.mrf.mxu1 }
 0x28d   : > { %v1980_v40 = vpop.f32.mrf.mxu0 }
 0x28e   : > { %v2141_v41 = vpop.f32.mrf.mxu1  ;;  %v1981_v32 = vadd.f32 %v1980_v40, %v3960_v7 }
 0x28f   : > { %v1982_v60 = vpop.f32.mrf.mxu0 }
 0x290   : > { %v2143_v16 = vpop.f32.mrf.mxu1  ;;  %v2142_v17 = vadd.f32 %v2141_v41, %v1981_v32  ;;  %v1983_v42 = vadd.f32 %v1982_v60, %v3963_v1 }
 0x291   : > { %v1986_v62 = vpop.f32.mrf.mxu0 }
 0x292   : > { %v2147_v51 = vpop.f32.mrf.mxu1  ;;  %v2268_v37 = vsub.f32 0.0, %v2142_v17  ;;  %v2144_v7 = vadd.f32 %v2143_v16, %v1983_v42  ;;  %v1987_v27 = vadd.f32 %v1986_v62, %v3966_v52  ;;  %v4091_v52 = vpop.eup %2776 }
 0x293   : > { %v1988_v26 = vpop.f32.mrf.mxu0  ;;  %v4093_v60 = vpop.eup %2778 }
 0x294   : > { %v2149_v1 = vpop.f32.mrf.mxu1  ;;  %v2300_v54 = vmul.f32 1.442695, %v2268_v37  ;;  %v2269_v49 = vsub.f32 0.0, %v2144_v7  ;;  %v2148_v20 = vadd.f32 %v2147_v51, %v1987_v27  ;;  %v1989_v63 = vadd.f32 %v1988_v26, %v3969_v36  ;;  %v4097_v42 = vpop.eup %2780 }
 0x295   : > { %v1992_v50 = vpop.f32.mrf.mxu0  ;;  %v4100_v37 = vpop.eup %2782 }
 0x296   : > { %v2153_v40 = vpop.f32.mrf.mxu1  ;;  %2800 = vpow2.f32 %v2300_v54  ;;  %v2302_v41 = vmul.f32 1.442695, %v2269_v49  ;;  %v2270_v44 = vsub.f32 0.0, %v2148_v20  ;;  %v2150_v32 = vadd.f32 %v2149_v1, %v1989_v63  ;;  %v4103_v1 = vpop.eup %2784 }
 0x297   : > { %2802 = vtanh.f32 %v3910_v58  ;;  %v1993_v16 = vadd.f32 %v1992_v50, %v3972_v56  ;;  %v1994_v17 = vpop.f32.mrf.mxu0  ;;  %v4106_v49 = vpop.eup %2786 }
 0x298   : > { %v2155_v36 = vpop.f32.mrf.mxu1  ;;  %2804 = vpow2.f32 %v2302_v41  ;;  %v2304_v47 = vmul.f32 1.442695, %v2270_v44  ;;  %v2271_v62 = vsub.f32 0.0, %v2150_v32  ;;  %v1995_v51 = vadd.f32 %v1994_v17, %v3975_v59  ;;  %v4109_v50 = vpop.eup %2788 }
 0x299   : > { %2806 = vtanh.f32 %v3913_v11  ;;  %v2154_v7 = vadd.f32 %v2153_v40, %v1993_v16  ;;  %v1998_v27 = vpop.f32.mrf.mxu0  ;;  %v4112_v44 = vpop.eup %2790 }
 0x29a   : > { %v2159_v26 = vpop.f32.mrf.mxu1  ;;  %2808 = vpow2.f32 %v2304_v47  ;;  %v2306_v58 = vmul.f32 1.442695, %v2271_v62  ;;  %v2156_v56 = vadd.f32 %v2155_v36, %v1995_v51  ;;  %v1999_v54 = vadd.f32 %v1998_v27, %v3978_v45  ;;  %v4115_v17 = vpop.eup %2792 }
 0x29b   : > { %2810 = vtanh.f32 %v3918_v12  ;;  %v2272_v20 = vsub.f32 0.0, %v2154_v7  ;;  %v2000_v59 = vpop.f32.mrf.mxu0  ;;  %v4118_v51 = vpop.eup %2794 }
 0x29c   : > { %v2161_v63 = vpop.f32.mrf.mxu1  ;;  %2812 = vpow2.f32 %v2306_v58  ;;  %v2273_v11 = vsub.f32 0.0, %v2156_v56  ;;  %v2160_v40 = vadd.f32 %v2159_v26, %v1999_v54  ;;  %v2001_v41 = vadd.f32 %v2000_v59, %v3981_v2  ;;  %v4120_v2 = vpop.eup %2796 }
 0x29d   : > { %2814 = vtanh.f32 %v3921_v39  ;;  %v2308_v32 = vmul.f32 1.442695, %v2272_v20  ;;  %v2004_v45 = vpop.f32.mrf.mxu0  ;;  %v4124_v59 = vpop.eup %2798 }
 0x29e   : > { %v2165_v16 = vpop.f32.mrf.mxu1  ;;  %v2310_v12 = vmul.f32 1.442695, %v2273_v11  ;;  %v2274_v36 = vsub.f32 0.0, %v2160_v40  ;;  %v2162_v47 = vadd.f32 %v2161_v63, %v2001_v41  ;;  %v2005_v62 = vadd.f32 %v2004_v45, %v3984_v53 }
 0x29f   : > { %2816 = vpow2.f32 %v2308_v32  ;;  %v2006_v7 = vpop.f32.mrf.mxu0 }
 0x2a0   : > { %v2167_v27 = vpop.f32.mrf.mxu1  ;;  %2818 = vpow2.f32 %v2310_v12  ;;  %v2312_v26 = vmul.f32 1.442695, %v2274_v36  ;;  %v2275_v39 = vsub.f32 0.0, %v2162_v47  ;;  %v2166_v58 = vadd.f32 %v2165_v16, %v2005_v62 }
 0x2a1   : > { %2820 = vtanh.f32 %v3924_v15  ;;  %v2007_v56 = vadd.f32 %v2006_v7, %v3987_v8  ;;  %v2010_v54 = vpop.f32.mrf.mxu0 }
 0x2a2   : > { %v2171_v20 = vpop.f32.mrf.mxu1  ;;  %2822 = vpow2.f32 %v2312_v26  ;;  %v2314_v53 = vmul.f32 1.442695, %v2275_v39  ;;  %v2276_v63 = vsub.f32 0.0, %v2166_v58  ;;  %v2011_v11 = vadd.f32 %v2010_v54, %v3990_v33 }
 0x2a3   : > { %v2801_v40 = vpop.eup %2800  ;;  %2824 = vtanh.f32 %v3927_v13  ;;  %v2168_v41 = vadd.f32 %v2167_v27, %v2007_v56  ;;  %v2012_v32 = vpop.f32.mrf.mxu0 }
 0x2a4   : > { %v2173_v45 = vpop.f32.mrf.mxu1  ;;  %v4128_v16 = vpop.eup %2802  ;;  %v2364_v15 = vadd.f32 1.0, %v2801_v40  ;;  %2826 = vpow2.f32 %v2314_v53  ;;  %v2316_v8 = vmul.f32 1.442695, %v2276_v63  ;;  %v2172_v12 = vadd.f32 %v2171_v20, %v2011_v11 }
 0x2a5   : > { %v2805_v36 = vpop.eup %2804  ;;  %2828 = vtanh.f32 %v3930_v61  ;;  %v2277_v47 = vsub.f32 0.0, %v2168_v41  ;;  %v2013_v62 = vadd.f32 %v2012_v32, %v3993_v46  ;;  %v2016_v7 = vpop.f32.mrf.mxu0 }
 0x2a6   : > { %v2177_v33 = vpop.f32.mrf.mxu1  ;;  %v4132_v26 = vpop.eup %2806  ;;  %2830 = vrcp.f32 %v2364_v15  ;;  %v2365_v13 = vadd.f32 1.0, %v2805_v36  ;;  %v2278_v27 = vsub.f32 0.0, %v2172_v12  ;;  %v2017_v39 = vadd.f32 %v2016_v7, %v3996_v3 }
 0x2a7   : > { %v2809_v58 = vpop.eup %2808  ;;  %2832 = vpow2.f32 %v2316_v8  ;;  %v2318_v56 = vmul.f32 1.442695, %v2277_v47  ;;  %v2174_v54 = vadd.f32 %v2173_v45, %v2013_v62  ;;  %v2018_v20 = vpop.f32.mrf.mxu0 }
 0x2a8   : > { %v2179_v53 = vpop.f32.mrf.mxu1  ;;  %v4135_v63 = vpop.eup %2810  ;;  %2834 = vrcp.f32 %v2365_v13  ;;  %v2366_v61 = vadd.f32 1.0, %v2809_v58  ;;  %v2320_v46 = vmul.f32 1.442695, %v2278_v27  ;;  %v2178_v11 = vadd.f32 %v2177_v33, %v2017_v39 }
 0x2a9   : > { %v2813_v40 = vpop.eup %2812  ;;  %2836 = vpow2.f32 %v2318_v56  ;;  %v2279_v41 = vsub.f32 0.0, %v2174_v54  ;;  %v2019_v32 = vadd.f32 %v2018_v20, %v3999_v10  ;;  %v2022_v15 = vpop.f32.mrf.mxu0  ;;  %v1749_v56 = vadd.f32 %v4054_v19, %v3953_v30 }
 0x2aa   : > { %v2183_v12 = vpop.f32.mrf.mxu1  ;;  %v4138_v3 = vpop.eup %2814  ;;  %2838 = vrcp.f32 %v2366_v61  ;;  %v2367_v8 = vadd.f32 1.0, %v2813_v40  ;;  %v2280_v45 = vsub.f32 0.0, %v2178_v11  ;;  %v2023_v36 = vadd.f32 %v2022_v15, %v4002_v4 }
 0x2ab   : > { %2840 = vpow2.f32 %v2320_v46  ;;  %v2322_v47 = vmul.f32 1.442695, %v2279_v41  ;;  %v2180_v62 = vadd.f32 %v2179_v53, %v2019_v32  ;;  %v2024_v7 = vpop.f32.mrf.mxu0 }
 0x2ac   : > { %v2185_v13 = vpop.f32.mrf.mxu1  ;;  %v2817_v33 = vpop.eup %2816  ;;  %2842 = vrcp.f32 %v2367_v8  ;;  %v2324_v27 = vmul.f32 1.442695, %v2280_v45  ;;  %v2184_v39 = vadd.f32 %v2183_v12, %v2023_v36  ;;  %v2025_v10 = vadd.f32 %v2024_v7, %v4005_v14 }
 0x2ad   : > { %v2819_v58 = vpop.eup %2818  ;;  %v2368_v54 = vadd.f32 1.0, %v2817_v33  ;;  %2844 = vpow2.f32 %v2322_v47  ;;  %v2281_v20 = vsub.f32 0.0, %v2180_v62  ;;  %v2028_v61 = vpop.f32.mrf.mxu0  ;;  %v4150_v47 = vadd.f32 %v4056_v6, %v1749_v56 }
 0x2ae   : > { %v2189_v4 = vpop.f32.mrf.mxu1  ;;  %v4144_v46 = vpop.eup %2820  ;;  %v2369_v53 = vadd.f32 1.0, %v2819_v58  ;;  %2846 = vpow2.f32 %v2324_v27  ;;  %v2282_v11 = vsub.f32 0.0, %v2184_v39  ;;  %v2186_v40 = vadd.f32 %v2185_v13, %v2025_v10 }
 0x2af   : > { %v2823_v41 = vpop.eup %2822  ;;  %2848 = vrcp.f32 %v2368_v54  ;;  %v2326_v32 = vmul.f32 1.442695, %v2281_v20  ;;  %v2029_v14 = vadd.f32 %v2028_v61, %v4008_v34  ;;  %v2030_v15 = vpop.f32.mrf.mxu0  ;;  %v1751_v54 = vadd.f32 %v4060_v9, %v3957_v25 }
 0x2b0   : > { %v2191_v12 = vpop.f32.mrf.mxu1  ;;  %v4147_v8 = vpop.eup %2824  ;;  %2850 = vrcp.f32 %v2369_v53  ;;  %v2370_v30 = vadd.f32 1.0, %v2823_v41  ;;  %v2328_v19 = vmul.f32 1.442695, %v2282_v11  ;;  %v2283_v45 = vsub.f32 0.0, %v2186_v40 }
 0x2b1   : > { %v2827_v36 = vpop.eup %2826  ;;  %2852 = vpow2.f32 %v2326_v32  ;;  %v2190_v62 = vadd.f32 %v2189_v4, %v2029_v14  ;;  %v2031_v7 = vadd.f32 %v2030_v15, %v4011_v21  ;;  %v2034_v13 = vpop.f32.mrf.mxu0 }
 0x2b2   : > { %v2195_v33 = vpop.f32.mrf.mxu1  ;;  %v4153_v27 = vpop.eup %2828  ;;  %2854 = vrcp.f32 %v2370_v30  ;;  %v2371_v34 = vadd.f32 1.0, %v2827_v36  ;;  %v2330_v39 = vmul.f32 1.442695, %v2283_v45  ;;  %v2035_v10 = vadd.f32 %v2034_v13, %v4014_v5  ;;  %v4353_v30 = vld [vmem:[#allocation25_spill] sm:$0xff] }
 0x2b3   : > { %v2831_v58 = vpop.eup %2830  ;;  %2856 = vpow2.f32 %v2328_v19  ;;  %v2284_v6 = vsub.f32 0.0, %v2190_v62  ;;  %v2192_v56 = vadd.f32 %v2191_v12, %v2031_v7  ;;  %v2036_v20 = vpop.f32.mrf.mxu0 }
 0x2b4   : > { %v2197_v61 = vpop.f32.mrf.mxu1  ;;  %v2833_v4 = vpop.eup %2832  ;;  %2858 = vrcp.f32 %v2371_v34  ;;  %v2196_v21 = vadd.f32 %v2195_v33, %v2035_v10  ;;  %v2037_v53 = vadd.f32 %v2036_v20, %v4017_v24  ;;  %v4160_v11 = vmul.f32 %v2831_v58, %v4071_v43 }
 0x2b5   : > { %v2835_v40 = vpop.eup %2834  ;;  %v2372_v41 = vadd.f32 1.0, %v2833_v4  ;;  %2860 = vpow2.f32 %v2330_v39  ;;  %v2332_v5 = vmul.f32 1.442695, %v2284_v6  ;;  %v2285_v32 = vsub.f32 0.0, %v2192_v56  ;;  %v2040_v14 = vpop.f32.mrf.mxu0  ;;  %v4354_v56 = vld [vmem:[#allocation26_spill] sm:$0xff] }
 0x2b6   : > { %v2201_v25 = vpop.f32.mrf.mxu1  ;;  %v2837_v9 = vpop.eup %2836  ;;  %v2286_v15 = vsub.f32 0.0, %v2196_v21  ;;  %v2198_v12 = vadd.f32 %v2197_v61, %v2037_v53  ;;  %v2041_v19 = vadd.f32 %v2040_v14, %v4353_v30  ;;  %v4164_v45 = vmul.f32 %v2835_v40, %v4075_v38  ;;  %v4355_v53 = vld [vmem:[#allocation27_spill] sm:$0xff] }
 0x2b7   : > { %v2839_v36 = vpop.eup %2838  ;;  %v4167_v24 = vadd.f32 %v4062_v23, %v1751_v54  ;;  %2862 = vrcp.f32 %v2372_v41  ;;  %v2373_v43 = vadd.f32 1.0, %v2837_v9  ;;  %v2334_v62 = vmul.f32 1.442695, %v2285_v32  ;;  %v2042_v7 = vpop.f32.mrf.mxu0 }
 0x2b8   : > { %v2203_v13 = vpop.f32.mrf.mxu1  ;;  %v2841_v33 = vpop.eup %2840  ;;  %2864 = vpow2.f32 %v2332_v5  ;;  %v2336_v34 = vmul.f32 1.442695, %v2286_v15  ;;  %v2287_v39 = vsub.f32 0.0, %v2198_v12  ;;  %v2202_v10 = vadd.f32 %v2201_v25, %v2041_v19 }
 0x2b9   : > { %v2843_v58 = vpop.eup %2842  ;;  %2866 = vrcp.f32 %v2373_v43  ;;  %v2374_v6 = vadd.f32 1.0, %v2841_v33  ;;  %v2043_v38 = vadd.f32 %v2042_v7, %v4354_v56  ;;  %v2046_v20 = vpop.f32.mrf.mxu0  ;;  %v4171_v23 = vmul.f32 %v2839_v36, %v4078_v0  ;;  %v4356_v43 = vld [vmem:[#allocation28_spill] sm:$0xff] }
 0x2ba   : > { %v2207_v61 = vpop.f32.mrf.mxu1  ;;  %v2845_v54 = vpop.eup %2844  ;;  %2868 = vpow2.f32 %v2334_v62  ;;  %v2338_v4 = vmul.f32 1.442695, %v2287_v39  ;;  %v2288_v21 = vsub.f32 0.0, %v2202_v10  ;;  %v2047_v40 = vadd.f32 %v2046_v20, %v4355_v53 }
 0x2bb   : > { %v2847_v41 = vpop.eup %2846  ;;  %2870 = vrcp.f32 %v2374_v6  ;;  %v2375_v5 = vadd.f32 1.0, %v2845_v54  ;;  %v2204_v32 = vadd.f32 %v2203_v13, %v2043_v38  ;;  %v2048_v14 = vpop.f32.mrf.mxu0  ;;  %v4175_v9 = vmul.f32 %v2843_v58, %v4082_v31 }
 0x2bc   : > { %v2209_v25 = vpop.f32.mrf.mxu1  ;;  %v2849_v15 = vpop.eup %2848  ;;  %v2376_v12 = vadd.f32 1.0, %v2847_v41  ;;  %2872 = vpow2.f32 %v2336_v34  ;;  %v2340_v0 = vmul.f32 1.442695, %v2288_v21  ;;  %v2208_v30 = vadd.f32 %v2207_v61, %v2047_v40 }
 0x2bd   : > { %v2851_v19 = vpop.eup %2850  ;;  %2874 = vrcp.f32 %v2375_v5  ;;  %v2289_v36 = vsub.f32 0.0, %v2204_v32  ;;  %v2049_v62 = vadd.f32 %v2048_v14, %v4356_v43  ;;  %v2052_v7 = vpop.f32.mrf.mxu0  ;;  %v4179_v39 = vmul.f32 %v2849_v15, %v4085_v18 }
 0x2be   : > { %v2213_v33 = vpop.f32.mrf.mxu1  ;;  %v2853_v13 = vpop.eup %2852  ;;  %2876 = vrcp.f32 %v2376_v12  ;;  %v2290_v10 = vsub.f32 0.0, %v2208_v30  ;;  %v2053_v31 = vadd.f32 %v2052_v7, %v4032_v29  ;;  %v4183_v58 = vmul.f32 %v2851_v19, %v4088_v28  ;;  %v4190_v12 = vld [vmem:[#allocation9] sm:$0x3] }
 0x2bf   : > { %v2855_v34 = vpop.eup %2854  ;;  %v2377_v6 = vadd.f32 1.0, %v2853_v13  ;;  %2878 = vpow2.f32 %v2338_v4  ;;  %v2342_v56 = vmul.f32 1.442695, %v2289_v36  ;;  %v2210_v38 = vadd.f32 %v2209_v25, %v2049_v62  ;;  %v2054_v20 = vpop.f32.mrf.mxu0 }
 0x2c0   : > { %v2215_v61 = vpop.f32.mrf.mxu1  ;;  %v2857_v54 = vpop.eup %2856  ;;  %2880 = vpow2.f32 %v2340_v0  ;;  %v2344_v21 = vmul.f32 1.442695, %v2290_v10  ;;  %v2214_v18 = vadd.f32 %v2213_v33, %v2053_v31  ;;  %v2055_v53 = vadd.f32 %v2054_v20, %v4035_v22 }
 0x2c1   : > { %v2859_v40 = vpop.eup %2858  ;;  %2882 = vrcp.f32 %v2377_v6  ;;  %v2378_v41 = vadd.f32 1.0, %v2857_v54  ;;  %v2291_v29 = vsub.f32 0.0, %v2210_v38  ;;  %v2058_v5 = vpop.f32.mrf.mxu0  ;;  %v4187_v32 = vmul.f32 %v2855_v34, %v4091_v52  ;;  %v4357_v34 = vld [vmem:[#allocation16_spill] sm:$0xff] }
 0x2c2   : > { %v2219_v28 = vpop.f32.mrf.mxu1  ;;  %v2861_v4 = vpop.eup %2860  ;;  %2884 = vpow2.f32 %v2342_v56  ;;  %v2292_v14 = vsub.f32 0.0, %v2214_v18  ;;  %v2216_v25 = vadd.f32 %v2215_v61, %v2055_v53  ;;  %v2059_v15 = vadd.f32 %v2058_v5, %v4038_v35 }
 0x2c3   : > { %2886 = vrcp.f32 %v2378_v41  ;;  %v2379_v0 = vadd.f32 1.0, %v2861_v4  ;;  %v2346_v22 = vmul.f32 1.442695, %v2291_v29  ;;  %v2060_v30 = vpop.f32.mrf.mxu0  ;;  %v4193_v36 = vmul.f32 %v2859_v40, %v4093_v60 }
 0x2c4   : > { %v2221_v19 = vpop.f32.mrf.mxu1  ;;  %v2863_v43 = vpop.eup %2862  ;;  %2888 = vpow2.f32 %v2344_v21  ;;  %v2348_v52 = vmul.f32 1.442695, %v2292_v14  ;;  %v2293_v62 = vsub.f32 0.0, %v2216_v25  ;;  %v2220_v7 = vadd.f32 %v2219_v28, %v2059_v15 }
 0x2c5   : > { %v2865_v33 = vpop.eup %2864  ;;  %2890 = vrcp.f32 %v2379_v0  ;;  %v2061_v13 = vadd.f32 %v2060_v30, %v4041_v48  ;;  %v2064_v35 = vpop.f32.mrf.mxu0  ;;  %v4197_v31 = vmul.f32 %v2863_v43, %v4097_v42  ;;  %v4358_v6 = vsub.s32 1, %v4357_v34 }
 0x2c6   : > { %v2225_v10 = vpop.f32.mrf.mxu1  ;;  %v2867_v60 = vpop.eup %2866  ;;  %v2380_v38 = vadd.f32 1.0, %v2865_v33  ;;  %2892 = vpow2.f32 %v2346_v22  ;;  %v2350_v20 = vmul.f32 1.442695, %v2293_v62  ;;  %v2294_v61 = vsub.f32 0.0, %v2220_v7 }
 0x2c7   : > { %v2479_v56 = vrot.slane %v4190_v12, %v4358_v6  ;;  %v2869_v54 = vpop.eup %2868  ;;  %2894 = vpow2.f32 %v2348_v52  ;;  %v2222_v21 = vadd.f32 %v2221_v19, %v2061_v13  ;;  %v2065_v18 = vadd.f32 %v2064_v35, %v4046_v55  ;;  %v2066_v48 = vpop.f32.mrf.mxu0 }
 0x2c8   : > { %v2227_v53 = vpop.f32.mrf.mxu1  ;;  %v4204_v40 = vmul.f32 %v2867_v60, %v4100_v37  ;;  %v2871_v42 = vpop.eup %2870  ;;  %2896 = vrcp.f32 %v2380_v38  ;;  %v2381_v41 = vadd.f32 1.0, %v2869_v54  ;;  %v2352_v29 = vmul.f32 1.442695, %v2294_v61  ;;  %v4359_v60 = vld [vmem:[#allocation18_spill] sm:$0xff] }
 0x2c9   : > { %2546 = vmatprep.mubr.f32.mxu0 %v2479_v56  ;;  %v2067_v5 = vadd.f32 %v2066_v48, %v4051_v57  ;;  %v2873_v28 = vpop.eup %2872  ;;  %2898 = vpow2.f32 %v2350_v20  ;;  %v2295_v4 = vsub.f32 0.0, %v2222_v21  ;;  %v2226_v14 = vadd.f32 %v2225_v10, %v2065_v18  ;;  %v2070_v25 = vpop.f32.mrf.mxu0  ;;  %v2461_v61 = vld [vmem:[#allocation2] sm:$0x1] }
 0x2ca   : > { %v2231_v15 = vpop.f32.mrf.mxu1  ;;  %v4208_v55 = vmul.f32 %v2871_v42, %v4103_v1  ;;  %v2875_v0 = vpop.eup %2874  ;;  %2900 = vrcp.f32 %v2381_v41  ;;  %v2382_v37 = vadd.f32 1.0, %v2873_v28  ;;  %v2071_v30 = vadd.f32 %v2070_v25, %v4150_v47 }
 0x2cb   : > { %v2228_v22 = vadd.f32 %v2227_v53, %v2067_v5  ;;  %v2877_v19 = vpop.eup %2876  ;;  %2902 = vpow2.f32 %v2352_v29  ;;  %v2354_v43 = vmul.f32 1.442695, %v2295_v4  ;;  %v2296_v52 = vsub.f32 0.0, %v2226_v14  ;;  %v2072_v57 = vpop.f32.mrf.mxu0 }
 0x2cc   : > { %v4212_v62 = vmul.f32 %v2875_v0, %v4106_v49  ;;  %v2879_v7 = vpop.eup %2878  ;;  %2904 = vrcp.f32 %v2382_v37  ;;  %v2232_v13 = vadd.f32 %v2231_v15, %v2071_v30  ;;  %v2073_v1 = vadd.f32 %v2072_v57, %v4167_v24  ;;  %v2233_v6 = vpop.f32.mrf.mxu1 }
 0x2cd   : > { %v2297_v33 = vsub.f32 0.0, %v2228_v22  ;;  %v2881_v35 = vpop.eup %2880  ;;  %v2383_v10 = vadd.f32 1.0, %v2879_v7  ;;  %2906 = vpow2.f32 %v2354_v43  ;;  %v2356_v34 = vmul.f32 1.442695, %v2296_v52 }
 0x2ce   : > { %v4216_v47 = vmul.f32 %v2877_v19, %v4109_v50  ;;  %v2883_v56 = vpop.eup %2882  ;;  %2908 = vtanh.f32 %v4359_v60  ;;  %v2384_v38 = vadd.f32 1.0, %v2881_v35  ;;  %v2298_v49 = vsub.f32 0.0, %v2232_v13 }
 0x2cf   : > { %v2234_v20 = vadd.f32 %v2233_v6, %v2073_v1  ;;  %v2885_v54 = vpop.eup %2884  ;;  %2910 = vrcp.f32 %v2383_v10  ;;  %v2358_v21 = vmul.f32 1.442695, %v2297_v33  ;;  %v4220_v24 = vmul.f32 %v2883_v56, %v4112_v44  ;;  %v4360_v33 = vld [vmem:[#allocation19_spill] sm:$0xff]  ;;  %v4361_v10 = vld [vmem:[#allocation20_spill] sm:$0xff] }
 0x2d0   : > { %v2887_v18 = vpop.eup %2886  ;;  %2912 = vrcp.f32 %v2384_v38  ;;  %v2385_v48 = vadd.f32 1.0, %v2885_v54  ;;  %v3273_v42 = vmov 0   ;;  %v2360_v41 = vmul.f32 1.442695, %v2298_v49 }
 0x2d1   : > { %v2299_v53 = vsub.f32 0.0, %v2234_v20  ;;  %2763 = vset.pattern.permute.xlu0 %v3273_v42  ;;  %v2889_v50 = vpop.eup %2888  ;;  %2914 = vpow2.f32 %v2356_v34  ;;  %v4223_v29 = vmul.f32 %v2887_v18, %v4115_v17  ;;  %v4362_v20 = vld [vmem:[#allocation21_spill] sm:$0xff]  ;;  %v4363_v18 = vld [vmem:[#allocation22_spill] sm:$0xff] }
 0x2d2   : > { %2464 = vperm.xlu0 %2763, %v2461_v61   ;;  %v2891_v5 = vpop.eup %2890  ;;  %2916 = vrcp.f32 %v2385_v48  ;;  %v2386_v28 = vadd.f32 1.0, %v2889_v50 }
 0x2d3   : > { %v2893_v4 = vpop.eup %2892  ;;  %2918 = vpow2.f32 %v2358_v21  ;;  %v4226_v44 = vmul.f32 %v2891_v5, %v4118_v51  ;;  %v2362_v15 = vmul.f32 1.442695, %v2299_v53 }
 0x2d4   : > { %v2895_v14 = vpop.eup %2894  ;;  %2920 = vrcp.f32 %v2386_v28  ;;  %v2387_v25 = vadd.f32 1.0, %v2893_v4  ;;  %v4364_v28 = vld [vmem:[#allocation24_spill] sm:$0xff] }
 0x2d5   : > { %v2897_v0 = vpop.eup %2896  ;;  %v2388_v37 = vadd.f32 1.0, %v2895_v14  ;;  %2922 = vpow2.f32 %v2360_v41 }
 0x2d6   : > { %v2899_v22 = vpop.eup %2898  ;;  %2924 = vrcp.f32 %v2387_v25  ;;  %v4229_v17 = vmul.f32 %v2897_v0, %v4120_v2 }
 0x2d7   : > { %v2901_v30 = vpop.eup %2900  ;;  %2926 = vrcp.f32 %v2388_v37  ;;  %v2389_v19 = vadd.f32 1.0, %v2899_v22 }
 0x2d8   : > { %v2903_v43 = vpop.eup %2902  ;;  %2928 = vpow2.f32 %v2362_v15  ;;  %v4232_v51 = vmul.f32 %v2901_v30, %v4124_v59 }
 0x2d9   : > { %v2905_v52 = vpop.eup %2904  ;;  %2930 = vrcp.f32 %v2389_v19  ;;  %v2390_v57 = vadd.f32 1.0, %v2903_v43 }
 0x2da   : > { %v2907_v7 = vpop.eup %2906  ;;  %2932 = vtanh.f32 %v4360_v33  ;;  %v4236_v13 = vmul.f32 %v2905_v52, %v4128_v16 }
 0x2db   : > { %v2909_v1 = vpop.eup %2908  ;;  %2934 = vrcp.f32 %v2390_v57  ;;  %v2391_v2 = vadd.f32 1.0, %v2907_v7 }
 0x2dc   : > { %v2911_v35 = vpop.eup %2910  ;;  %2936 = vtanh.f32 %v4361_v10 }
 0x2dd   : > { %v2913_v34 = vpop.eup %2912  ;;  %2938 = vrcp.f32 %v2391_v2  ;;  %v2447_v59 = vmul.f32 %v2911_v35, %v4132_v26 }
 0x2de   : > { %v2915_v6 = vpop.eup %2914  ;;  %v2448_v56 = vmul.f32 %v2913_v34, %v4135_v63  ;;  %2940 = vtanh.f32 %v4362_v20 }
 0x2df   : > { %v2917_v60 = vpop.eup %2916  ;;  %v2392_v38 = vadd.f32 1.0, %v2915_v6 }
 0x2e0   : > { %v2919_v49 = vpop.eup %2918  ;;  %v2449_v16 = vmul.f32 %v2917_v60, %v4138_v3 }
 0x2e1   : > { %v2921_v61 = vpop.eup %2920  ;;  %2942 = vrcp.f32 %v2392_v38  ;;  %v2393_v54 = vadd.f32 1.0, %v2919_v49 }
 0x2e2   : > { %v2923_v21 = vpop.eup %2922  ;;  %2944 = vtanh.f32 %v4363_v18  ;;  %v2450_v48 = vmul.f32 %v2921_v61, %v4144_v46  ;;  %v4365_v46 = vld [vmem:[#allocation23_spill] sm:$0xff] }
 0x2e3   : > { %v2925_v53 = vpop.eup %2924  ;;  %2946 = vrcp.f32 %v2393_v54  ;;  %v2394_v26 = vadd.f32 1.0, %v2923_v21 }
 0x2e4   : > { %v2927_v42 = vpop.eup %2926  ;;  %v2451_v63 = vmul.f32 %v2925_v53, %v4147_v8  ;;  %2948 = vtanh.f32 %v4364_v28 }
 0x2e5   : > { %v2929_v50 = vpop.eup %2928  ;;  %v2452_v41 = vmul.f32 %v2927_v42, %v4153_v27  ;;  %2950 = vrcp.f32 %v2394_v26 }
 0x2e6   : > { %v2931_v5 = vpop.eup %2930  ;;  %v2395_v3 = vadd.f32 1.0, %v2929_v50 }
 0x2e7   : > { %v2933_v4 = vpop.eup %2932  ;;  %v2453_v14 = vmul.f32 %v2931_v5, %v2909_v1 }
 0x2e8   : > { %v2935_v25 = vpop.eup %2934  ;;  %2952 = vrcp.f32 %v2395_v3 }
 0x2e9   : > { %v2937_v15 = vpop.eup %2936  ;;  %2954 = vtanh.f32 %v4365_v46  ;;  %v2454_v0 = vmul.f32 %v2935_v25, %v2933_v4 }
 0x2ea   : > { %v2939_v37 = vpop.eup %2938 }
 0x2eb   : > { %v2455_v22 = vmul.f32 %v2939_v37, %v2937_v15  ;;  %v2941_v30 = vpop.eup %2940 }
 0x2ee   : > { %v2943_v8 = vpop.eup %2942 }
 0x2ef   : > { %v2945_v19 = vpop.eup %2944  ;;  %v2456_v43 = vmul.f32 %v2943_v8, %v2941_v30 }
 0x2f0   : > { %v2947_v27 = vpop.eup %2946 }
 0x2f1   : > { %v2457_v52 = vmul.f32 %v2947_v27, %v2945_v19  ;;  %v2949_v57 = vpop.eup %2948 }
 0x2f2   : > { %v2951_v7 = vpop.eup %2950 }
 0x2f5   : > { %v2953_v33 = vpop.eup %2952 }
 0x2f6   : > { %v2955_v2 = vpop.eup %2954  ;;  %v2459_v35 = vmul.f32 %v2953_v33, %v2949_v57 }
 0x2f7   : > { %v2458_v1 = vmul.f32 %v2955_v2, %v2951_v7 }
 0x2f8   : > { %2482 = vmatprep.subr.mxu0 %v2459_v35 }
 0x2f9   : > { %2483 = vmatpush1.xpose.msra.mxu0 %v2458_v1 }
 0x2fa   : > { %2484 = vmatprep.subr.mxu0 %v2457_v52 }
 0x2fd   : > { %2485 = vmatpush1.xpose.msra.mxu0 %v2456_v43 }
 0x2fe   : > { %2486 = vmatprep.subr.mxu0 %v2455_v22 }
 0x301   : > { %2487 = vmatpush1.xpose.msra.mxu0 %v2454_v0 }
 0x302   : > { %2488 = vmatprep.subr.mxu0 %v2453_v14 }
 0x305   : > { %2489 = vmatpush1.xpose.msra.mxu0 %v2452_v41 }
 0x306   : > { %2490 = vmatprep.subr.mxu0 %v2451_v63 }
 0x309   : > { %2491 = vmatpush1.xpose.msra.mxu0 %v2450_v48 }
 0x30a   : > { %2492 = vmatprep.subr.mxu0 %v2449_v16 }
 0x30d   : > { %2493 = vmatpush1.xpose.msra.mxu0 %v2448_v56 }
 0x30e   : > { %2494 = vmatprep.subr.mxu0 %v2447_v59 }
 0x311   : > { %2495 = vmatpush1.xpose.msra.mxu0 %v4236_v13 }
 0x312   : > { %2496 = vmatprep.subr.mxu0 %v4232_v51 }
 0x315   : > { %2497 = vmatpush1.xpose.msra.mxu0 %v4229_v17 }
 0x316   : > { %2498 = vmatprep.subr.mxu0 %v4226_v44 }
 0x319   : > { %2499 = vmatpush1.xpose.msra.mxu0 %v4223_v29 }
 0x31a   : > { %2500 = vmatprep.subr.mxu0 %v4220_v24 }
 0x31d   : > { %2501 = vmatpush1.xpose.msra.mxu0 %v4216_v47 }
 0x31e   : > { %2502 = vmatprep.subr.mxu0 %v4212_v62 }
 0x321   : > { %2503 = vmatpush1.xpose.msra.mxu0 %v4208_v55  ;;  %v4366_v55 = vld [vmem:[#allocation17_spill] sm:$0xff] }
 0x322   : > { %2504 = vmatprep.subr.mxu0 %v4204_v40  ;;  %v2475_v40 = vrot.slane %v4190_v12, %v4366_v55 }
 0x325   : > { %2505 = vmatpush1.xpose.msra.mxu0 %v4197_v31 }
 0x326   : > { %2506 = vmatprep.subr.mxu0 %v4193_v36 }
 0x329   : > { %2507 = vmatpush1.xpose.msra.mxu0 %v4187_v32 }
 0x32a   : > { %2508 = vmatprep.subr.mxu0 %v4183_v58 }
 0x32d   : > { %2509 = vmatpush1.xpose.msra.mxu0 %v4179_v39 }
 0x32e   : > { %2510 = vmatprep.subr.mxu0 %v4175_v9 }
 0x331   : > { %2511 = vmatpush1.xpose.msra.mxu0 %v4171_v23 }
 0x332   : > { %2512 = vmatprep.subr.mxu0 %v4164_v45 }
 0x335   : > { %2513 = vmatpush1.xpose.msra.mxu0 %v4160_v11 }
 0x338   : > { %2547 = vmatmul.mubr.f32.vlgmr.msra.gmra.mxu0 %v2475_v40 }
 0x34d   : > { %v2465_v36 = vpop.permute.xlu0 %2464 }
 0x34e   : > { %v2470_v32 = vrot.slane %v2465_v36, %v4366_v55 }
 0x3f8   : > { %v2548_v39 = vpop.f32.mrf.mxu0 }
 0x3f9   : > { %v2549_v9 = vadd.f32 %v2548_v39, %v2470_v32 }
 0x3fa   : > { %v2550_v45 = vpop.f32.mrf.mxu0 }
 0x3fb   : > { %2552 = vst [vmem:[%s284_s27] sm:$0x1] %v2549_v9 }
 0x3fc   : > { %3204 = shalt.err (!%p3201_p9)
}
 0x3fd   : > { %s3205_s12 = scalar_lea.hbm %s4276_s17, 16  ;;  %s3209_s19 = scalar_lea.hbm %s4318_s5, 32 }
 0x3fe   : > { %p3206_p1 = scmp.ne.s32.totalorder %s4276_s17, %s3205_s12  ;;  %p3210_p11 = scmp.lt.s32.totalorder %s4276_s17, %s4318_s5 }
 0x3ff   : > { %p3211_p13 = scmp.lt.s32.totalorder %s3209_s19, %s3205_s12 }
 0x400   : > { %p3207_p8 = pnand %p3206_p1, %p4367_p6 }
 0x401   : > { %p3212_p2 = por %p3211_p13, %p3210_p11 }
 0x402   : > { %p3208_p10 = pneg %p3207_p8 }
 0x404   : > { %p3213_p4 = pnand %p3212_p2, %p3208_p10 }
 0x406   : > { %3216 = shalt.err (!%p3213_p4)
}
 0x407   : > { %2695 = dma.vmem_to_hbm [thread:$0]  (%p4367_p6), %s2567_s13, 16, %s4276_s17, %s2554_s10  }
 0x408 PF: > { %s2578_s30 = sand.u32 1, %s3251_s20   ;;  %p4368_p12 = scmp.ne.s32.totalorder %s4328_s26, 0 }
 0x409   : > { %p4369_p0 = scmp.ge.s32.totalorder %s3263_s23, 2  ;;  %s2579_s25 = scalar_lea.sflag [#allocation5], %s2578_s30 }
 0x40b   : > { %p2712_p5 = pnand %p4369_p0, %p4368_p12 }
 0x40d   : > { %p2713_p3 = pneg %p2712_p5 }
 0x40f   : > { %3246 = dma.done.wait (%p2713_p3), %s2579_s25, 16  }
 0x410   : > { %3248 = vsyncadd (%p2713_p3), %s2579_s25, 4294967280  ;;  %p22_p7 = scmp.ge.s32.totalorder %s3388_s28, 4   ;;  %s4370_s20 = smov %s3255_s21 }
 0x411   : > { %s4371_s21 = smov %s3259_s22  ;;  %s4372_s22 = smov %s3398_s6 }
 0x412   : > { %s4373_s23 = smov %s3388_s28  ;;  %24 = sbr.rel (!%p22_p7) target bundleno = 10 (0xa), region = 97 }
 0x417   :  { %2583 = vsyncpa [#allocation4], 1 }
 0x418   :  { %2585 = vsyncpa [#allocation4 + $0x1], 1 }
 0x419   :  { %2586 = vsyncpa [#allocation7], 1 }
 0x41a   :  { %2587 = vsyncpa [#allocation10], 1 }
 0x41b   :  { %2588 = vsyncpa [#allocation5], 1 }
 0x41c   :  { %2590 = vsyncpa [#allocation5 + $0x1], 1 }

// kernel: tpu_custom_call.1
= control target key start
LH: loop header
LB: loop body
LE: loop exit
PB: predicated region body
PF: predicated region fallthrough
CT: control target
= control target key end

     0   :  { %s4313_s0 = inlined_call_operand.hbm [shape: f32[256,1024], index: 0, kind: input, shape index: {}]   ;;  %s4314_s1 = inlined_call_operand.hbm [shape: f32[1024,512], index: 1, kind: input, shape index: {}]   ;;  %s4315_s2 = inlined_call_operand.hbm [shape: f32[1,512], index: 2, kind: input, shape index: {}]   ;;  %s4316_s3 = inlined_call_operand.hbm [shape: f32[1,256], index: 3, kind: input, shape index: {}]   ;;  %s4317_s4 = inlined_call_operand.<no memory space> [shape: f32[1,1], index: 4, kind: input, shape index: {}]   ;;  %s4318_s5 = inlined_call_operand.hbm [shape: f32[1,256], index: 5, kind: output, shape index: {}]  }
   0x1   :  { %v10_v0 = vstv %s4317_s4 }
   0x2   :  { %11 = vst [vmem:[#allocation2] sm:$0x1] %v10_v0 }
   0x3   :  { %12 = vsyncpa [#allocation4], 0 }
   0x4   :  { %14 = vsyncpa [#allocation4 + $0x1], 0 }
   0x5   :  { %15 = vsyncpa [#allocation7], 0 }
   0x6   :  { %16 = vsyncpa [#allocation10], 0 }
   0x7   :  { %17 = vsyncpa [#allocation5], 0 }
   0x8   :  { %19 = vsyncpa [#allocation5 + $0x1], 0  ;;  %s3308_s20 = smov 0   ;;  %s3310_s21 = smov 0  }
   0x9   :  { %s3312_s22 = smov 0   ;;  %s3314_s23 = smov 0  }
   0xa LB: > { %s3329_s4 = sadd.s32 4294967295, %s3263_s23   ;;  %s2661_s24 = sadd.s32 4294967294, %s3263_s23   ;;  %s3263_s23 = sphi %s3314_s23, %s4373_s23   ;;  %s3259_s22 = sphi %s3312_s22, %s4372_s22   ;;  %s3255_s21 = sphi %s3310_s21, %s4371_s21   ;;  %s3251_s20 = sphi %s3308_s20, %s4370_s20  }
   0xb   : > { %p45_p0 = scmp.ne.s32.totalorder %s3255_s21, %s3251_s20  ;;  %p4319_p1 = scmp.eq.s32.totalorder %s3329_s4, 0 }
   0xc   : > { %p159_p3 = scmp.eq.s32.totalorder %s2661_s24, 1  ;;  %p2662_p5 = scmp.ge.s32.totalorder %s3263_s23, 1 }
   0xd   : > { %p3338_p4 = por %p4319_p1, %p45_p0  ;;  %p166_p7 = scmp.lt.s32.totalorder %s3263_s23, 3 }
   0xe   : > { %p3343_p6 = por %p159_p3, %p45_p0  ;;  %s3265_s28 = smov [#allocation6]  }
   0xf   : > { %s4327_s25 = scalar_select %p3338_p4, 1, 0 }
  0x10   : > { %s4328_s26 = scalar_select %p3343_p6, 1, 0 }
  0x11   : > { %p3348_p8 = pnand %p2662_p5, %p166_p7  ;;  %s178_s29 = sshll.u32 %s3265_s28, 4  ;;  %s179_s29 = int_to_ptr.vmem [resolvable:$true] %s178_s29 }
  0x12   : > { %s3266_s6 = smov [#allocation8]   ;;  %s3267_s8 = smov [#allocation9]  }
  0x13   : > { %s4329_s27 = scalar_select %p3348_p8, 1, 0 }
  0x14   : > { %p2697_p9 = pneg %p3348_p8  ;;  %s192_s7 = sshll.u32 %s3266_s6, 4  ;;  %s193_s7 = int_to_ptr.vmem [resolvable:$true] %s192_s7 }
  0x15   : > { %s203_s9 = sshll.u32 %s3267_s8, 4  ;;  %s3096_s10 = scalar_lea.vmem %s179_s29, 65536  ;;  %s204_s9 = int_to_ptr.vmem [resolvable:$true] %s203_s9 }
  0x16   : > { %p3357_p11 = pnand %p2697_p9, %p4319_p1  ;;  %p3097_p13 = scmp.ne.s32.totalorder %s179_s29, %s3096_s10 }
  0x17   : > { %p3104_p5 = scmp.lt.s32.totalorder %s179_s29, %s179_s29  ;;  %p3105_p7 = scmp.lt.s32.totalorder %s3096_s10, %s3096_s10 }
  0x18   : > { %p3087_p12 = pneg %p3357_p11 }
  0x19   : > { %p3106_p9 = por %p3105_p7, %p3104_p5 }
  0x1a   : > { %p3099_p0 = pnand %p3097_p13, %p3087_p12 }
  0x1c   : > { %p3100_p3 = pneg %p3099_p0 }
  0x1e   : > { %p3107_p10 = pnand %p3106_p9, %p3100_p3 }
  0x20   : > { %3110 = shalt.err (!%p3107_p10)
}
  0x21   : > { %s3268_s11 = smov 512   ;;  %s3269_s12 = smov 32  }
  0x22   : > { %2700 = dma.hbm_to_vmem [thread:$0]  (!%p3357_p11), %s4314_s1, 65536, %s179_s29, [#allocation7], %s3268_s11, %s3268_s11, %s3269_s12  }
  0x23   : > { %s3122_s15 = scalar_lea.vmem %s193_s7, 64  ;;  %p3130_p2 = scmp.lt.s32.totalorder %s193_s7, %s193_s7 }
  0x24   : > { %p3123_p1 = scmp.ne.s32.totalorder %s193_s7, %s3122_s15  ;;  %p3131_p6 = scmp.lt.s32.totalorder %s3122_s15, %s3122_s15 }
  0x26   : > { %p3125_p13 = pnand %p3123_p1, %p3087_p12  ;;  %p3132_p5 = por %p3131_p6, %p3130_p2 }
  0x28   : > { %p3126_p0 = pneg %p3125_p13 }
  0x2a   : > { %p3133_p3 = pnand %p3132_p5, %p3126_p0 }
  0x2c   : > { %3136 = shalt.err (!%p3133_p3)
}
  0x2d   : > { %2703 = dma.hbm_to_vmem [thread:$0]  (!%p3357_p11), %s4315_s2, 64, %s193_s7, [#allocation7]  }
  0x2e   : > { %s3148_s18 = scalar_lea.vmem %s204_s9, 32  ;;  %p3156_p9 = scmp.lt.s32.totalorder %s204_s9, %s204_s9 }
  0x2f   : > { %p3149_p10 = scmp.ne.s32.totalorder %s204_s9, %s3148_s18  ;;  %p3157_p13 = scmp.lt.s32.totalorder %s3148_s18, %s3148_s18 }
  0x31   : > { %p3151_p7 = pnand %p3149_p10, %p3087_p12  ;;  %p3158_p4 = por %p3157_p13, %p3156_p9 }
  0x33   : > { %p3152_p1 = pneg %p3151_p7 }
  0x35   : > { %p3159_p2 = pnand %p3158_p4, %p3152_p1 }
  0x37   : > { %3162 = shalt.err (!%p3159_p2)
}
  0x38   : > { %2706 = dma.hbm_to_vmem [thread:$0]  (!%p3357_p11), %s4316_s3, 32, %s204_s9, [#allocation10]  }
  0x39   : > { %s3388_s28 = sadd.s32 1, %s3263_s23   ;;  %s32_s30 = sadd.s32 1, %s3259_s22 }
  0x3a   : > { %s29_s29 = ssub.s32 %s3263_s23, %s3388_s28  ;;  %p39_p6 = scmp.ne.s32.totalorder %s3259_s22, %s3255_s21 }
  0x3b   : > { %p30_p4 = scmp.eq.s32.totalorder %s29_s29, 0  ;;  %p40_p12 = scmp.eq.s32.totalorder %s3263_s23, 0 }
  0x3c   : > { %p2718_p0 = scmp.lt.s32.totalorder %s3263_s23, 2  ;;  %p4331_p3 = scmp.eq.s32.totalorder %s3329_s4, 1 }
  0x3d   : > { %s3398_s6 = scalar_select %p30_p4, %s3259_s22, %s32_s30  }
  0x3e   : > { %p41_p5 = por %p40_p12, %p39_p6  ;;  %p3402_p10 = por %p4331_p3, %p39_p6 }
  0x3f   : > { %s217_s8 = sand.u32 1, %s3259_s22   ;;  %s2680_s10 = sshll.u32 %s3263_s23, 14 }
  0x40   : > { %s4332_s7 = scalar_select %p3402_p10, 1, 0 }
  0x41   : > { %s2667_s9 = sshll.u32 %s217_s8, 10  ;;  %s3411_s13 = scalar_lea.hbm %s4313_s0, %s2680_s10 }
  0x42   : > { %s221_s14 = scalar_lea.vmem [#allocation3], %s2667_s9  ;;  %p3413_p11 = pnand %p2718_p0, %p41_p5 }
  0x43   : > { %s229_s15 = sshll.u32 %s221_s14, 4  ;;  %s3419_s17 = scalar_lea.sflag [#allocation4], %s217_s8  ;;  %s3417_s15 = int_to_ptr.vmem [resolvable:$true] %s229_s15 }
  0x44   : > { %s3163_s18 = scalar_lea.hbm %s3411_s13, 16384  ;;  %p3165_p1 = pneg %p3413_p11 }
  0x45   : > { %p3164_p7 = scmp.ne.s32.totalorder %s3411_s13, %s3163_s18  ;;  %s3168_s29 = scalar_lea.hbm %s4313_s0, 32768 }
  0x46   : > { %p3169_p2 = scmp.lt.s32.totalorder %s3411_s13, %s4313_s0  ;;  %p3170_p4 = scmp.lt.s32.totalorder %s3168_s29, %s3163_s18 }
  0x47   : > { %p3166_p9 = pnand %p3165_p1, %p3164_p7 }
  0x48   : > { %p3171_p6 = por %p3170_p4, %p3169_p2 }
  0x49   : > { %p3167_p13 = pneg %p3166_p9 }
  0x4b   : > { %p3172_p12 = pnand %p3171_p6, %p3167_p13 }
  0x4d   : > { %3175 = shalt.err (!%p3172_p12)
}
  0x4e   : > { %s3176_s8 = scalar_lea.vmem %s3417_s15, 16384  ;;  %s3270_s9 = smov [#allocation3]  }
  0x4f   : > { %p3177_p0 = scmp.ne.s32.totalorder %s3417_s15, %s3176_s8  ;;  %s3181_s11 = sshll.u32 %s3270_s9, 4  ;;  %s3182_s11 = int_to_ptr.vmem [resolvable:$false] %s3181_s11 }
  0x50   : > { %s3183_s12 = scalar_lea.vmem %s3182_s11, 32768  ;;  %p3184_p7 = scmp.lt.s32.totalorder %s3417_s15, %s3182_s11 }
  0x51   : > { %p3179_p5 = pnand %p3177_p0, %p3165_p1  ;;  %p3185_p9 = scmp.lt.s32.totalorder %s3183_s12, %s3176_s8 }
  0x53   : > { %p3180_p3 = pneg %p3179_p5  ;;  %p3186_p10 = por %p3185_p9, %p3184_p7 }
  0x55   : > { %p3187_p8 = pnand %p3186_p10, %p3180_p3 }
  0x57   : > { %3190 = shalt.err (!%p3187_p8)
}
  0x58   : > { %s3271_s14 = smov 1024   ;;  %s3272_s18 = smov 64  }
  0x59   : > { %2710 = dma.hbm_to_vmem [thread:$0]  (!%p3413_p11), %s3411_s13, 16384, %s3417_s15, %s3419_s17, %s3271_s14, %s3271_s14, %s3272_s18  }
  0x5a   : > { %p4334_p1 = scmp.ne.s32.totalorder %s4329_s27, 0 }
  0x5c   : > { %241 = sbr.rel (%p4334_p1) target bundleno = 1032 (0x408), region = 40 }
  0x61   : > { %s3443_s19 = sand.u32 1, %s3255_s21   ;;  %p4335_p8 = scmp.ne.s32.totalorder %s4327_s25, 0 }
  0x62   : > { %s2672_s24 = sshll.u32 %s3443_s19, 10  ;;  %s244_s29 = scalar_lea.sflag [#allocation4], %s3443_s19 }
  0x63   : > { %s3447_s30 = scalar_lea.vmem [#allocation3], %s2672_s24 }
  0x64   : > { %3234 = dma.done.wait (%p4335_p8), %s244_s29, 16384  }
  0x65   : > { %3236 = vsyncadd (%p4335_p8), %s244_s29, 4294950912  ;;  %p4336_p10 = scmp.eq.s32.totalorder %s3329_s4, 0 }
  0x67   : > { %3238 = dma.done.wait (%p4336_p10), [#allocation7], 65600   ;;  %p4337_p11 = pmov %p4336_p10 }
  0x68   : > { %p4338_p13 = pmov %p4336_p10 }
  0x69   : > { %3240 = vsyncadd (%p4337_p11), [#allocation7], 4294901696 }
  0x6a   : > { %3242 = dma.done.wait (%p4338_p13), [#allocation10], 32   ;;  %p4339_p2 = pmov %p4336_p10 }
  0x6b   : > { %v475_v1 = vld [vmem:[#allocation6 + $0x1e8] sm:$0xff]  ;;  %v474_v3 = vld [vmem:[#allocation6 + $0x1e0] sm:$0xff]  ;;  %s2676_s25 = sshll.u32 %s3329_s4, 4  ;;  %s284_s27 = scalar_lea.vmem [#allocation11], %s3443_s19 }
  0x6c   : > { %3244 = vsyncadd (%p4339_p2), [#allocation10], 4294967264  ;;  %v603_v2 = vld [vmem:[#allocation6 + $0x5e8] sm:$0xff]  ;;  %948 = vmatprep.subr.mxu0 %v475_v1  ;;  %v602_v4 = vld [vmem:[#allocation6 + $0x5e0] sm:$0xff]  ;;  %s2566_s13 = sshll.u32 %s284_s27, 4  ;;  %s4276_s17 = scalar_lea.hbm %s4318_s5, %s2676_s25  ;;  %s2567_s13 = int_to_ptr.vmem [resolvable:$true] %s2566_s13 }
  0x6d   : > { %1109 = vmatprep.subr.mxu1 %v603_v2  ;;  %v471_v5 = vld [vmem:[#allocation6 + $0x1c8] sm:$0xff]  ;;  %949 = vmatpush1.msra.mxu0 %v474_v3  ;;  %v470_v7 = vld [vmem:[#allocation6 + $0x1c0] sm:$0xff]  ;;  %s2554_s10 = scalar_lea.sflag [#allocation5], %s3443_s19  ;;  %s3191_s8 = scalar_lea.vmem %s2567_s13, 16 }
  0x6e   : > { %v599_v6 = vld [vmem:[#allocation6 + $0x5c8] sm:$0xff]  ;;  %1110 = vmatpush1.msra.mxu1 %v602_v4  ;;  %v598_v8 = vld [vmem:[#allocation6 + $0x5c0] sm:$0xff]  ;;  %950 = vmatprep.subr.mxu0 %v471_v5  ;;  %p3192_p4 = scmp.ne.s32.totalorder %s2567_s13, %s3191_s8  ;;  %p4367_p6 = scmp.ne.s32.totalorder %s4332_s7, 0 }
  0x6f   : > { %v467_v9 = vld [vmem:[#allocation6 + $0x1a8] sm:$0xff]  ;;  %1111 = vmatprep.subr.mxu1 %v599_v6  ;;  %v466_v11 = vld [vmem:[#allocation6 + $0x1a0] sm:$0xff]  ;;  %951 = vmatpush1.msra.mxu0 %v470_v7  ;;  %s3274_s9 = smov [#allocation11]  }
  0x70   : > { %v595_v10 = vld [vmem:[#allocation6 + $0x5a8] sm:$0xff]  ;;  %v594_v12 = vld [vmem:[#allocation6 + $0x5a0] sm:$0xff]  ;;  %1112 = vmatpush1.msra.mxu1 %v598_v8  ;;  %952 = vmatprep.subr.mxu0 %v467_v9  ;;  %p3193_p12 = pnand %p3192_p4, %p4367_p6  ;;  %s3195_s4 = sshll.u32 %s3274_s9, 4  ;;  %s3196_s4 = int_to_ptr.vmem [resolvable:$false] %s3195_s4 }
  0x71   : > { %v463_v13 = vld [vmem:[#allocation6 + $0x188] sm:$0xff]  ;;  %1113 = vmatprep.subr.mxu1 %v595_v10  ;;  %v462_v15 = vld [vmem:[#allocation6 + $0x180] sm:$0xff]  ;;  %953 = vmatpush1.msra.mxu0 %v466_v11  ;;  %s3197_s11 = scalar_lea.vmem %s3196_s4, 32  ;;  %p3198_p5 = scmp.lt.s32.totalorder %s2567_s13, %s3196_s4 }
  0x72   : > { %v591_v14 = vld [vmem:[#allocation6 + $0x588] sm:$0xff]  ;;  %v590_v16 = vld [vmem:[#allocation6 + $0x580] sm:$0xff]  ;;  %1114 = vmatpush1.msra.mxu1 %v594_v12  ;;  %954 = vmatprep.subr.mxu0 %v463_v13  ;;  %p3194_p0 = pneg %p3193_p12  ;;  %p3199_p3 = scmp.lt.s32.totalorder %s3197_s11, %s3191_s8 }
  0x73   : > { %v459_v17 = vld [vmem:[#allocation6 + $0x168] sm:$0xff]  ;;  %1115 = vmatprep.subr.mxu1 %v591_v14  ;;  %v458_v19 = vld [vmem:[#allocation6 + $0x160] sm:$0xff]  ;;  %955 = vmatpush1.msra.mxu0 %v462_v15 }
  0x74   : > { %v587_v18 = vld [vmem:[#allocation6 + $0x568] sm:$0xff]  ;;  %v586_v20 = vld [vmem:[#allocation6 + $0x560] sm:$0xff]  ;;  %1116 = vmatpush1.msra.mxu1 %v590_v16  ;;  %956 = vmatprep.subr.mxu0 %v459_v17  ;;  %p3200_p7 = por %p3199_p3, %p3198_p5 }
  0x75   : > { %v455_v21 = vld [vmem:[#allocation6 + $0x148] sm:$0xff]  ;;  %1117 = vmatprep.subr.mxu1 %v587_v18  ;;  %v454_v23 = vld [vmem:[#allocation6 + $0x140] sm:$0xff]  ;;  %957 = vmatpush1.msra.mxu0 %v458_v19 }
  0x76   : > { %v583_v22 = vld [vmem:[#allocation6 + $0x548] sm:$0xff]  ;;  %v582_v24 = vld [vmem:[#allocation6 + $0x540] sm:$0xff]  ;;  %1118 = vmatpush1.msra.mxu1 %v586_v20  ;;  %958 = vmatprep.subr.mxu0 %v455_v21  ;;  %p3201_p9 = pnand %p3200_p7, %p3194_p0 }
  0x77   : > { %v451_v25 = vld [vmem:[#allocation6 + $0x128] sm:$0xff]  ;;  %1119 = vmatprep.subr.mxu1 %v583_v22  ;;  %v450_v27 = vld [vmem:[#allocation6 + $0x120] sm:$0xff]  ;;  %959 = vmatpush1.msra.mxu0 %v454_v23 }
  0x78   : > { %v579_v26 = vld [vmem:[#allocation6 + $0x528] sm:$0xff]  ;;  %v578_v28 = vld [vmem:[#allocation6 + $0x520] sm:$0xff]  ;;  %1120 = vmatpush1.msra.mxu1 %v582_v24  ;;  %960 = vmatprep.subr.mxu0 %v451_v25 }
  0x79   : > { %v447_v29 = vld [vmem:[#allocation6 + $0x108] sm:$0xff]  ;;  %1121 = vmatprep.subr.mxu1 %v579_v26  ;;  %v446_v31 = vld [vmem:[#allocation6 + $0x100] sm:$0xff]  ;;  %961 = vmatpush1.msra.mxu0 %v450_v27 }
  0x7a   : > { %v575_v30 = vld [vmem:[#allocation6 + $0x508] sm:$0xff]  ;;  %v574_v32 = vld [vmem:[#allocation6 + $0x500] sm:$0xff]  ;;  %1122 = vmatpush1.msra.mxu1 %v578_v28  ;;  %962 = vmatprep.subr.mxu0 %v447_v29 }
  0x7b   : > { %v443_v33 = vld [vmem:[#allocation6 + $0xe8] sm:$0xff]  ;;  %1123 = vmatprep.subr.mxu1 %v575_v30  ;;  %v442_v35 = vld [vmem:[#allocation6 + $0xe0] sm:$0xff]  ;;  %963 = vmatpush1.msra.mxu0 %v446_v31 }
  0x7c   : > { %v571_v34 = vld [vmem:[#allocation6 + $0x4e8] sm:$0xff]  ;;  %v570_v36 = vld [vmem:[#allocation6 + $0x4e0] sm:$0xff]  ;;  %1124 = vmatpush1.msra.mxu1 %v574_v32  ;;  %964 = vmatprep.subr.mxu0 %v443_v33 }
  0x7d   : > { %v439_v37 = vld [vmem:[#allocation6 + $0xc8] sm:$0xff]  ;;  %1125 = vmatprep.subr.mxu1 %v571_v34  ;;  %v438_v39 = vld [vmem:[#allocation6 + $0xc0] sm:$0xff]  ;;  %965 = vmatpush1.msra.mxu0 %v442_v35 }
  0x7e   : > { %v567_v38 = vld [vmem:[#allocation6 + $0x4c8] sm:$0xff]  ;;  %v566_v40 = vld [vmem:[#allocation6 + $0x4c0] sm:$0xff]  ;;  %1126 = vmatpush1.msra.mxu1 %v570_v36  ;;  %966 = vmatprep.subr.mxu0 %v439_v37 }
  0x7f   : > { %v435_v41 = vld [vmem:[#allocation6 + $0xa8] sm:$0xff]  ;;  %1127 = vmatprep.subr.mxu1 %v567_v38  ;;  %v434_v43 = vld [vmem:[#allocation6 + $0xa0] sm:$0xff]  ;;  %967 = vmatpush1.msra.mxu0 %v438_v39 }
  0x80   : > { %v563_v42 = vld [vmem:[#allocation6 + $0x4a8] sm:$0xff]  ;;  %v562_v44 = vld [vmem:[#allocation6 + $0x4a0] sm:$0xff]  ;;  %1128 = vmatpush1.msra.mxu1 %v566_v40  ;;  %968 = vmatprep.subr.mxu0 %v435_v41 }
  0x81   : > { %v431_v45 = vld [vmem:[#allocation6 + $0x88] sm:$0xff]  ;;  %1129 = vmatprep.subr.mxu1 %v563_v42  ;;  %v430_v47 = vld [vmem:[#allocation6 + $0x80] sm:$0xff]  ;;  %969 = vmatpush1.msra.mxu0 %v434_v43 }
  0x82   : > { %v559_v46 = vld [vmem:[#allocation6 + $0x488] sm:$0xff]  ;;  %v558_v48 = vld [vmem:[#allocation6 + $0x480] sm:$0xff]  ;;  %1130 = vmatpush1.msra.mxu1 %v562_v44  ;;  %970 = vmatprep.subr.mxu0 %v431_v45 }
  0x83   : > { %v427_v49 = vld [vmem:[#allocation6 + $0x68] sm:$0xff]  ;;  %1131 = vmatprep.subr.mxu1 %v559_v46  ;;  %v426_v51 = vld [vmem:[#allocation6 + $0x60] sm:$0xff]  ;;  %971 = vmatpush1.msra.mxu0 %v430_v47 }
  0x84   : > { %v555_v50 = vld [vmem:[#allocation6 + $0x468] sm:$0xff]  ;;  %v554_v52 = vld [vmem:[#allocation6 + $0x460] sm:$0xff]  ;;  %1132 = vmatpush1.msra.mxu1 %v558_v48  ;;  %972 = vmatprep.subr.mxu0 %v427_v49 }
  0x85   : > { %v423_v53 = vld [vmem:[#allocation6 + $0x48] sm:$0xff]  ;;  %1133 = vmatprep.subr.mxu1 %v555_v50  ;;  %v422_v55 = vld [vmem:[#allocation6 + $0x40] sm:$0xff]  ;;  %973 = vmatpush1.msra.mxu0 %v426_v51 }
  0x86   : > { %v551_v54 = vld [vmem:[#allocation6 + $0x448] sm:$0xff]  ;;  %v550_v56 = vld [vmem:[#allocation6 + $0x440] sm:$0xff]  ;;  %1134 = vmatpush1.msra.mxu1 %v554_v52  ;;  %974 = vmatprep.subr.mxu0 %v423_v53 }
  0x87   : > { %v419_v57 = vld [vmem:[#allocation6 + $0x28] sm:$0xff]  ;;  %1135 = vmatprep.subr.mxu1 %v551_v54  ;;  %v418_v59 = vld [vmem:[#allocation6 + $0x20] sm:$0xff]  ;;  %975 = vmatpush1.msra.mxu0 %v422_v55 }
  0x88   : > { %v547_v58 = vld [vmem:[#allocation6 + $0x428] sm:$0xff]  ;;  %v546_v60 = vld [vmem:[#allocation6 + $0x420] sm:$0xff]  ;;  %1136 = vmatpush1.msra.mxu1 %v550_v56  ;;  %976 = vmatprep.subr.mxu0 %v419_v57 }
  0x89   : > { %v415_v61 = vld [vmem:[#allocation6 + $0x8] sm:$0xff]  ;;  %1137 = vmatprep.subr.mxu1 %v547_v58  ;;  %v414_v63 = vld [vmem:[#allocation6] sm:$0xff]  ;;  %977 = vmatpush1.msra.mxu0 %v418_v59 }
  0x8a   : > { %v543_v62 = vld [vmem:[#allocation6 + $0x408] sm:$0xff]  ;;  %v542_v0 = vld [vmem:[#allocation6 + $0x400] sm:$0xff]  ;;  %1138 = vmatpush1.msra.mxu1 %v546_v60  ;;  %978 = vmatprep.subr.mxu0 %v415_v61 }
  0x8b   : > { %v539_v1 = vld [vmem:[#allocation6 + $0x3e8] sm:$0xff]  ;;  %1139 = vmatprep.subr.mxu1 %v543_v62  ;;  %v538_v3 = vld [vmem:[#allocation6 + $0x3e0] sm:$0xff]  ;;  %979 = vmatpush1.msra.mxu0 %v414_v63 }
  0x8c   : > { %v667_v2 = vld [vmem:[#allocation6 + $0x7e8] sm:$0xff]  ;;  %v666_v4 = vld [vmem:[#allocation6 + $0x7e0] sm:$0xff]  ;;  %1140 = vmatpush1.msra.mxu1 %v542_v0  ;;  %980 = vmatprep.subr.mxu0 %v539_v1 }
  0x8d   : > { %v535_v5 = vld [vmem:[#allocation6 + $0x3c8] sm:$0xff]  ;;  %1141 = vmatprep.subr.mxu1 %v667_v2  ;;  %v534_v7 = vld [vmem:[#allocation6 + $0x3c0] sm:$0xff]  ;;  %981 = vmatpush2.msra.mxu0 %v538_v3  ;;  %v289_v2 = vld [vmem:[%s3447_s30 + $0x18] sm:$0xff] }
  0x8e   : > { %v663_v6 = vld [vmem:[#allocation6 + $0x7c8] sm:$0xff]  ;;  %v662_v8 = vld [vmem:[#allocation6 + $0x7c0] sm:$0xff]  ;;  %1142 = vmatpush2.msra.mxu1 %v666_v4  ;;  %982 = vmatprep.subr.mxu0 %v535_v5  ;;  %v288_v4 = vld [vmem:[%s3447_s30 + $0x10] sm:$0xff] }
  0x8f   : > { %v531_v9 = vld [vmem:[#allocation6 + $0x3a8] sm:$0xff]  ;;  %1143 = vmatprep.subr.mxu1 %v663_v6  ;;  %v530_v11 = vld [vmem:[#allocation6 + $0x3a0] sm:$0xff]  ;;  %983 = vmatpush2.msra.mxu0 %v534_v7 }
  0x90   : > { %v659_v10 = vld [vmem:[#allocation6 + $0x7a8] sm:$0xff]  ;;  %v658_v12 = vld [vmem:[#allocation6 + $0x7a0] sm:$0xff]  ;;  %1144 = vmatpush2.msra.mxu1 %v662_v8  ;;  %984 = vmatprep.subr.mxu0 %v531_v9 }
  0x91   : > { %v527_v13 = vld [vmem:[#allocation6 + $0x388] sm:$0xff]  ;;  %1145 = vmatprep.subr.mxu1 %v659_v10  ;;  %v526_v15 = vld [vmem:[#allocation6 + $0x380] sm:$0xff]  ;;  %985 = vmatpush2.msra.mxu0 %v530_v11 }
  0x92   : > { %v655_v14 = vld [vmem:[#allocation6 + $0x788] sm:$0xff]  ;;  %v654_v16 = vld [vmem:[#allocation6 + $0x780] sm:$0xff]  ;;  %1146 = vmatpush2.msra.mxu1 %v658_v12  ;;  %986 = vmatprep.subr.mxu0 %v527_v13  ;;  %v297_v12 = vld [vmem:[%s3447_s30 + $0x58] sm:$0xff] }
  0x93   : > { %v523_v17 = vld [vmem:[#allocation6 + $0x368] sm:$0xff]  ;;  %1147 = vmatprep.subr.mxu1 %v655_v14  ;;  %v522_v19 = vld [vmem:[#allocation6 + $0x360] sm:$0xff]  ;;  %987 = vmatpush2.msra.mxu0 %v526_v15 }
  0x94   : > { %v651_v18 = vld [vmem:[#allocation6 + $0x768] sm:$0xff]  ;;  %v650_v20 = vld [vmem:[#allocation6 + $0x760] sm:$0xff]  ;;  %1148 = vmatpush2.msra.mxu1 %v654_v16  ;;  %988 = vmatprep.subr.mxu0 %v523_v17  ;;  %v296_v16 = vld [vmem:[%s3447_s30 + $0x50] sm:$0xff] }
  0x95   : > { %v519_v21 = vld [vmem:[#allocation6 + $0x348] sm:$0xff]  ;;  %1149 = vmatprep.subr.mxu1 %v651_v18  ;;  %v518_v23 = vld [vmem:[#allocation6 + $0x340] sm:$0xff]  ;;  %989 = vmatpush2.msra.mxu0 %v522_v19 }
  0x96   : > { %v647_v22 = vld [vmem:[#allocation6 + $0x748] sm:$0xff]  ;;  %v646_v24 = vld [vmem:[#allocation6 + $0x740] sm:$0xff]  ;;  %1150 = vmatpush2.msra.mxu1 %v650_v20  ;;  %990 = vmatprep.subr.mxu0 %v519_v21 }
  0x97   : > { %v515_v25 = vld [vmem:[#allocation6 + $0x328] sm:$0xff]  ;;  %1151 = vmatprep.subr.mxu1 %v647_v22  ;;  %v514_v27 = vld [vmem:[#allocation6 + $0x320] sm:$0xff]  ;;  %991 = vmatpush2.msra.mxu0 %v518_v23 }
  0x98   : > { %v643_v26 = vld [vmem:[#allocation6 + $0x728] sm:$0xff]  ;;  %v642_v28 = vld [vmem:[#allocation6 + $0x720] sm:$0xff]  ;;  %1152 = vmatpush2.msra.mxu1 %v646_v24  ;;  %992 = vmatprep.subr.mxu0 %v515_v25  ;;  %v305_v24 = vld [vmem:[%s3447_s30 + $0x98] sm:$0xff] }
  0x99   : > { %v511_v29 = vld [vmem:[#allocation6 + $0x308] sm:$0xff]  ;;  %1153 = vmatprep.subr.mxu1 %v643_v26  ;;  %v510_v31 = vld [vmem:[#allocation6 + $0x300] sm:$0xff]  ;;  %993 = vmatpush2.msra.mxu0 %v514_v27 }
  0x9a   : > { %v639_v30 = vld [vmem:[#allocation6 + $0x708] sm:$0xff]  ;;  %v638_v32 = vld [vmem:[#allocation6 + $0x700] sm:$0xff]  ;;  %1154 = vmatpush2.msra.mxu1 %v642_v28  ;;  %994 = vmatprep.subr.mxu0 %v511_v29  ;;  %v304_v28 = vld [vmem:[%s3447_s30 + $0x90] sm:$0xff] }
  0x9b   : > { %v507_v33 = vld [vmem:[#allocation6 + $0x2e8] sm:$0xff]  ;;  %1155 = vmatprep.subr.mxu1 %v639_v30  ;;  %v506_v35 = vld [vmem:[#allocation6 + $0x2e0] sm:$0xff]  ;;  %995 = vmatpush2.msra.mxu0 %v510_v31 }
  0x9c   : > { %v635_v34 = vld [vmem:[#allocation6 + $0x6e8] sm:$0xff]  ;;  %v634_v36 = vld [vmem:[#allocation6 + $0x6e0] sm:$0xff]  ;;  %1156 = vmatpush2.msra.mxu1 %v638_v32  ;;  %996 = vmatprep.subr.mxu0 %v507_v33 }
  0x9d   : > { %v503_v37 = vld [vmem:[#allocation6 + $0x2c8] sm:$0xff]  ;;  %1157 = vmatprep.subr.mxu1 %v635_v34  ;;  %v502_v39 = vld [vmem:[#allocation6 + $0x2c0] sm:$0xff]  ;;  %997 = vmatpush2.msra.mxu0 %v506_v35 }
  0x9e   : > { %v631_v38 = vld [vmem:[#allocation6 + $0x6c8] sm:$0xff]  ;;  %v630_v40 = vld [vmem:[#allocation6 + $0x6c0] sm:$0xff]  ;;  %1158 = vmatpush2.msra.mxu1 %v634_v36  ;;  %998 = vmatprep.subr.mxu0 %v503_v37  ;;  %v313_v36 = vld [vmem:[%s3447_s30 + $0xd8] sm:$0xff] }
  0x9f   : > { %v499_v41 = vld [vmem:[#allocation6 + $0x2a8] sm:$0xff]  ;;  %1159 = vmatprep.subr.mxu1 %v631_v38  ;;  %v498_v43 = vld [vmem:[#allocation6 + $0x2a0] sm:$0xff]  ;;  %999 = vmatpush2.msra.mxu0 %v502_v39 }
  0xa0   : > { %v627_v42 = vld [vmem:[#allocation6 + $0x6a8] sm:$0xff]  ;;  %v626_v44 = vld [vmem:[#allocation6 + $0x6a0] sm:$0xff]  ;;  %1160 = vmatpush2.msra.mxu1 %v630_v40  ;;  %1000 = vmatprep.subr.mxu0 %v499_v41  ;;  %v312_v40 = vld [vmem:[%s3447_s30 + $0xd0] sm:$0xff] }
  0xa1   : > { %v495_v45 = vld [vmem:[#allocation6 + $0x288] sm:$0xff]  ;;  %1161 = vmatprep.subr.mxu1 %v627_v42  ;;  %v494_v47 = vld [vmem:[#allocation6 + $0x280] sm:$0xff]  ;;  %1001 = vmatpush2.msra.mxu0 %v498_v43 }
  0xa2   : > { %v623_v46 = vld [vmem:[#allocation6 + $0x688] sm:$0xff]  ;;  %v622_v48 = vld [vmem:[#allocation6 + $0x680] sm:$0xff]  ;;  %1162 = vmatpush2.msra.mxu1 %v626_v44  ;;  %1002 = vmatprep.subr.mxu0 %v495_v45 }
  0xa3   : > { %v491_v49 = vld [vmem:[#allocation6 + $0x268] sm:$0xff]  ;;  %1163 = vmatprep.subr.mxu1 %v623_v46  ;;  %v490_v51 = vld [vmem:[#allocation6 + $0x260] sm:$0xff]  ;;  %1003 = vmatpush2.msra.mxu0 %v494_v47 }
  0xa4   : > { %v619_v50 = vld [vmem:[#allocation6 + $0x668] sm:$0xff]  ;;  %v618_v52 = vld [vmem:[#allocation6 + $0x660] sm:$0xff]  ;;  %1164 = vmatpush2.msra.mxu1 %v622_v48  ;;  %1004 = vmatprep.subr.mxu0 %v491_v49  ;;  %v321_v48 = vld [vmem:[%s3447_s30 + $0x118] sm:$0xff] }
  0xa5   : > { %v487_v53 = vld [vmem:[#allocation6 + $0x248] sm:$0xff]  ;;  %1165 = vmatprep.subr.mxu1 %v619_v50  ;;  %v486_v55 = vld [vmem:[#allocation6 + $0x240] sm:$0xff]  ;;  %1005 = vmatpush2.msra.mxu0 %v490_v51 }
  0xa6   : > { %v615_v54 = vld [vmem:[#allocation6 + $0x648] sm:$0xff]  ;;  %v614_v56 = vld [vmem:[#allocation6 + $0x640] sm:$0xff]  ;;  %1166 = vmatpush2.msra.mxu1 %v618_v52  ;;  %1006 = vmatprep.subr.mxu0 %v487_v53  ;;  %v320_v52 = vld [vmem:[%s3447_s30 + $0x110] sm:$0xff] }
  0xa7   : > { %v483_v57 = vld [vmem:[#allocation6 + $0x228] sm:$0xff]  ;;  %1167 = vmatprep.subr.mxu1 %v615_v54  ;;  %v482_v59 = vld [vmem:[#allocation6 + $0x220] sm:$0xff]  ;;  %1007 = vmatpush2.msra.mxu0 %v486_v55 }
  0xa8   : > { %v611_v58 = vld [vmem:[#allocation6 + $0x628] sm:$0xff]  ;;  %v610_v60 = vld [vmem:[#allocation6 + $0x620] sm:$0xff]  ;;  %1168 = vmatpush2.msra.mxu1 %v614_v56  ;;  %1008 = vmatprep.subr.mxu0 %v483_v57 }
  0xa9   : > { %v479_v61 = vld [vmem:[#allocation6 + $0x208] sm:$0xff]  ;;  %1169 = vmatprep.subr.mxu1 %v611_v58  ;;  %v478_v63 = vld [vmem:[#allocation6 + $0x200] sm:$0xff]  ;;  %1009 = vmatpush2.msra.mxu0 %v482_v59 }
  0xaa   : > { %v607_v62 = vld [vmem:[#allocation6 + $0x608] sm:$0xff]  ;;  %1170 = vmatpush2.msra.mxu1 %v610_v60  ;;  %v606_v1 = vld [vmem:[#allocation6 + $0x600] sm:$0xff]  ;;  %1010 = vmatprep.subr.mxu0 %v479_v61  ;;  %v329_v60 = vld [vmem:[%s3447_s30 + $0x158] sm:$0xff] }
  0xab   : > { %v287_v0 = vld [vmem:[%s3447_s30 + $0x8] sm:$0xff]  ;;  %1171 = vmatprep.subr.mxu1 %v607_v62  ;;  %v286_v3 = vld [vmem:[%s3447_s30] sm:$0xff]  ;;  %1011 = vmatpush2.msra.mxu0 %v478_v63 }
  0xac   : > { %1012 = vmatprep.mubr.f32.mxu0 %v287_v0  ;;  %v731_v5 = vld [vmem:[#allocation6 + $0x9e8] sm:$0xff]  ;;  %1172 = vmatpush2.msra.mxu1 %v606_v1  ;;  %v730_v7 = vld [vmem:[#allocation6 + $0x9e0] sm:$0xff]  ;;  %v328_v0 = vld [vmem:[%s3447_s30 + $0x150] sm:$0xff] }
  0xad   : > { %v859_v6 = vld [vmem:[#allocation6 + $0xde8] sm:$0xff]  ;;  %1173 = vmatprep.mubr.f32.mxu1 %v289_v2  ;;  %v858_v8 = vld [vmem:[#allocation6 + $0xde0] sm:$0xff]  ;;  %1013 = vmatmul.mubr.f32.vlgmr.msra.gmra.mxu0 %v286_v3 }
  0xae   : > { %1174 = vmatmul.mubr.f32.vlgmr.msra.gmra.mxu1 %v288_v4  ;;  %v727_v9 = vld [vmem:[#allocation6 + $0x9c8] sm:$0xff]  ;;  %1270 = vmatprep.subr.mxu0 %v731_v5  ;;  %v726_v13 = vld [vmem:[#allocation6 + $0x9c0] sm:$0xff] }
  0xaf   : > { %v855_v10 = vld [vmem:[#allocation6 + $0xdc8] sm:$0xff]  ;;  %1431 = vmatprep.subr.mxu1 %v859_v6  ;;  %1271 = vmatpush1.msra.mxu0 %v730_v7  ;;  %v854_v14 = vld [vmem:[#allocation6 + $0xdc0] sm:$0xff] }
  0xb0   : > { %v295_v11 = vld [vmem:[%s3447_s30 + $0x48] sm:$0xff]  ;;  %1432 = vmatpush1.msra.mxu1 %v858_v8  ;;  %1272 = vmatprep.subr.mxu0 %v727_v9  ;;  %v294_v15 = vld [vmem:[%s3447_s30 + $0x40] sm:$0xff]  ;;  %v337_v8 = vld [vmem:[%s3447_s30 + $0x198] sm:$0xff] }
  0xb1   : > { %1433 = vmatprep.subr.mxu1 %v855_v10  ;;  %1018 = vmatprep.mubr.f32.mxu0 %v295_v11  ;;  %v723_v17 = vld [vmem:[#allocation6 + $0x9a8] sm:$0xff]  ;;  %v722_v19 = vld [vmem:[#allocation6 + $0x9a0] sm:$0xff] }
  0xb2   : > { %1179 = vmatprep.mubr.f32.mxu1 %v297_v12  ;;  %v851_v18 = vld [vmem:[#allocation6 + $0xda8] sm:$0xff]  ;;  %1273 = vmatpush1.msra.mxu0 %v726_v13  ;;  %v850_v20 = vld [vmem:[#allocation6 + $0xda0] sm:$0xff]  ;;  %v336_v12 = vld [vmem:[%s3447_s30 + $0x190] sm:$0xff] }
  0xb3   : > { %1434 = vmatpush1.msra.mxu1 %v854_v14  ;;  %1019 = vmatmul.mubr.f32.gmra.mxu0 %v294_v15  ;;  %v719_v21 = vld [vmem:[#allocation6 + $0x988] sm:$0xff]  ;;  %v718_v25 = vld [vmem:[#allocation6 + $0x980] sm:$0xff] }
  0xb4   : > { %1180 = vmatmul.mubr.f32.gmra.mxu1 %v296_v16  ;;  %v847_v22 = vld [vmem:[#allocation6 + $0xd88] sm:$0xff]  ;;  %1274 = vmatprep.subr.mxu0 %v723_v17  ;;  %v846_v26 = vld [vmem:[#allocation6 + $0xd80] sm:$0xff] }
  0xb5   : > { %1435 = vmatprep.subr.mxu1 %v851_v18  ;;  %v303_v23 = vld [vmem:[%s3447_s30 + $0x88] sm:$0xff]  ;;  %1275 = vmatpush1.msra.mxu0 %v722_v19  ;;  %v302_v27 = vld [vmem:[%s3447_s30 + $0x80] sm:$0xff] }
  0xb6   : > { %1436 = vmatpush1.msra.mxu1 %v850_v20  ;;  %1276 = vmatprep.subr.mxu0 %v719_v21  ;;  %v715_v29 = vld [vmem:[#allocation6 + $0x968] sm:$0xff]  ;;  %v714_v31 = vld [vmem:[#allocation6 + $0x960] sm:$0xff]  ;;  %v345_v20 = vld [vmem:[%s3447_s30 + $0x1d8] sm:$0xff] }
  0xb7   : > { %1437 = vmatprep.subr.mxu1 %v847_v22  ;;  %1024 = vmatprep.mubr.f32.mxu0 %v303_v23  ;;  %v843_v30 = vld [vmem:[#allocation6 + $0xd68] sm:$0xff]  ;;  %v842_v32 = vld [vmem:[#allocation6 + $0xd60] sm:$0xff] }
  0xb8   : > { %1185 = vmatprep.mubr.f32.mxu1 %v305_v24  ;;  %1277 = vmatpush1.msra.mxu0 %v718_v25  ;;  %v711_v33 = vld [vmem:[#allocation6 + $0x948] sm:$0xff]  ;;  %v710_v37 = vld [vmem:[#allocation6 + $0x940] sm:$0xff]  ;;  %v344_v24 = vld [vmem:[%s3447_s30 + $0x1d0] sm:$0xff] }
  0xb9   : > { %1438 = vmatpush1.msra.mxu1 %v846_v26  ;;  %1025 = vmatmul.mubr.f32.gmra.mxu0 %v302_v27  ;;  %v839_v34 = vld [vmem:[#allocation6 + $0xd48] sm:$0xff]  ;;  %v838_v38 = vld [vmem:[#allocation6 + $0xd40] sm:$0xff] }
  0xba   : > { %1186 = vmatmul.mubr.f32.gmra.mxu1 %v304_v28  ;;  %1278 = vmatprep.subr.mxu0 %v715_v29  ;;  %v311_v35 = vld [vmem:[%s3447_s30 + $0xc8] sm:$0xff]  ;;  %v310_v39 = vld [vmem:[%s3447_s30 + $0xc0] sm:$0xff] }
  0xbb   : > { %1439 = vmatprep.subr.mxu1 %v843_v30  ;;  %1279 = vmatpush1.msra.mxu0 %v714_v31  ;;  %v707_v41 = vld [vmem:[#allocation6 + $0x928] sm:$0xff]  ;;  %v706_v43 = vld [vmem:[#allocation6 + $0x920] sm:$0xff] }
  0xbc   : > { %1440 = vmatpush1.msra.mxu1 %v842_v32  ;;  %1280 = vmatprep.subr.mxu0 %v711_v33  ;;  %v835_v42 = vld [vmem:[#allocation6 + $0xd28] sm:$0xff]  ;;  %v834_v44 = vld [vmem:[#allocation6 + $0xd20] sm:$0xff]  ;;  %v353_v32 = vld [vmem:[%s3447_s30 + $0x218] sm:$0xff] }
  0xbd   : > { %1441 = vmatprep.subr.mxu1 %v839_v34  ;;  %1030 = vmatprep.mubr.f32.mxu0 %v311_v35  ;;  %v703_v45 = vld [vmem:[#allocation6 + $0x908] sm:$0xff]  ;;  %v702_v49 = vld [vmem:[#allocation6 + $0x900] sm:$0xff] }
  0xbe   : > { %1191 = vmatprep.mubr.f32.mxu1 %v313_v36  ;;  %1281 = vmatpush1.msra.mxu0 %v710_v37  ;;  %v831_v46 = vld [vmem:[#allocation6 + $0xd08] sm:$0xff]  ;;  %v830_v50 = vld [vmem:[#allocation6 + $0xd00] sm:$0xff]  ;;  %v352_v36 = vld [vmem:[%s3447_s30 + $0x210] sm:$0xff] }
  0xbf   : > { %1442 = vmatpush1.msra.mxu1 %v838_v38  ;;  %1031 = vmatmul.mubr.f32.gmra.mxu0 %v310_v39  ;;  %v319_v47 = vld [vmem:[%s3447_s30 + $0x108] sm:$0xff]  ;;  %v318_v51 = vld [vmem:[%s3447_s30 + $0x100] sm:$0xff] }
  0xc0   : > { %1192 = vmatmul.mubr.f32.gmra.mxu1 %v312_v40  ;;  %1282 = vmatprep.subr.mxu0 %v707_v41  ;;  %v699_v53 = vld [vmem:[#allocation6 + $0x8e8] sm:$0xff]  ;;  %v698_v55 = vld [vmem:[#allocation6 + $0x8e0] sm:$0xff] }
  0xc1   : > { %1443 = vmatprep.subr.mxu1 %v835_v42  ;;  %1283 = vmatpush1.msra.mxu0 %v706_v43  ;;  %v827_v54 = vld [vmem:[#allocation6 + $0xce8] sm:$0xff]  ;;  %v826_v56 = vld [vmem:[#allocation6 + $0xce0] sm:$0xff] }
  0xc2   : > { %1444 = vmatpush1.msra.mxu1 %v834_v44  ;;  %1284 = vmatprep.subr.mxu0 %v703_v45  ;;  %v695_v57 = vld [vmem:[#allocation6 + $0x8c8] sm:$0xff]  ;;  %v694_v61 = vld [vmem:[#allocation6 + $0x8c0] sm:$0xff]  ;;  %v361_v44 = vld [vmem:[%s3447_s30 + $0x258] sm:$0xff] }
  0xc3   : > { %1445 = vmatprep.subr.mxu1 %v831_v46  ;;  %1036 = vmatprep.mubr.f32.mxu0 %v319_v47  ;;  %v823_v58 = vld [vmem:[#allocation6 + $0xcc8] sm:$0xff]  ;;  %v822_v62 = vld [vmem:[#allocation6 + $0xcc0] sm:$0xff] }
  0xc4   : > { %1197 = vmatprep.mubr.f32.mxu1 %v321_v48  ;;  %1285 = vmatpush1.msra.mxu0 %v702_v49  ;;  %v327_v59 = vld [vmem:[%s3447_s30 + $0x148] sm:$0xff]  ;;  %v326_v63 = vld [vmem:[%s3447_s30 + $0x140] sm:$0xff]  ;;  %v360_v48 = vld [vmem:[%s3447_s30 + $0x250] sm:$0xff] }
  0xc5   : > { %1446 = vmatpush1.msra.mxu1 %v830_v50  ;;  %1037 = vmatmul.mubr.f32.gmra.mxu0 %v318_v51  ;;  %v691_v1 = vld [vmem:[#allocation6 + $0x8a8] sm:$0xff]  ;;  %v690_v3 = vld [vmem:[#allocation6 + $0x8a0] sm:$0xff] }
  0xc6   : > { %1198 = vmatmul.mubr.f32.gmra.mxu1 %v320_v52  ;;  %1286 = vmatprep.subr.mxu0 %v699_v53  ;;  %v819_v2 = vld [vmem:[#allocation6 + $0xca8] sm:$0xff]  ;;  %v818_v4 = vld [vmem:[#allocation6 + $0xca0] sm:$0xff] }
  0xc7   : > { %1447 = vmatprep.subr.mxu1 %v827_v54  ;;  %1287 = vmatpush1.msra.mxu0 %v698_v55  ;;  %v687_v5 = vld [vmem:[#allocation6 + $0x888] sm:$0xff]  ;;  %v686_v9 = vld [vmem:[#allocation6 + $0x880] sm:$0xff] }
  0xc8   : > { %1448 = vmatpush1.msra.mxu1 %v826_v56  ;;  %1288 = vmatprep.subr.mxu0 %v695_v57  ;;  %v815_v6 = vld [vmem:[#allocation6 + $0xc88] sm:$0xff]  ;;  %v814_v10 = vld [vmem:[#allocation6 + $0xc80] sm:$0xff]  ;;  %v369_v56 = vld [vmem:[%s3447_s30 + $0x298] sm:$0xff] }
  0xc9   : > { %1449 = vmatprep.subr.mxu1 %v823_v58  ;;  %1042 = vmatprep.mubr.f32.mxu0 %v327_v59  ;;  %v335_v7 = vld [vmem:[%s3447_s30 + $0x188] sm:$0xff]  ;;  %v334_v11 = vld [vmem:[%s3447_s30 + $0x180] sm:$0xff] }
  0xca   : > { %1203 = vmatprep.mubr.f32.mxu1 %v329_v60  ;;  %1289 = vmatpush1.msra.mxu0 %v694_v61  ;;  %v683_v13 = vld [vmem:[#allocation6 + $0x868] sm:$0xff]  ;;  %v682_v15 = vld [vmem:[#allocation6 + $0x860] sm:$0xff]  ;;  %v368_v60 = vld [vmem:[%s3447_s30 + $0x290] sm:$0xff] }
  0xcb   : > { %1450 = vmatpush1.msra.mxu1 %v822_v62  ;;  %1043 = vmatmul.mubr.f32.gmra.mxu0 %v326_v63  ;;  %v811_v14 = vld [vmem:[#allocation6 + $0xc68] sm:$0xff]  ;;  %v810_v16 = vld [vmem:[#allocation6 + $0xc60] sm:$0xff] }
  0xcc   : > { %1204 = vmatmul.mubr.f32.gmra.mxu1 %v328_v0  ;;  %1290 = vmatprep.subr.mxu0 %v691_v1  ;;  %v679_v17 = vld [vmem:[#allocation6 + $0x848] sm:$0xff]  ;;  %v678_v21 = vld [vmem:[#allocation6 + $0x840] sm:$0xff] }
  0xcd   : > { %1451 = vmatprep.subr.mxu1 %v819_v2  ;;  %1291 = vmatpush1.msra.mxu0 %v690_v3  ;;  %v807_v18 = vld [vmem:[#allocation6 + $0xc48] sm:$0xff]  ;;  %v806_v22 = vld [vmem:[#allocation6 + $0xc40] sm:$0xff] }
  0xce   : > { %1452 = vmatpush1.msra.mxu1 %v818_v4  ;;  %1292 = vmatprep.subr.mxu0 %v687_v5  ;;  %v343_v19 = vld [vmem:[%s3447_s30 + $0x1c8] sm:$0xff]  ;;  %v342_v23 = vld [vmem:[%s3447_s30 + $0x1c0] sm:$0xff]  ;;  %v377_v4 = vld [vmem:[%s3447_s30 + $0x2d8] sm:$0xff] }
  0xcf   : > { %1453 = vmatprep.subr.mxu1 %v815_v6  ;;  %1048 = vmatprep.mubr.f32.mxu0 %v335_v7  ;;  %v675_v25 = vld [vmem:[#allocation6 + $0x828] sm:$0xff]  ;;  %v674_v27 = vld [vmem:[#allocation6 + $0x820] sm:$0xff] }
  0xd0   : > { %1209 = vmatprep.mubr.f32.mxu1 %v337_v8  ;;  %1293 = vmatpush1.msra.mxu0 %v686_v9  ;;  %v803_v26 = vld [vmem:[#allocation6 + $0xc28] sm:$0xff]  ;;  %v802_v28 = vld [vmem:[#allocation6 + $0xc20] sm:$0xff]  ;;  %v376_v8 = vld [vmem:[%s3447_s30 + $0x2d0] sm:$0xff] }
  0xd1   : > { %1454 = vmatpush1.msra.mxu1 %v814_v10  ;;  %1049 = vmatmul.mubr.f32.gmra.mxu0 %v334_v11  ;;  %v671_v29 = vld [vmem:[#allocation6 + $0x808] sm:$0xff]  ;;  %v670_v33 = vld [vmem:[#allocation6 + $0x800] sm:$0xff] }
  0xd2   : > { %1210 = vmatmul.mubr.f32.gmra.mxu1 %v336_v12  ;;  %1294 = vmatprep.subr.mxu0 %v683_v13  ;;  %v799_v30 = vld [vmem:[#allocation6 + $0xc08] sm:$0xff]  ;;  %v798_v34 = vld [vmem:[#allocation6 + $0xc00] sm:$0xff] }
  0xd3   : > { %1455 = vmatprep.subr.mxu1 %v811_v14  ;;  %1295 = vmatpush1.msra.mxu0 %v682_v15  ;;  %v351_v31 = vld [vmem:[%s3447_s30 + $0x208] sm:$0xff]  ;;  %v350_v35 = vld [vmem:[%s3447_s30 + $0x200] sm:$0xff] }
  0xd4   : > { %1456 = vmatpush1.msra.mxu1 %v810_v16  ;;  %1296 = vmatprep.subr.mxu0 %v679_v17  ;;  %v795_v37 = vld [vmem:[#allocation6 + $0xbe8] sm:$0xff]  ;;  %v794_v39 = vld [vmem:[#allocation6 + $0xbe0] sm:$0xff]  ;;  %v385_v16 = vld [vmem:[%s3447_s30 + $0x318] sm:$0xff] }
  0xd5   : > { %1457 = vmatprep.subr.mxu1 %v807_v18  ;;  %1054 = vmatprep.mubr.f32.mxu0 %v343_v19  ;;  %v923_v38 = vld [vmem:[#allocation6 + $0xfe8] sm:$0xff]  ;;  %v922_v40 = vld [vmem:[#allocation6 + $0xfe0] sm:$0xff] }
  0xd6   : > { %1215 = vmatprep.mubr.f32.mxu1 %v345_v20  ;;  %1297 = vmatpush1.msra.mxu0 %v678_v21  ;;  %v791_v41 = vld [vmem:[#allocation6 + $0xbc8] sm:$0xff]  ;;  %v790_v45 = vld [vmem:[#allocation6 + $0xbc0] sm:$0xff]  ;;  %v384_v20 = vld [vmem:[%s3447_s30 + $0x310] sm:$0xff] }
  0xd7   : > { %1458 = vmatpush1.msra.mxu1 %v806_v22  ;;  %1055 = vmatmul.mubr.f32.gmra.mxu0 %v342_v23  ;;  %v919_v42 = vld [vmem:[#allocation6 + $0xfc8] sm:$0xff]  ;;  %v918_v46 = vld [vmem:[#allocation6 + $0xfc0] sm:$0xff] }
  0xd8   : > { %1216 = vmatmul.mubr.f32.gmra.mxu1 %v344_v24  ;;  %1298 = vmatprep.subr.mxu0 %v675_v25  ;;  %v359_v43 = vld [vmem:[%s3447_s30 + $0x248] sm:$0xff]  ;;  %v358_v47 = vld [vmem:[%s3447_s30 + $0x240] sm:$0xff] }
  0xd9   : > { %1459 = vmatprep.subr.mxu1 %v803_v26  ;;  %1299 = vmatpush1.msra.mxu0 %v674_v27  ;;  %v787_v49 = vld [vmem:[#allocation6 + $0xba8] sm:$0xff]  ;;  %v786_v51 = vld [vmem:[#allocation6 + $0xba0] sm:$0xff] }
  0xda   : > { %1460 = vmatpush1.msra.mxu1 %v802_v28  ;;  %1300 = vmatprep.subr.mxu0 %v671_v29  ;;  %v915_v50 = vld [vmem:[#allocation6 + $0xfa8] sm:$0xff]  ;;  %v914_v52 = vld [vmem:[#allocation6 + $0xfa0] sm:$0xff]  ;;  %v393_v28 = vld [vmem:[%s3447_s30 + $0x358] sm:$0xff] }
  0xdb   : > { %1461 = vmatprep.subr.mxu1 %v799_v30  ;;  %1060 = vmatprep.mubr.f32.mxu0 %v351_v31  ;;  %v783_v53 = vld [vmem:[#allocation6 + $0xb88] sm:$0xff]  ;;  %v782_v57 = vld [vmem:[#allocation6 + $0xb80] sm:$0xff] }
  0xdc   : > { %1221 = vmatprep.mubr.f32.mxu1 %v353_v32  ;;  %1301 = vmatpush1.msra.mxu0 %v670_v33  ;;  %v911_v54 = vld [vmem:[#allocation6 + $0xf88] sm:$0xff]  ;;  %v910_v58 = vld [vmem:[#allocation6 + $0xf80] sm:$0xff]  ;;  %v392_v32 = vld [vmem:[%s3447_s30 + $0x350] sm:$0xff] }
  0xdd   : > { %1462 = vmatpush1.msra.mxu1 %v798_v34  ;;  %1061 = vmatmul.mubr.f32.gmra.mxu0 %v350_v35  ;;  %v367_v55 = vld [vmem:[%s3447_s30 + $0x288] sm:$0xff]  ;;  %v366_v59 = vld [vmem:[%s3447_s30 + $0x280] sm:$0xff] }
  0xde   : > { %1222 = vmatmul.mubr.f32.gmra.mxu1 %v352_v36  ;;  %1302 = vmatprep.subr.mxu0 %v795_v37  ;;  %v779_v61 = vld [vmem:[#allocation6 + $0xb68] sm:$0xff]  ;;  %v778_v63 = vld [vmem:[#allocation6 + $0xb60] sm:$0xff] }
  0xdf   : > { %1463 = vmatprep.subr.mxu1 %v923_v38  ;;  %1303 = vmatpush2.msra.mxu0 %v794_v39  ;;  %v907_v62 = vld [vmem:[#allocation6 + $0xf68] sm:$0xff]  ;;  %v906_v0 = vld [vmem:[#allocation6 + $0xf60] sm:$0xff] }
  0xe0   : > { %1464 = vmatpush2.msra.mxu1 %v922_v40  ;;  %1304 = vmatprep.subr.mxu0 %v791_v41  ;;  %v775_v1 = vld [vmem:[#allocation6 + $0xb48] sm:$0xff]  ;;  %v774_v5 = vld [vmem:[#allocation6 + $0xb40] sm:$0xff]  ;;  %v401_v40 = vld [vmem:[%s3447_s30 + $0x398] sm:$0xff] }
  0xe1   : > { %1465 = vmatprep.subr.mxu1 %v919_v42  ;;  %1066 = vmatprep.mubr.f32.mxu0 %v359_v43  ;;  %v903_v2 = vld [vmem:[#allocation6 + $0xf48] sm:$0xff]  ;;  %v902_v6 = vld [vmem:[#allocation6 + $0xf40] sm:$0xff] }
  0xe2   : > { %1227 = vmatprep.mubr.f32.mxu1 %v361_v44  ;;  %1305 = vmatpush2.msra.mxu0 %v790_v45  ;;  %v375_v3 = vld [vmem:[%s3447_s30 + $0x2c8] sm:$0xff]  ;;  %v374_v7 = vld [vmem:[%s3447_s30 + $0x2c0] sm:$0xff]  ;;  %v400_v44 = vld [vmem:[%s3447_s30 + $0x390] sm:$0xff] }
  0xe3   : > { %1466 = vmatpush2.msra.mxu1 %v918_v46  ;;  %1067 = vmatmul.mubr.f32.gmra.mxu0 %v358_v47  ;;  %v771_v9 = vld [vmem:[#allocation6 + $0xb28] sm:$0xff]  ;;  %v770_v11 = vld [vmem:[#allocation6 + $0xb20] sm:$0xff] }
  0xe4   : > { %1228 = vmatmul.mubr.f32.gmra.mxu1 %v360_v48  ;;  %1306 = vmatprep.subr.mxu0 %v787_v49  ;;  %v899_v10 = vld [vmem:[#allocation6 + $0xf28] sm:$0xff]  ;;  %v898_v12 = vld [vmem:[#allocation6 + $0xf20] sm:$0xff] }
  0xe5   : > { %1467 = vmatprep.subr.mxu1 %v915_v50  ;;  %1307 = vmatpush2.msra.mxu0 %v786_v51  ;;  %v767_v13 = vld [vmem:[#allocation6 + $0xb08] sm:$0xff]  ;;  %v766_v17 = vld [vmem:[#allocation6 + $0xb00] sm:$0xff] }
  0xe6   : > { %1468 = vmatpush2.msra.mxu1 %v914_v52  ;;  %1308 = vmatprep.subr.mxu0 %v783_v53  ;;  %v895_v14 = vld [vmem:[#allocation6 + $0xf08] sm:$0xff]  ;;  %v894_v18 = vld [vmem:[#allocation6 + $0xf00] sm:$0xff]  ;;  %v409_v52 = vld [vmem:[%s3447_s30 + $0x3d8] sm:$0xff] }
  0xe7   : > { %1469 = vmatprep.subr.mxu1 %v911_v54  ;;  %1072 = vmatprep.mubr.f32.mxu0 %v367_v55  ;;  %v383_v15 = vld [vmem:[%s3447_s30 + $0x308] sm:$0xff]  ;;  %v382_v19 = vld [vmem:[%s3447_s30 + $0x300] sm:$0xff] }
  0xe8   : > { %1233 = vmatprep.mubr.f32.mxu1 %v369_v56  ;;  %1309 = vmatpush2.msra.mxu0 %v782_v57  ;;  %v763_v21 = vld [vmem:[#allocation6 + $0xae8] sm:$0xff]  ;;  %v762_v23 = vld [vmem:[#allocation6 + $0xae0] sm:$0xff]  ;;  %v408_v56 = vld [vmem:[%s3447_s30 + $0x3d0] sm:$0xff] }
  0xe9   : > { %1470 = vmatpush2.msra.mxu1 %v910_v58  ;;  %1073 = vmatmul.mubr.f32.gmra.mxu0 %v366_v59  ;;  %v891_v22 = vld [vmem:[#allocation6 + $0xee8] sm:$0xff]  ;;  %v890_v24 = vld [vmem:[#allocation6 + $0xee0] sm:$0xff] }
  0xea   : > { %1234 = vmatmul.mubr.f32.gmra.mxu1 %v368_v60  ;;  %1310 = vmatprep.subr.mxu0 %v779_v61  ;;  %v759_v25 = vld [vmem:[#allocation6 + $0xac8] sm:$0xff]  ;;  %v758_v29 = vld [vmem:[#allocation6 + $0xac0] sm:$0xff] }
  0xeb   : > { %1471 = vmatprep.subr.mxu1 %v907_v62  ;;  %1311 = vmatpush2.msra.mxu0 %v778_v63  ;;  %v887_v26 = vld [vmem:[#allocation6 + $0xec8] sm:$0xff]  ;;  %v886_v30 = vld [vmem:[#allocation6 + $0xec0] sm:$0xff] }
  0xec   : > { %1472 = vmatpush2.msra.mxu1 %v906_v0  ;;  %1312 = vmatprep.subr.mxu0 %v775_v1  ;;  %v391_v27 = vld [vmem:[%s3447_s30 + $0x348] sm:$0xff]  ;;  %v390_v31 = vld [vmem:[%s3447_s30 + $0x340] sm:$0xff] }
  0xed   : > { %1473 = vmatprep.subr.mxu1 %v903_v2  ;;  %1078 = vmatprep.mubr.f32.mxu0 %v375_v3  ;;  %v755_v33 = vld [vmem:[#allocation6 + $0xaa8] sm:$0xff]  ;;  %v754_v35 = vld [vmem:[#allocation6 + $0xaa0] sm:$0xff]  ;;  %v293_v2 = vld [vmem:[%s3447_s30 + $0x38] sm:$0xff] }
  0xee   : > { %1239 = vmatprep.mubr.f32.mxu1 %v377_v4  ;;  %1313 = vmatpush2.msra.mxu0 %v774_v5  ;;  %v883_v34 = vld [vmem:[#allocation6 + $0xea8] sm:$0xff]  ;;  %v882_v36 = vld [vmem:[#allocation6 + $0xea0] sm:$0xff]  ;;  %v292_v4 = vld [vmem:[%s3447_s30 + $0x30] sm:$0xff] }
  0xef   : > { %1474 = vmatpush2.msra.mxu1 %v902_v6  ;;  %1079 = vmatmul.mubr.f32.gmra.mxu0 %v374_v7  ;;  %v751_v37 = vld [vmem:[#allocation6 + $0xa88] sm:$0xff]  ;;  %v750_v41 = vld [vmem:[#allocation6 + $0xa80] sm:$0xff]  ;;  %v477_v5 = vld [vmem:[#allocation6 + $0x1f8] sm:$0xff] }
  0xf0   : > { %1240 = vmatmul.mubr.f32.gmra.mxu1 %v376_v8  ;;  %1314 = vmatprep.subr.mxu0 %v771_v9  ;;  %v879_v38 = vld [vmem:[#allocation6 + $0xe88] sm:$0xff]  ;;  %v878_v42 = vld [vmem:[#allocation6 + $0xe80] sm:$0xff]  ;;  %v605_v6 = vld [vmem:[#allocation6 + $0x5f8] sm:$0xff] }
  0xf1   : > { %1475 = vmatprep.subr.mxu1 %v899_v10  ;;  %1315 = vmatpush2.msra.mxu0 %v770_v11  ;;  %v399_v39 = vld [vmem:[%s3447_s30 + $0x388] sm:$0xff]  ;;  %v398_v43 = vld [vmem:[%s3447_s30 + $0x380] sm:$0xff]  ;;  %v476_v7 = vld [vmem:[#allocation6 + $0x1f0] sm:$0xff] }
  0xf2   : > { %1476 = vmatpush2.msra.mxu1 %v898_v12  ;;  %1316 = vmatprep.subr.mxu0 %v767_v13  ;;  %v747_v45 = vld [vmem:[#allocation6 + $0xa68] sm:$0xff]  ;;  %v746_v47 = vld [vmem:[#allocation6 + $0xa60] sm:$0xff]  ;;  %v604_v8 = vld [vmem:[#allocation6 + $0x5f0] sm:$0xff] }
  0xf3   : > { %1477 = vmatprep.subr.mxu1 %v895_v14  ;;  %1084 = vmatprep.mubr.f32.mxu0 %v383_v15  ;;  %v875_v46 = vld [vmem:[#allocation6 + $0xe68] sm:$0xff]  ;;  %v874_v48 = vld [vmem:[#allocation6 + $0xe60] sm:$0xff]  ;;  %v473_v9 = vld [vmem:[#allocation6 + $0x1d8] sm:$0xff] }
  0xf4   : > { %1245 = vmatprep.mubr.f32.mxu1 %v385_v16  ;;  %1317 = vmatpush2.msra.mxu0 %v766_v17  ;;  %v743_v49 = vld [vmem:[#allocation6 + $0xa48] sm:$0xff]  ;;  %v742_v53 = vld [vmem:[#allocation6 + $0xa40] sm:$0xff]  ;;  %v601_v10 = vld [vmem:[#allocation6 + $0x5d8] sm:$0xff] }
  0xf5   : > { %1478 = vmatpush2.msra.mxu1 %v894_v18  ;;  %1085 = vmatmul.mubr.f32.gmra.mxu0 %v382_v19  ;;  %v871_v50 = vld [vmem:[#allocation6 + $0xe48] sm:$0xff]  ;;  %v870_v54 = vld [vmem:[#allocation6 + $0xe40] sm:$0xff]  ;;  %v301_v12 = vld [vmem:[%s3447_s30 + $0x78] sm:$0xff] }
  0xf6   : > { %1246 = vmatmul.mubr.f32.gmra.mxu1 %v384_v20  ;;  %1318 = vmatprep.subr.mxu0 %v763_v21  ;;  %v407_v51 = vld [vmem:[%s3447_s30 + $0x3c8] sm:$0xff]  ;;  %v406_v55 = vld [vmem:[%s3447_s30 + $0x3c0] sm:$0xff]  ;;  %v472_v13 = vld [vmem:[#allocation6 + $0x1d0] sm:$0xff] }
  0xf7   : > { %1479 = vmatprep.subr.mxu1 %v891_v22  ;;  %1319 = vmatpush2.msra.mxu0 %v762_v23  ;;  %v739_v57 = vld [vmem:[#allocation6 + $0xa28] sm:$0xff]  ;;  %v738_v59 = vld [vmem:[#allocation6 + $0xa20] sm:$0xff]  ;;  %v600_v14 = vld [vmem:[#allocation6 + $0x5d0] sm:$0xff] }
  0xf8   : > { %1480 = vmatpush2.msra.mxu1 %v890_v24  ;;  %1320 = vmatprep.subr.mxu0 %v759_v25  ;;  %v867_v58 = vld [vmem:[#allocation6 + $0xe28] sm:$0xff]  ;;  %v866_v60 = vld [vmem:[#allocation6 + $0xe20] sm:$0xff]  ;;  %v300_v16 = vld [vmem:[%s3447_s30 + $0x70] sm:$0xff] }
  0xf9   : > { %1481 = vmatprep.subr.mxu1 %v887_v26  ;;  %1090 = vmatprep.mubr.f32.mxu0 %v391_v27  ;;  %v735_v61 = vld [vmem:[#allocation6 + $0xa08] sm:$0xff]  ;;  %v734_v63 = vld [vmem:[#allocation6 + $0xa00] sm:$0xff]  ;;  %v469_v17 = vld [vmem:[#allocation6 + $0x1b8] sm:$0xff] }
  0xfa   : > { %1251 = vmatprep.mubr.f32.mxu1 %v393_v28  ;;  %1321 = vmatpush2.msra.mxu0 %v758_v29  ;;  %v863_v62 = vld [vmem:[#allocation6 + $0xe08] sm:$0xff]  ;;  %v862_v1 = vld [vmem:[#allocation6 + $0xe00] sm:$0xff]  ;;  %v597_v18 = vld [vmem:[#allocation6 + $0x5b8] sm:$0xff] }
  0xfb   : > { %1482 = vmatpush2.msra.mxu1 %v886_v30  ;;  %1091 = vmatmul.mubr.f32.gmra.mxu0 %v390_v31  ;;  %v291_v0 = vld [vmem:[%s3447_s30 + $0x28] sm:$0xff]  ;;  %v290_v3 = vld [vmem:[%s3447_s30 + $0x20] sm:$0xff]  ;;  %v468_v19 = vld [vmem:[#allocation6 + $0x1b0] sm:$0xff] }
  0xfc   : > { %1252 = vmatmul.mubr.f32.gmra.mxu1 %v392_v32  ;;  %1322 = vmatprep.subr.mxu0 %v755_v33  ;;  %v299_v11 = vld [vmem:[%s3447_s30 + $0x68] sm:$0xff]  ;;  %v298_v15 = vld [vmem:[%s3447_s30 + $0x60] sm:$0xff]  ;;  %v596_v20 = vld [vmem:[#allocation6 + $0x5b0] sm:$0xff] }
  0xfd   : > { %1483 = vmatprep.subr.mxu1 %v883_v34  ;;  %1323 = vmatpush2.msra.mxu0 %v754_v35  ;;  %v465_v21 = vld [vmem:[#allocation6 + $0x198] sm:$0xff]  ;;  %v307_v23 = vld [vmem:[%s3447_s30 + $0xa8] sm:$0xff]  ;;  %v464_v25 = vld [vmem:[#allocation6 + $0x190] sm:$0xff] }
  0xfe   : > { %1484 = vmatpush2.msra.mxu1 %v882_v36  ;;  %1324 = vmatprep.subr.mxu0 %v751_v37  ;;  %v593_v22 = vld [vmem:[#allocation6 + $0x598] sm:$0xff]  ;;  %v592_v26 = vld [vmem:[#allocation6 + $0x590] sm:$0xff]  ;;  %v306_v27 = vld [vmem:[%s3447_s30 + $0xa0] sm:$0xff] }
  0xff   : > { %1485 = vmatprep.subr.mxu1 %v879_v38  ;;  %1096 = vmatprep.mubr.f32.mxu0 %v399_v39  ;;  %v309_v24 = vld [vmem:[%s3447_s30 + $0xb8] sm:$0xff]  ;;  %v308_v28 = vld [vmem:[%s3447_s30 + $0xb0] sm:$0xff]  ;;  %v315_v35 = vld [vmem:[%s3447_s30 + $0xe8] sm:$0xff] }
 0x100   : > { %1257 = vmatprep.mubr.f32.mxu1 %v401_v40  ;;  %1325 = vmatpush2.msra.mxu0 %v750_v41  ;;  %v461_v29 = vld [vmem:[#allocation6 + $0x178] sm:$0xff]  ;;  %v460_v31 = vld [vmem:[#allocation6 + $0x170] sm:$0xff]  ;;  %v314_v39 = vld [vmem:[%s3447_s30 + $0xe0] sm:$0xff] }
 0x101   : > { %1486 = vmatpush2.msra.mxu1 %v878_v42  ;;  %1097 = vmatmul.mubr.f32.gmra.mxu0 %v398_v43  ;;  %v589_v30 = vld [vmem:[#allocation6 + $0x578] sm:$0xff]  ;;  %v588_v32 = vld [vmem:[#allocation6 + $0x570] sm:$0xff] }
 0x102   : > { %1258 = vmatmul.mubr.f32.gmra.mxu1 %v400_v44  ;;  %1326 = vmatprep.subr.mxu0 %v747_v45  ;;  %v457_v33 = vld [vmem:[#allocation6 + $0x158] sm:$0xff]  ;;  %v456_v37 = vld [vmem:[#allocation6 + $0x150] sm:$0xff] }
 0x103   : > { %1487 = vmatprep.subr.mxu1 %v875_v46  ;;  %1327 = vmatpush2.msra.mxu0 %v746_v47  ;;  %v585_v34 = vld [vmem:[#allocation6 + $0x558] sm:$0xff]  ;;  %v584_v38 = vld [vmem:[#allocation6 + $0x550] sm:$0xff]  ;;  %v323_v47 = vld [vmem:[%s3447_s30 + $0x128] sm:$0xff] }
 0x104   : > { %1488 = vmatpush2.msra.mxu1 %v874_v48  ;;  %1328 = vmatprep.subr.mxu0 %v743_v49  ;;  %v317_v36 = vld [vmem:[%s3447_s30 + $0xf8] sm:$0xff]  ;;  %v316_v40 = vld [vmem:[%s3447_s30 + $0xf0] sm:$0xff] }
 0x105   : > { %1489 = vmatprep.subr.mxu1 %v871_v50  ;;  %1102 = vmatprep.mubr.f32.mxu0 %v407_v51  ;;  %v453_v41 = vld [vmem:[#allocation6 + $0x138] sm:$0xff]  ;;  %v452_v43 = vld [vmem:[#allocation6 + $0x130] sm:$0xff]  ;;  %v322_v51 = vld [vmem:[%s3447_s30 + $0x120] sm:$0xff] }
 0x106   : > { %1263 = vmatprep.mubr.f32.mxu1 %v409_v52  ;;  %1329 = vmatpush2.msra.mxu0 %v742_v53  ;;  %v581_v42 = vld [vmem:[#allocation6 + $0x538] sm:$0xff]  ;;  %v580_v44 = vld [vmem:[#allocation6 + $0x530] sm:$0xff] }
 0x107   : > { %1490 = vmatpush2.msra.mxu1 %v870_v54  ;;  %1103 = vmatmul.mubr.f32.gmra.mxu0 %v406_v55  ;;  %v449_v45 = vld [vmem:[#allocation6 + $0x118] sm:$0xff]  ;;  %v448_v49 = vld [vmem:[#allocation6 + $0x110] sm:$0xff] }
 0x108   : > { %1264 = vmatmul.mubr.f32.gmra.mxu1 %v408_v56  ;;  %1330 = vmatprep.subr.mxu0 %v739_v57  ;;  %v577_v46 = vld [vmem:[#allocation6 + $0x518] sm:$0xff]  ;;  %v576_v50 = vld [vmem:[#allocation6 + $0x510] sm:$0xff] }
 0x109   : > { %1491 = vmatprep.subr.mxu1 %v867_v58  ;;  %1331 = vmatpush2.msra.mxu0 %v738_v59  ;;  %v325_v48 = vld [vmem:[%s3447_s30 + $0x138] sm:$0xff]  ;;  %v324_v52 = vld [vmem:[%s3447_s30 + $0x130] sm:$0xff]  ;;  %v331_v59 = vld [vmem:[%s3447_s30 + $0x168] sm:$0xff] }
 0x10a   : > { %1492 = vmatpush2.msra.mxu1 %v866_v60  ;;  %1332 = vmatprep.subr.mxu0 %v735_v61  ;;  %v445_v53 = vld [vmem:[#allocation6 + $0xf8] sm:$0xff]  ;;  %v444_v55 = vld [vmem:[#allocation6 + $0xf0] sm:$0xff] }
 0x10b   : > { %1493 = vmatprep.subr.mxu1 %v863_v62  ;;  %1333 = vmatpush2.msra.mxu0 %v734_v63  ;;  %v573_v54 = vld [vmem:[#allocation6 + $0x4f8] sm:$0xff]  ;;  %v572_v56 = vld [vmem:[#allocation6 + $0x4f0] sm:$0xff]  ;;  %v330_v63 = vld [vmem:[%s3447_s30 + $0x160] sm:$0xff] }
 0x10c   : > { %1334 = vmatprep.mubr.f32.mxu0 %v291_v0  ;;  %1494 = vmatpush2.msra.mxu1 %v862_v1  ;;  %v441_v57 = vld [vmem:[#allocation6 + $0xd8] sm:$0xff]  ;;  %v440_v61 = vld [vmem:[#allocation6 + $0xd0] sm:$0xff] }
 0x10d   : > { %1495 = vmatprep.mubr.f32.mxu1 %v293_v2  ;;  %1335 = vmatmul.mubr.f32.vlgmr.msra.gmra.mxu0 %v290_v3  ;;  %v569_v58 = vld [vmem:[#allocation6 + $0x4d8] sm:$0xff]  ;;  %v568_v62 = vld [vmem:[#allocation6 + $0x4d0] sm:$0xff] }
 0x10e   : > { %1496 = vmatmul.mubr.f32.vlgmr.msra.gmra.mxu1 %v292_v4  ;;  %1592 = vmatprep.subr.mxu0 %v477_v5  ;;  %v333_v60 = vld [vmem:[%s3447_s30 + $0x178] sm:$0xff]  ;;  %v332_v0 = vld [vmem:[%s3447_s30 + $0x170] sm:$0xff] }
 0x10f   : > { %1753 = vmatprep.subr.mxu1 %v605_v6  ;;  %1593 = vmatpush1.msra.mxu0 %v476_v7  ;;  %v437_v1 = vld [vmem:[#allocation6 + $0xb8] sm:$0xff]  ;;  %v436_v3 = vld [vmem:[#allocation6 + $0xb0] sm:$0xff]  ;;  %v339_v7 = vld [vmem:[%s3447_s30 + $0x1a8] sm:$0xff] }
 0x110   : > { %1754 = vmatpush1.msra.mxu1 %v604_v8  ;;  %1594 = vmatprep.subr.mxu0 %v473_v9  ;;  %v565_v2 = vld [vmem:[#allocation6 + $0x4b8] sm:$0xff]  ;;  %v564_v4 = vld [vmem:[#allocation6 + $0x4b0] sm:$0xff] }
 0x111   : > { %1755 = vmatprep.subr.mxu1 %v601_v10  ;;  %1340 = vmatprep.mubr.f32.mxu0 %v299_v11  ;;  %v433_v5 = vld [vmem:[#allocation6 + $0x98] sm:$0xff]  ;;  %v432_v9 = vld [vmem:[#allocation6 + $0x90] sm:$0xff]  ;;  %v338_v11 = vld [vmem:[%s3447_s30 + $0x1a0] sm:$0xff] }
 0x112   : > { %1501 = vmatprep.mubr.f32.mxu1 %v301_v12  ;;  %1595 = vmatpush1.msra.mxu0 %v472_v13  ;;  %v561_v6 = vld [vmem:[#allocation6 + $0x498] sm:$0xff]  ;;  %v560_v10 = vld [vmem:[#allocation6 + $0x490] sm:$0xff] }
 0x113   : > { %1756 = vmatpush1.msra.mxu1 %v600_v14  ;;  %1341 = vmatmul.mubr.f32.gmra.mxu0 %v298_v15  ;;  %v341_v8 = vld [vmem:[%s3447_s30 + $0x1b8] sm:$0xff]  ;;  %v340_v12 = vld [vmem:[%s3447_s30 + $0x1b0] sm:$0xff] }
 0x114   : > { %1502 = vmatmul.mubr.f32.gmra.mxu1 %v300_v16  ;;  %1596 = vmatprep.subr.mxu0 %v469_v17  ;;  %v429_v13 = vld [vmem:[#allocation6 + $0x78] sm:$0xff]  ;;  %v428_v15 = vld [vmem:[#allocation6 + $0x70] sm:$0xff] }
 0x115   : > { %1757 = vmatprep.subr.mxu1 %v597_v18  ;;  %1597 = vmatpush1.msra.mxu0 %v468_v19  ;;  %v557_v14 = vld [vmem:[#allocation6 + $0x478] sm:$0xff]  ;;  %v556_v16 = vld [vmem:[#allocation6 + $0x470] sm:$0xff]  ;;  %v347_v19 = vld [vmem:[%s3447_s30 + $0x1e8] sm:$0xff] }
 0x116   : > { %1758 = vmatpush1.msra.mxu1 %v596_v20  ;;  %1598 = vmatprep.subr.mxu0 %v465_v21  ;;  %v425_v17 = vld [vmem:[#allocation6 + $0x58] sm:$0xff]  ;;  %v424_v21 = vld [vmem:[#allocation6 + $0x50] sm:$0xff] }
 0x117   : > { %1759 = vmatprep.subr.mxu1 %v593_v22  ;;  %1346 = vmatprep.mubr.f32.mxu0 %v307_v23  ;;  %v553_v18 = vld [vmem:[#allocation6 + $0x458] sm:$0xff]  ;;  %v552_v22 = vld [vmem:[#allocation6 + $0x450] sm:$0xff]  ;;  %v346_v23 = vld [vmem:[%s3447_s30 + $0x1e0] sm:$0xff] }
 0x118   : > { %1507 = vmatprep.mubr.f32.mxu1 %v309_v24  ;;  %1599 = vmatpush1.msra.mxu0 %v464_v25  ;;  %v349_v20 = vld [vmem:[%s3447_s30 + $0x1f8] sm:$0xff]  ;;  %v348_v24 = vld [vmem:[%s3447_s30 + $0x1f0] sm:$0xff] }
 0x119   : > { %1760 = vmatpush1.msra.mxu1 %v592_v26  ;;  %1347 = vmatmul.mubr.f32.gmra.mxu0 %v306_v27  ;;  %v421_v25 = vld [vmem:[#allocation6 + $0x38] sm:$0xff]  ;;  %v420_v27 = vld [vmem:[#allocation6 + $0x30] sm:$0xff] }
 0x11a   : > { %1508 = vmatmul.mubr.f32.gmra.mxu1 %v308_v28  ;;  %1600 = vmatprep.subr.mxu0 %v461_v29  ;;  %v549_v26 = vld [vmem:[#allocation6 + $0x438] sm:$0xff]  ;;  %v548_v28 = vld [vmem:[#allocation6 + $0x430] sm:$0xff] }
 0x11b   : > { %1761 = vmatprep.subr.mxu1 %v589_v30  ;;  %1601 = vmatpush1.msra.mxu0 %v460_v31  ;;  %v417_v29 = vld [vmem:[#allocation6 + $0x18] sm:$0xff]  ;;  %v355_v31 = vld [vmem:[%s3447_s30 + $0x228] sm:$0xff] }
 0x11c   : > { %1762 = vmatpush1.msra.mxu1 %v588_v32  ;;  %1602 = vmatprep.subr.mxu0 %v457_v33  ;;  %v545_v30 = vld [vmem:[#allocation6 + $0x418] sm:$0xff]  ;;  %v416_v33 = vld [vmem:[#allocation6 + $0x10] sm:$0xff] }
 0x11d   : > { %1763 = vmatprep.subr.mxu1 %v585_v34  ;;  %1352 = vmatprep.mubr.f32.mxu0 %v315_v35  ;;  %v357_v32 = vld [vmem:[%s3447_s30 + $0x238] sm:$0xff]  ;;  %v544_v34 = vld [vmem:[#allocation6 + $0x410] sm:$0xff]  ;;  %v354_v35 = vld [vmem:[%s3447_s30 + $0x220] sm:$0xff] }
 0x11e   : > { %1513 = vmatprep.mubr.f32.mxu1 %v317_v36  ;;  %1603 = vmatpush1.msra.mxu0 %v456_v37  ;;  %v356_v36 = vld [vmem:[%s3447_s30 + $0x230] sm:$0xff]  ;;  %v541_v37 = vld [vmem:[#allocation6 + $0x3f8] sm:$0xff] }
 0x11f   : > { %1764 = vmatpush1.msra.mxu1 %v584_v38  ;;  %1353 = vmatmul.mubr.f32.gmra.mxu0 %v314_v39  ;;  %v669_v38 = vld [vmem:[#allocation6 + $0x7f8] sm:$0xff]  ;;  %v540_v39 = vld [vmem:[#allocation6 + $0x3f0] sm:$0xff] }
 0x120   : > { %1514 = vmatmul.mubr.f32.gmra.mxu1 %v316_v40  ;;  %1604 = vmatprep.subr.mxu0 %v453_v41  ;;  %v668_v40 = vld [vmem:[#allocation6 + $0x7f0] sm:$0xff]  ;;  %v537_v41 = vld [vmem:[#allocation6 + $0x3d8] sm:$0xff] }
 0x121   : > { %1765 = vmatprep.subr.mxu1 %v581_v42  ;;  %1605 = vmatpush1.msra.mxu0 %v452_v43  ;;  %v665_v42 = vld [vmem:[#allocation6 + $0x7d8] sm:$0xff]  ;;  %v363_v43 = vld [vmem:[%s3447_s30 + $0x268] sm:$0xff] }
 0x122   : > { %1766 = vmatpush1.msra.mxu1 %v580_v44  ;;  %1606 = vmatprep.subr.mxu0 %v449_v45  ;;  %v365_v44 = vld [vmem:[%s3447_s30 + $0x278] sm:$0xff]  ;;  %v536_v45 = vld [vmem:[#allocation6 + $0x3d0] sm:$0xff] }
 0x123   : > { %1767 = vmatprep.subr.mxu1 %v577_v46  ;;  %1358 = vmatprep.mubr.f32.mxu0 %v323_v47  ;;  %v664_v46 = vld [vmem:[#allocation6 + $0x7d0] sm:$0xff]  ;;  %v362_v47 = vld [vmem:[%s3447_s30 + $0x260] sm:$0xff] }
 0x124   : > { %1519 = vmatprep.mubr.f32.mxu1 %v325_v48  ;;  %1607 = vmatpush1.msra.mxu0 %v448_v49  ;;  %v364_v48 = vld [vmem:[%s3447_s30 + $0x270] sm:$0xff]  ;;  %v533_v49 = vld [vmem:[#allocation6 + $0x3b8] sm:$0xff] }
 0x125   : > { %1768 = vmatpush1.msra.mxu1 %v576_v50  ;;  %1359 = vmatmul.mubr.f32.gmra.mxu0 %v322_v51  ;;  %v661_v50 = vld [vmem:[#allocation6 + $0x7b8] sm:$0xff]  ;;  %v532_v51 = vld [vmem:[#allocation6 + $0x3b0] sm:$0xff] }
 0x126   : > { %1520 = vmatmul.mubr.f32.gmra.mxu1 %v324_v52  ;;  %1608 = vmatprep.subr.mxu0 %v445_v53  ;;  %v660_v52 = vld [vmem:[#allocation6 + $0x7b0] sm:$0xff]  ;;  %v529_v53 = vld [vmem:[#allocation6 + $0x398] sm:$0xff] }
 0x127   : > { %1769 = vmatprep.subr.mxu1 %v573_v54  ;;  %1609 = vmatpush1.msra.mxu0 %v444_v55  ;;  %v657_v54 = vld [vmem:[#allocation6 + $0x798] sm:$0xff]  ;;  %v371_v55 = vld [vmem:[%s3447_s30 + $0x2a8] sm:$0xff] }
 0x128   : > { %1770 = vmatpush1.msra.mxu1 %v572_v56  ;;  %1610 = vmatprep.subr.mxu0 %v441_v57  ;;  %v373_v56 = vld [vmem:[%s3447_s30 + $0x2b8] sm:$0xff]  ;;  %v528_v57 = vld [vmem:[#allocation6 + $0x390] sm:$0xff] }
 0x129   : > { %1771 = vmatprep.subr.mxu1 %v569_v58  ;;  %1364 = vmatprep.mubr.f32.mxu0 %v331_v59  ;;  %v656_v58 = vld [vmem:[#allocation6 + $0x790] sm:$0xff]  ;;  %v370_v59 = vld [vmem:[%s3447_s30 + $0x2a0] sm:$0xff] }
 0x12a   : > { %1525 = vmatprep.mubr.f32.mxu1 %v333_v60  ;;  %1611 = vmatpush1.msra.mxu0 %v440_v61  ;;  %v372_v60 = vld [vmem:[%s3447_s30 + $0x2b0] sm:$0xff]  ;;  %v525_v61 = vld [vmem:[#allocation6 + $0x378] sm:$0xff] }
 0x12b   : > { %1772 = vmatpush1.msra.mxu1 %v568_v62  ;;  %1365 = vmatmul.mubr.f32.gmra.mxu0 %v330_v63  ;;  %v653_v62 = vld [vmem:[#allocation6 + $0x778] sm:$0xff]  ;;  %v524_v63 = vld [vmem:[#allocation6 + $0x370] sm:$0xff] }
 0x12c   : > { %1526 = vmatmul.mubr.f32.gmra.mxu1 %v332_v0  ;;  %1612 = vmatprep.subr.mxu0 %v437_v1  ;;  %v652_v0 = vld [vmem:[#allocation6 + $0x770] sm:$0xff]  ;;  %v521_v1 = vld [vmem:[#allocation6 + $0x358] sm:$0xff] }
 0x12d   : > { %1773 = vmatprep.subr.mxu1 %v565_v2  ;;  %1613 = vmatpush1.msra.mxu0 %v436_v3  ;;  %v649_v2 = vld [vmem:[#allocation6 + $0x758] sm:$0xff]  ;;  %v379_v3 = vld [vmem:[%s3447_s30 + $0x2e8] sm:$0xff] }
 0x12e   : > { %1774 = vmatpush1.msra.mxu1 %v564_v4  ;;  %1614 = vmatprep.subr.mxu0 %v433_v5  ;;  %v381_v4 = vld [vmem:[%s3447_s30 + $0x2f8] sm:$0xff]  ;;  %v520_v5 = vld [vmem:[#allocation6 + $0x350] sm:$0xff] }
 0x12f   : > { %1775 = vmatprep.subr.mxu1 %v561_v6  ;;  %1370 = vmatprep.mubr.f32.mxu0 %v339_v7  ;;  %v648_v6 = vld [vmem:[#allocation6 + $0x750] sm:$0xff]  ;;  %v378_v7 = vld [vmem:[%s3447_s30 + $0x2e0] sm:$0xff] }
 0x130   : > { %1531 = vmatprep.mubr.f32.mxu1 %v341_v8  ;;  %1615 = vmatpush1.msra.mxu0 %v432_v9  ;;  %v380_v8 = vld [vmem:[%s3447_s30 + $0x2f0] sm:$0xff]  ;;  %v517_v9 = vld [vmem:[#allocation6 + $0x338] sm:$0xff] }
 0x131   : > { %1776 = vmatpush1.msra.mxu1 %v560_v10  ;;  %1371 = vmatmul.mubr.f32.gmra.mxu0 %v338_v11  ;;  %v645_v10 = vld [vmem:[#allocation6 + $0x738] sm:$0xff]  ;;  %v516_v11 = vld [vmem:[#allocation6 + $0x330] sm:$0xff] }
 0x132   : > { %1532 = vmatmul.mubr.f32.gmra.mxu1 %v340_v12  ;;  %1616 = vmatprep.subr.mxu0 %v429_v13  ;;  %v644_v12 = vld [vmem:[#allocation6 + $0x730] sm:$0xff]  ;;  %v513_v13 = vld [vmem:[#allocation6 + $0x318] sm:$0xff] }
 0x133   : > { %1777 = vmatprep.subr.mxu1 %v557_v14  ;;  %1617 = vmatpush1.msra.mxu0 %v428_v15  ;;  %v641_v14 = vld [vmem:[#allocation6 + $0x718] sm:$0xff]  ;;  %v387_v15 = vld [vmem:[%s3447_s30 + $0x328] sm:$0xff] }
 0x134   : > { %1778 = vmatpush1.msra.mxu1 %v556_v16  ;;  %1618 = vmatprep.subr.mxu0 %v425_v17  ;;  %v389_v16 = vld [vmem:[%s3447_s30 + $0x338] sm:$0xff]  ;;  %v512_v17 = vld [vmem:[#allocation6 + $0x310] sm:$0xff] }
 0x135   : > { %1779 = vmatprep.subr.mxu1 %v553_v18  ;;  %1376 = vmatprep.mubr.f32.mxu0 %v347_v19  ;;  %v640_v18 = vld [vmem:[#allocation6 + $0x710] sm:$0xff]  ;;  %v386_v19 = vld [vmem:[%s3447_s30 + $0x320] sm:$0xff] }
 0x136   : > { %1537 = vmatprep.mubr.f32.mxu1 %v349_v20  ;;  %1619 = vmatpush1.msra.mxu0 %v424_v21  ;;  %v388_v20 = vld [vmem:[%s3447_s30 + $0x330] sm:$0xff]  ;;  %v509_v21 = vld [vmem:[#allocation6 + $0x2f8] sm:$0xff] }
 0x137   : > { %1780 = vmatpush1.msra.mxu1 %v552_v22  ;;  %1377 = vmatmul.mubr.f32.gmra.mxu0 %v346_v23  ;;  %v637_v22 = vld [vmem:[#allocation6 + $0x6f8] sm:$0xff]  ;;  %v508_v23 = vld [vmem:[#allocation6 + $0x2f0] sm:$0xff] }
 0x138   : > { %1538 = vmatmul.mubr.f32.gmra.mxu1 %v348_v24  ;;  %1620 = vmatprep.subr.mxu0 %v421_v25  ;;  %v636_v24 = vld [vmem:[#allocation6 + $0x6f0] sm:$0xff]  ;;  %v505_v25 = vld [vmem:[#allocation6 + $0x2d8] sm:$0xff] }
 0x139   : > { %1781 = vmatprep.subr.mxu1 %v549_v26  ;;  %1621 = vmatpush1.msra.mxu0 %v420_v27  ;;  %v633_v26 = vld [vmem:[#allocation6 + $0x6d8] sm:$0xff]  ;;  %v395_v27 = vld [vmem:[%s3447_s30 + $0x368] sm:$0xff] }
 0x13a   : > { %1782 = vmatpush1.msra.mxu1 %v548_v28  ;;  %1622 = vmatprep.subr.mxu0 %v417_v29  ;;  %v397_v28 = vld [vmem:[%s3447_s30 + $0x378] sm:$0xff]  ;;  %v504_v29 = vld [vmem:[#allocation6 + $0x2d0] sm:$0xff] }
 0x13b   : > { %1783 = vmatprep.subr.mxu1 %v545_v30  ;;  %1382 = vmatprep.mubr.f32.mxu0 %v355_v31  ;;  %v632_v30 = vld [vmem:[#allocation6 + $0x6d0] sm:$0xff]  ;;  %v394_v31 = vld [vmem:[%s3447_s30 + $0x360] sm:$0xff] }
 0x13c   : > { %1543 = vmatprep.mubr.f32.mxu1 %v357_v32  ;;  %1623 = vmatpush1.msra.mxu0 %v416_v33  ;;  %v396_v32 = vld [vmem:[%s3447_s30 + $0x370] sm:$0xff]  ;;  %v501_v33 = vld [vmem:[#allocation6 + $0x2b8] sm:$0xff] }
 0x13d   : > { %1784 = vmatpush1.msra.mxu1 %v544_v34  ;;  %1383 = vmatmul.mubr.f32.gmra.mxu0 %v354_v35  ;;  %v629_v34 = vld [vmem:[#allocation6 + $0x6b8] sm:$0xff]  ;;  %v500_v35 = vld [vmem:[#allocation6 + $0x2b0] sm:$0xff] }
 0x13e   : > { %1544 = vmatmul.mubr.f32.gmra.mxu1 %v356_v36  ;;  %1624 = vmatprep.subr.mxu0 %v541_v37  ;;  %v628_v36 = vld [vmem:[#allocation6 + $0x6b0] sm:$0xff]  ;;  %v497_v37 = vld [vmem:[#allocation6 + $0x298] sm:$0xff] }
 0x13f   : > { %1785 = vmatprep.subr.mxu1 %v669_v38  ;;  %1625 = vmatpush2.msra.mxu0 %v540_v39  ;;  %v625_v38 = vld [vmem:[#allocation6 + $0x698] sm:$0xff]  ;;  %v403_v39 = vld [vmem:[%s3447_s30 + $0x3a8] sm:$0xff] }
 0x140   : > { %1786 = vmatpush2.msra.mxu1 %v668_v40  ;;  %1626 = vmatprep.subr.mxu0 %v537_v41  ;;  %v405_v40 = vld [vmem:[%s3447_s30 + $0x3b8] sm:$0xff]  ;;  %v496_v41 = vld [vmem:[#allocation6 + $0x290] sm:$0xff] }
 0x141   : > { %1787 = vmatprep.subr.mxu1 %v665_v42  ;;  %1388 = vmatprep.mubr.f32.mxu0 %v363_v43  ;;  %v624_v42 = vld [vmem:[#allocation6 + $0x690] sm:$0xff]  ;;  %v402_v43 = vld [vmem:[%s3447_s30 + $0x3a0] sm:$0xff] }
 0x142   : > { %1549 = vmatprep.mubr.f32.mxu1 %v365_v44  ;;  %1627 = vmatpush2.msra.mxu0 %v536_v45  ;;  %v404_v44 = vld [vmem:[%s3447_s30 + $0x3b0] sm:$0xff]  ;;  %v928_v45 = vlaneseq }
 0x143   : > { %1788 = vmatpush2.msra.mxu1 %v664_v46  ;;  %1389 = vmatmul.mubr.f32.gmra.mxu0 %v362_v47  ;;  %v493_v46 = vld [vmem:[#allocation6 + $0x278] sm:$0xff] }
 0x144   : > { %1550 = vmatmul.mubr.f32.gmra.mxu1 %v364_v48  ;;  %1628 = vmatprep.subr.mxu0 %v533_v49  ;;  %v621_v47 = vld [vmem:[#allocation6 + $0x678] sm:$0xff]  ;;  %v492_v48 = vld [vmem:[#allocation6 + $0x270] sm:$0xff] }
 0x145   : > { %1789 = vmatprep.subr.mxu1 %v661_v50  ;;  %1629 = vmatpush2.msra.mxu0 %v532_v51  ;;  %v620_v49 = vld [vmem:[#allocation6 + $0x670] sm:$0xff]  ;;  %v489_v50 = vld [vmem:[#allocation6 + $0x258] sm:$0xff] }
 0x146   : > { %1790 = vmatpush2.msra.mxu1 %v660_v52  ;;  %1630 = vmatprep.subr.mxu0 %v529_v53  ;;  %v617_v51 = vld [vmem:[#allocation6 + $0x658] sm:$0xff]  ;;  %v411_v52 = vld [vmem:[%s3447_s30 + $0x3e8] sm:$0xff] }
 0x147   : > { %1791 = vmatprep.subr.mxu1 %v657_v54  ;;  %1394 = vmatprep.mubr.f32.mxu0 %v371_v55  ;;  %v413_v53 = vld [vmem:[%s3447_s30 + $0x3f8] sm:$0xff]  ;;  %v3587_v54 = vshrl.u32 %v928_v45, 7  ;;  %v488_v55 = vld [vmem:[#allocation6 + $0x250] sm:$0xff] }
 0x148   : > { %1555 = vmatprep.mubr.f32.mxu1 %v373_v56  ;;  %1631 = vmatpush2.msra.mxu0 %v528_v57  ;;  %v616_v56 = vld [vmem:[#allocation6 + $0x650] sm:$0xff]  ;;  %v410_v57 = vld [vmem:[%s3447_s30 + $0x3e0] sm:$0xff]  ;;  %v845_v45 = vld [vmem:[#allocation6 + $0xd78] sm:$0xff] }
 0x149   : > { %1792 = vmatpush2.msra.mxu1 %v656_v58  ;;  %1395 = vmatmul.mubr.f32.gmra.mxu0 %v370_v59  ;;  %4340 = vst [vmem:[#allocation16_spill] sm:$0xff] %v3587_v54  ;;  %v412_v58 = vld [vmem:[%s3447_s30 + $0x3f0] sm:$0xff]  ;;  %v485_v59 = vld [vmem:[#allocation6 + $0x238] sm:$0xff] }
 0x14a   : > { %1556 = vmatmul.mubr.f32.gmra.mxu1 %v372_v60  ;;  %1632 = vmatprep.subr.mxu0 %v525_v61  ;;  %v613_v60 = vld [vmem:[#allocation6 + $0x638] sm:$0xff]  ;;  %v484_v61 = vld [vmem:[#allocation6 + $0x230] sm:$0xff] }
 0x14b   : > { %1793 = vmatprep.subr.mxu1 %v653_v62  ;;  %1633 = vmatpush2.msra.mxu0 %v524_v63  ;;  %v612_v62 = vld [vmem:[#allocation6 + $0x630] sm:$0xff]  ;;  %v3592_v63 = vsub.s32 0, %v3587_v54 }
 0x14c   : > { %1794 = vmatpush2.msra.mxu1 %v652_v0  ;;  %1634 = vmatprep.subr.mxu0 %v521_v1  ;;  %v481_v0 = vld [vmem:[#allocation6 + $0x218] sm:$0xff] }
 0x14d   : > { %1795 = vmatprep.subr.mxu1 %v649_v2  ;;  %1400 = vmatprep.mubr.f32.mxu0 %v379_v3  ;;  %4341 = vst [vmem:[#allocation17_spill] sm:$0xff] %v3592_v63  ;;  %v609_v1 = vld [vmem:[#allocation6 + $0x618] sm:$0xff]  ;;  %v3594_v2 = vld [vmem:[#allocation8] sm:$0xf]  ;;  %v480_v3 = vld [vmem:[#allocation6 + $0x210] sm:$0xff] }
 0x14e   : > { %1561 = vmatprep.mubr.f32.mxu1 %v381_v4  ;;  %1635 = vmatpush2.msra.mxu0 %v520_v5  ;;  %v608_v4 = vld [vmem:[#allocation6 + $0x610] sm:$0xff]  ;;  %v3598_v5 = vrot.slane %v3594_v2, %v3592_v63 }
 0x14f   : > { %1796 = vmatpush2.msra.mxu1 %v648_v6  ;;  %1401 = vmatmul.mubr.f32.gmra.mxu0 %v378_v7  ;;  %v2956_v6 = vld [vmem:[%s3447_s30 + $0x8] sm:$0xff]  ;;  %v733_v7 = vld [vmem:[#allocation6 + $0x9f8] sm:$0xff] }
 0x150   : > { %1562 = vmatmul.mubr.f32.gmra.mxu1 %v380_v8  ;;  %1636 = vmatprep.subr.mxu0 %v517_v9  ;;  %v861_v8 = vld [vmem:[#allocation6 + $0xdf8] sm:$0xff] }
 0x151   : > { %1797 = vmatprep.subr.mxu1 %v645_v10  ;;  %1637 = vmatpush2.msra.mxu0 %v516_v11  ;;  %v2957_v9 = vld [vmem:[%s3447_s30 + $0x18] sm:$0xff]  ;;  %v732_v10 = vld [vmem:[#allocation6 + $0x9f0] sm:$0xff] }
 0x152   : > { %1798 = vmatpush2.msra.mxu1 %v644_v12  ;;  %1638 = vmatprep.subr.mxu0 %v513_v13  ;;  %v860_v11 = vld [vmem:[#allocation6 + $0xdf0] sm:$0xff]  ;;  %v2958_v12 = vld [vmem:[%s3447_s30] sm:$0xff] }
 0x153   : > { %1799 = vmatprep.subr.mxu1 %v641_v14  ;;  %1406 = vmatprep.mubr.f32.mxu0 %v387_v15  ;;  %v2959_v13 = vld [vmem:[%s3447_s30 + $0x10] sm:$0xff]  ;;  %v729_v14 = vld [vmem:[#allocation6 + $0x9d8] sm:$0xff] }
 0x154   : > { %1567 = vmatprep.mubr.f32.mxu1 %v389_v16  ;;  %1639 = vmatpush2.msra.mxu0 %v512_v17  ;;  %v857_v15 = vld [vmem:[#allocation6 + $0xdd8] sm:$0xff] }
 0x155   : > { %1800 = vmatpush2.msra.mxu1 %v640_v18  ;;  %1407 = vmatmul.mubr.f32.gmra.mxu0 %v386_v19  ;;  %v728_v19 = vld [vmem:[#allocation6 + $0x9d0] sm:$0xff] }
 0x156   : > { %1568 = vmatmul.mubr.f32.gmra.mxu1 %v388_v20  ;;  %1640 = vmatprep.subr.mxu0 %v509_v21  ;;  %v856_v20 = vld [vmem:[#allocation6 + $0xdd0] sm:$0xff] }
 0x157   : > { %1801 = vmatprep.subr.mxu1 %v637_v22  ;;  %1641 = vmatpush2.msra.mxu0 %v508_v23 }
 0x158   : > { %1802 = vmatpush2.msra.mxu1 %v636_v24  ;;  %1642 = vmatprep.subr.mxu0 %v505_v25  ;;  %v2960_v24 = vld [vmem:[%s3447_s30 + $0x48] sm:$0xff]  ;;  %v2961_v25 = vld [vmem:[%s3447_s30 + $0x58] sm:$0xff] }
 0x159   : > { %1803 = vmatprep.subr.mxu1 %v633_v26  ;;  %1412 = vmatprep.mubr.f32.mxu0 %v395_v27  ;;  %v725_v26 = vld [vmem:[#allocation6 + $0x9b8] sm:$0xff] }
 0x15a   : > { %1573 = vmatprep.mubr.f32.mxu1 %v397_v28  ;;  %1643 = vmatpush2.msra.mxu0 %v504_v29  ;;  %v853_v27 = vld [vmem:[#allocation6 + $0xdb8] sm:$0xff]  ;;  %v724_v28 = vld [vmem:[#allocation6 + $0x9b0] sm:$0xff] }
 0x15b   : > { %1804 = vmatpush2.msra.mxu1 %v632_v30  ;;  %1413 = vmatmul.mubr.f32.gmra.mxu0 %v394_v31  ;;  %v852_v29 = vld [vmem:[#allocation6 + $0xdb0] sm:$0xff]  ;;  %v2962_v30 = vld [vmem:[%s3447_s30 + $0x40] sm:$0xff] }
 0x15c   : > { %1574 = vmatmul.mubr.f32.gmra.mxu1 %v396_v32  ;;  %1644 = vmatprep.subr.mxu0 %v501_v33  ;;  %v2963_v31 = vld [vmem:[%s3447_s30 + $0x50] sm:$0xff]  ;;  %v721_v32 = vld [vmem:[#allocation6 + $0x998] sm:$0xff] }
 0x15d   : > { %1805 = vmatprep.subr.mxu1 %v629_v34  ;;  %1645 = vmatpush2.msra.mxu0 %v500_v35  ;;  %v849_v33 = vld [vmem:[#allocation6 + $0xd98] sm:$0xff] }
 0x15e   : > { %1806 = vmatpush2.msra.mxu1 %v628_v36  ;;  %1646 = vmatprep.subr.mxu0 %v497_v37  ;;  %v720_v37 = vld [vmem:[#allocation6 + $0x990] sm:$0xff] }
 0x15f   : > { %1807 = vmatprep.subr.mxu1 %v625_v38  ;;  %1418 = vmatprep.mubr.f32.mxu0 %v403_v39  ;;  %v848_v38 = vld [vmem:[#allocation6 + $0xd90] sm:$0xff] }
 0x160   : > { %1579 = vmatprep.mubr.f32.mxu1 %v405_v40  ;;  %1647 = vmatpush2.msra.mxu0 %v496_v41 }
 0x161   : > { %1808 = vmatpush2.msra.mxu1 %v624_v42  ;;  %1419 = vmatmul.mubr.f32.gmra.mxu0 %v402_v43  ;;  %v2964_v42 = vld [vmem:[%s3447_s30 + $0x88] sm:$0xff]  ;;  %v2965_v43 = vld [vmem:[%s3447_s30 + $0x98] sm:$0xff] }
 0x162   : > { %1580 = vmatmul.mubr.f32.gmra.mxu1 %v404_v44  ;;  %1648 = vmatprep.subr.mxu0 %v493_v46  ;;  %v717_v44 = vld [vmem:[#allocation6 + $0x978] sm:$0xff]  ;;  %v716_v46 = vld [vmem:[#allocation6 + $0x970] sm:$0xff] }
 0x163   : > { %1809 = vmatprep.subr.mxu1 %v621_v47  ;;  %1649 = vmatpush2.msra.mxu0 %v492_v48  ;;  %v844_v47 = vld [vmem:[#allocation6 + $0xd70] sm:$0xff]  ;;  %v2966_v48 = vld [vmem:[%s3447_s30 + $0x80] sm:$0xff] }
 0x164   : > { %1810 = vmatpush2.msra.mxu1 %v620_v49  ;;  %1650 = vmatprep.subr.mxu0 %v489_v50  ;;  %v2967_v49 = vld [vmem:[%s3447_s30 + $0x90] sm:$0xff]  ;;  %v713_v50 = vld [vmem:[#allocation6 + $0x958] sm:$0xff] }
 0x165   : > { %1811 = vmatprep.subr.mxu1 %v617_v51  ;;  %1424 = vmatprep.mubr.f32.mxu0 %v411_v52  ;;  %v841_v51 = vld [vmem:[#allocation6 + $0xd58] sm:$0xff] }
 0x166   : > { %1585 = vmatprep.mubr.f32.mxu1 %v413_v53  ;;  %1651 = vmatpush2.msra.mxu0 %v488_v55 }
 0x167   : > { %1812 = vmatpush2.msra.mxu1 %v616_v56  ;;  %1425 = vmatmul.mubr.f32.gmra.mxu0 %v410_v57  ;;  %v712_v56 = vld [vmem:[#allocation6 + $0x950] sm:$0xff] }
 0x168   : > { %1586 = vmatmul.mubr.f32.gmra.mxu1 %v412_v58  ;;  %1652 = vmatprep.subr.mxu0 %v485_v59  ;;  %v840_v57 = vld [vmem:[#allocation6 + $0xd50] sm:$0xff] }
 0x169   : > { %1813 = vmatprep.subr.mxu1 %v613_v60  ;;  %1653 = vmatpush2.msra.mxu0 %v484_v61  ;;  %v2968_v61 = vld [vmem:[%s3447_s30 + $0xc8] sm:$0xff] }
 0x16a   : > { %1814 = vmatpush2.msra.mxu1 %v612_v62  ;;  %1654 = vmatprep.subr.mxu0 %v481_v0  ;;  %v2969_v62 = vld [vmem:[%s3447_s30 + $0xd8] sm:$0xff] }
 0x16b   : > { %1815 = vmatprep.subr.mxu1 %v609_v1  ;;  %1655 = vmatpush2.msra.mxu0 %v480_v3  ;;  %v709_v0 = vld [vmem:[#allocation6 + $0x938] sm:$0xff]  ;;  %v708_v3 = vld [vmem:[#allocation6 + $0x930] sm:$0xff] }
 0x16c   : > { %1656 = vmatprep.mubr.f32.mxu0 %v2956_v6  ;;  %1816 = vmatpush2.msra.mxu1 %v608_v4  ;;  %v837_v1 = vld [vmem:[#allocation6 + $0xd38] sm:$0xff]  ;;  %v836_v4 = vld [vmem:[#allocation6 + $0xd30] sm:$0xff]  ;;  %v2970_v6 = vld [vmem:[%s3447_s30 + $0xc0] sm:$0xff] }
 0x16d   : > { %1817 = vmatprep.mubr.f32.mxu1 %v2957_v9  ;;  %1657 = vmatmul.mubr.f32.vlgmr.msra.gmra.mxu0 %v2958_v12  ;;  %v1014_v16 = vpop.f32.mrf.mxu0  ;;  %v833_v9 = vld [vmem:[#allocation6 + $0xd18] sm:$0xff] }
 0x16e   : > { %1818 = vmatmul.mubr.f32.vlgmr.msra.gmra.mxu1 %v2959_v13  ;;  %v1175_v17 = vpop.f32.mrf.mxu1  ;;  %1914 = vmatprep.subr.mxu0 %v733_v7  ;;  %v1015_v18 = vadd.f32 %v1014_v16, %v3598_v5  ;;  %v2971_v7 = vld [vmem:[%s3447_s30 + $0xd0] sm:$0xff] }
 0x16f   : > { %2075 = vmatprep.subr.mxu1 %v861_v8  ;;  %1915 = vmatpush1.msra.mxu0 %v732_v10  ;;  %v3605_v21 = vpop.f32.mrf.mxu0  ;;  %v705_v8 = vld [vmem:[#allocation6 + $0x918] sm:$0xff]  ;;  %v704_v13 = vld [vmem:[#allocation6 + $0x910] sm:$0xff] }
 0x170   : > { %2076 = vmatpush1.msra.mxu1 %v860_v11  ;;  %v3607_v22 = vpop.f32.mrf.mxu1  ;;  %1916 = vmatprep.subr.mxu0 %v729_v14  ;;  %v3609_v23 = vadd.f32 %v1175_v17, %v1015_v18  ;;  %v832_v14 = vld [vmem:[#allocation6 + $0xd10] sm:$0xff]  ;;  %v2972_v18 = vld [vmem:[%s3447_s30 + $0x108] sm:$0xff] }
 0x171   : > { %2077 = vmatprep.subr.mxu1 %v857_v15  ;;  %1662 = vmatprep.mubr.f32.mxu0 %v2960_v24  ;;  %v829_v24 = vld [vmem:[#allocation6 + $0xcf8] sm:$0xff] }
 0x172   : > { %1823 = vmatprep.mubr.f32.mxu1 %v2961_v25  ;;  %1917 = vmatpush1.msra.mxu0 %v728_v19  ;;  %v2973_v19 = vld [vmem:[%s3447_s30 + $0x118] sm:$0xff]  ;;  %v700_v25 = vld [vmem:[#allocation6 + $0x8f0] sm:$0xff] }
 0x173   : > { %2078 = vmatpush1.msra.mxu1 %v856_v20  ;;  %1663 = vmatmul.mubr.f32.gmra.mxu0 %v2962_v30  ;;  %v1020_v34 = vpop.f32.mrf.mxu0  ;;  %v701_v20 = vld [vmem:[#allocation6 + $0x8f8] sm:$0xff] }
 0x174   : > { %1824 = vmatmul.mubr.f32.gmra.mxu1 %v2963_v31  ;;  %v1181_v35 = vpop.f32.mrf.mxu1  ;;  %1918 = vmatprep.subr.mxu0 %v725_v26  ;;  %v1021_v36 = vadd.f32 %v1020_v34, %v3598_v5  ;;  %v828_v26 = vld [vmem:[#allocation6 + $0xcf0] sm:$0xff]  ;;  %v825_v30 = vld [vmem:[#allocation6 + $0xcd8] sm:$0xff] }
 0x175   : > { %2079 = vmatprep.subr.mxu1 %v853_v27  ;;  %1919 = vmatpush1.msra.mxu0 %v724_v28  ;;  %v3616_v39 = vpop.f32.mrf.mxu0  ;;  %v2974_v27 = vld [vmem:[%s3447_s30 + $0x100] sm:$0xff]  ;;  %v2975_v28 = vld [vmem:[%s3447_s30 + $0x110] sm:$0xff] }
 0x176   : > { %2080 = vmatpush1.msra.mxu1 %v852_v29  ;;  %v3618_v40 = vpop.f32.mrf.mxu1  ;;  %1920 = vmatprep.subr.mxu0 %v721_v32  ;;  %v3620_v41 = vadd.f32 %v1181_v35, %v1021_v36  ;;  %v697_v29 = vld [vmem:[#allocation6 + $0x8d8] sm:$0xff]  ;;  %v696_v34 = vld [vmem:[#allocation6 + $0x8d0] sm:$0xff] }
 0x177   : > { %2081 = vmatprep.subr.mxu1 %v849_v33  ;;  %1668 = vmatprep.mubr.f32.mxu0 %v2964_v42  ;;  %v824_v35 = vld [vmem:[#allocation6 + $0xcd0] sm:$0xff]  ;;  %v2976_v42 = vld [vmem:[%s3447_s30 + $0x148] sm:$0xff] }
 0x178   : > { %1829 = vmatprep.mubr.f32.mxu1 %v2965_v43  ;;  %1921 = vmatpush1.msra.mxu0 %v720_v37  ;;  %v2977_v43 = vld [vmem:[%s3447_s30 + $0x158] sm:$0xff] }
 0x179   : > { %2082 = vmatpush1.msra.mxu1 %v848_v38  ;;  %1669 = vmatmul.mubr.f32.gmra.mxu0 %v2966_v48  ;;  %v1026_v52 = vpop.f32.mrf.mxu0  ;;  %v2978_v48 = vld [vmem:[%s3447_s30 + $0x140] sm:$0xff] }
 0x17a   : > { %1830 = vmatmul.mubr.f32.gmra.mxu1 %v2967_v49  ;;  %v1187_v53 = vpop.f32.mrf.mxu1  ;;  %1922 = vmatprep.subr.mxu0 %v717_v44  ;;  %v1027_v55 = vadd.f32 %v1026_v52, %v3598_v5  ;;  %v693_v44 = vld [vmem:[#allocation6 + $0x8b8] sm:$0xff]  ;;  %v2979_v49 = vld [vmem:[%s3447_s30 + $0x150] sm:$0xff] }
 0x17b   : > { %2083 = vmatprep.subr.mxu1 %v845_v45  ;;  %1923 = vmatpush1.msra.mxu0 %v716_v46  ;;  %v3627_v58 = vpop.f32.mrf.mxu0  ;;  %v821_v45 = vld [vmem:[#allocation6 + $0xcb8] sm:$0xff]  ;;  %v692_v46 = vld [vmem:[#allocation6 + $0x8b0] sm:$0xff] }
 0x17c   : > { %2084 = vmatpush1.msra.mxu1 %v844_v47  ;;  %v3629_v59 = vpop.f32.mrf.mxu1  ;;  %1924 = vmatprep.subr.mxu0 %v713_v50  ;;  %v3631_v60 = vadd.f32 %v1187_v53, %v1027_v55  ;;  %v820_v47 = vld [vmem:[#allocation6 + $0xcb0] sm:$0xff]  ;;  %v689_v50 = vld [vmem:[#allocation6 + $0x898] sm:$0xff] }
 0x17d   : > { %2085 = vmatprep.subr.mxu1 %v841_v51  ;;  %1674 = vmatprep.mubr.f32.mxu0 %v2968_v61  ;;  %v817_v51 = vld [vmem:[#allocation6 + $0xc98] sm:$0xff] }
 0x17e   : > { %1835 = vmatprep.mubr.f32.mxu1 %v2969_v62  ;;  %1925 = vmatpush1.msra.mxu0 %v712_v56  ;;  %v688_v56 = vld [vmem:[#allocation6 + $0x890] sm:$0xff] }
 0x17f   : > { %2086 = vmatpush1.msra.mxu1 %v840_v57  ;;  %1675 = vmatmul.mubr.f32.gmra.mxu0 %v2970_v6  ;;  %v1032_v10 = vpop.f32.mrf.mxu0  ;;  %v816_v57 = vld [vmem:[#allocation6 + $0xc90] sm:$0xff]  ;;  %v813_v6 = vld [vmem:[#allocation6 + $0xc78] sm:$0xff] }
 0x180   : > { %1836 = vmatmul.mubr.f32.gmra.mxu1 %v2971_v7  ;;  %v1193_v11 = vpop.f32.mrf.mxu1  ;;  %1926 = vmatprep.subr.mxu0 %v709_v0  ;;  %v1033_v12 = vadd.f32 %v1032_v10, %v3598_v5  ;;  %v684_v7 = vld [vmem:[#allocation6 + $0x870] sm:$0xff] }
 0x181   : > { %2087 = vmatprep.subr.mxu1 %v837_v1  ;;  %1927 = vmatpush1.msra.mxu0 %v708_v3  ;;  %v3638_v15 = vpop.f32.mrf.mxu0  ;;  %v2980_v1 = vld [vmem:[%s3447_s30 + $0x188] sm:$0xff]  ;;  %v2981_v3 = vld [vmem:[%s3447_s30 + $0x198] sm:$0xff]  ;;  %v2983_v10 = vld [vmem:[%s3447_s30 + $0x190] sm:$0xff] }
 0x182   : > { %2088 = vmatpush1.msra.mxu1 %v836_v4  ;;  %v3640_v16 = vpop.f32.mrf.mxu1  ;;  %1928 = vmatprep.subr.mxu0 %v705_v8  ;;  %v3642_v17 = vadd.f32 %v1193_v11, %v1033_v12  ;;  %v685_v4 = vld [vmem:[#allocation6 + $0x878] sm:$0xff]  ;;  %v812_v8 = vld [vmem:[#allocation6 + $0xc70] sm:$0xff] }
 0x183   : > { %2089 = vmatprep.subr.mxu1 %v833_v9  ;;  %1680 = vmatprep.mubr.f32.mxu0 %v2972_v18  ;;  %v2982_v9 = vld [vmem:[%s3447_s30 + $0x180] sm:$0xff]  ;;  %v681_v11 = vld [vmem:[#allocation6 + $0x858] sm:$0xff] }
 0x184   : > { %1841 = vmatprep.mubr.f32.mxu1 %v2973_v19  ;;  %1929 = vmatpush1.msra.mxu0 %v704_v13  ;;  %v809_v12 = vld [vmem:[#allocation6 + $0xc58] sm:$0xff]  ;;  %v680_v19 = vld [vmem:[#allocation6 + $0x850] sm:$0xff] }
 0x185   : > { %2090 = vmatpush1.msra.mxu1 %v832_v14  ;;  %1681 = vmatmul.mubr.f32.gmra.mxu0 %v2974_v27  ;;  %v1038_v31 = vpop.f32.mrf.mxu0  ;;  %v2984_v27 = vld [vmem:[%s3447_s30 + $0x1c8] sm:$0xff] }
 0x186   : > { %1842 = vmatmul.mubr.f32.gmra.mxu1 %v2975_v28  ;;  %v1199_v32 = vpop.f32.mrf.mxu1  ;;  %1930 = vmatprep.subr.mxu0 %v701_v20  ;;  %v1039_v33 = vadd.f32 %v1038_v31, %v3598_v5  ;;  %v808_v20 = vld [vmem:[#allocation6 + $0xc50] sm:$0xff]  ;;  %v2985_v28 = vld [vmem:[%s3447_s30 + $0x1d8] sm:$0xff] }
 0x187   : > { %2091 = vmatprep.subr.mxu1 %v829_v24  ;;  %1931 = vmatpush1.msra.mxu0 %v700_v25  ;;  %v3649_v36 = vpop.f32.mrf.mxu0  ;;  %v676_v31 = vld [vmem:[#allocation6 + $0x830] sm:$0xff] }
 0x188   : > { %2092 = vmatpush1.msra.mxu1 %v828_v26  ;;  %v3651_v37 = vpop.f32.mrf.mxu1  ;;  %1932 = vmatprep.subr.mxu0 %v697_v29  ;;  %v3653_v38 = vadd.f32 %v1199_v32, %v1039_v33  ;;  %v677_v29 = vld [vmem:[#allocation6 + $0x838] sm:$0xff]  ;;  %v804_v32 = vld [vmem:[#allocation6 + $0xc30] sm:$0xff]  ;;  %v2986_v33 = vld [vmem:[%s3447_s30 + $0x1c0] sm:$0xff] }
 0x189   : > { %2093 = vmatprep.subr.mxu1 %v825_v30  ;;  %1686 = vmatprep.mubr.f32.mxu0 %v2976_v42  ;;  %v805_v30 = vld [vmem:[#allocation6 + $0xc38] sm:$0xff] }
 0x18a   : > { %1847 = vmatprep.mubr.f32.mxu1 %v2977_v43  ;;  %1933 = vmatpush1.msra.mxu0 %v696_v34  ;;  %v2987_v34 = vld [vmem:[%s3447_s30 + $0x1d0] sm:$0xff]  ;;  %v801_v42 = vld [vmem:[#allocation6 + $0xc18] sm:$0xff] }
 0x18b   : > { %2094 = vmatpush1.msra.mxu1 %v824_v35  ;;  %1687 = vmatmul.mubr.f32.gmra.mxu0 %v2978_v48  ;;  %v1044_v52 = vpop.f32.mrf.mxu0  ;;  %v673_v35 = vld [vmem:[#allocation6 + $0x818] sm:$0xff] }
 0x18c   : > { %1848 = vmatmul.mubr.f32.gmra.mxu1 %v2979_v49  ;;  %v1205_v53 = vpop.f32.mrf.mxu1  ;;  %1934 = vmatprep.subr.mxu0 %v693_v44  ;;  %v1045_v55 = vadd.f32 %v1044_v52, %v3598_v5  ;;  %v2989_v52 = vld [vmem:[%s3447_s30 + $0x218] sm:$0xff] }
 0x18d   : > { %2095 = vmatprep.subr.mxu1 %v821_v45  ;;  %1935 = vmatpush1.msra.mxu0 %v692_v46  ;;  %v3660_v61 = vpop.f32.mrf.mxu0  ;;  %v672_v46 = vld [vmem:[#allocation6 + $0x810] sm:$0xff] }
 0x18e   : > { %2096 = vmatpush1.msra.mxu1 %v820_v47  ;;  %v3662_v62 = vpop.f32.mrf.mxu1  ;;  %1936 = vmatprep.subr.mxu0 %v689_v50  ;;  %v3664_v0 = vadd.f32 %v1205_v53, %v1045_v55  ;;  %v800_v47 = vld [vmem:[#allocation6 + $0xc10] sm:$0xff]  ;;  %v797_v53 = vld [vmem:[#allocation6 + $0xbf8] sm:$0xff] }
 0x18f   : > { %2097 = vmatprep.subr.mxu1 %v817_v51  ;;  %1692 = vmatprep.mubr.f32.mxu0 %v2980_v1  ;;  %v2988_v51 = vld [vmem:[%s3447_s30 + $0x208] sm:$0xff]  ;;  %v925_v55 = vld [vmem:[#allocation6 + $0xff8] sm:$0xff]  ;;  %v2990_v1 = vld [vmem:[%s3447_s30 + $0x200] sm:$0xff] }
 0x190   : > { %1853 = vmatprep.mubr.f32.mxu1 %v2981_v3  ;;  %1937 = vmatpush1.msra.mxu0 %v688_v56  ;;  %v796_v56 = vld [vmem:[#allocation6 + $0xbf0] sm:$0xff] }
 0x191   : > { %2098 = vmatpush1.msra.mxu1 %v816_v57  ;;  %1693 = vmatmul.mubr.f32.gmra.mxu0 %v2982_v9  ;;  %v1050_v13 = vpop.f32.mrf.mxu0  ;;  %v924_v57 = vld [vmem:[#allocation6 + $0xff0] sm:$0xff] }
 0x192   : > { %1854 = vmatmul.mubr.f32.gmra.mxu1 %v2983_v10  ;;  %v1211_v14 = vpop.f32.mrf.mxu1  ;;  %1938 = vmatprep.subr.mxu0 %v685_v4  ;;  %v1051_v18 = vadd.f32 %v1050_v13, %v3598_v5  ;;  %v2991_v3 = vld [vmem:[%s3447_s30 + $0x210] sm:$0xff]  ;;  %v793_v4 = vld [vmem:[#allocation6 + $0xbd8] sm:$0xff] }
 0x193   : > { %2099 = vmatprep.subr.mxu1 %v813_v6  ;;  %1939 = vmatpush1.msra.mxu0 %v684_v7  ;;  %v3671_v24 = vpop.f32.mrf.mxu0  ;;  %v921_v6 = vld [vmem:[#allocation6 + $0xfd8] sm:$0xff]  ;;  %v792_v10 = vld [vmem:[#allocation6 + $0xbd0] sm:$0xff] }
 0x194   : > { %2100 = vmatpush1.msra.mxu1 %v812_v8  ;;  %v3673_v25 = vpop.f32.mrf.mxu1  ;;  %1940 = vmatprep.subr.mxu0 %v681_v11  ;;  %v3675_v26 = vadd.f32 %v1211_v14, %v1051_v18  ;;  %v920_v11 = vld [vmem:[#allocation6 + $0xfd0] sm:$0xff]  ;;  %v4323_v14 = vsub.s32 1, %v3587_v54 }
 0x195   : > { %2101 = vmatprep.subr.mxu1 %v809_v12  ;;  %1698 = vmatprep.mubr.f32.mxu0 %v2984_v27  ;;  %v789_v27 = vld [vmem:[#allocation6 + $0xbb8] sm:$0xff] }
 0x196   : > { %1859 = vmatprep.mubr.f32.mxu1 %v2985_v28  ;;  %1941 = vmatpush1.msra.mxu0 %v680_v19  ;;  %v2992_v19 = vld [vmem:[%s3447_s30 + $0x248] sm:$0xff]  ;;  %v917_v28 = vld [vmem:[#allocation6 + $0xfb8] sm:$0xff] }
 0x197   : > { %2102 = vmatpush1.msra.mxu1 %v808_v20  ;;  %1699 = vmatmul.mubr.f32.gmra.mxu0 %v2986_v33  ;;  %v1056_v43 = vpop.f32.mrf.mxu0  ;;  %v2993_v20 = vld [vmem:[%s3447_s30 + $0x258] sm:$0xff] }
 0x198   : > { %1860 = vmatmul.mubr.f32.gmra.mxu1 %v2987_v34  ;;  %v1217_v44 = vpop.f32.mrf.mxu1  ;;  %1942 = vmatprep.subr.mxu0 %v677_v29  ;;  %v1057_v45 = vadd.f32 %v1056_v43, %v3598_v5  ;;  %v788_v29 = vld [vmem:[#allocation6 + $0xbb0] sm:$0xff]  ;;  %v785_v33 = vld [vmem:[#allocation6 + $0xb98] sm:$0xff]  ;;  %v3707_v43 = vrot.slane %v3594_v2, %v4323_v14 }
 0x199   : > { %2103 = vmatprep.subr.mxu1 %v805_v30  ;;  %1943 = vmatpush1.msra.mxu0 %v676_v31  ;;  %v3682_v48 = vpop.f32.mrf.mxu0  ;;  %v916_v30 = vld [vmem:[#allocation6 + $0xfb0] sm:$0xff]  ;;  %v2994_v31 = vld [vmem:[%s3447_s30 + $0x240] sm:$0xff]  ;;  %v913_v34 = vld [vmem:[#allocation6 + $0xf98] sm:$0xff] }
 0x19a   : > { %2104 = vmatpush1.msra.mxu1 %v804_v32  ;;  %v3684_v49 = vpop.f32.mrf.mxu1  ;;  %1944 = vmatprep.subr.mxu0 %v673_v35  ;;  %v3686_v50 = vadd.f32 %v1217_v44, %v1057_v45  ;;  %v2995_v32 = vld [vmem:[%s3447_s30 + $0x250] sm:$0xff]  ;;  %v2997_v2 = vld [vmem:[%s3447_s30 + $0x298] sm:$0xff] }
 0x19b   : > { %2105 = vmatprep.subr.mxu1 %v801_v42  ;;  %1704 = vmatprep.mubr.f32.mxu0 %v2988_v51  ;;  %v784_v45 = vld [vmem:[#allocation6 + $0xb90] sm:$0xff] }
 0x19c   : > { %1865 = vmatprep.mubr.f32.mxu1 %v2989_v52  ;;  %1945 = vmatpush1.msra.mxu0 %v672_v46  ;;  %v912_v46 = vld [vmem:[#allocation6 + $0xf90] sm:$0xff] }
 0x19d   : > { %2106 = vmatpush1.msra.mxu1 %v800_v47  ;;  %1705 = vmatmul.mubr.f32.gmra.mxu0 %v2990_v1  ;;  %v1062_v7 = vpop.f32.mrf.mxu0  ;;  %v780_v1 = vld [vmem:[#allocation6 + $0xb70] sm:$0xff] }
 0x19e   : > { %1866 = vmatmul.mubr.f32.gmra.mxu1 %v2991_v3  ;;  %v1223_v8 = vpop.f32.mrf.mxu1  ;;  %1946 = vmatprep.subr.mxu0 %v797_v53  ;;  %v1063_v9 = vadd.f32 %v1062_v7, %v3598_v5  ;;  %v908_v3 = vld [vmem:[#allocation6 + $0xf70] sm:$0xff] }
 0x19f   : > { %2107 = vmatprep.subr.mxu1 %v925_v55  ;;  %1947 = vmatpush2.msra.mxu0 %v796_v56  ;;  %v3693_v12 = vpop.f32.mrf.mxu0  ;;  %v2996_v55 = vld [vmem:[%s3447_s30 + $0x288] sm:$0xff]  ;;  %v781_v56 = vld [vmem:[#allocation6 + $0xb78] sm:$0xff]  ;;  %v2999_v7 = vld [vmem:[%s3447_s30 + $0x290] sm:$0xff] }
 0x1a0   : > { %2108 = vmatpush2.msra.mxu1 %v924_v57  ;;  %v3695_v13 = vpop.f32.mrf.mxu1  ;;  %1948 = vmatprep.subr.mxu0 %v793_v4  ;;  %v3698_v18 = vadd.f32 %v1223_v8, %v1063_v9  ;;  %v909_v57 = vld [vmem:[#allocation6 + $0xf78] sm:$0xff] }
 0x1a1   : > { %2109 = vmatprep.subr.mxu1 %v921_v6  ;;  %1710 = vmatprep.mubr.f32.mxu0 %v2992_v19  ;;  %v2998_v6 = vld [vmem:[%s3447_s30 + $0x280] sm:$0xff]  ;;  %v777_v8 = vld [vmem:[#allocation6 + $0xb58] sm:$0xff] }
 0x1a2   : > { %1871 = vmatprep.mubr.f32.mxu1 %v2993_v20  ;;  %1949 = vmatpush2.msra.mxu0 %v792_v10  ;;  %v905_v9 = vld [vmem:[#allocation6 + $0xf58] sm:$0xff]  ;;  %v776_v20 = vld [vmem:[#allocation6 + $0xb50] sm:$0xff] }
 0x1a3   : > { %2110 = vmatpush2.msra.mxu1 %v920_v11  ;;  %1711 = vmatmul.mubr.f32.gmra.mxu0 %v2994_v31  ;;  %v1068_v35 = vpop.f32.mrf.mxu0 }
 0x1a4   : > { %1872 = vmatmul.mubr.f32.gmra.mxu1 %v2995_v32  ;;  %v1229_v42 = vpop.f32.mrf.mxu1  ;;  %1950 = vmatprep.subr.mxu0 %v789_v27  ;;  %v1069_v44 = vadd.f32 %v1068_v35, %v3598_v5  ;;  %v904_v27 = vld [vmem:[#allocation6 + $0xf50] sm:$0xff]  ;;  %v3000_v32 = vld [vmem:[%s3447_s30 + $0x2c8] sm:$0xff]  ;;  %v901_v35 = vld [vmem:[#allocation6 + $0xf38] sm:$0xff] }
 0x1a5   : > { %2111 = vmatprep.subr.mxu1 %v917_v28  ;;  %1951 = vmatpush2.msra.mxu0 %v788_v29  ;;  %v1070_v47 = vpop.f32.mrf.mxu0 }
 0x1a6   : > { %2112 = vmatpush2.msra.mxu1 %v916_v30  ;;  %v1231_v51 = vpop.f32.mrf.mxu1  ;;  %1952 = vmatprep.subr.mxu0 %v785_v33  ;;  %v3710_v52 = vadd.f32 %v1229_v42, %v1069_v44  ;;  %v1071_v53 = vadd.f32 %v1070_v47, %v3707_v43  ;;  %v3001_v33 = vld [vmem:[%s3447_s30 + $0x2d8] sm:$0xff]  ;;  %v772_v42 = vld [vmem:[#allocation6 + $0xb30] sm:$0xff] }
 0x1a7   : > { %2113 = vmatprep.subr.mxu1 %v913_v34  ;;  %1716 = vmatprep.mubr.f32.mxu0 %v2996_v55  ;;  %v773_v34 = vld [vmem:[#allocation6 + $0xb38] sm:$0xff]  ;;  %v900_v44 = vld [vmem:[#allocation6 + $0xf30] sm:$0xff] }
 0x1a8   : > { %1877 = vmatprep.mubr.f32.mxu1 %v2997_v2  ;;  %1953 = vmatpush2.msra.mxu0 %v784_v45  ;;  %v3715_v4 = vadd.f32 %v1231_v51, %v1071_v53  ;;  %v3003_v47 = vld [vmem:[%s3447_s30 + $0x2d0] sm:$0xff]  ;;  %v769_v51 = vld [vmem:[#allocation6 + $0xb18] sm:$0xff] }
 0x1a9   : > { %2114 = vmatpush2.msra.mxu1 %v912_v46  ;;  %1717 = vmatmul.mubr.f32.gmra.mxu0 %v2998_v6  ;;  %v1074_v10 = vpop.f32.mrf.mxu0  ;;  %v3002_v46 = vld [vmem:[%s3447_s30 + $0x2c0] sm:$0xff]  ;;  %v897_v53 = vld [vmem:[#allocation6 + $0xf18] sm:$0xff] }
 0x1aa   : > { %1878 = vmatmul.mubr.f32.gmra.mxu1 %v2999_v7  ;;  %v1235_v11 = vpop.f32.mrf.mxu1  ;;  %1954 = vmatprep.subr.mxu0 %v781_v56  ;;  %v1075_v19 = vadd.f32 %v1074_v10, %v3598_v5  ;;  %v3005_v10 = vld [vmem:[%s3447_s30 + $0x318] sm:$0xff] }
 0x1ab   : > { %2115 = vmatprep.subr.mxu1 %v909_v57  ;;  %1955 = vmatpush2.msra.mxu0 %v780_v1  ;;  %v1076_v28 = vpop.f32.mrf.mxu0  ;;  %v768_v57 = vld [vmem:[#allocation6 + $0xb10] sm:$0xff] }
 0x1ac   : > { %2116 = vmatpush2.msra.mxu1 %v908_v3  ;;  %v1237_v29 = vpop.f32.mrf.mxu1  ;;  %1956 = vmatprep.subr.mxu0 %v777_v8  ;;  %v3720_v30 = vadd.f32 %v1235_v11, %v1075_v19  ;;  %v1077_v31 = vadd.f32 %v1076_v28, %v3707_v43  ;;  %v896_v1 = vld [vmem:[#allocation6 + $0xf10] sm:$0xff]  ;;  %v765_v11 = vld [vmem:[#allocation6 + $0xaf8] sm:$0xff] }
 0x1ad   : > { %2117 = vmatprep.subr.mxu1 %v905_v9  ;;  %1722 = vmatprep.mubr.f32.mxu0 %v3000_v32  ;;  %v3004_v9 = vld [vmem:[%s3447_s30 + $0x308] sm:$0xff]  ;;  %v893_v19 = vld [vmem:[#allocation6 + $0xef8] sm:$0xff] }
 0x1ae   : > { %1883 = vmatprep.mubr.f32.mxu1 %v3001_v33  ;;  %1957 = vmatpush2.msra.mxu0 %v776_v20  ;;  %v3725_v45 = vadd.f32 %v1237_v29, %v1077_v31  ;;  %v764_v20 = vld [vmem:[#allocation6 + $0xaf0] sm:$0xff]  ;;  %v3006_v29 = vld [vmem:[%s3447_s30 + $0x300] sm:$0xff]  ;;  %v761_v32 = vld [vmem:[#allocation6 + $0xad8] sm:$0xff] }
 0x1af   : > { %2118 = vmatpush2.msra.mxu1 %v904_v27  ;;  %1723 = vmatmul.mubr.f32.gmra.mxu0 %v3002_v46  ;;  %v1080_v55 = vpop.f32.mrf.mxu0  ;;  %v892_v27 = vld [vmem:[#allocation6 + $0xef0] sm:$0xff]  ;;  %v889_v33 = vld [vmem:[#allocation6 + $0xed8] sm:$0xff] }
 0x1b0   : > { %1884 = vmatmul.mubr.f32.gmra.mxu1 %v3003_v47  ;;  %v1241_v2 = vpop.f32.mrf.mxu1  ;;  %1958 = vmatprep.subr.mxu0 %v773_v34  ;;  %v1081_v56 = vadd.f32 %v1080_v55, %v3598_v5  ;;  %v3007_v31 = vld [vmem:[%s3447_s30 + $0x310] sm:$0xff] }
 0x1b1   : > { %2119 = vmatprep.subr.mxu1 %v901_v35  ;;  %1959 = vmatpush2.msra.mxu0 %v772_v42  ;;  %v1082_v3 = vpop.f32.mrf.mxu0  ;;  %v888_v46 = vld [vmem:[#allocation6 + $0xed0] sm:$0xff] }
 0x1b2   : > { %2120 = vmatpush2.msra.mxu1 %v900_v44  ;;  %v1243_v6 = vpop.f32.mrf.mxu1  ;;  %1960 = vmatprep.subr.mxu0 %v769_v51  ;;  %v3730_v7 = vadd.f32 %v1241_v2, %v1081_v56  ;;  %v1083_v8 = vadd.f32 %v1082_v3, %v3707_v43  ;;  %v760_v44 = vld [vmem:[#allocation6 + $0xad0] sm:$0xff]  ;;  %v3008_v2 = vld [vmem:[%s3447_s30 + $0x348] sm:$0xff]  ;;  %v3009_v56 = vld [vmem:[%s3447_s30 + $0x358] sm:$0xff] }
 0x1b3   : > { %2121 = vmatprep.subr.mxu1 %v897_v53  ;;  %1728 = vmatprep.mubr.f32.mxu0 %v3004_v9  ;;  %v756_v3 = vld [vmem:[#allocation6 + $0xab0] sm:$0xff]  ;;  %v3010_v9 = vld [vmem:[%s3447_s30 + $0x340] sm:$0xff] }
 0x1b4   : > { %1889 = vmatprep.mubr.f32.mxu1 %v3005_v10  ;;  %1961 = vmatpush2.msra.mxu0 %v768_v57  ;;  %v3735_v28 = vadd.f32 %v1243_v6, %v1083_v8  ;;  %v757_v57 = vld [vmem:[#allocation6 + $0xab8] sm:$0xff]  ;;  %v884_v6 = vld [vmem:[#allocation6 + $0xeb0] sm:$0xff] }
 0x1b5   : > { %2122 = vmatpush2.msra.mxu1 %v896_v1  ;;  %1729 = vmatmul.mubr.f32.gmra.mxu0 %v3006_v29  ;;  %v1086_v34 = vpop.f32.mrf.mxu0  ;;  %v885_v1 = vld [vmem:[#allocation6 + $0xeb8] sm:$0xff]  ;;  %v3011_v10 = vld [vmem:[%s3447_s30 + $0x350] sm:$0xff] }
 0x1b6   : > { %1890 = vmatmul.mubr.f32.gmra.mxu1 %v3007_v31  ;;  %v1247_v35 = vpop.f32.mrf.mxu1  ;;  %1962 = vmatprep.subr.mxu0 %v765_v11  ;;  %v1087_v42 = vadd.f32 %v1086_v34, %v3598_v5  ;;  %v753_v11 = vld [vmem:[#allocation6 + $0xa98] sm:$0xff]  ;;  %v752_v31 = vld [vmem:[#allocation6 + $0xa90] sm:$0xff] }
 0x1b7   : > { %2123 = vmatprep.subr.mxu1 %v893_v19  ;;  %1963 = vmatpush2.msra.mxu0 %v764_v20  ;;  %v1088_v47 = vpop.f32.mrf.mxu0  ;;  %v881_v19 = vld [vmem:[#allocation6 + $0xe98] sm:$0xff] }
 0x1b8   : > { %2124 = vmatpush2.msra.mxu1 %v892_v27  ;;  %v1249_v51 = vpop.f32.mrf.mxu1  ;;  %1964 = vmatprep.subr.mxu0 %v761_v32  ;;  %v3740_v53 = vadd.f32 %v1247_v35, %v1087_v42  ;;  %v1089_v55 = vadd.f32 %v1088_v47, %v3707_v43  ;;  %v880_v32 = vld [vmem:[#allocation6 + $0xe90] sm:$0xff]  ;;  %v749_v47 = vld [vmem:[#allocation6 + $0xa78] sm:$0xff] }
 0x1b9   : > { %2125 = vmatprep.subr.mxu1 %v889_v33  ;;  %1734 = vmatprep.mubr.f32.mxu0 %v3008_v2  ;;  %v876_v2 = vld [vmem:[#allocation6 + $0xe70] sm:$0xff] }
 0x1ba   : > { %1895 = vmatprep.mubr.f32.mxu1 %v3009_v56  ;;  %1965 = vmatpush2.msra.mxu0 %v760_v44  ;;  %v3745_v8 = vadd.f32 %v1249_v51, %v1089_v55  ;;  %v3012_v44 = vld [vmem:[%s3447_s30 + $0x388] sm:$0xff]  ;;  %v877_v51 = vld [vmem:[#allocation6 + $0xe78] sm:$0xff]  ;;  %v748_v55 = vld [vmem:[#allocation6 + $0xa70] sm:$0xff] }
 0x1bb   : > { %2126 = vmatpush2.msra.mxu1 %v888_v46  ;;  %1735 = vmatmul.mubr.f32.gmra.mxu0 %v3010_v9  ;;  %v1092_v20 = vpop.f32.mrf.mxu0  ;;  %v3013_v46 = vld [vmem:[%s3447_s30 + $0x398] sm:$0xff] }
 0x1bc   : > { %1896 = vmatmul.mubr.f32.gmra.mxu1 %v3011_v10  ;;  %v1253_v27 = vpop.f32.mrf.mxu1  ;;  %1966 = vmatprep.subr.mxu0 %v757_v57  ;;  %v1093_v29 = vadd.f32 %v1092_v20, %v3598_v5  ;;  %v3014_v57 = vld [vmem:[%s3447_s30 + $0x380] sm:$0xff]  ;;  %v872_v20 = vld [vmem:[#allocation6 + $0xe50] sm:$0xff] }
 0x1bd   : > { %2127 = vmatprep.subr.mxu1 %v885_v1  ;;  %1967 = vmatpush2.msra.mxu0 %v756_v3  ;;  %v1094_v33 = vpop.f32.mrf.mxu0  ;;  %v3015_v1 = vld [vmem:[%s3447_s30 + $0x390] sm:$0xff]  ;;  %v745_v3 = vld [vmem:[#allocation6 + $0xa58] sm:$0xff] }
 0x1be   : > { %2128 = vmatpush2.msra.mxu1 %v884_v6  ;;  %v1255_v34 = vpop.f32.mrf.mxu1  ;;  %1968 = vmatprep.subr.mxu0 %v753_v11  ;;  %v3750_v35 = vadd.f32 %v1253_v27, %v1093_v29  ;;  %v1095_v42 = vadd.f32 %v1094_v33, %v3707_v43  ;;  %v873_v6 = vld [vmem:[#allocation6 + $0xe58] sm:$0xff]  ;;  %v3016_v33 = vld [vmem:[%s3447_s30 + $0x3c8] sm:$0xff] }
 0x1bf   : > { %2129 = vmatprep.subr.mxu1 %v881_v19  ;;  %1740 = vmatprep.mubr.f32.mxu0 %v3012_v44  ;;  %v744_v19 = vld [vmem:[#allocation6 + $0xa50] sm:$0xff]  ;;  %v869_v44 = vld [vmem:[#allocation6 + $0xe38] sm:$0xff] }
 0x1c0   : > { %1901 = vmatprep.mubr.f32.mxu1 %v3013_v46  ;;  %1969 = vmatpush2.msra.mxu0 %v752_v31  ;;  %v3755_v56 = vadd.f32 %v1255_v34, %v1095_v42  ;;  %v3017_v34 = vld [vmem:[%s3447_s30 + $0x3d8] sm:$0xff]  ;;  %v740_v46 = vld [vmem:[#allocation6 + $0xa30] sm:$0xff] }
 0x1c1   : > { %2130 = vmatpush2.msra.mxu1 %v880_v32  ;;  %1741 = vmatmul.mubr.f32.gmra.mxu0 %v3014_v57  ;;  %v1098_v9 = vpop.f32.mrf.mxu0  ;;  %v741_v42 = vld [vmem:[#allocation6 + $0xa38] sm:$0xff] }
 0x1c2   : > { %1902 = vmatmul.mubr.f32.gmra.mxu1 %v3015_v1  ;;  %v1259_v10 = vpop.f32.mrf.mxu1  ;;  %1970 = vmatprep.subr.mxu0 %v749_v47  ;;  %v1099_v11 = vadd.f32 %v1098_v9, %v3598_v5  ;;  %v868_v47 = vld [vmem:[#allocation6 + $0xe30] sm:$0xff]  ;;  %v737_v57 = vld [vmem:[#allocation6 + $0xa18] sm:$0xff] }
 0x1c3   : > { %2131 = vmatprep.subr.mxu1 %v877_v51  ;;  %1971 = vmatpush2.msra.mxu0 %v748_v55  ;;  %v1100_v27 = vpop.f32.mrf.mxu0  ;;  %v3018_v55 = vld [vmem:[%s3447_s30 + $0x3c0] sm:$0xff]  ;;  %v865_v1 = vld [vmem:[#allocation6 + $0xe18] sm:$0xff]  ;;  %v736_v9 = vld [vmem:[#allocation6 + $0xa10] sm:$0xff] }
 0x1c4   : > { %2132 = vmatpush2.msra.mxu1 %v876_v2  ;;  %v1261_v29 = vpop.f32.mrf.mxu1  ;;  %1972 = vmatprep.subr.mxu0 %v745_v3  ;;  %v3760_v31 = vadd.f32 %v1259_v10, %v1099_v11  ;;  %v1101_v32 = vadd.f32 %v1100_v27, %v3707_v43  ;;  %v3019_v2 = vld [vmem:[%s3447_s30 + $0x3d0] sm:$0xff]  ;;  %v1017_v27 = vadd.f32 %v3605_v21, %v3707_v43 }
 0x1c5   : > { %2133 = vmatprep.subr.mxu1 %v873_v6  ;;  %1746 = vmatprep.mubr.f32.mxu0 %v3016_v33  ;;  %v864_v11 = vld [vmem:[#allocation6 + $0xe10] sm:$0xff]  ;;  %v3021_v33 = vld [vmem:[%s3447_s30 + $0x38] sm:$0xff] }
 0x1c6   : > { %1907 = vmatprep.mubr.f32.mxu1 %v3017_v34  ;;  %1973 = vmatpush2.msra.mxu0 %v744_v19  ;;  %v3765_v51 = vadd.f32 %v1261_v29, %v1101_v32 }
 0x1c7   : > { %2134 = vmatpush2.msra.mxu1 %v872_v20  ;;  %1747 = vmatmul.mubr.f32.gmra.mxu0 %v3018_v55  ;;  %v1104_v3 = vpop.f32.mrf.mxu0  ;;  %v3024_v55 = vld [vmem:[%s3447_s30 + $0x68] sm:$0xff] }
 0x1c8   : > { %1908 = vmatmul.mubr.f32.gmra.mxu1 %v3019_v2  ;;  %v1265_v6 = vpop.f32.mrf.mxu1  ;;  %1974 = vmatprep.subr.mxu0 %v741_v42  ;;  %v1105_v10 = vadd.f32 %v1104_v3, %v3598_v5  ;;  %v3020_v5 = vld [vmem:[%s3447_s30 + $0x28] sm:$0xff]  ;;  %v3022_v42 = vld [vmem:[%s3447_s30 + $0x20] sm:$0xff]  ;;  %v3025_v2 = vld [vmem:[%s3447_s30 + $0x78] sm:$0xff] }
 0x1c9   : > { %2135 = vmatprep.subr.mxu1 %v869_v44  ;;  %1975 = vmatpush2.msra.mxu0 %v740_v46  ;;  %v1106_v19 = vpop.f32.mrf.mxu0  ;;  %v3023_v44 = vld [vmem:[%s3447_s30 + $0x30] sm:$0xff] }
 0x1ca   : > { %2136 = vmatpush2.msra.mxu1 %v868_v47  ;;  %v1267_v20 = vpop.f32.mrf.mxu1  ;;  %1976 = vmatprep.subr.mxu0 %v737_v57  ;;  %v3772_v29 = vadd.f32 %v1265_v6, %v1105_v10  ;;  %v1107_v32 = vadd.f32 %v1106_v19, %v3707_v43  ;;  %v1178_v47 = vadd.f32 %v3607_v22, %v1017_v27  ;;  %v3027_v22 = vld [vmem:[%s3447_s30 + $0x70] sm:$0xff]  ;;  %v3028_v19 = vld [vmem:[%s3447_s30 + $0xa8] sm:$0xff] }
 0x1cb   : > { %2137 = vmatprep.subr.mxu1 %v865_v1  ;;  %1977 = vmatpush2.msra.mxu0 %v736_v9  ;;  %v1023_v6 = vadd.f32 %v3616_v39, %v3707_v43 }
 0x1cc   : > { %1978 = vmatprep.mubr.f32.mxu0 %v3020_v5  ;;  %2138 = vmatpush2.msra.mxu1 %v864_v11  ;;  %v3777_v34 = vadd.f32 %v1267_v20, %v1107_v32  ;;  %v3026_v11 = vld [vmem:[%s3447_s30 + $0x60] sm:$0xff]  ;;  %v3029_v20 = vld [vmem:[%s3447_s30 + $0xb8] sm:$0xff] }
 0x1cd   : > { %2139 = vmatprep.mubr.f32.mxu1 %v3021_v33  ;;  %1979 = vmatmul.mubr.f32.vlgmr.msra.gmra.mxu0 %v3022_v42  ;;  %v1336_v21 = vpop.f32.mrf.mxu0  ;;  %v1184_v39 = vadd.f32 %v3618_v40, %v1023_v6  ;;  %v3030_v33 = vld [vmem:[%s3447_s30 + $0xa0] sm:$0xff]  ;;  %v3031_v42 = vld [vmem:[%s3447_s30 + $0xb0] sm:$0xff] }
 0x1ce   : > { %2140 = vmatmul.mubr.f32.vlgmr.msra.gmra.mxu1 %v3023_v44  ;;  %v1497_v46 = vpop.f32.mrf.mxu1  ;;  %1984 = vmatprep.mubr.f32.mxu0 %v3024_v55  ;;  %v1337_v57 = vadd.f32 %v1336_v21, %v3609_v23  ;;  %v3033_v55 = vld [vmem:[%s3447_s30 + $0xf8] sm:$0xff] }
 0x1cf   : > { %2145 = vmatprep.mubr.f32.mxu1 %v3025_v2  ;;  %v1338_v1 = vpop.f32.mrf.mxu0 }
 0x1d0   : > { %v1499_v3 = vpop.f32.mrf.mxu1  ;;  %v3787_v9 = vadd.f32 %v1497_v46, %v1337_v57  ;;  %v1339_v10 = vadd.f32 %v1338_v1, %v1178_v47  ;;  %v1029_v46 = vadd.f32 %v3627_v58, %v3707_v43  ;;  %v3032_v47 = vld [vmem:[%s3447_s30 + $0xe8] sm:$0xff]  ;;  %v3034_v57 = vld [vmem:[%s3447_s30 + $0xe0] sm:$0xff]  ;;  %v3035_v1 = vld [vmem:[%s3447_s30 + $0xf0] sm:$0xff] }
 0x1d1   : > { %1985 = vmatmul.mubr.f32.gmra.mxu0 %v3026_v11  ;;  %v3037_v11 = vld [vmem:[%s3447_s30 + $0x138] sm:$0xff] }
 0x1d2   : > { %2146 = vmatmul.mubr.f32.gmra.mxu1 %v3027_v22  ;;  %1990 = vmatprep.mubr.f32.mxu0 %v3028_v19  ;;  %v3793_v23 = vadd.f32 %v1499_v3, %v1339_v10  ;;  %v1190_v58 = vadd.f32 %v3629_v59, %v1029_v46  ;;  %v3036_v10 = vld [vmem:[%s3447_s30 + $0x128] sm:$0xff]  ;;  %v3039_v59 = vld [vmem:[%s3447_s30 + $0x130] sm:$0xff]  ;;  %2764 = vtanh.f32 %v3787_v9 }
 0x1d3   : > { %2151 = vmatprep.mubr.f32.mxu1 %v3029_v20  ;;  %v1342_v27 = vpop.f32.mrf.mxu0 }
 0x1d4   : > { %v1503_v32 = vpop.f32.mrf.mxu1  ;;  %v1343_v5 = vadd.f32 %v1342_v27, %v3620_v41  ;;  %v1035_v27 = vadd.f32 %v3638_v15, %v3707_v43  ;;  %2766 = vtanh.f32 %v3793_v23 }
 0x1d5   : > { %1991 = vmatmul.mubr.f32.gmra.mxu0 %v3030_v33  ;;  %v1344_v44 = vpop.f32.mrf.mxu0  ;;  %v3040_v33 = vld [vmem:[%s3447_s30 + $0x168] sm:$0xff] }
 0x1d6   : > { %2152 = vmatmul.mubr.f32.gmra.mxu1 %v3031_v42  ;;  %v1505_v21 = vpop.f32.mrf.mxu1  ;;  %1996 = vmatprep.mubr.f32.mxu0 %v3032_v47  ;;  %v3803_v40 = vadd.f32 %v1503_v32, %v1343_v5  ;;  %v1345_v2 = vadd.f32 %v1344_v44, %v1184_v39  ;;  %v3038_v5 = vld [vmem:[%s3447_s30 + $0x120] sm:$0xff]  ;;  %v3041_v42 = vld [vmem:[%s3447_s30 + $0x178] sm:$0xff]  ;;  %v1196_v15 = vadd.f32 %v3640_v16, %v1035_v27 }
 0x1d7   : > { %2157 = vmatprep.mubr.f32.mxu1 %v3033_v55  ;;  %v3042_v47 = vld [vmem:[%s3447_s30 + $0x160] sm:$0xff]  ;;  %v3043_v55 = vld [vmem:[%s3447_s30 + $0x170] sm:$0xff]  ;;  %v3049_v27 = vld [vmem:[%s3447_s30 + $0x1f8] sm:$0xff] }
 0x1d8   : > { %v3805_v41 = vadd.f32 %v1505_v21, %v1345_v2  ;;  %2768 = vtanh.f32 %v3803_v40 }
 0x1d9   : > { %1997 = vmatmul.mubr.f32.gmra.mxu0 %v3034_v57  ;;  %v1348_v3 = vpop.f32.mrf.mxu0 }
 0x1da   : > { %2158 = vmatmul.mubr.f32.gmra.mxu1 %v3035_v1  ;;  %v1509_v6 = vpop.f32.mrf.mxu1  ;;  %2002 = vmatprep.mubr.f32.mxu0 %v3036_v10  ;;  %v1349_v22 = vadd.f32 %v1348_v3, %v3631_v60  ;;  %v1041_v1 = vadd.f32 %v3649_v36, %v3707_v43  ;;  %v3044_v3 = vld [vmem:[%s3447_s30 + $0x1a8] sm:$0xff]  ;;  %v3046_v10 = vld [vmem:[%s3447_s30 + $0x1a0] sm:$0xff]  ;;  %2770 = vtanh.f32 %v3805_v41 }
 0x1db   : > { %2163 = vmatprep.mubr.f32.mxu1 %v3037_v11  ;;  %v1350_v19 = vpop.f32.mrf.mxu0  ;;  %v3047_v11 = vld [vmem:[%s3447_s30 + $0x1b0] sm:$0xff] }
 0x1dc   : > { %v1511_v20 = vpop.f32.mrf.mxu1  ;;  %v3815_v32 = vadd.f32 %v1509_v6, %v1349_v22  ;;  %v1351_v39 = vadd.f32 %v1350_v19, %v1190_v58  ;;  %v3045_v6 = vld [vmem:[%s3447_s30 + $0x1b8] sm:$0xff]  ;;  %v1202_v36 = vadd.f32 %v3651_v37, %v1041_v1  ;;  %v3051_v37 = vld [vmem:[%s3447_s30 + $0x1f0] sm:$0xff] }
 0x1dd   : > { %2003 = vmatmul.mubr.f32.gmra.mxu0 %v3038_v5  ;;  %v3055_v1 = vld [vmem:[%s3447_s30 + $0x230] sm:$0xff] }
 0x1de   : > { %2164 = vmatmul.mubr.f32.gmra.mxu1 %v3039_v59  ;;  %2008 = vmatprep.mubr.f32.mxu0 %v3040_v33  ;;  %v3821_v60 = vadd.f32 %v1511_v20, %v1351_v39  ;;  %v3048_v20 = vld [vmem:[%s3447_s30 + $0x1e8] sm:$0xff]  ;;  %v1047_v33 = vadd.f32 %v3660_v61, %v3707_v43  ;;  %2772 = vtanh.f32 %v3815_v32 }
 0x1df   : > { %2169 = vmatprep.mubr.f32.mxu1 %v3041_v42  ;;  %v1354_v44 = vpop.f32.mrf.mxu0 }
 0x1e0   : > { %v1515_v21 = vpop.f32.mrf.mxu1  ;;  %v1355_v46 = vadd.f32 %v1354_v44, %v3642_v17  ;;  %v1208_v61 = vadd.f32 %v3662_v62, %v1047_v33  ;;  %2774 = vtanh.f32 %v3821_v60 }
 0x1e1   : > { %2009 = vmatmul.mubr.f32.gmra.mxu0 %v3042_v47  ;;  %v1356_v2 = vpop.f32.mrf.mxu0 }
 0x1e2   : > { %2170 = vmatmul.mubr.f32.gmra.mxu1 %v3043_v55  ;;  %v1517_v57 = vpop.f32.mrf.mxu1  ;;  %2014 = vmatprep.mubr.f32.mxu0 %v3044_v3  ;;  %v3831_v16 = vadd.f32 %v1515_v21, %v1355_v46  ;;  %v1357_v58 = vadd.f32 %v1356_v2, %v1196_v15  ;;  %v3050_v21 = vld [vmem:[%s3447_s30 + $0x1e0] sm:$0xff]  ;;  %v3052_v15 = vld [vmem:[%s3447_s30 + $0x228] sm:$0xff]  ;;  %v3053_v46 = vld [vmem:[%s3447_s30 + $0x238] sm:$0xff] }
 0x1e3   : > { %2175 = vmatprep.mubr.f32.mxu1 %v3045_v6 }
 0x1e4   : > { %v3833_v17 = vadd.f32 %v1517_v57, %v1357_v58  ;;  %v3054_v57 = vld [vmem:[%s3447_s30 + $0x220] sm:$0xff]  ;;  %v1053_v58 = vadd.f32 %v3671_v24, %v3707_v43  ;;  %2776 = vtanh.f32 %v3831_v16 }
 0x1e5   : > { %2015 = vmatmul.mubr.f32.gmra.mxu0 %v3046_v10  ;;  %v1360_v22 = vpop.f32.mrf.mxu0  ;;  %v3056_v10 = vld [vmem:[%s3447_s30 + $0x268] sm:$0xff] }
 0x1e6   : > { %2176 = vmatmul.mubr.f32.gmra.mxu1 %v3047_v11  ;;  %v1521_v19 = vpop.f32.mrf.mxu1  ;;  %2020 = vmatprep.mubr.f32.mxu0 %v3048_v20  ;;  %v1361_v39 = vadd.f32 %v1360_v22, %v3653_v38  ;;  %v3057_v11 = vld [vmem:[%s3447_s30 + $0x278] sm:$0xff]  ;;  %v1214_v24 = vadd.f32 %v3673_v25, %v1053_v58  ;;  %v3063_v25 = vld [vmem:[%s3447_s30 + $0x2b0] sm:$0xff]  ;;  %2778 = vtanh.f32 %v3833_v17 }
 0x1e7   : > { %2181 = vmatprep.mubr.f32.mxu1 %v3049_v27  ;;  %v1362_v5 = vpop.f32.mrf.mxu0 }
 0x1e8   : > { %v1523_v59 = vpop.f32.mrf.mxu1  ;;  %v3843_v42 = vadd.f32 %v1521_v19, %v1361_v39  ;;  %v1363_v44 = vadd.f32 %v1362_v5, %v1202_v36  ;;  %v3058_v19 = vld [vmem:[%s3447_s30 + $0x260] sm:$0xff]  ;;  %v3059_v36 = vld [vmem:[%s3447_s30 + $0x270] sm:$0xff]  ;;  %v3060_v39 = vld [vmem:[%s3447_s30 + $0x2a8] sm:$0xff] }
 0x1e9   : > { %2021 = vmatmul.mubr.f32.gmra.mxu0 %v3050_v21  ;;  %v3061_v5 = vld [vmem:[%s3447_s30 + $0x2b8] sm:$0xff]  ;;  %v1059_v21 = vadd.f32 %v3682_v48, %v3707_v43 }
 0x1ea   : > { %2182 = vmatmul.mubr.f32.gmra.mxu1 %v3051_v37  ;;  %2026 = vmatprep.mubr.f32.mxu0 %v3052_v15  ;;  %v3849_v38 = vadd.f32 %v1523_v59, %v1363_v44  ;;  %2780 = vtanh.f32 %v3843_v42 }
 0x1eb   : > { %2187 = vmatprep.mubr.f32.mxu1 %v3053_v46  ;;  %v1366_v47 = vpop.f32.mrf.mxu0  ;;  %v3062_v46 = vld [vmem:[%s3447_s30 + $0x2a0] sm:$0xff]  ;;  %v1220_v48 = vadd.f32 %v3684_v49, %v1059_v21 }
 0x1ec   : > { %v1527_v55 = vpop.f32.mrf.mxu1  ;;  %v1367_v2 = vadd.f32 %v1366_v47, %v3664_v0  ;;  %v3064_v47 = vld [vmem:[%s3447_s30 + $0x2e8] sm:$0xff]  ;;  %2782 = vtanh.f32 %v3849_v38 }
 0x1ed   : > { %2027 = vmatmul.mubr.f32.gmra.mxu0 %v3054_v57  ;;  %v1368_v3 = vpop.f32.mrf.mxu0 }
 0x1ee   : > { %2188 = vmatmul.mubr.f32.gmra.mxu1 %v3055_v1  ;;  %v1529_v6 = vpop.f32.mrf.mxu1  ;;  %2032 = vmatprep.mubr.f32.mxu0 %v3056_v10  ;;  %v3859_v62 = vadd.f32 %v1527_v55, %v1367_v2  ;;  %v1369_v22 = vadd.f32 %v1368_v3, %v1208_v61  ;;  %v3065_v55 = vld [vmem:[%s3447_s30 + $0x2f8] sm:$0xff]  ;;  %v3066_v1 = vld [vmem:[%s3447_s30 + $0x2e0] sm:$0xff]  ;;  %v3067_v3 = vld [vmem:[%s3447_s30 + $0x2f0] sm:$0xff]  ;;  %v1065_v10 = vadd.f32 %v3693_v12, %v3707_v43 }
 0x1ef   : > { %2193 = vmatprep.mubr.f32.mxu1 %v3057_v11  ;;  %v3068_v11 = vld [vmem:[%s3447_s30 + $0x328] sm:$0xff] }
 0x1f0   : > { %v3861_v0 = vadd.f32 %v1529_v6, %v1369_v22  ;;  %v3069_v22 = vld [vmem:[%s3447_s30 + $0x338] sm:$0xff]  ;;  %v1226_v12 = vadd.f32 %v3695_v13, %v1065_v10  ;;  %v3072_v43 = vld [vmem:[%s3447_s30 + $0x368] sm:$0xff]  ;;  %2784 = vtanh.f32 %v3859_v62 }
 0x1f1   : > { %2033 = vmatmul.mubr.f32.gmra.mxu0 %v3058_v19  ;;  %v1372_v20 = vpop.f32.mrf.mxu0  ;;  %v3076_v13 = vld [vmem:[%s3447_s30 + $0x3a8] sm:$0xff] }
 0x1f2   : > { %2194 = vmatmul.mubr.f32.gmra.mxu1 %v3059_v36  ;;  %v1533_v27 = vpop.f32.mrf.mxu1  ;;  %2038 = vmatprep.mubr.f32.mxu0 %v3060_v39  ;;  %v1373_v59 = vadd.f32 %v1372_v20, %v3675_v26  ;;  %v3070_v36 = vld [vmem:[%s3447_s30 + $0x320] sm:$0xff]  ;;  %v3071_v20 = vld [vmem:[%s3447_s30 + $0x330] sm:$0xff]  ;;  %v3073_v39 = vld [vmem:[%s3447_s30 + $0x378] sm:$0xff]  ;;  %2786 = vtanh.f32 %v3861_v0 }
 0x1f3   : > { %2199 = vmatprep.mubr.f32.mxu1 %v3061_v5  ;;  %v1374_v33 = vpop.f32.mrf.mxu0 }
 0x1f4   : > { %v1535_v44 = vpop.f32.mrf.mxu1  ;;  %v3871_v37 = vadd.f32 %v1533_v27, %v1373_v59  ;;  %v1375_v15 = vadd.f32 %v1374_v33, %v1214_v24 }
 0x1f5   : > { %2039 = vmatmul.mubr.f32.gmra.mxu0 %v3062_v46  ;;  %v3075_v46 = vld [vmem:[%s3447_s30 + $0x370] sm:$0xff] }
 0x1f6   : > { %2200 = vmatmul.mubr.f32.gmra.mxu1 %v3063_v25  ;;  %2044 = vmatprep.mubr.f32.mxu0 %v3064_v47  ;;  %v3877_v26 = vadd.f32 %v1535_v44, %v1375_v15  ;;  %v3074_v15 = vld [vmem:[%s3447_s30 + $0x360] sm:$0xff]  ;;  %v3077_v25 = vld [vmem:[%s3447_s30 + $0x3b8] sm:$0xff]  ;;  %2788 = vtanh.f32 %v3871_v37 }
 0x1f7   : > { %2205 = vmatprep.mubr.f32.mxu1 %v3065_v55  ;;  %v1378_v61 = vpop.f32.mrf.mxu0 }
 0x1f8   : > { %v1539_v2 = vpop.f32.mrf.mxu1  ;;  %v1379_v57 = vadd.f32 %v1378_v61, %v3686_v50  ;;  %2790 = vtanh.f32 %v3877_v26 }
 0x1f9   : > { %2045 = vmatmul.mubr.f32.gmra.mxu0 %v3066_v1  ;;  %v1380_v6 = vpop.f32.mrf.mxu0 }
 0x1fa   : > { %2206 = vmatmul.mubr.f32.gmra.mxu1 %v3067_v3  ;;  %v1541_v58 = vpop.f32.mrf.mxu1  ;;  %2050 = vmatprep.mubr.f32.mxu0 %v3068_v11  ;;  %v3887_v49 = vadd.f32 %v1539_v2, %v1379_v57  ;;  %v1381_v19 = vadd.f32 %v1380_v6, %v1220_v48  ;;  %v3078_v2 = vld [vmem:[%s3447_s30 + $0x3a0] sm:$0xff]  ;;  %v3079_v48 = vld [vmem:[%s3447_s30 + $0x3b0] sm:$0xff]  ;;  %v3080_v3 = vld [vmem:[%s3447_s30 + $0x3e8] sm:$0xff] }
 0x1fb   : > { %2211 = vmatprep.mubr.f32.mxu1 %v3069_v22  ;;  %v3081_v6 = vld [vmem:[%s3447_s30 + $0x3f8] sm:$0xff]  ;;  %v3082_v22 = vld [vmem:[%s3447_s30 + $0x3e0] sm:$0xff] }
 0x1fc   : > { %v3889_v50 = vadd.f32 %v1541_v58, %v1381_v19  ;;  %2792 = vtanh.f32 %v3887_v49 }
 0x1fd   : > { %2051 = vmatmul.mubr.f32.gmra.mxu0 %v3070_v36  ;;  %v1384_v27 = vpop.f32.mrf.mxu0 }
 0x1fe   : > { %2212 = vmatmul.mubr.f32.gmra.mxu1 %v3071_v20  ;;  %v1545_v24 = vpop.f32.mrf.mxu1  ;;  %2056 = vmatprep.mubr.f32.mxu0 %v3072_v43  ;;  %v1385_v5 = vadd.f32 %v1384_v27, %v3698_v18  ;;  %2794 = vtanh.f32 %v3889_v50 }
 0x1ff   : > { %2217 = vmatprep.mubr.f32.mxu1 %v3073_v39  ;;  %v1386_v59 = vpop.f32.mrf.mxu0 }
 0x200   : > { %v1547_v33 = vpop.f32.mrf.mxu1  ;;  %v3897_v44 = vadd.f32 %v1545_v24, %v1385_v5  ;;  %v1387_v21 = vadd.f32 %v1386_v59, %v1226_v12 }
 0x201   : > { %2057 = vmatmul.mubr.f32.gmra.mxu0 %v3074_v15 }
 0x202   : > { %2218 = vmatmul.mubr.f32.gmra.mxu1 %v3075_v46  ;;  %2062 = vmatprep.mubr.f32.mxu0 %v3076_v13  ;;  %v3903_v47 = vadd.f32 %v1547_v33, %v1387_v21 }
 0x203   : > { %2223 = vmatprep.mubr.f32.mxu1 %v3077_v25  ;;  %v1390_v18 = vpop.f32.mrf.mxu0 }
 0x204   : > { %v1551_v55 = vpop.f32.mrf.mxu1  ;;  %v1391_v61 = vadd.f32 %v1390_v18, %v3710_v52  ;;  %v3083_v52 = vld [vmem:[%s3447_s30 + $0x3f0] sm:$0xff] }
 0x205   : > { %2063 = vmatmul.mubr.f32.gmra.mxu0 %v3078_v2  ;;  %v1392_v57 = vpop.f32.mrf.mxu0 }
 0x206   : > { %2224 = vmatmul.mubr.f32.gmra.mxu1 %v3079_v48  ;;  %v1553_v1 = vpop.f32.mrf.mxu1  ;;  %2068 = vmatprep.mubr.f32.mxu0 %v3080_v3  ;;  %v3910_v58 = vadd.f32 %v1551_v55, %v1391_v61  ;;  %v1393_v10 = vadd.f32 %v1392_v57, %v3715_v4 }
 0x207   : > { %2229 = vmatprep.mubr.f32.mxu1 %v3081_v6 }
 0x208   : > { %v3913_v11 = vadd.f32 %v1553_v1, %v1393_v10 }
 0x209   : > { %2069 = vmatmul.mubr.f32.gmra.mxu0 %v3082_v22  ;;  %v1396_v19 = vpop.f32.mrf.mxu0 }
 0x20a   : > { %2230 = vmatmul.mubr.f32.gmra.mxu1 %v3083_v52  ;;  %v1557_v36 = vpop.f32.mrf.mxu1  ;;  %v1397_v20 = vadd.f32 %v1396_v19, %v3720_v30 }
 0x20b   : > { %v1398_v27 = vpop.f32.mrf.mxu0 }
 0x20c   : > { %v1559_v24 = vpop.f32.mrf.mxu1  ;;  %v3918_v12 = vadd.f32 %v1557_v36, %v1397_v20  ;;  %v1399_v43 = vadd.f32 %v1398_v27, %v3725_v45 }
 0x20e   : > { %v3921_v39 = vadd.f32 %v1559_v24, %v1399_v43 }
 0x20f   : > { %v1402_v5 = vpop.f32.mrf.mxu0 }
 0x210   : > { %v1563_v4 = vpop.f32.mrf.mxu1  ;;  %v1403_v59 = vadd.f32 %v1402_v5, %v3730_v7 }
 0x211   : > { %v1404_v33 = vpop.f32.mrf.mxu0 }
 0x212   : > { %v1565_v21 = vpop.f32.mrf.mxu1  ;;  %v3924_v15 = vadd.f32 %v1563_v4, %v1403_v59  ;;  %v1405_v46 = vadd.f32 %v1404_v33, %v3735_v28  ;;  %v942_v4 = vsub.s32 3, %v3587_v54 }
 0x214   : > { %v3927_v13 = vadd.f32 %v1565_v21, %v1405_v46  ;;  %v3084_v46 = vld [vmem:[#allocation8] sm:$0xf] }
 0x215   : > { %v1408_v30 = vpop.f32.mrf.mxu0 }
 0x216   : > { %v1569_v25 = vpop.f32.mrf.mxu1  ;;  %v1409_v18 = vadd.f32 %v1408_v30, %v3740_v53 }
 0x217   : > { %v1410_v55 = vpop.f32.mrf.mxu0 }
 0x218   : > { %v1571_v45 = vpop.f32.mrf.mxu1  ;;  %v3930_v61 = vadd.f32 %v1569_v25, %v1409_v18  ;;  %v1411_v2 = vadd.f32 %v1410_v55, %v3745_v8  ;;  %v3957_v25 = vrot.slane %v3084_v46, %v942_v4 }
 0x21a   : > { %v3933_v48 = vadd.f32 %v1571_v45, %v1411_v2 }
 0x21b   : > { %v1414_v7 = vpop.f32.mrf.mxu0 }
 0x21c   : > { %4342 = vst [vmem:[#allocation18_spill] sm:$0xff] %v3933_v48  ;;  %v1575_v57 = vpop.f32.mrf.mxu1  ;;  %v1415_v1 = vadd.f32 %v1414_v7, %v3750_v35  ;;  %v938_v35 = vsub.s32 2, %v3587_v54 }
 0x21d   : > { %v1416_v3 = vpop.f32.mrf.mxu0 }
 0x21e   : > { %v1577_v28 = vpop.f32.mrf.mxu1  ;;  %v3936_v6 = vadd.f32 %v1575_v57, %v1415_v1  ;;  %v1417_v10 = vadd.f32 %v1416_v3, %v3755_v56  ;;  %v3953_v30 = vrot.slane %v3084_v46, %v938_v35 }
 0x220   : > { %4343 = vst [vmem:[#allocation19_spill] sm:$0xff] %v3936_v6  ;;  %v3939_v22 = vadd.f32 %v1577_v28, %v1417_v10 }
 0x221   : > { %v1420_v53 = vpop.f32.mrf.mxu0 }
 0x222   : > { %4344 = vst [vmem:[#allocation20_spill] sm:$0xff] %v3939_v22  ;;  %v1581_v52 = vpop.f32.mrf.mxu1  ;;  %v1421_v19 = vadd.f32 %v1420_v53, %v3760_v31 }
 0x223   : > { %v1422_v36 = vpop.f32.mrf.mxu0 }
 0x224   : > { %v1583_v8 = vpop.f32.mrf.mxu1  ;;  %v3942_v20 = vadd.f32 %v1581_v52, %v1421_v19  ;;  %v1423_v27 = vadd.f32 %v1422_v36, %v3765_v51 }
 0x226   : > { %4345 = vst [vmem:[#allocation21_spill] sm:$0xff] %v3942_v20  ;;  %v3945_v24 = vadd.f32 %v1583_v8, %v1423_v27 }
 0x227   : > { %v1426_v43 = vpop.f32.mrf.mxu0 }
 0x228   : > { %4346 = vst [vmem:[#allocation22_spill] sm:$0xff] %v3945_v24  ;;  %v1587_v5 = vpop.f32.mrf.mxu1  ;;  %v1427_v56 = vadd.f32 %v1426_v43, %v3772_v29 }
 0x229   : > { %v1428_v59 = vpop.f32.mrf.mxu0 }
 0x22a   : > { %v1589_v33 = vpop.f32.mrf.mxu1  ;;  %v3950_v21 = vadd.f32 %v1587_v5, %v1427_v56  ;;  %v1429_v31 = vadd.f32 %v1428_v59, %v3777_v34 }
 0x22c   : > { %4347 = vst [vmem:[#allocation23_spill] sm:$0xff] %v3950_v21  ;;  %v3955_v51 = vadd.f32 %v1589_v33, %v1429_v31 }
 0x22d   : > { %v1658_v18 = vpop.f32.mrf.mxu0 }
 0x22e   : > { %4348 = vst [vmem:[#allocation24_spill] sm:$0xff] %v3955_v51  ;;  %v1819_v55 = vpop.f32.mrf.mxu1  ;;  %v1659_v45 = vadd.f32 %v1658_v18, %v3953_v30 }
 0x22f   : > { %v1660_v29 = vpop.f32.mrf.mxu0 }
 0x230   : > { %v1821_v2 = vpop.f32.mrf.mxu1  ;;  %v3960_v7 = vadd.f32 %v1819_v55, %v1659_v45  ;;  %v1661_v57 = vadd.f32 %v1660_v29, %v3957_v25 }
 0x232   : > { %v3963_v1 = vadd.f32 %v1821_v2, %v1661_v57 }
 0x233   : > { %v1664_v34 = vpop.f32.mrf.mxu0 }
 0x234   : > { %v1825_v3 = vpop.f32.mrf.mxu1  ;;  %v1665_v28 = vadd.f32 %v1664_v34, %v3953_v30 }
 0x235   : > { %v1666_v10 = vpop.f32.mrf.mxu0 }
 0x236   : > { %v1827_v53 = vpop.f32.mrf.mxu1  ;;  %v3966_v52 = vadd.f32 %v1825_v3, %v1665_v28  ;;  %v1667_v19 = vadd.f32 %v1666_v10, %v3957_v25 }
 0x238   : > { %v3969_v36 = vadd.f32 %v1827_v53, %v1667_v19 }
 0x239   : > { %v1670_v8 = vpop.f32.mrf.mxu0 }
 0x23a   : > { %v1831_v27 = vpop.f32.mrf.mxu1  ;;  %v1671_v35 = vadd.f32 %v1670_v8, %v3953_v30 }
 0x23b   : > { %v1672_v43 = vpop.f32.mrf.mxu0 }
 0x23c   : > { %v1833_v5 = vpop.f32.mrf.mxu1  ;;  %v3972_v56 = vadd.f32 %v1831_v27, %v1671_v35  ;;  %v1673_v4 = vadd.f32 %v1672_v43, %v3957_v25 }
 0x23e   : > { %v3975_v59 = vadd.f32 %v1833_v5, %v1673_v4 }
 0x23f   : > { %v1676_v33 = vpop.f32.mrf.mxu0 }
 0x240   : > { %v1837_v31 = vpop.f32.mrf.mxu1  ;;  %v1677_v46 = vadd.f32 %v1676_v33, %v3953_v30 }
 0x241   : > { %v1678_v18 = vpop.f32.mrf.mxu0 }
 0x242   : > { %v1839_v55 = vpop.f32.mrf.mxu1  ;;  %v3978_v45 = vadd.f32 %v1837_v31, %v1677_v46  ;;  %v1679_v29 = vadd.f32 %v1678_v18, %v3957_v25 }
 0x244   : > { %v3981_v2 = vadd.f32 %v1839_v55, %v1679_v29 }
 0x245   : > { %v1682_v57 = vpop.f32.mrf.mxu0 }
 0x246   : > { %v1843_v34 = vpop.f32.mrf.mxu1  ;;  %v1683_v3 = vadd.f32 %v1682_v57, %v3953_v30 }
 0x247   : > { %v1684_v28 = vpop.f32.mrf.mxu0 }
 0x248   : > { %v1845_v10 = vpop.f32.mrf.mxu1  ;;  %v3984_v53 = vadd.f32 %v1843_v34, %v1683_v3  ;;  %v1685_v19 = vadd.f32 %v1684_v28, %v3957_v25 }
 0x24a   : > { %v3987_v8 = vadd.f32 %v1845_v10, %v1685_v19 }
 0x24b   : > { %v1688_v27 = vpop.f32.mrf.mxu0 }
 0x24c   : > { %v1849_v35 = vpop.f32.mrf.mxu1  ;;  %v1689_v43 = vadd.f32 %v1688_v27, %v3953_v30 }
 0x24d   : > { %v1690_v5 = vpop.f32.mrf.mxu0 }
 0x24e   : > { %v1851_v4 = vpop.f32.mrf.mxu1  ;;  %v3990_v33 = vadd.f32 %v1849_v35, %v1689_v43  ;;  %v1691_v31 = vadd.f32 %v1690_v5, %v3957_v25 }
 0x250   : > { %v3993_v46 = vadd.f32 %v1851_v4, %v1691_v31 }
 0x251   : > { %v1694_v18 = vpop.f32.mrf.mxu0 }
 0x252   : > { %v1855_v55 = vpop.f32.mrf.mxu1  ;;  %v1695_v29 = vadd.f32 %v1694_v18, %v3953_v30 }
 0x253   : > { %v1696_v57 = vpop.f32.mrf.mxu0 }
 0x254   : > { %v1857_v34 = vpop.f32.mrf.mxu1  ;;  %v3996_v3 = vadd.f32 %v1855_v55, %v1695_v29  ;;  %v1697_v28 = vadd.f32 %v1696_v57, %v3957_v25 }
 0x256   : > { %v3999_v10 = vadd.f32 %v1857_v34, %v1697_v28 }
 0x257   : > { %v1700_v19 = vpop.f32.mrf.mxu0 }
 0x258   : > { %v1861_v27 = vpop.f32.mrf.mxu1  ;;  %v1701_v35 = vadd.f32 %v1700_v19, %v3953_v30 }
 0x259   : > { %v1702_v43 = vpop.f32.mrf.mxu0 }
 0x25a   : > { %v1863_v5 = vpop.f32.mrf.mxu1  ;;  %v4002_v4 = vadd.f32 %v1861_v27, %v1701_v35  ;;  %v1703_v31 = vadd.f32 %v1702_v43, %v3957_v25 }
 0x25c   : > { %v4005_v14 = vadd.f32 %v1863_v5, %v1703_v31 }
 0x25d   : > { %v1706_v18 = vpop.f32.mrf.mxu0 }
 0x25e   : > { %v1867_v63 = vpop.f32.mrf.mxu1  ;;  %v1707_v55 = vadd.f32 %v1706_v18, %v3953_v30 }
 0x25f   : > { %v1708_v29 = vpop.f32.mrf.mxu0 }
 0x260   : > { %v1869_v57 = vpop.f32.mrf.mxu1  ;;  %v4008_v34 = vadd.f32 %v1867_v63, %v1707_v55  ;;  %v1709_v28 = vadd.f32 %v1708_v29, %v3957_v25 }
 0x262   : > { %v4011_v21 = vadd.f32 %v1869_v57, %v1709_v28 }
 0x263   : > { %v1712_v19 = vpop.f32.mrf.mxu0 }
 0x264   : > { %v1873_v51 = vpop.f32.mrf.mxu1  ;;  %v1713_v27 = vadd.f32 %v1712_v19, %v3953_v30 }
 0x265   : > { %v1714_v35 = vpop.f32.mrf.mxu0 }
 0x266   : > { %v1875_v43 = vpop.f32.mrf.mxu1  ;;  %v4014_v5 = vadd.f32 %v1873_v51, %v1713_v27  ;;  %v1715_v31 = vadd.f32 %v1714_v35, %v3957_v25 }
 0x268   : > { %v4017_v24 = vadd.f32 %v1875_v43, %v1715_v31 }
 0x269   : > { %v1718_v18 = vpop.f32.mrf.mxu0 }
 0x26a   : > { %v1879_v20 = vpop.f32.mrf.mxu1  ;;  %v1719_v63 = vadd.f32 %v1718_v18, %v3953_v30 }
 0x26b   : > { %v1720_v55 = vpop.f32.mrf.mxu0 }
 0x26c   : > { %v1881_v29 = vpop.f32.mrf.mxu1  ;;  %v4020_v57 = vadd.f32 %v1879_v20, %v1719_v63  ;;  %v1721_v28 = vadd.f32 %v1720_v55, %v3957_v25 }
 0x26e   : > { %4349 = vst [vmem:[#allocation25_spill] sm:$0xff] %v4020_v57  ;;  %v4023_v22 = vadd.f32 %v1881_v29, %v1721_v28 }
 0x26f   : > { %v1724_v19 = vpop.f32.mrf.mxu0 }
 0x270   : > { %4350 = vst [vmem:[#allocation26_spill] sm:$0xff] %v4023_v22  ;;  %v1885_v6 = vpop.f32.mrf.mxu1  ;;  %v1725_v51 = vadd.f32 %v1724_v19, %v3953_v30 }
 0x271   : > { %v1726_v27 = vpop.f32.mrf.mxu0 }
 0x272   : > { %v1887_v35 = vpop.f32.mrf.mxu1  ;;  %v4026_v43 = vadd.f32 %v1885_v6, %v1725_v51  ;;  %v1727_v31 = vadd.f32 %v1726_v27, %v3957_v25 }
 0x274   : > { %4351 = vst [vmem:[#allocation27_spill] sm:$0xff] %v4026_v43  ;;  %v4029_v48 = vadd.f32 %v1887_v35, %v1727_v31 }
 0x275   : > { %v1730_v18 = vpop.f32.mrf.mxu0 }
 0x276   : > { %4352 = vst [vmem:[#allocation28_spill] sm:$0xff] %v4029_v48  ;;  %v1891_v54 = vpop.f32.mrf.mxu1  ;;  %v1731_v20 = vadd.f32 %v1730_v18, %v3953_v30 }
 0x277   : > { %v1732_v63 = vpop.f32.mrf.mxu0 }
 0x278   : > { %v1893_v55 = vpop.f32.mrf.mxu1  ;;  %v4032_v29 = vadd.f32 %v1891_v54, %v1731_v20  ;;  %v1733_v28 = vadd.f32 %v1732_v63, %v3957_v25 }
 0x27a   : > { %v4035_v22 = vadd.f32 %v1893_v55, %v1733_v28 }
 0x27b   : > { %v1736_v19 = vpop.f32.mrf.mxu0 }
 0x27c   : > { %v1897_v57 = vpop.f32.mrf.mxu1  ;;  %v1737_v6 = vadd.f32 %v1736_v19, %v3953_v30 }
 0x27d   : > { %v1738_v51 = vpop.f32.mrf.mxu0 }
 0x27e   : > { %v1899_v27 = vpop.f32.mrf.mxu1  ;;  %v4038_v35 = vadd.f32 %v1897_v57, %v1737_v6  ;;  %v1739_v31 = vadd.f32 %v1738_v51, %v3957_v25 }
 0x280   : > { %v4041_v48 = vadd.f32 %v1899_v27, %v1739_v31 }
 0x281   : > { %v1742_v18 = vpop.f32.mrf.mxu0 }
 0x282   : > { %v1903_v43 = vpop.f32.mrf.mxu1  ;;  %v1743_v54 = vadd.f32 %v1742_v18, %v3953_v30 }
 0x283   : > { %v1744_v20 = vpop.f32.mrf.mxu0 }
 0x284   : > { %v1905_v63 = vpop.f32.mrf.mxu1  ;;  %v4046_v55 = vadd.f32 %v1903_v43, %v1743_v54  ;;  %v1745_v28 = vadd.f32 %v1744_v20, %v3957_v25  ;;  %v4071_v43 = vpop.eup %2764  ;;  %2796 = vtanh.f32 %v3897_v44 }
 0x285   : > { %v4075_v38 = vpop.eup %2766  ;;  %2798 = vtanh.f32 %v3903_v47 }
 0x286   : > { %v4051_v57 = vadd.f32 %v1905_v63, %v1745_v28  ;;  %v4078_v0 = vpop.eup %2768 }
 0x287   : > { %v4054_v19 = vpop.f32.mrf.mxu0  ;;  %v4082_v31 = vpop.eup %2770 }
 0x288   : > { %v4056_v6 = vpop.f32.mrf.mxu1  ;;  %v4085_v18 = vpop.eup %2772 }
 0x289   : > { %v4060_v9 = vpop.f32.mrf.mxu0  ;;  %v4088_v28 = vpop.eup %2774 }
 0x28a   : > { %v4062_v23 = vpop.f32.mrf.mxu1 }
 0x28d   : > { %v1980_v40 = vpop.f32.mrf.mxu0 }
 0x28e   : > { %v2141_v41 = vpop.f32.mrf.mxu1  ;;  %v1981_v32 = vadd.f32 %v1980_v40, %v3960_v7 }
 0x28f   : > { %v1982_v60 = vpop.f32.mrf.mxu0 }
 0x290   : > { %v2143_v16 = vpop.f32.mrf.mxu1  ;;  %v2142_v17 = vadd.f32 %v2141_v41, %v1981_v32  ;;  %v1983_v42 = vadd.f32 %v1982_v60, %v3963_v1 }
 0x291   : > { %v1986_v62 = vpop.f32.mrf.mxu0 }
 0x292   : > { %v2147_v51 = vpop.f32.mrf.mxu1  ;;  %v2268_v37 = vsub.f32 0.0, %v2142_v17  ;;  %v2144_v7 = vadd.f32 %v2143_v16, %v1983_v42  ;;  %v1987_v27 = vadd.f32 %v1986_v62, %v3966_v52  ;;  %v4091_v52 = vpop.eup %2776 }
 0x293   : > { %v1988_v26 = vpop.f32.mrf.mxu0  ;;  %v4093_v60 = vpop.eup %2778 }
 0x294   : > { %v2149_v1 = vpop.f32.mrf.mxu1  ;;  %v2300_v54 = vmul.f32 1.442695, %v2268_v37  ;;  %v2269_v49 = vsub.f32 0.0, %v2144_v7  ;;  %v2148_v20 = vadd.f32 %v2147_v51, %v1987_v27  ;;  %v1989_v63 = vadd.f32 %v1988_v26, %v3969_v36  ;;  %v4097_v42 = vpop.eup %2780 }
 0x295   : > { %v1992_v50 = vpop.f32.mrf.mxu0  ;;  %v4100_v37 = vpop.eup %2782 }
 0x296   : > { %v2153_v40 = vpop.f32.mrf.mxu1  ;;  %2800 = vpow2.f32 %v2300_v54  ;;  %v2302_v41 = vmul.f32 1.442695, %v2269_v49  ;;  %v2270_v44 = vsub.f32 0.0, %v2148_v20  ;;  %v2150_v32 = vadd.f32 %v2149_v1, %v1989_v63  ;;  %v4103_v1 = vpop.eup %2784 }
 0x297   : > { %2802 = vtanh.f32 %v3910_v58  ;;  %v1993_v16 = vadd.f32 %v1992_v50, %v3972_v56  ;;  %v1994_v17 = vpop.f32.mrf.mxu0  ;;  %v4106_v49 = vpop.eup %2786 }
 0x298   : > { %v2155_v36 = vpop.f32.mrf.mxu1  ;;  %2804 = vpow2.f32 %v2302_v41  ;;  %v2304_v47 = vmul.f32 1.442695, %v2270_v44  ;;  %v2271_v62 = vsub.f32 0.0, %v2150_v32  ;;  %v1995_v51 = vadd.f32 %v1994_v17, %v3975_v59  ;;  %v4109_v50 = vpop.eup %2788 }
 0x299   : > { %2806 = vtanh.f32 %v3913_v11  ;;  %v2154_v7 = vadd.f32 %v2153_v40, %v1993_v16  ;;  %v1998_v27 = vpop.f32.mrf.mxu0  ;;  %v4112_v44 = vpop.eup %2790 }
 0x29a   : > { %v2159_v26 = vpop.f32.mrf.mxu1  ;;  %2808 = vpow2.f32 %v2304_v47  ;;  %v2306_v58 = vmul.f32 1.442695, %v2271_v62  ;;  %v2156_v56 = vadd.f32 %v2155_v36, %v1995_v51  ;;  %v1999_v54 = vadd.f32 %v1998_v27, %v3978_v45  ;;  %v4115_v17 = vpop.eup %2792 }
 0x29b   : > { %2810 = vtanh.f32 %v3918_v12  ;;  %v2272_v20 = vsub.f32 0.0, %v2154_v7  ;;  %v2000_v59 = vpop.f32.mrf.mxu0  ;;  %v4118_v51 = vpop.eup %2794 }
 0x29c   : > { %v2161_v63 = vpop.f32.mrf.mxu1  ;;  %2812 = vpow2.f32 %v2306_v58  ;;  %v2273_v11 = vsub.f32 0.0, %v2156_v56  ;;  %v2160_v40 = vadd.f32 %v2159_v26, %v1999_v54  ;;  %v2001_v41 = vadd.f32 %v2000_v59, %v3981_v2  ;;  %v4120_v2 = vpop.eup %2796 }
 0x29d   : > { %2814 = vtanh.f32 %v3921_v39  ;;  %v2308_v32 = vmul.f32 1.442695, %v2272_v20  ;;  %v2004_v45 = vpop.f32.mrf.mxu0  ;;  %v4124_v59 = vpop.eup %2798 }
 0x29e   : > { %v2165_v16 = vpop.f32.mrf.mxu1  ;;  %v2310_v12 = vmul.f32 1.442695, %v2273_v11  ;;  %v2274_v36 = vsub.f32 0.0, %v2160_v40  ;;  %v2162_v47 = vadd.f32 %v2161_v63, %v2001_v41  ;;  %v2005_v62 = vadd.f32 %v2004_v45, %v3984_v53 }
 0x29f   : > { %2816 = vpow2.f32 %v2308_v32  ;;  %v2006_v7 = vpop.f32.mrf.mxu0 }
 0x2a0   : > { %v2167_v27 = vpop.f32.mrf.mxu1  ;;  %2818 = vpow2.f32 %v2310_v12  ;;  %v2312_v26 = vmul.f32 1.442695, %v2274_v36  ;;  %v2275_v39 = vsub.f32 0.0, %v2162_v47  ;;  %v2166_v58 = vadd.f32 %v2165_v16, %v2005_v62 }
 0x2a1   : > { %2820 = vtanh.f32 %v3924_v15  ;;  %v2007_v56 = vadd.f32 %v2006_v7, %v3987_v8  ;;  %v2010_v54 = vpop.f32.mrf.mxu0 }
 0x2a2   : > { %v2171_v20 = vpop.f32.mrf.mxu1  ;;  %2822 = vpow2.f32 %v2312_v26  ;;  %v2314_v53 = vmul.f32 1.442695, %v2275_v39  ;;  %v2276_v63 = vsub.f32 0.0, %v2166_v58  ;;  %v2011_v11 = vadd.f32 %v2010_v54, %v3990_v33 }
 0x2a3   : > { %v2801_v40 = vpop.eup %2800  ;;  %2824 = vtanh.f32 %v3927_v13  ;;  %v2168_v41 = vadd.f32 %v2167_v27, %v2007_v56  ;;  %v2012_v32 = vpop.f32.mrf.mxu0 }
 0x2a4   : > { %v2173_v45 = vpop.f32.mrf.mxu1  ;;  %v4128_v16 = vpop.eup %2802  ;;  %v2364_v15 = vadd.f32 1.0, %v2801_v40  ;;  %2826 = vpow2.f32 %v2314_v53  ;;  %v2316_v8 = vmul.f32 1.442695, %v2276_v63  ;;  %v2172_v12 = vadd.f32 %v2171_v20, %v2011_v11 }
 0x2a5   : > { %v2805_v36 = vpop.eup %2804  ;;  %2828 = vtanh.f32 %v3930_v61  ;;  %v2277_v47 = vsub.f32 0.0, %v2168_v41  ;;  %v2013_v62 = vadd.f32 %v2012_v32, %v3993_v46  ;;  %v2016_v7 = vpop.f32.mrf.mxu0 }
 0x2a6   : > { %v2177_v33 = vpop.f32.mrf.mxu1  ;;  %v4132_v26 = vpop.eup %2806  ;;  %2830 = vrcp.f32 %v2364_v15  ;;  %v2365_v13 = vadd.f32 1.0, %v2805_v36  ;;  %v2278_v27 = vsub.f32 0.0, %v2172_v12  ;;  %v2017_v39 = vadd.f32 %v2016_v7, %v3996_v3 }
 0x2a7   : > { %v2809_v58 = vpop.eup %2808  ;;  %2832 = vpow2.f32 %v2316_v8  ;;  %v2318_v56 = vmul.f32 1.442695, %v2277_v47  ;;  %v2174_v54 = vadd.f32 %v2173_v45, %v2013_v62  ;;  %v2018_v20 = vpop.f32.mrf.mxu0 }
 0x2a8   : > { %v2179_v53 = vpop.f32.mrf.mxu1  ;;  %v4135_v63 = vpop.eup %2810  ;;  %2834 = vrcp.f32 %v2365_v13  ;;  %v2366_v61 = vadd.f32 1.0, %v2809_v58  ;;  %v2320_v46 = vmul.f32 1.442695, %v2278_v27  ;;  %v2178_v11 = vadd.f32 %v2177_v33, %v2017_v39 }
 0x2a9   : > { %v2813_v40 = vpop.eup %2812  ;;  %2836 = vpow2.f32 %v2318_v56  ;;  %v2279_v41 = vsub.f32 0.0, %v2174_v54  ;;  %v2019_v32 = vadd.f32 %v2018_v20, %v3999_v10  ;;  %v2022_v15 = vpop.f32.mrf.mxu0  ;;  %v1749_v56 = vadd.f32 %v4054_v19, %v3953_v30 }
 0x2aa   : > { %v2183_v12 = vpop.f32.mrf.mxu1  ;;  %v4138_v3 = vpop.eup %2814  ;;  %2838 = vrcp.f32 %v2366_v61  ;;  %v2367_v8 = vadd.f32 1.0, %v2813_v40  ;;  %v2280_v45 = vsub.f32 0.0, %v2178_v11  ;;  %v2023_v36 = vadd.f32 %v2022_v15, %v4002_v4 }
 0x2ab   : > { %2840 = vpow2.f32 %v2320_v46  ;;  %v2322_v47 = vmul.f32 1.442695, %v2279_v41  ;;  %v2180_v62 = vadd.f32 %v2179_v53, %v2019_v32  ;;  %v2024_v7 = vpop.f32.mrf.mxu0 }
 0x2ac   : > { %v2185_v13 = vpop.f32.mrf.mxu1  ;;  %v2817_v33 = vpop.eup %2816  ;;  %2842 = vrcp.f32 %v2367_v8  ;;  %v2324_v27 = vmul.f32 1.442695, %v2280_v45  ;;  %v2184_v39 = vadd.f32 %v2183_v12, %v2023_v36  ;;  %v2025_v10 = vadd.f32 %v2024_v7, %v4005_v14 }
 0x2ad   : > { %v2819_v58 = vpop.eup %2818  ;;  %v2368_v54 = vadd.f32 1.0, %v2817_v33  ;;  %2844 = vpow2.f32 %v2322_v47  ;;  %v2281_v20 = vsub.f32 0.0, %v2180_v62  ;;  %v2028_v61 = vpop.f32.mrf.mxu0  ;;  %v4150_v47 = vadd.f32 %v4056_v6, %v1749_v56 }
 0x2ae   : > { %v2189_v4 = vpop.f32.mrf.mxu1  ;;  %v4144_v46 = vpop.eup %2820  ;;  %v2369_v53 = vadd.f32 1.0, %v2819_v58  ;;  %2846 = vpow2.f32 %v2324_v27  ;;  %v2282_v11 = vsub.f32 0.0, %v2184_v39  ;;  %v2186_v40 = vadd.f32 %v2185_v13, %v2025_v10 }
 0x2af   : > { %v2823_v41 = vpop.eup %2822  ;;  %2848 = vrcp.f32 %v2368_v54  ;;  %v2326_v32 = vmul.f32 1.442695, %v2281_v20  ;;  %v2029_v14 = vadd.f32 %v2028_v61, %v4008_v34  ;;  %v2030_v15 = vpop.f32.mrf.mxu0  ;;  %v1751_v54 = vadd.f32 %v4060_v9, %v3957_v25 }
 0x2b0   : > { %v2191_v12 = vpop.f32.mrf.mxu1  ;;  %v4147_v8 = vpop.eup %2824  ;;  %2850 = vrcp.f32 %v2369_v53  ;;  %v2370_v30 = vadd.f32 1.0, %v2823_v41  ;;  %v2328_v19 = vmul.f32 1.442695, %v2282_v11  ;;  %v2283_v45 = vsub.f32 0.0, %v2186_v40 }
 0x2b1   : > { %v2827_v36 = vpop.eup %2826  ;;  %2852 = vpow2.f32 %v2326_v32  ;;  %v2190_v62 = vadd.f32 %v2189_v4, %v2029_v14  ;;  %v2031_v7 = vadd.f32 %v2030_v15, %v4011_v21  ;;  %v2034_v13 = vpop.f32.mrf.mxu0 }
 0x2b2   : > { %v2195_v33 = vpop.f32.mrf.mxu1  ;;  %v4153_v27 = vpop.eup %2828  ;;  %2854 = vrcp.f32 %v2370_v30  ;;  %v2371_v34 = vadd.f32 1.0, %v2827_v36  ;;  %v2330_v39 = vmul.f32 1.442695, %v2283_v45  ;;  %v2035_v10 = vadd.f32 %v2034_v13, %v4014_v5  ;;  %v4353_v30 = vld [vmem:[#allocation25_spill] sm:$0xff] }
 0x2b3   : > { %v2831_v58 = vpop.eup %2830  ;;  %2856 = vpow2.f32 %v2328_v19  ;;  %v2284_v6 = vsub.f32 0.0, %v2190_v62  ;;  %v2192_v56 = vadd.f32 %v2191_v12, %v2031_v7  ;;  %v2036_v20 = vpop.f32.mrf.mxu0 }
 0x2b4   : > { %v2197_v61 = vpop.f32.mrf.mxu1  ;;  %v2833_v4 = vpop.eup %2832  ;;  %2858 = vrcp.f32 %v2371_v34  ;;  %v2196_v21 = vadd.f32 %v2195_v33, %v2035_v10  ;;  %v2037_v53 = vadd.f32 %v2036_v20, %v4017_v24  ;;  %v4160_v11 = vmul.f32 %v2831_v58, %v4071_v43 }
 0x2b5   : > { %v2835_v40 = vpop.eup %2834  ;;  %v2372_v41 = vadd.f32 1.0, %v2833_v4  ;;  %2860 = vpow2.f32 %v2330_v39  ;;  %v2332_v5 = vmul.f32 1.442695, %v2284_v6  ;;  %v2285_v32 = vsub.f32 0.0, %v2192_v56  ;;  %v2040_v14 = vpop.f32.mrf.mxu0  ;;  %v4354_v56 = vld [vmem:[#allocation26_spill] sm:$0xff] }
 0x2b6   : > { %v2201_v25 = vpop.f32.mrf.mxu1  ;;  %v2837_v9 = vpop.eup %2836  ;;  %v2286_v15 = vsub.f32 0.0, %v2196_v21  ;;  %v2198_v12 = vadd.f32 %v2197_v61, %v2037_v53  ;;  %v2041_v19 = vadd.f32 %v2040_v14, %v4353_v30  ;;  %v4164_v45 = vmul.f32 %v2835_v40, %v4075_v38  ;;  %v4355_v53 = vld [vmem:[#allocation27_spill] sm:$0xff] }
 0x2b7   : > { %v2839_v36 = vpop.eup %2838  ;;  %v4167_v24 = vadd.f32 %v4062_v23, %v1751_v54  ;;  %2862 = vrcp.f32 %v2372_v41  ;;  %v2373_v43 = vadd.f32 1.0, %v2837_v9  ;;  %v2334_v62 = vmul.f32 1.442695, %v2285_v32  ;;  %v2042_v7 = vpop.f32.mrf.mxu0 }
 0x2b8   : > { %v2203_v13 = vpop.f32.mrf.mxu1  ;;  %v2841_v33 = vpop.eup %2840  ;;  %2864 = vpow2.f32 %v2332_v5  ;;  %v2336_v34 = vmul.f32 1.442695, %v2286_v15  ;;  %v2287_v39 = vsub.f32 0.0, %v2198_v12  ;;  %v2202_v10 = vadd.f32 %v2201_v25, %v2041_v19 }
 0x2b9   : > { %v2843_v58 = vpop.eup %2842  ;;  %2866 = vrcp.f32 %v2373_v43  ;;  %v2374_v6 = vadd.f32 1.0, %v2841_v33  ;;  %v2043_v38 = vadd.f32 %v2042_v7, %v4354_v56  ;;  %v2046_v20 = vpop.f32.mrf.mxu0  ;;  %v4171_v23 = vmul.f32 %v2839_v36, %v4078_v0  ;;  %v4356_v43 = vld [vmem:[#allocation28_spill] sm:$0xff] }
 0x2ba   : > { %v2207_v61 = vpop.f32.mrf.mxu1  ;;  %v2845_v54 = vpop.eup %2844  ;;  %2868 = vpow2.f32 %v2334_v62  ;;  %v2338_v4 = vmul.f32 1.442695, %v2287_v39  ;;  %v2288_v21 = vsub.f32 0.0, %v2202_v10  ;;  %v2047_v40 = vadd.f32 %v2046_v20, %v4355_v53 }
 0x2bb   : > { %v2847_v41 = vpop.eup %2846  ;;  %2870 = vrcp.f32 %v2374_v6  ;;  %v2375_v5 = vadd.f32 1.0, %v2845_v54  ;;  %v2204_v32 = vadd.f32 %v2203_v13, %v2043_v38  ;;  %v2048_v14 = vpop.f32.mrf.mxu0  ;;  %v4175_v9 = vmul.f32 %v2843_v58, %v4082_v31 }
 0x2bc   : > { %v2209_v25 = vpop.f32.mrf.mxu1  ;;  %v2849_v15 = vpop.eup %2848  ;;  %v2376_v12 = vadd.f32 1.0, %v2847_v41  ;;  %2872 = vpow2.f32 %v2336_v34  ;;  %v2340_v0 = vmul.f32 1.442695, %v2288_v21  ;;  %v2208_v30 = vadd.f32 %v2207_v61, %v2047_v40 }
 0x2bd   : > { %v2851_v19 = vpop.eup %2850  ;;  %2874 = vrcp.f32 %v2375_v5  ;;  %v2289_v36 = vsub.f32 0.0, %v2204_v32  ;;  %v2049_v62 = vadd.f32 %v2048_v14, %v4356_v43  ;;  %v2052_v7 = vpop.f32.mrf.mxu0  ;;  %v4179_v39 = vmul.f32 %v2849_v15, %v4085_v18 }
 0x2be   : > { %v2213_v33 = vpop.f32.mrf.mxu1  ;;  %v2853_v13 = vpop.eup %2852  ;;  %2876 = vrcp.f32 %v2376_v12  ;;  %v2290_v10 = vsub.f32 0.0, %v2208_v30  ;;  %v2053_v31 = vadd.f32 %v2052_v7, %v4032_v29  ;;  %v4183_v58 = vmul.f32 %v2851_v19, %v4088_v28  ;;  %v4190_v12 = vld [vmem:[#allocation9] sm:$0x3] }
 0x2bf   : > { %v2855_v34 = vpop.eup %2854  ;;  %v2377_v6 = vadd.f32 1.0, %v2853_v13  ;;  %2878 = vpow2.f32 %v2338_v4  ;;  %v2342_v56 = vmul.f32 1.442695, %v2289_v36  ;;  %v2210_v38 = vadd.f32 %v2209_v25, %v2049_v62  ;;  %v2054_v20 = vpop.f32.mrf.mxu0 }
 0x2c0   : > { %v2215_v61 = vpop.f32.mrf.mxu1  ;;  %v2857_v54 = vpop.eup %2856  ;;  %2880 = vpow2.f32 %v2340_v0  ;;  %v2344_v21 = vmul.f32 1.442695, %v2290_v10  ;;  %v2214_v18 = vadd.f32 %v2213_v33, %v2053_v31  ;;  %v2055_v53 = vadd.f32 %v2054_v20, %v4035_v22 }
 0x2c1   : > { %v2859_v40 = vpop.eup %2858  ;;  %2882 = vrcp.f32 %v2377_v6  ;;  %v2378_v41 = vadd.f32 1.0, %v2857_v54  ;;  %v2291_v29 = vsub.f32 0.0, %v2210_v38  ;;  %v2058_v5 = vpop.f32.mrf.mxu0  ;;  %v4187_v32 = vmul.f32 %v2855_v34, %v4091_v52  ;;  %v4357_v34 = vld [vmem:[#allocation16_spill] sm:$0xff] }
 0x2c2   : > { %v2219_v28 = vpop.f32.mrf.mxu1  ;;  %v2861_v4 = vpop.eup %2860  ;;  %2884 = vpow2.f32 %v2342_v56  ;;  %v2292_v14 = vsub.f32 0.0, %v2214_v18  ;;  %v2216_v25 = vadd.f32 %v2215_v61, %v2055_v53  ;;  %v2059_v15 = vadd.f32 %v2058_v5, %v4038_v35 }
 0x2c3   : > { %2886 = vrcp.f32 %v2378_v41  ;;  %v2379_v0 = vadd.f32 1.0, %v2861_v4  ;;  %v2346_v22 = vmul.f32 1.442695, %v2291_v29  ;;  %v2060_v30 = vpop.f32.mrf.mxu0  ;;  %v4193_v36 = vmul.f32 %v2859_v40, %v4093_v60 }
 0x2c4   : > { %v2221_v19 = vpop.f32.mrf.mxu1  ;;  %v2863_v43 = vpop.eup %2862  ;;  %2888 = vpow2.f32 %v2344_v21  ;;  %v2348_v52 = vmul.f32 1.442695, %v2292_v14  ;;  %v2293_v62 = vsub.f32 0.0, %v2216_v25  ;;  %v2220_v7 = vadd.f32 %v2219_v28, %v2059_v15 }
 0x2c5   : > { %v2865_v33 = vpop.eup %2864  ;;  %2890 = vrcp.f32 %v2379_v0  ;;  %v2061_v13 = vadd.f32 %v2060_v30, %v4041_v48  ;;  %v2064_v35 = vpop.f32.mrf.mxu0  ;;  %v4197_v31 = vmul.f32 %v2863_v43, %v4097_v42  ;;  %v4358_v6 = vsub.s32 1, %v4357_v34 }
 0x2c6   : > { %v2225_v10 = vpop.f32.mrf.mxu1  ;;  %v2867_v60 = vpop.eup %2866  ;;  %v2380_v38 = vadd.f32 1.0, %v2865_v33  ;;  %2892 = vpow2.f32 %v2346_v22  ;;  %v2350_v20 = vmul.f32 1.442695, %v2293_v62  ;;  %v2294_v61 = vsub.f32 0.0, %v2220_v7 }
 0x2c7   : > { %v2479_v56 = vrot.slane %v4190_v12, %v4358_v6  ;;  %v2869_v54 = vpop.eup %2868  ;;  %2894 = vpow2.f32 %v2348_v52  ;;  %v2222_v21 = vadd.f32 %v2221_v19, %v2061_v13  ;;  %v2065_v18 = vadd.f32 %v2064_v35, %v4046_v55  ;;  %v2066_v48 = vpop.f32.mrf.mxu0 }
 0x2c8   : > { %v2227_v53 = vpop.f32.mrf.mxu1  ;;  %v4204_v40 = vmul.f32 %v2867_v60, %v4100_v37  ;;  %v2871_v42 = vpop.eup %2870  ;;  %2896 = vrcp.f32 %v2380_v38  ;;  %v2381_v41 = vadd.f32 1.0, %v2869_v54  ;;  %v2352_v29 = vmul.f32 1.442695, %v2294_v61  ;;  %v4359_v60 = vld [vmem:[#allocation18_spill] sm:$0xff] }
 0x2c9   : > { %2546 = vmatprep.mubr.f32.mxu0 %v2479_v56  ;;  %v2067_v5 = vadd.f32 %v2066_v48, %v4051_v57  ;;  %v2873_v28 = vpop.eup %2872  ;;  %2898 = vpow2.f32 %v2350_v20  ;;  %v2295_v4 = vsub.f32 0.0, %v2222_v21  ;;  %v2226_v14 = vadd.f32 %v2225_v10, %v2065_v18  ;;  %v2070_v25 = vpop.f32.mrf.mxu0  ;;  %v2461_v61 = vld [vmem:[#allocation2] sm:$0x1] }
 0x2ca   : > { %v2231_v15 = vpop.f32.mrf.mxu1  ;;  %v4208_v55 = vmul.f32 %v2871_v42, %v4103_v1  ;;  %v2875_v0 = vpop.eup %2874  ;;  %2900 = vrcp.f32 %v2381_v41  ;;  %v2382_v37 = vadd.f32 1.0, %v2873_v28  ;;  %v2071_v30 = vadd.f32 %v2070_v25, %v4150_v47 }
 0x2cb   : > { %v2228_v22 = vadd.f32 %v2227_v53, %v2067_v5  ;;  %v2877_v19 = vpop.eup %2876  ;;  %2902 = vpow2.f32 %v2352_v29  ;;  %v2354_v43 = vmul.f32 1.442695, %v2295_v4  ;;  %v2296_v52 = vsub.f32 0.0, %v2226_v14  ;;  %v2072_v57 = vpop.f32.mrf.mxu0 }
 0x2cc   : > { %v4212_v62 = vmul.f32 %v2875_v0, %v4106_v49  ;;  %v2879_v7 = vpop.eup %2878  ;;  %2904 = vrcp.f32 %v2382_v37  ;;  %v2232_v13 = vadd.f32 %v2231_v15, %v2071_v30  ;;  %v2073_v1 = vadd.f32 %v2072_v57, %v4167_v24  ;;  %v2233_v6 = vpop.f32.mrf.mxu1 }
 0x2cd   : > { %v2297_v33 = vsub.f32 0.0, %v2228_v22  ;;  %v2881_v35 = vpop.eup %2880  ;;  %v2383_v10 = vadd.f32 1.0, %v2879_v7  ;;  %2906 = vpow2.f32 %v2354_v43  ;;  %v2356_v34 = vmul.f32 1.442695, %v2296_v52 }
 0x2ce   : > { %v4216_v47 = vmul.f32 %v2877_v19, %v4109_v50  ;;  %v2883_v56 = vpop.eup %2882  ;;  %2908 = vtanh.f32 %v4359_v60  ;;  %v2384_v38 = vadd.f32 1.0, %v2881_v35  ;;  %v2298_v49 = vsub.f32 0.0, %v2232_v13 }
 0x2cf   : > { %v2234_v20 = vadd.f32 %v2233_v6, %v2073_v1  ;;  %v2885_v54 = vpop.eup %2884  ;;  %2910 = vrcp.f32 %v2383_v10  ;;  %v2358_v21 = vmul.f32 1.442695, %v2297_v33  ;;  %v4220_v24 = vmul.f32 %v2883_v56, %v4112_v44  ;;  %v4360_v33 = vld [vmem:[#allocation19_spill] sm:$0xff]  ;;  %v4361_v10 = vld [vmem:[#allocation20_spill] sm:$0xff] }
 0x2d0   : > { %v2887_v18 = vpop.eup %2886  ;;  %2912 = vrcp.f32 %v2384_v38  ;;  %v2385_v48 = vadd.f32 1.0, %v2885_v54  ;;  %v3273_v42 = vmov 0   ;;  %v2360_v41 = vmul.f32 1.442695, %v2298_v49 }
 0x2d1   : > { %v2299_v53 = vsub.f32 0.0, %v2234_v20  ;;  %2763 = vset.pattern.permute.xlu0 %v3273_v42  ;;  %v2889_v50 = vpop.eup %2888  ;;  %2914 = vpow2.f32 %v2356_v34  ;;  %v4223_v29 = vmul.f32 %v2887_v18, %v4115_v17  ;;  %v4362_v20 = vld [vmem:[#allocation21_spill] sm:$0xff]  ;;  %v4363_v18 = vld [vmem:[#allocation22_spill] sm:$0xff] }
 0x2d2   : > { %2464 = vperm.xlu0 %2763, %v2461_v61   ;;  %v2891_v5 = vpop.eup %2890  ;;  %2916 = vrcp.f32 %v2385_v48  ;;  %v2386_v28 = vadd.f32 1.0, %v2889_v50 }
 0x2d3   : > { %v2893_v4 = vpop.eup %2892  ;;  %2918 = vpow2.f32 %v2358_v21  ;;  %v4226_v44 = vmul.f32 %v2891_v5, %v4118_v51  ;;  %v2362_v15 = vmul.f32 1.442695, %v2299_v53 }
 0x2d4   : > { %v2895_v14 = vpop.eup %2894  ;;  %2920 = vrcp.f32 %v2386_v28  ;;  %v2387_v25 = vadd.f32 1.0, %v2893_v4  ;;  %v4364_v28 = vld [vmem:[#allocation24_spill] sm:$0xff] }
 0x2d5   : > { %v2897_v0 = vpop.eup %2896  ;;  %v2388_v37 = vadd.f32 1.0, %v2895_v14  ;;  %2922 = vpow2.f32 %v2360_v41 }
 0x2d6   : > { %v2899_v22 = vpop.eup %2898  ;;  %2924 = vrcp.f32 %v2387_v25  ;;  %v4229_v17 = vmul.f32 %v2897_v0, %v4120_v2 }
 0x2d7   : > { %v2901_v30 = vpop.eup %2900  ;;  %2926 = vrcp.f32 %v2388_v37  ;;  %v2389_v19 = vadd.f32 1.0, %v2899_v22 }
 0x2d8   : > { %v2903_v43 = vpop.eup %2902  ;;  %2928 = vpow2.f32 %v2362_v15  ;;  %v4232_v51 = vmul.f32 %v2901_v30, %v4124_v59 }
 0x2d9   : > { %v2905_v52 = vpop.eup %2904  ;;  %2930 = vrcp.f32 %v2389_v19  ;;  %v2390_v57 = vadd.f32 1.0, %v2903_v43 }
 0x2da   : > { %v2907_v7 = vpop.eup %2906  ;;  %2932 = vtanh.f32 %v4360_v33  ;;  %v4236_v13 = vmul.f32 %v2905_v52, %v4128_v16 }
 0x2db   : > { %v2909_v1 = vpop.eup %2908  ;;  %2934 = vrcp.f32 %v2390_v57  ;;  %v2391_v2 = vadd.f32 1.0, %v2907_v7 }
 0x2dc   : > { %v2911_v35 = vpop.eup %2910  ;;  %2936 = vtanh.f32 %v4361_v10 }
 0x2dd   : > { %v2913_v34 = vpop.eup %2912  ;;  %2938 = vrcp.f32 %v2391_v2  ;;  %v2447_v59 = vmul.f32 %v2911_v35, %v4132_v26 }
 0x2de   : > { %v2915_v6 = vpop.eup %2914  ;;  %v2448_v56 = vmul.f32 %v2913_v34, %v4135_v63  ;;  %2940 = vtanh.f32 %v4362_v20 }
 0x2df   : > { %v2917_v60 = vpop.eup %2916  ;;  %v2392_v38 = vadd.f32 1.0, %v2915_v6 }
 0x2e0   : > { %v2919_v49 = vpop.eup %2918  ;;  %v2449_v16 = vmul.f32 %v2917_v60, %v4138_v3 }
 0x2e1   : > { %v2921_v61 = vpop.eup %2920  ;;  %2942 = vrcp.f32 %v2392_v38  ;;  %v2393_v54 = vadd.f32 1.0, %v2919_v49 }
 0x2e2   : > { %v2923_v21 = vpop.eup %2922  ;;  %2944 = vtanh.f32 %v4363_v18  ;;  %v2450_v48 = vmul.f32 %v2921_v61, %v4144_v46  ;;  %v4365_v46 = vld [vmem:[#allocation23_spill] sm:$0xff] }
 0x2e3   : > { %v2925_v53 = vpop.eup %2924  ;;  %2946 = vrcp.f32 %v2393_v54  ;;  %v2394_v26 = vadd.f32 1.0, %v2923_v21 }
 0x2e4   : > { %v2927_v42 = vpop.eup %2926  ;;  %v2451_v63 = vmul.f32 %v2925_v53, %v4147_v8  ;;  %2948 = vtanh.f32 %v4364_v28 }
 0x2e5   : > { %v2929_v50 = vpop.eup %2928  ;;  %v2452_v41 = vmul.f32 %v2927_v42, %v4153_v27  ;;  %2950 = vrcp.f32 %v2394_v26 }
 0x2e6   : > { %v2931_v5 = vpop.eup %2930  ;;  %v2395_v3 = vadd.f32 1.0, %v2929_v50 }
 0x2e7   : > { %v2933_v4 = vpop.eup %2932  ;;  %v2453_v14 = vmul.f32 %v2931_v5, %v2909_v1 }
 0x2e8   : > { %v2935_v25 = vpop.eup %2934  ;;  %2952 = vrcp.f32 %v2395_v3 }
 0x2e9   : > { %v2937_v15 = vpop.eup %2936  ;;  %2954 = vtanh.f32 %v4365_v46  ;;  %v2454_v0 = vmul.f32 %v2935_v25, %v2933_v4 }
 0x2ea   : > { %v2939_v37 = vpop.eup %2938 }
 0x2eb   : > { %v2455_v22 = vmul.f32 %v2939_v37, %v2937_v15  ;;  %v2941_v30 = vpop.eup %2940 }
 0x2ee   : > { %v2943_v8 = vpop.eup %2942 }
 0x2ef   : > { %v2945_v19 = vpop.eup %2944  ;;  %v2456_v43 = vmul.f32 %v2943_v8, %v2941_v30 }
 0x2f0   : > { %v2947_v27 = vpop.eup %2946 }
 0x2f1   : > { %v2457_v52 = vmul.f32 %v2947_v27, %v2945_v19  ;;  %v2949_v57 = vpop.eup %2948 }
 0x2f2   : > { %v2951_v7 = vpop.eup %2950 }
 0x2f5   : > { %v2953_v33 = vpop.eup %2952 }
 0x2f6   : > { %v2955_v2 = vpop.eup %2954  ;;  %v2459_v35 = vmul.f32 %v2953_v33, %v2949_v57 }
 0x2f7   : > { %v2458_v1 = vmul.f32 %v2955_v2, %v2951_v7 }
 0x2f8   : > { %2482 = vmatprep.subr.mxu0 %v2459_v35 }
 0x2f9   : > { %2483 = vmatpush1.xpose.msra.mxu0 %v2458_v1 }
 0x2fa   : > { %2484 = vmatprep.subr.mxu0 %v2457_v52 }
 0x2fd   : > { %2485 = vmatpush1.xpose.msra.mxu0 %v2456_v43 }
 0x2fe   : > { %2486 = vmatprep.subr.mxu0 %v2455_v22 }
 0x301   : > { %2487 = vmatpush1.xpose.msra.mxu0 %v2454_v0 }
 0x302   : > { %2488 = vmatprep.subr.mxu0 %v2453_v14 }
 0x305   : > { %2489 = vmatpush1.xpose.msra.mxu0 %v2452_v41 }
 0x306   : > { %2490 = vmatprep.subr.mxu0 %v2451_v63 }
 0x309   : > { %2491 = vmatpush1.xpose.msra.mxu0 %v2450_v48 }
 0x30a   : > { %2492 = vmatprep.subr.mxu0 %v2449_v16 }
 0x30d   : > { %2493 = vmatpush1.xpose.msra.mxu0 %v2448_v56 }
 0x30e   : > { %2494 = vmatprep.subr.mxu0 %v2447_v59 }
 0x311   : > { %2495 = vmatpush1.xpose.msra.mxu0 %v4236_v13 }
 0x312   : > { %2496 = vmatprep.subr.mxu0 %v4232_v51 }
 0x315   : > { %2497 = vmatpush1.xpose.msra.mxu0 %v4229_v17 }
 0x316   : > { %2498 = vmatprep.subr.mxu0 %v4226_v44 }
 0x319   : > { %2499 = vmatpush1.xpose.msra.mxu0 %v4223_v29 }
 0x31a   : > { %2500 = vmatprep.subr.mxu0 %v4220_v24 }
 0x31d   : > { %2501 = vmatpush1.xpose.msra.mxu0 %v4216_v47 }
 0x31e   : > { %2502 = vmatprep.subr.mxu0 %v4212_v62 }
 0x321   : > { %2503 = vmatpush1.xpose.msra.mxu0 %v4208_v55  ;;  %v4366_v55 = vld [vmem:[#allocation17_spill] sm:$0xff] }
 0x322   : > { %2504 = vmatprep.subr.mxu0 %v4204_v40  ;;  %v2475_v40 = vrot.slane %v4190_v12, %v4366_v55 }
 0x325   : > { %2505 = vmatpush1.xpose.msra.mxu0 %v4197_v31 }
 0x326   : > { %2506 = vmatprep.subr.mxu0 %v4193_v36 }
 0x329   : > { %2507 = vmatpush1.xpose.msra.mxu0 %v4187_v32 }
 0x32a   : > { %2508 = vmatprep.subr.mxu0 %v4183_v58 }
 0x32d   : > { %2509 = vmatpush1.xpose.msra.mxu0 %v4179_v39 }
 0x32e   : > { %2510 = vmatprep.subr.mxu0 %v4175_v9 }
 0x331   : > { %2511 = vmatpush1.xpose.msra.mxu0 %v4171_v23 }
 0x332   : > { %2512 = vmatprep.subr.mxu0 %v4164_v45 }
 0x335   : > { %2513 = vmatpush1.xpose.msra.mxu0 %v4160_v11 }
 0x338   : > { %2547 = vmatmul.mubr.f32.vlgmr.msra.gmra.mxu0 %v2475_v40 }
 0x34d   : > { %v2465_v36 = vpop.permute.xlu0 %2464 }
 0x34e   : > { %v2470_v32 = vrot.slane %v2465_v36, %v4366_v55 }
 0x3f8   : > { %v2548_v39 = vpop.f32.mrf.mxu0 }
 0x3f9   : > { %v2549_v9 = vadd.f32 %v2548_v39, %v2470_v32 }
 0x3fa   : > { %v2550_v45 = vpop.f32.mrf.mxu0 }
 0x3fb   : > { %2552 = vst [vmem:[%s284_s27] sm:$0x1] %v2549_v9 }
 0x3fc   : > { %3204 = shalt.err (!%p3201_p9)
}
 0x3fd   : > { %s3205_s12 = scalar_lea.hbm %s4276_s17, 16  ;;  %s3209_s19 = scalar_lea.hbm %s4318_s5, 32 }
 0x3fe   : > { %p3206_p1 = scmp.ne.s32.totalorder %s4276_s17, %s3205_s12  ;;  %p3210_p11 = scmp.lt.s32.totalorder %s4276_s17, %s4318_s5 }
 0x3ff   : > { %p3211_p13 = scmp.lt.s32.totalorder %s3209_s19, %s3205_s12 }
 0x400   : > { %p3207_p8 = pnand %p3206_p1, %p4367_p6 }
 0x401   : > { %p3212_p2 = por %p3211_p13, %p3210_p11 }
 0x402   : > { %p3208_p10 = pneg %p3207_p8 }
 0x404   : > { %p3213_p4 = pnand %p3212_p2, %p3208_p10 }
 0x406   : > { %3216 = shalt.err (!%p3213_p4)
}
 0x407   : > { %2695 = dma.vmem_to_hbm [thread:$0]  (%p4367_p6), %s2567_s13, 16, %s4276_s17, %s2554_s10  }
 0x408 PF: > { %s2578_s30 = sand.u32 1, %s3251_s20   ;;  %p4368_p12 = scmp.ne.s32.totalorder %s4328_s26, 0 }
 0x409   : > { %p4369_p0 = scmp.ge.s32.totalorder %s3263_s23, 2  ;;  %s2579_s25 = scalar_lea.sflag [#allocation5], %s2578_s30 }
 0x40b   : > { %p2712_p5 = pnand %p4369_p0, %p4368_p12 }
 0x40d   : > { %p2713_p3 = pneg %p2712_p5 }
 0x40f   : > { %3246 = dma.done.wait (%p2713_p3), %s2579_s25, 16  }
 0x410   : > { %3248 = vsyncadd (%p2713_p3), %s2579_s25, 4294967280  ;;  %p22_p7 = scmp.ge.s32.totalorder %s3388_s28, 4   ;;  %s4370_s20 = smov %s3255_s21 }
 0x411   : > { %s4371_s21 = smov %s3259_s22  ;;  %s4372_s22 = smov %s3398_s6 }
 0x412   : > { %s4373_s23 = smov %s3388_s28  ;;  %24 = sbr.rel (!%p22_p7) target bundleno = 10 (0xa), region = 97 }
 0x417   :  { %2583 = vsyncpa [#allocation4], 1 }
 0x418   :  { %2585 = vsyncpa [#allocation4 + $0x1], 1 }
 0x419   :  { %2586 = vsyncpa [#allocation7], 1 }
 0x41a   :  { %2587 = vsyncpa [#allocation10], 1 }
 0x41b   :  { %2588 = vsyncpa [#allocation5], 1 }
 0x41c   :  { %2590 = vsyncpa [#allocation5 + $0x1], 1 }

</bundles_post_ra>
